<compile_context>
chip_gen: v5e
topology: v5e:2x2
jax: 0.10.0
libtpu: 0.0.40
codegen_flags: <defaults>
</compile_context>

<pallas_src>
import math

import jax
import jax.numpy as jnp
from jax.experimental import pallas as pl
from jax.experimental.pallas import tpu as pltpu

_EPS = 1e-5
_LANE = 128


def _round_up(v, m):
    return -(-v // m) * m


def _channel_moments_1pass(x, count):
    """Per-channel (last axis) mean / biased variance, single fused pass.

    Safe when `x` contains zero-padded halo/channel entries (they add 0 to both sums).
    """
    s1, s2 = x, x * x
    while s1.ndim > 2:
        s1 = jnp.sum(s1, axis=0)
        s2 = jnp.sum(s2, axis=0)
    s1 = jnp.sum(s1, axis=0, keepdims=True)
    s2 = jnp.sum(s2, axis=0, keepdims=True)
    mean = s1 / count
    var = jnp.maximum(s2 / count - mean * mean, 0.0)   # biased variance, clamped
    return mean, var


def _channel_moments_2pass(x2d, count):
    """Two-pass (centered) per-channel mean / biased variance for MXU outputs."""
    mean = jnp.sum(x2d, axis=0, keepdims=True) / count
    cent = x2d - mean
    var = jnp.sum(cent * cent, axis=0, keepdims=True) / count
    return mean, cent, var


def _make_kernel(N, H, W, Cin_p, Cp_p, s, has_down):
    Ho = (H - 1) // s + 1
    Wo = (W - 1) // s + 1
    Ha = -(-(H + 2) // s)
    Wa = -(-(W + 2) // s)
    M = N * Ho * Wo
    n_in = 11 if has_down else 7
    f32, bf16 = jnp.float32, jnp.bfloat16

    def _valid_range(p, full):
        # Static range of in-bounds indices inside a padded phase (padded coord a*s+p
        # must lie in [1, full]).
        lo = 1 if p == 0 else 0
        hi = min(-(-(full + 2) // s) - 1, (full - p) // s)
        return lo, hi

    def kernel(*refs):
        x_ref, g1_ref, b1_ref, w1_ref, g2_ref, b2_ref, w2_ref = refs[:7]
        if has_down:
            wd_ref, bd_ref, gd_ref, betad_ref = refs[7:11]
        out_ref = refs[n_in]
        y1s_ref, y2p_ref, p1_ref, p2_ref = refs[n_in + 1:n_in + 5]

        # s==1: (N,H,W,Cin_p) raw input; s>1: (s*s,N,Ha,Wa,Cin_p) padded+phase-decomposed.
        x_all = x_ref[...]

        # ---------------- BN1: one pass over x (zero halo / zero channels add nothing) -
        mean1, var1 = _channel_moments_1pass(x_all, float(N * H * W))
        scale1 = (g1_ref[...] * jax.lax.rsqrt(var1 + _EPS)).reshape(1, 1, 1, Cin_p)
        shift1 = b1_ref[...].reshape(1, 1, 1, Cin_p) \
            - mean1.reshape(1, 1, 1, Cin_p) * scale1

        # ---------------- y1 = relu(bn1(x)), computed ONCE into a zero-halo scratch ----
        if s == 1:
            y1s_ref[:, 0:1, :, :] = jnp.zeros((N, 1, W + 2, Cin_p), f32)
            y1s_ref[:, H + 1:H + 2, :, :] = jnp.zeros((N, 1, W + 2, Cin_p), f32)
            y1s_ref[:, :, 0:1, :] = jnp.zeros((N, H + 2, 1, Cin_p), f32)
            y1s_ref[:, :, W + 1:W + 2, :] = jnp.zeros((N, H + 2, 1, Cin_p), f32)
            y1s_ref[:, 1:H + 1, 1:W + 1, :] = jnp.maximum(x_all * scale1 + shift1, 0.0)

            def tap1(dy, dx):
                return y1s_ref[:, dy:dy + Ho, dx:dx + Wo, :]
        else:
            # per-phase: zero only the (static) invalid border rows/cols, then one slab
            # store of relu(bn1(x)) over the valid box — no mask tensor, no recompute.
            for p in range(s):
                a_lo, a_hi = _valid_range(p, H)
                for q in range(s):
                    b_lo, b_hi = _valid_range(q, W)
                    pq = p * s + q
                    if a_lo > 0:
                        y1s_ref[pq, :, 0:a_lo, :, :] = \
                            jnp.zeros((N, a_lo, Wa, Cin_p), f32)
                    if a_hi + 1 < Ha:
                        y1s_ref[pq, :, a_hi + 1:Ha, :, :] = \
                            jnp.zeros((N, Ha - a_hi - 1, Wa, Cin_p), f32)
                    if b_lo > 0:
                        y1s_ref[pq, :, :, 0:b_lo, :] = \
                            jnp.zeros((N, Ha, b_lo, Cin_p), f32)
                    if b_hi + 1 < Wa:
                        y1s_ref[pq, :, :, b_hi + 1:Wa, :] = \
                            jnp.zeros((N, Ha, Wa - b_hi - 1, Cin_p), f32)
                    xv = x_all[pq, :, a_lo:a_hi + 1, b_lo:b_hi + 1, :]
                    y1s_ref[pq, :, a_lo:a_hi + 1, b_lo:b_hi + 1, :] = \
                        jnp.maximum(xv * scale1 + shift1, 0.0)

            def tap1(dy, dx):
                pq = (dy % s) * s + (dx % s)
                a0, b0 = dy // s, dx // s
                return y1s_ref[pq, :, a0:a0 + Ho, b0:b0 + Wo, :]

        # ---------------- conv1: bf16 im2col (lane-aligned column blocks, no per-tap
        # reshape) + single bf16 MXU matmul with f32 accumulation ------------------------
        for dy in range(3):
            for dx in range(3):
                t = dy * 3 + dx
                p1_ref[:, :, :, t * Cin_p:(t + 1) * Cin_p] = tap1(dy, dx).astype(bf16)
        acc1 = jnp.dot(p1_ref[...].reshape(M, 9 * Cin_p), w1_ref[...],
                       preferred_element_type=f32)                          # (M, Cp_p)

        # ---------------- BN2 + ReLU (two-pass centered variance) ----------------------
        mean2, cent2, var2 = _channel_moments_2pass(acc1, float(M))
        y2 = jnp.maximum(cent2 * (g2_ref[...] * jax.lax.rsqrt(var2 + _EPS))
                         + b2_ref[...], 0.0)

        # ---------------- y2 -> zero-halo padded scratch (single slab store) -----------
        y2p_ref[:, 0:1, :, :] = jnp.zeros((N, 1, Wo + 2, Cp_p), f32)
        y2p_ref[:, Ho + 1:Ho + 2, :, :] = jnp.zeros((N, 1, Wo + 2, Cp_p), f32)
        y2p_ref[:, :, 0:1, :] = jnp.zeros((N, Ho + 2, 1, Cp_p), f32)
        y2p_ref[:, :, Wo + 1:Wo + 2, :] = jnp.zeros((N, Ho + 2, 1, Cp_p), f32)
        y2p_ref[:, 1:Ho + 1, 1:Wo + 1, :] = y2.reshape(N, Ho, Wo, Cp_p)

        # ---------------- conv2: bf16 im2col + single bf16 MXU matmul ------------------
        for dy in range(3):
            for dx in range(3):
                t = dy * 3 + dx
                p2_ref[:, :, :, t * Cp_p:(t + 1) * Cp_p] = \
                    y2p_ref[:, dy:dy + Ho, dx:dx + Wo, :].astype(bf16)
        acc2 = jnp.dot(p2_ref[...].reshape(M, 9 * Cp_p), w2_ref[...],
                       preferred_element_type=f32)                          # (M, Cp_p)

        # ---------------- identity / downsample (1x1 conv stride s + bias + BN) --------
        if s == 1:
            xs = x_all.reshape(M, Cin_p)
        else:
            pq_id = (1 % s) * s + (1 % s)
            o_id = 1 // s
            xs = x_all[pq_id, :, o_id:o_id + Ho, o_id:o_id + Wo, :].reshape(M, Cin_p)
        if has_down:
            idc = jnp.dot(xs.astype(bf16), wd_ref[...],
                          preferred_element_type=f32) + bd_ref[...]
            meand, centd, vard = _channel_moments_2pass(idc, float(M))
            identity = centd * (gd_ref[...] * jax.lax.rsqrt(vard + _EPS)) + betad_ref[...]
        else:
            identity = xs                                 # Cin == Cp and s == 1

        # lane-dense (M, Cp_p) slab store (unmasked vst); padded channels stay zero
        out_ref[...] = (acc2 + identity).astype(out_ref.dtype)

    return kernel


def _vmem_bytes(shape, dtype):
    """VMEM footprint of one buffer including dtype-dependent (sublane,128) tiling."""
    dt = jnp.dtype(dtype)
    sublanes = {4: 8, 2: 16, 1: 32}.get(dt.itemsize, 8)
    pad = list(shape)
    if len(pad) >= 2:
        pad[-2] = _round_up(pad[-2], sublanes)
    pad[-1] = _round_up(pad[-1], _LANE)
    return math.prod(pad) * dt.itemsize


def _pad_last(a, width):
    extra = width - a.shape[-1]
    if extra == 0:
        return a
    return jnp.pad(a, [(0, 0)] * (a.ndim - 1) + [(0, extra)])


def preactivation_block(x_nchw, params, stride):
    """Forward pass of PreactivationBlock.  x_nchw: (N, Cin, H, W) float32."""
    N, Cin, H, W = map(int, x_nchw.shape)
    Cp = int(params['w1'].shape[0])
    s = int(stride)
    has_down = (Cin != Cp) or (s != 1)

    Cin_p = _round_up(Cin, _LANE)          # lane-dense channel padding
    Cp_p = _round_up(Cp, _LANE)

    Ho = (H - 1) // s + 1
    Wo = (W - 1) // s + 1
    Ha = -(-(H + 2) // s)
    Wa = -(-(W + 2) // s)
    M = N * Ho * Wo
    f32, bf16 = jnp.float32, jnp.bfloat16

    # Layout glue only: NCHW -> NHWC with channels zero-padded to a 128-lane multiple.
    x = jnp.transpose(x_nchw, (0, 2, 3, 1)).astype(f32)
    if s == 1:
        x_in = jnp.zeros((N, H, W, Cin_p), f32).at[..., :Cin].set(x)
    else:
        # Single layout pass: channel pad + zero spatial pad + s*s phase decomposition so
        # every strided conv tap becomes a contiguous static slice inside the kernel.
        xpad = jnp.zeros((N, Ha * s, Wa * s, Cin_p), f32) \
                  .at[:, 1:H + 1, 1:W + 1, :Cin].set(x)
        x_in = xpad.reshape(N, Ha, s, Wa, s, Cin_p).transpose(2, 4, 0, 1, 3, 5) \
                   .reshape(s * s, N, Ha, Wa, Cin_p)
        # TODO(synk): fold this pad+phase pass into the kernel for production strided
        #   blocks to save one HBM round trip of the input.

    def conv_w(w, ci, ci_p, co, co_p):
        # OIHW -> HWIO, zero-pad I/O channels to lane multiples, im2col row layout, bf16.
        hwio = jnp.transpose(w, (2, 3, 1, 0))
        hwio = jnp.zeros((3, 3, ci_p, co_p), f32).at[:, :, :ci, :co].set(hwio)
        return hwio.reshape(9 * ci_p, co_p).astype(bf16)

    w1 = conv_w(params['w1'], Cin, Cin_p, Cp, Cp_p)
    w2 = conv_w(params['w2'], Cp, Cp_p, Cp, Cp_p)

    args = [x_in,
            _pad_last(params['g1'].reshape(1, Cin).astype(f32), Cin_p),
            _pad_last(params['b1'].reshape(1, Cin).astype(f32), Cin_p),
            w1,
            _pad_last(params['g2'].reshape(1, Cp).astype(f32), Cp_p),
            _pad_last(params['b2'].reshape(1, Cp).astype(f32), Cp_p),
            w2]
    if has_down:
        wd = jnp.zeros((Cin_p, Cp_p), f32) \
                .at[:Cin, :Cp].set(params['wd'].reshape(Cp, Cin).T).astype(bf16)
        args += [wd,
                 _pad_last(params['bd'].reshape(1, Cp).astype(f32), Cp_p),
                 _pad_last(params['gd'].reshape(1, Cp).astype(f32), Cp_p),
                 _pad_last(params['betad'].reshape(1, Cp).astype(f32), Cp_p)]

    y1_shape = (N, H + 2, W + 2, Cin_p) if s == 1 else (s * s, N, Ha, Wa, Cin_p)
    y2_shape = (N, Ho + 2, Wo + 2, Cp_p)
    p1_shape = (N, Ho, Wo, 9 * Cin_p)      # im2col patches, bf16, lane-aligned columns
    p2_shape = (N, Ho, Wo, 9 * Cp_p)
    scratch = [
        pltpu.VMEM(y1_shape, f32),         # relu(bn1(x)), zero halo
        pltpu.VMEM(y2_shape, f32),         # relu(bn2(conv1)), zero halo
        pltpu.VMEM(p1_shape, bf16),        # conv1 im2col patches (bf16 MXU operand)
        pltpu.VMEM(p2_shape, bf16),        # conv2 im2col patches (bf16 MXU operand)
    ]

    # VMEM budget: tile-padded footprint (dtype-aware), no double-counting of scratch
    # (gridless => nothing is double-buffered), headroom below physical VMEM.
    footprint = sum(_vmem_bytes(a.shape, a.dtype) for a in args)
    footprint += _vmem_bytes((M, Cp_p), f32)
    footprint += _vmem_bytes(y1_shape, f32) + _vmem_bytes(y2_shape, f32)
    footprint += _vmem_bytes(p1_shape, bf16) + _vmem_bytes(p2_shape, bf16)
    try:
        phys_vmem = int(pltpu.get_tpu_info().vmem_capacity_bytes)
    except Exception:
        phys_vmem = 64 << 20               # conservative (v7x per-TC) fallback
    vmem_limit = int(min(max(16 << 20, footprint + (4 << 20)), phys_vmem - (8 << 20)))

    kernel = _make_kernel(N, H, W, Cin_p, Cp_p, s, has_down)
    out2d = pl.pallas_call(
        kernel,
        out_shape=jax.ShapeDtypeStruct((M, Cp_p), f32),
        in_specs=[pl.BlockSpec(memory_space=pltpu.MemorySpace.VMEM)] * len(args),
        out_specs=pl.BlockSpec(memory_space=pltpu.MemorySpace.VMEM),
        scratch_shapes=scratch,
        compiler_params=pltpu.CompilerParams(vmem_limit_bytes=vmem_limit),
    )(*args)

    # kernel rows are ordered (n, i, j); slice off padded channels, NHWC -> NCHW.
    return out2d.reshape(N, Ho, Wo, Cp_p)[..., :Cp].transpose(0, 3, 1, 2)


# ----------------------------- pure-JAX reference (f32) -----------------------------
_REF_PREC = jax.lax.Precision.HIGHEST


def reference_block(x_nchw, params, stride):
    def bn(v, g, b):
        mean = jnp.mean(v, axis=(0, 2, 3), keepdims=True)
        var = jnp.mean((v - mean) ** 2, axis=(0, 2, 3), keepdims=True)
        return (v - mean) * jax.lax.rsqrt(var + _EPS) * g.reshape(1, -1, 1, 1) \
            + b.reshape(1, -1, 1, 1)

    def conv(v, w, s, pad):
        return jax.lax.conv_general_dilated(
            v, w, window_strides=(s, s), padding=[(pad, pad), (pad, pad)],
            dimension_numbers=('NCHW', 'OIHW', 'NCHW'), precision=_REF_PREC)

    Cin, Cp = x_nchw.shape[1], params['w1'].shape[0]
    identity = x_nchw
    h = jnp.maximum(bn(x_nchw, params['g1'], params['b1']), 0.0)
    h = conv(h, params['w1'], stride, 1)
    h = jnp.maximum(bn(h, params['g2'], params['b2']), 0.0)
    h = conv(h, params['w2'], 1, 1)
    if Cin != Cp or stride != 1:
        idc = conv(identity, params['wd'], stride, 0) + params['bd'].reshape(1, -1, 1, 1)
        identity = bn(idc, params['gd'], params['betad'])
    return h + identity


def init_params(key, in_planes, planes, stride):
    ks = jax.random.split(key, 10)
    p = {
        'w1': 0.2 * jax.random.normal(ks[0], (planes, in_planes, 3, 3), jnp.float32),
        'g1': 1.0 + 0.1 * jax.random.normal(ks[1], (in_planes,), jnp.float32),
        'b1': 0.1 * jax.random.normal(ks[2], (in_planes,), jnp.float32),
        'w2': 0.2 * jax.random.normal(ks[3], (planes, planes, 3, 3), jnp.float32),
        'g2': 1.0 + 0.1 * jax.random.normal(ks[4], (planes,), jnp.float32),
        'b2': 0.1 * jax.random.normal(ks[5], (planes,), jnp.float32),
    }
    if in_planes != planes or stride != 1:
        p['wd'] = 0.2 * jax.random.normal(ks[6], (planes, in_planes, 1, 1), jnp.float32)
        p['bd'] = 0.1 * jax.random.normal(ks[7], (planes,), jnp.float32)
        p['gd'] = 1.0 + 0.1 * jax.random.normal(ks[8], (planes,), jnp.float32)
        p['betad'] = 0.1 * jax.random.normal(ks[9], (planes,), jnp.float32)
    return p


if __name__ == "__main__":
    key = jax.random.PRNGKey(0)
    kx1, kp1, kx2, kp2 = jax.random.split(key, 4)

    # The kernel feeds the MXU bf16 operands (f32 accumulation); vs the all-f32
    # HIGHEST-precision reference this gives O(1e-2) absolute error at these magnitudes.
    TOL = 8e-2

    # Case 1: downsampling block (in_planes=4 -> planes=8, stride=2)
    x1 = jax.random.normal(kx1, (2, 4, 16, 16), jnp.float32)
    p1 = init_params(kp1, 4, 8, 2)
    out1 = jax.block_until_ready(preactivation_block(x1, p1, stride=2))
    ref1 = reference_block(x1, p1, 2)
    assert out1.shape == ref1.shape == (2, 8, 8, 8)
    err1 = float(jnp.max(jnp.abs(out1 - ref1)))
    assert err1 < TOL, f"case1 max error {err1}"

    # Case 2: identity block (same channels, stride=1, no downsample path)
    x2 = jax.random.normal(kx2, (2, 4, 8, 8), jnp.float32)
    p2 = init_params(kp2, 4, 4, 1)
    out2 = jax.block_until_ready(preactivation_block(x2, p2, stride=1))
    ref2 = reference_block(x2, p2, 1)
    assert out2.shape == ref2.shape == (2, 4, 8, 8)
    err2 = float(jnp.max(jnp.abs(out2 - ref2)))
    assert err2 < TOL, f"case2 max error {err2}"

    print("KERNEL_OK")
</pallas_src>

<mosaic_0001>
module attributes {stable_mosaic.version = 11 : i64} {
  func.func @kernel(%arg0: memref<4x2x9x9x128xf32, #tpu.memory_space<vmem>>, %arg1: memref<1x128xf32, #tpu.memory_space<vmem>>, %arg2: memref<1x128xf32, #tpu.memory_space<vmem>>, %arg3: memref<1152x128xbf16, #tpu.memory_space<vmem>>, %arg4: memref<1x128xf32, #tpu.memory_space<vmem>>, %arg5: memref<1x128xf32, #tpu.memory_space<vmem>>, %arg6: memref<1152x128xbf16, #tpu.memory_space<vmem>>, %arg7: memref<128x128xbf16, #tpu.memory_space<vmem>>, %arg8: memref<1x128xf32, #tpu.memory_space<vmem>>, %arg9: memref<1x128xf32, #tpu.memory_space<vmem>>, %arg10: memref<1x128xf32, #tpu.memory_space<vmem>>, %arg11: memref<128x128xf32, #tpu.memory_space<vmem>>, %arg12: memref<4x2x9x9x128xf32, #tpu.memory_space<vmem>>, %arg13: memref<2x10x10x128xf32, #tpu.memory_space<vmem>>, %arg14: memref<2x8x8x1152xbf16, #tpu.memory_space<vmem>>, %arg15: memref<2x8x8x1152xbf16, #tpu.memory_space<vmem>>) attributes {dimension_semantics = [], scalar_prefetch = 0 : i64, scratch_operands = 4 : i64, tpu.core_type = #tpu.core_type<tc>} {
    %c0 = arith.constant 0 : index
    %c0_0 = arith.constant 0 : index
    %c0_1 = arith.constant 0 : index
    %c0_2 = arith.constant 0 : index
    %c0_3 = arith.constant 0 : index
    %0 = vector.load %arg0[%c0, %c0_0, %c0_1, %c0_2, %c0_3] : memref<4x2x9x9x128xf32, #tpu.memory_space<vmem>>, vector<4x2x9x9x128xf32>
    %1 = arith.mulf %0, %0 : vector<4x2x9x9x128xf32>
    %cst = arith.constant dense<0.000000e+00> : vector<2x9x9x128xf32>
    %2 = vector.multi_reduction <add>, %0, %cst [0] : vector<4x2x9x9x128xf32> to vector<2x9x9x128xf32>
    %cst_4 = arith.constant dense<0.000000e+00> : vector<2x9x9x128xf32>
    %3 = vector.multi_reduction <add>, %1, %cst_4 [0] : vector<4x2x9x9x128xf32> to vector<2x9x9x128xf32>
    %cst_5 = arith.constant dense<0.000000e+00> : vector<9x9x128xf32>
    %4 = vector.multi_reduction <add>, %2, %cst_5 [0] : vector<2x9x9x128xf32> to vector<9x9x128xf32>
    %cst_6 = arith.constant dense<0.000000e+00> : vector<9x9x128xf32>
    %5 = vector.multi_reduction <add>, %3, %cst_6 [0] : vector<2x9x9x128xf32> to vector<9x9x128xf32>
    %cst_7 = arith.constant dense<0.000000e+00> : vector<9x128xf32>
    %6 = vector.multi_reduction <add>, %4, %cst_7 [0] : vector<9x9x128xf32> to vector<9x128xf32>
    %cst_8 = arith.constant dense<0.000000e+00> : vector<9x128xf32>
    %7 = vector.multi_reduction <add>, %5, %cst_8 [0] : vector<9x9x128xf32> to vector<9x128xf32>
    %cst_9 = arith.constant dense<0.000000e+00> : vector<128xf32>
    %8 = vector.multi_reduction <add>, %6, %cst_9 [0] : vector<9x128xf32> to vector<128xf32>
    %9 = vector.shape_cast %8 : vector<128xf32> to vector<1x128xf32>
    %cst_10 = arith.constant dense<0.000000e+00> : vector<128xf32>
    %10 = vector.multi_reduction <add>, %7, %cst_10 [0] : vector<9x128xf32> to vector<128xf32>
    %11 = vector.shape_cast %10 : vector<128xf32> to vector<1x128xf32>
    %cst_11 = arith.constant 5.120000e+02 : f32
    %12 = vector.broadcast %cst_11 : f32 to vector<1x128xf32>
    %13 = arith.divf %9, %12 : vector<1x128xf32>
    %cst_12 = arith.constant 5.120000e+02 : f32
    %14 = vector.broadcast %cst_12 : f32 to vector<1x128xf32>
    %15 = arith.divf %11, %14 : vector<1x128xf32>
    %16 = arith.mulf %13, %13 : vector<1x128xf32>
    %17 = arith.subf %15, %16 : vector<1x128xf32>
    %cst_13 = arith.constant 0.000000e+00 : f32
    %18 = vector.broadcast %cst_13 : f32 to vector<1x128xf32>
    %19 = arith.maximumf %17, %18 : vector<1x128xf32>
    %c0_14 = arith.constant 0 : index
    %c0_15 = arith.constant 0 : index
    %20 = vector.load %arg1[%c0_14, %c0_15] : memref<1x128xf32, #tpu.memory_space<vmem>>, vector<1x128xf32>
    %cst_16 = arith.constant 9.99999974E-6 : f32
    %21 = vector.broadcast %cst_16 : f32 to vector<1x128xf32>
    %22 = arith.addf %19, %21 : vector<1x128xf32>
    %23 = math.rsqrt %22 : vector<1x128xf32>
    %24 = arith.mulf %20, %23 : vector<1x128xf32>
    %25 = vector.shape_cast %24 : vector<1x128xf32> to vector<1x1x1x128xf32>
    %c0_17 = arith.constant 0 : index
    %c0_18 = arith.constant 0 : index
    %26 = vector.load %arg2[%c0_17, %c0_18] : memref<1x128xf32, #tpu.memory_space<vmem>>, vector<1x128xf32>
    %27 = vector.shape_cast %26 : vector<1x128xf32> to vector<1x1x1x128xf32>
    %28 = vector.shape_cast %13 : vector<1x128xf32> to vector<1x1x1x128xf32>
    %29 = arith.mulf %28, %25 : vector<1x1x1x128xf32>
    %30 = arith.subf %27, %29 : vector<1x1x1x128xf32>
    %cst_19 = arith.constant 0.000000e+00 : f32
    %31 = vector.broadcast %cst_19 : f32 to vector<2x1x9x128xf32>
    %c0_20 = arith.constant 0 : index
    %c0_21 = arith.constant 0 : index
    %c0_22 = arith.constant 0 : index
    %c0_23 = arith.constant 0 : index
    %c0_24 = arith.constant 0 : index
    %32 = vector.load %arg12[%c0_20, %c0_21, %c0_22, %c0_23, %c0_24] : memref<4x2x9x9x128xf32, #tpu.memory_space<vmem>>, vector<1x2x1x9x128xf32>
    %33 = vector.shape_cast %32 : vector<1x2x1x9x128xf32> to vector<2x1x9x128xf32>
    %34 = vector.shape_cast %31 : vector<2x1x9x128xf32> to vector<1x2x1x9x128xf32>
    tpu.vector_store %arg12[%c0_20, %c0_21, %c0_22, %c0_23, %c0_24], %34 {strides = array<i32>} : memref<4x2x9x9x128xf32, #tpu.memory_space<vmem>>, vector<1x2x1x9x128xf32>,
    %cst_25 = arith.constant 0.000000e+00 : f32
    %35 = vector.broadcast %cst_25 : f32 to vector<2x9x1x128xf32>
    %c0_26 = arith.constant 0 : index
    %c0_27 = arith.constant 0 : index
    %c0_28 = arith.constant 0 : index
    %c0_29 = arith.constant 0 : index
    %c0_30 = arith.constant 0 : index
    %36 = vector.load %arg12[%c0_26, %c0_27, %c0_28, %c0_29, %c0_30] : memref<4x2x9x9x128xf32, #tpu.memory_space<vmem>>, vector<1x2x9x1x128xf32>
    %37 = vector.shape_cast %36 : vector<1x2x9x1x128xf32> to vector<2x9x1x128xf32>
    %38 = vector.shape_cast %35 : vector<2x9x1x128xf32> to vector<1x2x9x1x128xf32>
    tpu.vector_store %arg12[%c0_26, %c0_27, %c0_28, %c0_29, %c0_30], %38 {strides = array<i32>} : memref<4x2x9x9x128xf32, #tpu.memory_space<vmem>>, vector<1x2x9x1x128xf32>,
    %39 = vector.extract_strided_slice %0 {offsets = [0, 0, 1, 1, 0], sizes = [1, 2, 8, 8, 128], strides = [1, 1, 1, 1, 1]} : vector<4x2x9x9x128xf32> to vector<1x2x8x8x128xf32>
    %40 = vector.shape_cast %39 : vector<1x2x8x8x128xf32> to vector<2x8x8x128xf32>
    %41 = vector.broadcast %25 : vector<1x1x1x128xf32> to vector<2x8x8x128xf32>
    %42 = arith.mulf %40, %41 : vector<2x8x8x128xf32>
    %43 = vector.broadcast %30 : vector<1x1x1x128xf32> to vector<2x8x8x128xf32>
    %44 = arith.addf %42, %43 : vector<2x8x8x128xf32>
    %cst_31 = arith.constant 0.000000e+00 : f32
    %45 = vector.broadcast %cst_31 : f32 to vector<2x8x8x128xf32>
    %46 = arith.maximumf %44, %45 : vector<2x8x8x128xf32>
    %c0_32 = arith.constant 0 : index
    %c0_33 = arith.constant 0 : index
    %c1 = arith.constant 1 : index
    %c1_34 = arith.constant 1 : index
    %c0_35 = arith.constant 0 : index
    %47 = vector.load %arg12[%c0_32, %c0_33, %c1, %c1_34, %c0_35] : memref<4x2x9x9x128xf32, #tpu.memory_space<vmem>>, vector<1x2x8x8x128xf32>
    %48 = vector.shape_cast %47 : vector<1x2x8x8x128xf32> to vector<2x8x8x128xf32>
    %49 = vector.shape_cast %46 : vector<2x8x8x128xf32> to vector<1x2x8x8x128xf32>
    tpu.vector_store %arg12[%c0_32, %c0_33, %c1, %c1_34, %c0_35], %49 {strides = array<i32>} : memref<4x2x9x9x128xf32, #tpu.memory_space<vmem>>, vector<1x2x8x8x128xf32>,
    %cst_36 = arith.constant 0.000000e+00 : f32
    %50 = vector.broadcast %cst_36 : f32 to vector<2x1x9x128xf32>
    %c1_37 = arith.constant 1 : index
    %c0_38 = arith.constant 0 : index
    %c0_39 = arith.constant 0 : index
    %c0_40 = arith.constant 0 : index
    %c0_41 = arith.constant 0 : index
    %51 = vector.load %arg12[%c1_37, %c0_38, %c0_39, %c0_40, %c0_41] : memref<4x2x9x9x128xf32, #tpu.memory_space<vmem>>, vector<1x2x1x9x128xf32>
    %52 = vector.shape_cast %51 : vector<1x2x1x9x128xf32> to vector<2x1x9x128xf32>
    %53 = vector.shape_cast %50 : vector<2x1x9x128xf32> to vector<1x2x1x9x128xf32>
    tpu.vector_store %arg12[%c1_37, %c0_38, %c0_39, %c0_40, %c0_41], %53 {strides = array<i32>} : memref<4x2x9x9x128xf32, #tpu.memory_space<vmem>>, vector<1x2x1x9x128xf32>,
    %cst_42 = arith.constant 0.000000e+00 : f32
    %54 = vector.broadcast %cst_42 : f32 to vector<2x9x1x128xf32>
    %c1_43 = arith.constant 1 : index
    %c0_44 = arith.constant 0 : index
    %c0_45 = arith.constant 0 : index
    %c8 = arith.constant 8 : index
    %c0_46 = arith.constant 0 : index
    %55 = vector.load %arg12[%c1_43, %c0_44, %c0_45, %c8, %c0_46] : memref<4x2x9x9x128xf32, #tpu.memory_space<vmem>>, vector<1x2x9x1x128xf32>
    %56 = vector.shape_cast %55 : vector<1x2x9x1x128xf32> to vector<2x9x1x128xf32>
    %57 = vector.shape_cast %54 : vector<2x9x1x128xf32> to vector<1x2x9x1x128xf32>
    tpu.vector_store %arg12[%c1_43, %c0_44, %c0_45, %c8, %c0_46], %57 {strides = array<i32>} : memref<4x2x9x9x128xf32, #tpu.memory_space<vmem>>, vector<1x2x9x1x128xf32>,
    %58 = vector.extract_strided_slice %0 {offsets = [1, 0, 1, 0, 0], sizes = [1, 2, 8, 8, 128], strides = [1, 1, 1, 1, 1]} : vector<4x2x9x9x128xf32> to vector<1x2x8x8x128xf32>
    %59 = vector.shape_cast %58 : vector<1x2x8x8x128xf32> to vector<2x8x8x128xf32>
    %60 = vector.broadcast %25 : vector<1x1x1x128xf32> to vector<2x8x8x128xf32>
    %61 = arith.mulf %59, %60 : vector<2x8x8x128xf32>
    %62 = vector.broadcast %30 : vector<1x1x1x128xf32> to vector<2x8x8x128xf32>
    %63 = arith.addf %61, %62 : vector<2x8x8x128xf32>
    %cst_47 = arith.constant 0.000000e+00 : f32
    %64 = vector.broadcast %cst_47 : f32 to vector<2x8x8x128xf32>
    %65 = arith.maximumf %63, %64 : vector<2x8x8x128xf32>
    %c1_48 = arith.constant 1 : index
    %c0_49 = arith.constant 0 : index
    %c1_50 = arith.constant 1 : index
    %c0_51 = arith.constant 0 : index
    %c0_52 = arith.constant 0 : index
    %66 = vector.load %arg12[%c1_48, %c0_49, %c1_50, %c0_51, %c0_52] : memref<4x2x9x9x128xf32, #tpu.memory_space<vmem>>, vector<1x2x8x8x128xf32>
    %67 = vector.shape_cast %66 : vector<1x2x8x8x128xf32> to vector<2x8x8x128xf32>
    %68 = vector.shape_cast %65 : vector<2x8x8x128xf32> to vector<1x2x8x8x128xf32>
    tpu.vector_store %arg12[%c1_48, %c0_49, %c1_50, %c0_51, %c0_52], %68 {strides = array<i32>} : memref<4x2x9x9x128xf32, #tpu.memory_space<vmem>>, vector<1x2x8x8x128xf32>,
    %cst_53 = arith.constant 0.000000e+00 : f32
    %69 = vector.broadcast %cst_53 : f32 to vector<2x1x9x128xf32>
    %c2 = arith.constant 2 : index
    %c0_54 = arith.constant 0 : index
    %c8_55 = arith.constant 8 : index
    %c0_56 = arith.constant 0 : index
    %c0_57 = arith.constant 0 : index
    %70 = vector.load %arg12[%c2, %c0_54, %c8_55, %c0_56, %c0_57] : memref<4x2x9x9x128xf32, #tpu.memory_space<vmem>>, vector<1x2x1x9x128xf32>
    %71 = vector.shape_cast %70 : vector<1x2x1x9x128xf32> to vector<2x1x9x128xf32>
    %72 = vector.shape_cast %69 : vector<2x1x9x128xf32> to vector<1x2x1x9x128xf32>
    tpu.vector_store %arg12[%c2, %c0_54, %c8_55, %c0_56, %c0_57], %72 {strides = array<i32>} : memref<4x2x9x9x128xf32, #tpu.memory_space<vmem>>, vector<1x2x1x9x128xf32>,
    %cst_58 = arith.constant 0.000000e+00 : f32
    %73 = vector.broadcast %cst_58 : f32 to vector<2x9x1x128xf32>
    %c2_59 = arith.constant 2 : index
    %c0_60 = arith.constant 0 : index
    %c0_61 = arith.constant 0 : index
    %c0_62 = arith.constant 0 : index
    %c0_63 = arith.constant 0 : index
    %74 = vector.load %arg12[%c2_59, %c0_60, %c0_61, %c0_62, %c0_63] : memref<4x2x9x9x128xf32, #tpu.memory_space<vmem>>, vector<1x2x9x1x128xf32>
    %75 = vector.shape_cast %74 : vector<1x2x9x1x128xf32> to vector<2x9x1x128xf32>
    %76 = vector.shape_cast %73 : vector<2x9x1x128xf32> to vector<1x2x9x1x128xf32>
    tpu.vector_store %arg12[%c2_59, %c0_60, %c0_61, %c0_62, %c0_63], %76 {strides = array<i32>} : memref<4x2x9x9x128xf32, #tpu.memory_space<vmem>>, vector<1x2x9x1x128xf32>,
    %77 = vector.extract_strided_slice %0 {offsets = [2, 0, 0, 1, 0], sizes = [1, 2, 8, 8, 128], strides = [1, 1, 1, 1, 1]} : vector<4x2x9x9x128xf32> to vector<1x2x8x8x128xf32>
    %78 = vector.shape_cast %77 : vector<1x2x8x8x128xf32> to vector<2x8x8x128xf32>
    %79 = vector.broadcast %25 : vector<1x1x1x128xf32> to vector<2x8x8x128xf32>
    %80 = arith.mulf %78, %79 : vector<2x8x8x128xf32>
    %81 = vector.broadcast %30 : vector<1x1x1x128xf32> to vector<2x8x8x128xf32>
    %82 = arith.addf %80, %81 : vector<2x8x8x128xf32>
    %cst_64 = arith.constant 0.000000e+00 : f32
    %83 = vector.broadcast %cst_64 : f32 to vector<2x8x8x128xf32>
    %84 = arith.maximumf %82, %83 : vector<2x8x8x128xf32>
    %c2_65 = arith.constant 2 : index
    %c0_66 = arith.constant 0 : index
    %c0_67 = arith.constant 0 : index
    %c1_68 = arith.constant 1 : index
    %c0_69 = arith.constant 0 : index
    %85 = vector.load %arg12[%c2_65, %c0_66, %c0_67, %c1_68, %c0_69] : memref<4x2x9x9x128xf32, #tpu.memory_space<vmem>>, vector<1x2x8x8x128xf32>
    %86 = vector.shape_cast %85 : vector<1x2x8x8x128xf32> to vector<2x8x8x128xf32>
    %87 = vector.shape_cast %84 : vector<2x8x8x128xf32> to vector<1x2x8x8x128xf32>
    tpu.vector_store %arg12[%c2_65, %c0_66, %c0_67, %c1_68, %c0_69], %87 {strides = array<i32>} : memref<4x2x9x9x128xf32, #tpu.memory_space<vmem>>, vector<1x2x8x8x128xf32>,
    %cst_70 = arith.constant 0.000000e+00 : f32
    %88 = vector.broadcast %cst_70 : f32 to vector<2x1x9x128xf32>
    %c3 = arith.constant 3 : index
    %c0_71 = arith.constant 0 : index
    %c8_72 = arith.constant 8 : index
    %c0_73 = arith.constant 0 : index
    %c0_74 = arith.constant 0 : index
    %89 = vector.load %arg12[%c3, %c0_71, %c8_72, %c0_73, %c0_74] : memref<4x2x9x9x128xf32, #tpu.memory_space<vmem>>, vector<1x2x1x9x128xf32>
    %90 = vector.shape_cast %89 : vector<1x2x1x9x128xf32> to vector<2x1x9x128xf32>
    %91 = vector.shape_cast %88 : vector<2x1x9x128xf32> to vector<1x2x1x9x128xf32>
    tpu.vector_store %arg12[%c3, %c0_71, %c8_72, %c0_73, %c0_74], %91 {strides = array<i32>} : memref<4x2x9x9x128xf32, #tpu.memory_space<vmem>>, vector<1x2x1x9x128xf32>,
    %cst_75 = arith.constant 0.000000e+00 : f32
    %92 = vector.broadcast %cst_75 : f32 to vector<2x9x1x128xf32>
    %c3_76 = arith.constant 3 : index
    %c0_77 = arith.constant 0 : index
    %c0_78 = arith.constant 0 : index
    %c8_79 = arith.constant 8 : index
    %c0_80 = arith.constant 0 : index
    %93 = vector.load %arg12[%c3_76, %c0_77, %c0_78, %c8_79, %c0_80] : memref<4x2x9x9x128xf32, #tpu.memory_space<vmem>>, vector<1x2x9x1x128xf32>
    %94 = vector.shape_cast %93 : vector<1x2x9x1x128xf32> to vector<2x9x1x128xf32>
    %95 = vector.shape_cast %92 : vector<2x9x1x128xf32> to vector<1x2x9x1x128xf32>
    tpu.vector_store %arg12[%c3_76, %c0_77, %c0_78, %c8_79, %c0_80], %95 {strides = array<i32>} : memref<4x2x9x9x128xf32, #tpu.memory_space<vmem>>, vector<1x2x9x1x128xf32>,
    %96 = vector.extract_strided_slice %0 {offsets = [3, 0, 0, 0, 0], sizes = [1, 2, 8, 8, 128], strides = [1, 1, 1, 1, 1]} : vector<4x2x9x9x128xf32> to vector<1x2x8x8x128xf32>
    %97 = vector.shape_cast %96 : vector<1x2x8x8x128xf32> to vector<2x8x8x128xf32>
    %98 = vector.broadcast %25 : vector<1x1x1x128xf32> to vector<2x8x8x128xf32>
    %99 = arith.mulf %97, %98 : vector<2x8x8x128xf32>
    %100 = vector.broadcast %30 : vector<1x1x1x128xf32> to vector<2x8x8x128xf32>
    %101 = arith.addf %99, %100 : vector<2x8x8x128xf32>
    %cst_81 = arith.constant 0.000000e+00 : f32
    %102 = vector.broadcast %cst_81 : f32 to vector<2x8x8x128xf32>
    %103 = arith.maximumf %101, %102 : vector<2x8x8x128xf32>
    %c3_82 = arith.constant 3 : index
    %c0_83 = arith.constant 0 : index
    %c0_84 = arith.constant 0 : index
    %c0_85 = arith.constant 0 : index
    %c0_86 = arith.constant 0 : index
    %104 = vector.load %arg12[%c3_82, %c0_83, %c0_84, %c0_85, %c0_86] : memref<4x2x9x9x128xf32, #tpu.memory_space<vmem>>, vector<1x2x8x8x128xf32>
    %105 = vector.shape_cast %104 : vector<1x2x8x8x128xf32> to vector<2x8x8x128xf32>
    %106 = vector.shape_cast %103 : vector<2x8x8x128xf32> to vector<1x2x8x8x128xf32>
    tpu.vector_store %arg12[%c3_82, %c0_83, %c0_84, %c0_85, %c0_86], %106 {strides = array<i32>} : memref<4x2x9x9x128xf32, #tpu.memory_space<vmem>>, vector<1x2x8x8x128xf32>,
    %c0_87 = arith.constant 0 : index
    %c0_88 = arith.constant 0 : index
    %c0_89 = arith.constant 0 : index
    %c0_90 = arith.constant 0 : index
    %c0_91 = arith.constant 0 : index
    %107 = vector.load %arg12[%c0_87, %c0_88, %c0_89, %c0_90, %c0_91] : memref<4x2x9x9x128xf32, #tpu.memory_space<vmem>>, vector<1x2x8x8x128xf32>
    %108 = vector.shape_cast %107 : vector<1x2x8x8x128xf32> to vector<2x8x8x128xf32>
    %109 = arith.truncf %108 : vector<2x8x8x128xf32> to vector<2x8x8x128xbf16>
    %c0_92 = arith.constant 0 : index
    %c0_93 = arith.constant 0 : index
    %c0_94 = arith.constant 0 : index
    %c0_95 = arith.constant 0 : index
    %110 = vector.load %arg14[%c0_92, %c0_93, %c0_94, %c0_95] : memref<2x8x8x1152xbf16, #tpu.memory_space<vmem>>, vector<2x8x8x128xbf16>
    tpu.vector_store %arg14[%c0_92, %c0_93, %c0_94, %c0_95], %109 {strides = array<i32>} : memref<2x8x8x1152xbf16, #tpu.memory_space<vmem>>, vector<2x8x8x128xbf16>,
    %c1_96 = arith.constant 1 : index
    %c0_97 = arith.constant 0 : index
    %c0_98 = arith.constant 0 : index
    %c0_99 = arith.constant 0 : index
    %c0_100 = arith.constant 0 : index
    %111 = vector.load %arg12[%c1_96, %c0_97, %c0_98, %c0_99, %c0_100] : memref<4x2x9x9x128xf32, #tpu.memory_space<vmem>>, vector<1x2x8x8x128xf32>
    %112 = vector.shape_cast %111 : vector<1x2x8x8x128xf32> to vector<2x8x8x128xf32>
    %113 = arith.truncf %112 : vector<2x8x8x128xf32> to vector<2x8x8x128xbf16>
    %c0_101 = arith.constant 0 : index
    %c0_102 = arith.constant 0 : index
    %c0_103 = arith.constant 0 : index
    %c128 = arith.constant 128 : index
    %114 = vector.load %arg14[%c0_101, %c0_102, %c0_103, %c128] : memref<2x8x8x1152xbf16, #tpu.memory_space<vmem>>, vector<2x8x8x128xbf16>
    tpu.vector_store %arg14[%c0_101, %c0_102, %c0_103, %c128], %113 {strides = array<i32>} : memref<2x8x8x1152xbf16, #tpu.memory_space<vmem>>, vector<2x8x8x128xbf16>,
    %c0_104 = arith.constant 0 : index
    %c0_105 = arith.constant 0 : index
    %c0_106 = arith.constant 0 : index
    %c1_107 = arith.constant 1 : index
    %c0_108 = arith.constant 0 : index
    %115 = vector.load %arg12[%c0_104, %c0_105, %c0_106, %c1_107, %c0_108] : memref<4x2x9x9x128xf32, #tpu.memory_space<vmem>>, vector<1x2x8x8x128xf32>
    %116 = vector.shape_cast %115 : vector<1x2x8x8x128xf32> to vector<2x8x8x128xf32>
    %117 = arith.truncf %116 : vector<2x8x8x128xf32> to vector<2x8x8x128xbf16>
    %c0_109 = arith.constant 0 : index
    %c0_110 = arith.constant 0 : index
    %c0_111 = arith.constant 0 : index
    %c256 = arith.constant 256 : index
    %118 = vector.load %arg14[%c0_109, %c0_110, %c0_111, %c256] : memref<2x8x8x1152xbf16, #tpu.memory_space<vmem>>, vector<2x8x8x128xbf16>
    tpu.vector_store %arg14[%c0_109, %c0_110, %c0_111, %c256], %117 {strides = array<i32>} : memref<2x8x8x1152xbf16, #tpu.memory_space<vmem>>, vector<2x8x8x128xbf16>,
    %c2_112 = arith.constant 2 : index
    %c0_113 = arith.constant 0 : index
    %c0_114 = arith.constant 0 : index
    %c0_115 = arith.constant 0 : index
    %c0_116 = arith.constant 0 : index
    %119 = vector.load %arg12[%c2_112, %c0_113, %c0_114, %c0_115, %c0_116] : memref<4x2x9x9x128xf32, #tpu.memory_space<vmem>>, vector<1x2x8x8x128xf32>
    %120 = vector.shape_cast %119 : vector<1x2x8x8x128xf32> to vector<2x8x8x128xf32>
    %121 = arith.truncf %120 : vector<2x8x8x128xf32> to vector<2x8x8x128xbf16>
    %c0_117 = arith.constant 0 : index
    %c0_118 = arith.constant 0 : index
    %c0_119 = arith.constant 0 : index
    %c384 = arith.constant 384 : index
    %122 = vector.load %arg14[%c0_117, %c0_118, %c0_119, %c384] : memref<2x8x8x1152xbf16, #tpu.memory_space<vmem>>, vector<2x8x8x128xbf16>
    tpu.vector_store %arg14[%c0_117, %c0_118, %c0_119, %c384], %121 {strides = array<i32>} : memref<2x8x8x1152xbf16, #tpu.memory_space<vmem>>, vector<2x8x8x128xbf16>,
    %c3_120 = arith.constant 3 : index
    %c0_121 = arith.constant 0 : index
    %c0_122 = arith.constant 0 : index
    %c0_123 = arith.constant 0 : index
    %c0_124 = arith.constant 0 : index
    %123 = vector.load %arg12[%c3_120, %c0_121, %c0_122, %c0_123, %c0_124] : memref<4x2x9x9x128xf32, #tpu.memory_space<vmem>>, vector<1x2x8x8x128xf32>
    %124 = vector.shape_cast %123 : vector<1x2x8x8x128xf32> to vector<2x8x8x128xf32>
    %125 = arith.truncf %124 : vector<2x8x8x128xf32> to vector<2x8x8x128xbf16>
    %c0_125 = arith.constant 0 : index
    %c0_126 = arith.constant 0 : index
    %c0_127 = arith.constant 0 : index
    %c512 = arith.constant 512 : index
    %126 = vector.load %arg14[%c0_125, %c0_126, %c0_127, %c512] : memref<2x8x8x1152xbf16, #tpu.memory_space<vmem>>, vector<2x8x8x128xbf16>
    tpu.vector_store %arg14[%c0_125, %c0_126, %c0_127, %c512], %125 {strides = array<i32>} : memref<2x8x8x1152xbf16, #tpu.memory_space<vmem>>, vector<2x8x8x128xbf16>,
    %c2_128 = arith.constant 2 : index
    %c0_129 = arith.constant 0 : index
    %c0_130 = arith.constant 0 : index
    %c1_131 = arith.constant 1 : index
    %c0_132 = arith.constant 0 : index
    %127 = vector.load %arg12[%c2_128, %c0_129, %c0_130, %c1_131, %c0_132] : memref<4x2x9x9x128xf32, #tpu.memory_space<vmem>>, vector<1x2x8x8x128xf32>
    %128 = vector.shape_cast %127 : vector<1x2x8x8x128xf32> to vector<2x8x8x128xf32>
    %129 = arith.truncf %128 : vector<2x8x8x128xf32> to vector<2x8x8x128xbf16>
    %c0_133 = arith.constant 0 : index
    %c0_134 = arith.constant 0 : index
    %c0_135 = arith.constant 0 : index
    %c640 = arith.constant 640 : index
    %130 = vector.load %arg14[%c0_133, %c0_134, %c0_135, %c640] : memref<2x8x8x1152xbf16, #tpu.memory_space<vmem>>, vector<2x8x8x128xbf16>
    tpu.vector_store %arg14[%c0_133, %c0_134, %c0_135, %c640], %129 {strides = array<i32>} : memref<2x8x8x1152xbf16, #tpu.memory_space<vmem>>, vector<2x8x8x128xbf16>,
    %c0_136 = arith.constant 0 : index
    %c0_137 = arith.constant 0 : index
    %c1_138 = arith.constant 1 : index
    %c0_139 = arith.constant 0 : index
    %c0_140 = arith.constant 0 : index
    %131 = vector.load %arg12[%c0_136, %c0_137, %c1_138, %c0_139, %c0_140] : memref<4x2x9x9x128xf32, #tpu.memory_space<vmem>>, vector<1x2x8x8x128xf32>
    %132 = vector.shape_cast %131 : vector<1x2x8x8x128xf32> to vector<2x8x8x128xf32>
    %133 = arith.truncf %132 : vector<2x8x8x128xf32> to vector<2x8x8x128xbf16>
    %c0_141 = arith.constant 0 : index
    %c0_142 = arith.constant 0 : index
    %c0_143 = arith.constant 0 : index
    %c768 = arith.constant 768 : index
    %134 = vector.load %arg14[%c0_141, %c0_142, %c0_143, %c768] : memref<2x8x8x1152xbf16, #tpu.memory_space<vmem>>, vector<2x8x8x128xbf16>
    tpu.vector_store %arg14[%c0_141, %c0_142, %c0_143, %c768], %133 {strides = array<i32>} : memref<2x8x8x1152xbf16, #tpu.memory_space<vmem>>, vector<2x8x8x128xbf16>,
    %c1_144 = arith.constant 1 : index
    %c0_145 = arith.constant 0 : index
    %c1_146 = arith.constant 1 : index
    %c0_147 = arith.constant 0 : index
    %c0_148 = arith.constant 0 : index
    %135 = vector.load %arg12[%c1_144, %c0_145, %c1_146, %c0_147, %c0_148] : memref<4x2x9x9x128xf32, #tpu.memory_space<vmem>>, vector<1x2x8x8x128xf32>
    %136 = vector.shape_cast %135 : vector<1x2x8x8x128xf32> to vector<2x8x8x128xf32>
    %137 = arith.truncf %136 : vector<2x8x8x128xf32> to vector<2x8x8x128xbf16>
    %c0_149 = arith.constant 0 : index
    %c0_150 = arith.constant 0 : index
    %c0_151 = arith.constant 0 : index
    %c896 = arith.constant 896 : index
    %138 = vector.load %arg14[%c0_149, %c0_150, %c0_151, %c896] : memref<2x8x8x1152xbf16, #tpu.memory_space<vmem>>, vector<2x8x8x128xbf16>
    tpu.vector_store %arg14[%c0_149, %c0_150, %c0_151, %c896], %137 {strides = array<i32>} : memref<2x8x8x1152xbf16, #tpu.memory_space<vmem>>, vector<2x8x8x128xbf16>,
    %c0_152 = arith.constant 0 : index
    %c0_153 = arith.constant 0 : index
    %c1_154 = arith.constant 1 : index
    %c1_155 = arith.constant 1 : index
    %c0_156 = arith.constant 0 : index
    %139 = vector.load %arg12[%c0_152, %c0_153, %c1_154, %c1_155, %c0_156] : memref<4x2x9x9x128xf32, #tpu.memory_space<vmem>>, vector<1x2x8x8x128xf32>
    %140 = vector.shape_cast %139 : vector<1x2x8x8x128xf32> to vector<2x8x8x128xf32>
    %141 = arith.truncf %140 : vector<2x8x8x128xf32> to vector<2x8x8x128xbf16>
    %c0_157 = arith.constant 0 : index
    %c0_158 = arith.constant 0 : index
    %c0_159 = arith.constant 0 : index
    %c1024 = arith.constant 1024 : index
    %142 = vector.load %arg14[%c0_157, %c0_158, %c0_159, %c1024] : memref<2x8x8x1152xbf16, #tpu.memory_space<vmem>>, vector<2x8x8x128xbf16>
    tpu.vector_store %arg14[%c0_157, %c0_158, %c0_159, %c1024], %141 {strides = array<i32>} : memref<2x8x8x1152xbf16, #tpu.memory_space<vmem>>, vector<2x8x8x128xbf16>,
    %c0_160 = arith.constant 0 : index
    %c0_161 = arith.constant 0 : index
    %c0_162 = arith.constant 0 : index
    %c0_163 = arith.constant 0 : index
    %143 = vector.load %arg14[%c0_160, %c0_161, %c0_162, %c0_163] : memref<2x8x8x1152xbf16, #tpu.memory_space<vmem>>, vector<2x8x8x1152xbf16>
    %144 = vector.shape_cast %143 : vector<2x8x8x1152xbf16> to vector<128x1152xbf16>
    %c0_164 = arith.constant 0 : index
    %c0_165 = arith.constant 0 : index
    %145 = vector.load %arg3[%c0_164, %c0_165] : memref<1152x128xbf16, #tpu.memory_space<vmem>>, vector<1152x128xbf16>
    %cst_166 = arith.constant dense<0.000000e+00> : vector<128x128xf32>
    %146 = tpu.matmul %144, %145, %cst_166 {dimension_numbers = #tpu.dot_dimension_numbers<[1], [0], [0], [1], [0, 0, 1, 1], [], []>} : vector<128x1152xbf16>, vector<1152x128xbf16>, vector<128x128xf32> -> vector<128x128xf32>
    %cst_167 = arith.constant dense<0.000000e+00> : vector<128xf32>
    %147 = vector.multi_reduction <add>, %146, %cst_167 [0] : vector<128x128xf32> to vector<128xf32>
    %148 = vector.shape_cast %147 : vector<128xf32> to vector<1x128xf32>
    %cst_168 = arith.constant 1.280000e+02 : f32
    %149 = vector.broadcast %cst_168 : f32 to vector<1x128xf32>
    %150 = arith.divf %148, %149 : vector<1x128xf32>
    %151 = vector.broadcast %150 : vector<1x128xf32> to vector<128x128xf32>
    %152 = arith.subf %146, %151 : vector<128x128xf32>
    %153 = arith.mulf %152, %152 : vector<128x128xf32>
    %cst_169 = arith.constant dense<0.000000e+00> : vector<128xf32>
    %154 = vector.multi_reduction <add>, %153, %cst_169 [0] : vector<128x128xf32> to vector<128xf32>
    %155 = vector.shape_cast %154 : vector<128xf32> to vector<1x128xf32>
    %cst_170 = arith.constant 1.280000e+02 : f32
    %156 = vector.broadcast %cst_170 : f32 to vector<1x128xf32>
    %157 = arith.divf %155, %156 : vector<1x128xf32>
    %c0_171 = arith.constant 0 : index
    %c0_172 = arith.constant 0 : index
    %158 = vector.load %arg4[%c0_171, %c0_172] : memref<1x128xf32, #tpu.memory_space<vmem>>, vector<1x128xf32>
    %cst_173 = arith.constant 9.99999974E-6 : f32
    %159 = vector.broadcast %cst_173 : f32 to vector<1x128xf32>
    %160 = arith.addf %157, %159 : vector<1x128xf32>
    %161 = math.rsqrt %160 : vector<1x128xf32>
    %162 = arith.mulf %158, %161 : vector<1x128xf32>
    %163 = vector.broadcast %162 : vector<1x128xf32> to vector<128x128xf32>
    %164 = arith.mulf %152, %163 : vector<128x128xf32>
    %c0_174 = arith.constant 0 : index
    %c0_175 = arith.constant 0 : index
    %165 = vector.load %arg5[%c0_174, %c0_175] : memref<1x128xf32, #tpu.memory_space<vmem>>, vector<1x128xf32>
    %166 = vector.broadcast %165 : vector<1x128xf32> to vector<128x128xf32>
    %167 = arith.addf %164, %166 : vector<128x128xf32>
    %cst_176 = arith.constant 0.000000e+00 : f32
    %168 = vector.broadcast %cst_176 : f32 to vector<128x128xf32>
    %169 = arith.maximumf %167, %168 : vector<128x128xf32>
    %cst_177 = arith.constant 0.000000e+00 : f32
    %170 = vector.broadcast %cst_177 : f32 to vector<2x1x10x128xf32>
    %c0_178 = arith.constant 0 : index
    %c0_179 = arith.constant 0 : index
    %c0_180 = arith.constant 0 : index
    %c0_181 = arith.constant 0 : index
    %171 = vector.load %arg13[%c0_178, %c0_179, %c0_180, %c0_181] : memref<2x10x10x128xf32, #tpu.memory_space<vmem>>, vector<2x1x10x128xf32>
    tpu.vector_store %arg13[%c0_178, %c0_179, %c0_180, %c0_181], %170 {strides = array<i32>} : memref<2x10x10x128xf32, #tpu.memory_space<vmem>>, vector<2x1x10x128xf32>,
    %cst_182 = arith.constant 0.000000e+00 : f32
    %172 = vector.broadcast %cst_182 : f32 to vector<2x1x10x128xf32>
    %c0_183 = arith.constant 0 : index
    %c9 = arith.constant 9 : index
    %c0_184 = arith.constant 0 : index
    %c0_185 = arith.constant 0 : index
    %173 = vector.load %arg13[%c0_183, %c9, %c0_184, %c0_185] : memref<2x10x10x128xf32, #tpu.memory_space<vmem>>, vector<2x1x10x128xf32>
    tpu.vector_store %arg13[%c0_183, %c9, %c0_184, %c0_185], %172 {strides = array<i32>} : memref<2x10x10x128xf32, #tpu.memory_space<vmem>>, vector<2x1x10x128xf32>,
    %cst_186 = arith.constant 0.000000e+00 : f32
    %174 = vector.broadcast %cst_186 : f32 to vector<2x10x1x128xf32>
    %c0_187 = arith.constant 0 : index
    %c0_188 = arith.constant 0 : index
    %c0_189 = arith.constant 0 : index
    %c0_190 = arith.constant 0 : index
    %175 = vector.load %arg13[%c0_187, %c0_188, %c0_189, %c0_190] : memref<2x10x10x128xf32, #tpu.memory_space<vmem>>, vector<2x10x1x128xf32>
    tpu.vector_store %arg13[%c0_187, %c0_188, %c0_189, %c0_190], %174 {strides = array<i32>} : memref<2x10x10x128xf32, #tpu.memory_space<vmem>>, vector<2x10x1x128xf32>,
    %cst_191 = arith.constant 0.000000e+00 : f32
    %176 = vector.broadcast %cst_191 : f32 to vector<2x10x1x128xf32>
    %c0_192 = arith.constant 0 : index
    %c0_193 = arith.constant 0 : index
    %c9_194 = arith.constant 9 : index
    %c0_195 = arith.constant 0 : index
    %177 = vector.load %arg13[%c0_192, %c0_193, %c9_194, %c0_195] : memref<2x10x10x128xf32, #tpu.memory_space<vmem>>, vector<2x10x1x128xf32>
    tpu.vector_store %arg13[%c0_192, %c0_193, %c9_194, %c0_195], %176 {strides = array<i32>} : memref<2x10x10x128xf32, #tpu.memory_space<vmem>>, vector<2x10x1x128xf32>,
    %178 = vector.shape_cast %169 : vector<128x128xf32> to vector<2x8x8x128xf32>
    %c0_196 = arith.constant 0 : index
    %c1_197 = arith.constant 1 : index
    %c1_198 = arith.constant 1 : index
    %c0_199 = arith.constant 0 : index
    %179 = vector.load %arg13[%c0_196, %c1_197, %c1_198, %c0_199] : memref<2x10x10x128xf32, #tpu.memory_space<vmem>>, vector<2x8x8x128xf32>
    tpu.vector_store %arg13[%c0_196, %c1_197, %c1_198, %c0_199], %178 {strides = array<i32>} : memref<2x10x10x128xf32, #tpu.memory_space<vmem>>, vector<2x8x8x128xf32>,
    %c0_200 = arith.constant 0 : index
    %c0_201 = arith.constant 0 : index
    %c0_202 = arith.constant 0 : index
    %c0_203 = arith.constant 0 : index
    %180 = vector.load %arg13[%c0_200, %c0_201, %c0_202, %c0_203] : memref<2x10x10x128xf32, #tpu.memory_space<vmem>>, vector<2x8x8x128xf32>
    %181 = arith.truncf %180 : vector<2x8x8x128xf32> to vector<2x8x8x128xbf16>
    %c0_204 = arith.constant 0 : index
    %c0_205 = arith.constant 0 : index
    %c0_206 = arith.constant 0 : index
    %c0_207 = arith.constant 0 : index
    %182 = vector.load %arg15[%c0_204, %c0_205, %c0_206, %c0_207] : memref<2x8x8x1152xbf16, #tpu.memory_space<vmem>>, vector<2x8x8x128xbf16>
    tpu.vector_store %arg15[%c0_204, %c0_205, %c0_206, %c0_207], %181 {strides = array<i32>} : memref<2x8x8x1152xbf16, #tpu.memory_space<vmem>>, vector<2x8x8x128xbf16>,
    %c0_208 = arith.constant 0 : index
    %c0_209 = arith.constant 0 : index
    %c1_210 = arith.constant 1 : index
    %c0_211 = arith.constant 0 : index
    %183 = vector.load %arg13[%c0_208, %c0_209, %c1_210, %c0_211] : memref<2x10x10x128xf32, #tpu.memory_space<vmem>>, vector<2x8x8x128xf32>
    %184 = arith.truncf %183 : vector<2x8x8x128xf32> to vector<2x8x8x128xbf16>
    %c0_212 = arith.constant 0 : index
    %c0_213 = arith.constant 0 : index
    %c0_214 = arith.constant 0 : index
    %c128_215 = arith.constant 128 : index
    %185 = vector.load %arg15[%c0_212, %c0_213, %c0_214, %c128_215] : memref<2x8x8x1152xbf16, #tpu.memory_space<vmem>>, vector<2x8x8x128xbf16>
    tpu.vector_store %arg15[%c0_212, %c0_213, %c0_214, %c128_215], %184 {strides = array<i32>} : memref<2x8x8x1152xbf16, #tpu.memory_space<vmem>>, vector<2x8x8x128xbf16>,
    %c0_216 = arith.constant 0 : index
    %c0_217 = arith.constant 0 : index
    %c2_218 = arith.constant 2 : index
    %c0_219 = arith.constant 0 : index
    %186 = vector.load %arg13[%c0_216, %c0_217, %c2_218, %c0_219] : memref<2x10x10x128xf32, #tpu.memory_space<vmem>>, vector<2x8x8x128xf32>
    %187 = arith.truncf %186 : vector<2x8x8x128xf32> to vector<2x8x8x128xbf16>
    %c0_220 = arith.constant 0 : index
    %c0_221 = arith.constant 0 : index
    %c0_222 = arith.constant 0 : index
    %c256_223 = arith.constant 256 : index
    %188 = vector.load %arg15[%c0_220, %c0_221, %c0_222, %c256_223] : memref<2x8x8x1152xbf16, #tpu.memory_space<vmem>>, vector<2x8x8x128xbf16>
    tpu.vector_store %arg15[%c0_220, %c0_221, %c0_222, %c256_223], %187 {strides = array<i32>} : memref<2x8x8x1152xbf16, #tpu.memory_space<vmem>>, vector<2x8x8x128xbf16>,
    %c0_224 = arith.constant 0 : index
    %c1_225 = arith.constant 1 : index
    %c0_226 = arith.constant 0 : index
    %c0_227 = arith.constant 0 : index
    %189 = vector.load %arg13[%c0_224, %c1_225, %c0_226, %c0_227] : memref<2x10x10x128xf32, #tpu.memory_space<vmem>>, vector<2x8x8x128xf32>
    %190 = arith.truncf %189 : vector<2x8x8x128xf32> to vector<2x8x8x128xbf16>
    %c0_228 = arith.constant 0 : index
    %c0_229 = arith.constant 0 : index
    %c0_230 = arith.constant 0 : index
    %c384_231 = arith.constant 384 : index
    %191 = vector.load %arg15[%c0_228, %c0_229, %c0_230, %c384_231] : memref<2x8x8x1152xbf16, #tpu.memory_space<vmem>>, vector<2x8x8x128xbf16>
    tpu.vector_store %arg15[%c0_228, %c0_229, %c0_230, %c384_231], %190 {strides = array<i32>} : memref<2x8x8x1152xbf16, #tpu.memory_space<vmem>>, vector<2x8x8x128xbf16>,
    %c0_232 = arith.constant 0 : index
    %c1_233 = arith.constant 1 : index
    %c1_234 = arith.constant 1 : index
    %c0_235 = arith.constant 0 : index
    %192 = vector.load %arg13[%c0_232, %c1_233, %c1_234, %c0_235] : memref<2x10x10x128xf32, #tpu.memory_space<vmem>>, vector<2x8x8x128xf32>
    %193 = arith.truncf %192 : vector<2x8x8x128xf32> to vector<2x8x8x128xbf16>
    %c0_236 = arith.constant 0 : index
    %c0_237 = arith.constant 0 : index
    %c0_238 = arith.constant 0 : index
    %c512_239 = arith.constant 512 : index
    %194 = vector.load %arg15[%c0_236, %c0_237, %c0_238, %c512_239] : memref<2x8x8x1152xbf16, #tpu.memory_space<vmem>>, vector<2x8x8x128xbf16>
    tpu.vector_store %arg15[%c0_236, %c0_237, %c0_238, %c512_239], %193 {strides = array<i32>} : memref<2x8x8x1152xbf16, #tpu.memory_space<vmem>>, vector<2x8x8x128xbf16>,
    %c0_240 = arith.constant 0 : index
    %c1_241 = arith.constant 1 : index
    %c2_242 = arith.constant 2 : index
    %c0_243 = arith.constant 0 : index
    %195 = vector.load %arg13[%c0_240, %c1_241, %c2_242, %c0_243] : memref<2x10x10x128xf32, #tpu.memory_space<vmem>>, vector<2x8x8x128xf32>
    %196 = arith.truncf %195 : vector<2x8x8x128xf32> to vector<2x8x8x128xbf16>
    %c0_244 = arith.constant 0 : index
    %c0_245 = arith.constant 0 : index
    %c0_246 = arith.constant 0 : index
    %c640_247 = arith.constant 640 : index
    %197 = vector.load %arg15[%c0_244, %c0_245, %c0_246, %c640_247] : memref<2x8x8x1152xbf16, #tpu.memory_space<vmem>>, vector<2x8x8x128xbf16>
    tpu.vector_store %arg15[%c0_244, %c0_245, %c0_246, %c640_247], %196 {strides = array<i32>} : memref<2x8x8x1152xbf16, #tpu.memory_space<vmem>>, vector<2x8x8x128xbf16>,
    %c0_248 = arith.constant 0 : index
    %c2_249 = arith.constant 2 : index
    %c0_250 = arith.constant 0 : index
    %c0_251 = arith.constant 0 : index
    %198 = vector.load %arg13[%c0_248, %c2_249, %c0_250, %c0_251] : memref<2x10x10x128xf32, #tpu.memory_space<vmem>>, vector<2x8x8x128xf32>
    %199 = arith.truncf %198 : vector<2x8x8x128xf32> to vector<2x8x8x128xbf16>
    %c0_252 = arith.constant 0 : index
    %c0_253 = arith.constant 0 : index
    %c0_254 = arith.constant 0 : index
    %c768_255 = arith.constant 768 : index
    %200 = vector.load %arg15[%c0_252, %c0_253, %c0_254, %c768_255] : memref<2x8x8x1152xbf16, #tpu.memory_space<vmem>>, vector<2x8x8x128xbf16>
    tpu.vector_store %arg15[%c0_252, %c0_253, %c0_254, %c768_255], %199 {strides = array<i32>} : memref<2x8x8x1152xbf16, #tpu.memory_space<vmem>>, vector<2x8x8x128xbf16>,
    %c0_256 = arith.constant 0 : index
    %c2_257 = arith.constant 2 : index
    %c1_258 = arith.constant 1 : index
    %c0_259 = arith.constant 0 : index
    %201 = vector.load %arg13[%c0_256, %c2_257, %c1_258, %c0_259] : memref<2x10x10x128xf32, #tpu.memory_space<vmem>>, vector<2x8x8x128xf32>
    %202 = arith.truncf %201 : vector<2x8x8x128xf32> to vector<2x8x8x128xbf16>
    %c0_260 = arith.constant 0 : index
    %c0_261 = arith.constant 0 : index
    %c0_262 = arith.constant 0 : index
    %c896_263 = arith.constant 896 : index
    %203 = vector.load %arg15[%c0_260, %c0_261, %c0_262, %c896_263] : memref<2x8x8x1152xbf16, #tpu.memory_space<vmem>>, vector<2x8x8x128xbf16>
    tpu.vector_store %arg15[%c0_260, %c0_261, %c0_262, %c896_263], %202 {strides = array<i32>} : memref<2x8x8x1152xbf16, #tpu.memory_space<vmem>>, vector<2x8x8x128xbf16>,
    %c0_264 = arith.constant 0 : index
    %c2_265 = arith.constant 2 : index
    %c2_266 = arith.constant 2 : index
    %c0_267 = arith.constant 0 : index
    %204 = vector.load %arg13[%c0_264, %c2_265, %c2_266, %c0_267] : memref<2x10x10x128xf32, #tpu.memory_space<vmem>>, vector<2x8x8x128xf32>
    %205 = arith.truncf %204 : vector<2x8x8x128xf32> to vector<2x8x8x128xbf16>
    %c0_268 = arith.constant 0 : index
    %c0_269 = arith.constant 0 : index
    %c0_270 = arith.constant 0 : index
    %c1024_271 = arith.constant 1024 : index
    %206 = vector.load %arg15[%c0_268, %c0_269, %c0_270, %c1024_271] : memref<2x8x8x1152xbf16, #tpu.memory_space<vmem>>, vector<2x8x8x128xbf16>
    tpu.vector_store %arg15[%c0_268, %c0_269, %c0_270, %c1024_271], %205 {strides = array<i32>} : memref<2x8x8x1152xbf16, #tpu.memory_space<vmem>>, vector<2x8x8x128xbf16>,
    %c0_272 = arith.constant 0 : index
    %c0_273 = arith.constant 0 : index
    %c0_274 = arith.constant 0 : index
    %c0_275 = arith.constant 0 : index
    %207 = vector.load %arg15[%c0_272, %c0_273, %c0_274, %c0_275] : memref<2x8x8x1152xbf16, #tpu.memory_space<vmem>>, vector<2x8x8x1152xbf16>
    %208 = vector.shape_cast %207 : vector<2x8x8x1152xbf16> to vector<128x1152xbf16>
    %c0_276 = arith.constant 0 : index
    %c0_277 = arith.constant 0 : index
    %209 = vector.load %arg6[%c0_276, %c0_277] : memref<1152x128xbf16, #tpu.memory_space<vmem>>, vector<1152x128xbf16>
    %cst_278 = arith.constant dense<0.000000e+00> : vector<128x128xf32>
    %210 = tpu.matmul %208, %209, %cst_278 {dimension_numbers = #tpu.dot_dimension_numbers<[1], [0], [0], [1], [0, 0, 1, 1], [], []>} : vector<128x1152xbf16>, vector<1152x128xbf16>, vector<128x128xf32> -> vector<128x128xf32>
    %211 = vector.extract_strided_slice %0 {offsets = [3, 0, 0, 0, 0], sizes = [1, 2, 8, 8, 128], strides = [1, 1, 1, 1, 1]} : vector<4x2x9x9x128xf32> to vector<1x2x8x8x128xf32>
    %212 = vector.shape_cast %211 : vector<1x2x8x8x128xf32> to vector<2x8x8x128xf32>
    %213 = vector.shape_cast %212 : vector<2x8x8x128xf32> to vector<128x128xf32>
    %214 = arith.truncf %213 : vector<128x128xf32> to vector<128x128xbf16>
    %c0_279 = arith.constant 0 : index
    %c0_280 = arith.constant 0 : index
    %215 = vector.load %arg7[%c0_279, %c0_280] : memref<128x128xbf16, #tpu.memory_space<vmem>>, vector<128x128xbf16>
    %cst_281 = arith.constant dense<0.000000e+00> : vector<128x128xf32>
    %216 = tpu.matmul %214, %215, %cst_281 {dimension_numbers = #tpu.dot_dimension_numbers<[1], [0], [0], [1], [0, 0, 1, 1], [], []>} : vector<128x128xbf16>, vector<128x128xbf16>, vector<128x128xf32> -> vector<128x128xf32>
    %c0_282 = arith.constant 0 : index
    %c0_283 = arith.constant 0 : index
    %217 = vector.load %arg8[%c0_282, %c0_283] : memref<1x128xf32, #tpu.memory_space<vmem>>, vector<1x128xf32>
    %218 = vector.broadcast %217 : vector<1x128xf32> to vector<128x128xf32>
    %219 = arith.addf %216, %218 : vector<128x128xf32>
    %cst_284 = arith.constant dense<0.000000e+00> : vector<128xf32>
    %220 = vector.multi_reduction <add>, %219, %cst_284 [0] : vector<128x128xf32> to vector<128xf32>
    %221 = vector.shape_cast %220 : vector<128xf32> to vector<1x128xf32>
    %cst_285 = arith.constant 1.280000e+02 : f32
    %222 = vector.broadcast %cst_285 : f32 to vector<1x128xf32>
    %223 = arith.divf %221, %222 : vector<1x128xf32>
    %224 = vector.broadcast %223 : vector<1x128xf32> to vector<128x128xf32>
    %225 = arith.subf %219, %224 : vector<128x128xf32>
    %226 = arith.mulf %225, %225 : vector<128x128xf32>
    %cst_286 = arith.constant dense<0.000000e+00> : vector<128xf32>
    %227 = vector.multi_reduction <add>, %226, %cst_286 [0] : vector<128x128xf32> to vector<128xf32>
    %228 = vector.shape_cast %227 : vector<128xf32> to vector<1x128xf32>
    %cst_287 = arith.constant 1.280000e+02 : f32
    %229 = vector.broadcast %cst_287 : f32 to vector<1x128xf32>
    %230 = arith.divf %228, %229 : vector<1x128xf32>
    %c0_288 = arith.constant 0 : index
    %c0_289 = arith.constant 0 : index
    %231 = vector.load %arg9[%c0_288, %c0_289] : memref<1x128xf32, #tpu.memory_space<vmem>>, vector<1x128xf32>
    %cst_290 = arith.constant 9.99999974E-6 : f32
    %232 = vector.broadcast %cst_290 : f32 to vector<1x128xf32>
    %233 = arith.addf %230, %232 : vector<1x128xf32>
    %234 = math.rsqrt %233 : vector<1x128xf32>
    %235 = arith.mulf %231, %234 : vector<1x128xf32>
    %236 = vector.broadcast %235 : vector<1x128xf32> to vector<128x128xf32>
    %237 = arith.mulf %225, %236 : vector<128x128xf32>
    %c0_291 = arith.constant 0 : index
    %c0_292 = arith.constant 0 : index
    %238 = vector.load %arg10[%c0_291, %c0_292] : memref<1x128xf32, #tpu.memory_space<vmem>>, vector<1x128xf32>
    %239 = vector.broadcast %238 : vector<1x128xf32> to vector<128x128xf32>
    %240 = arith.addf %237, %239 : vector<128x128xf32>
    %241 = arith.addf %210, %240 : vector<128x128xf32>
    %c0_293 = arith.constant 0 : index
    %c0_294 = arith.constant 0 : index
    %242 = vector.load %arg11[%c0_293, %c0_294] : memref<128x128xf32, #tpu.memory_space<vmem>>, vector<128x128xf32>
    tpu.vector_store %arg11[%c0_293, %c0_294], %241 {strides = array<i32>} : memref<128x128xf32, #tpu.memory_space<vmem>>, vector<128x128xf32>,
    return
  }
}

</mosaic_0001>

<bundles_post_ra>
// kernel: tpu_custom_call.1
= control target key start
LH: loop header
LB: loop body
LE: loop exit
PB: predicated region body
PF: predicated region fallthrough
CT: control target
= control target key end

     0   :  { %vm330_vm0 = vcmask 1040384   ;;  %s11413_s0 = inlined_call_operand.vmem [shape: f32[4,2,9,9,128], index: 0, kind: input, shape index: {}]   ;;  %s11414_s1 = inlined_call_operand.vmem [shape: f32[1,128], index: 1, kind: input, shape index: {}]   ;;  %s11415_s2 = inlined_call_operand.vmem [shape: f32[1,128], index: 2, kind: input, shape index: {}]   ;;  %s11416_s3 = inlined_call_operand.vmem [shape: bf16[1152,128], index: 3, kind: input, shape index: {}]   ;;  %s11417_s4 = inlined_call_operand.vmem [shape: f32[1,128], index: 4, kind: input, shape index: {}]   ;;  %s11418_s5 = inlined_call_operand.vmem [shape: f32[1,128], index: 5, kind: input, shape index: {}]   ;;  %s11419_s6 = inlined_call_operand.vmem [shape: bf16[1152,128], index: 6, kind: input, shape index: {}]   ;;  %s11420_s7 = inlined_call_operand.vmem [shape: bf16[128,128], index: 7, kind: input, shape index: {}]   ;;  %s11421_s8 = inlined_call_operand.vmem [shape: f32[1,128], index: 8, kind: input, shape index: {}]   ;;  %s11422_s9 = inlined_call_operand.vmem [shape: f32[1,128], index: 9, kind: input, shape index: {}]   ;;  %s11423_s10 = inlined_call_operand.vmem [shape: f32[1,128], index: 10, kind: input, shape index: {}]   ;;  %s11424_s11 = inlined_call_operand.hbm [shape: f32[128,128], index: 11, kind: output, shape index: {}]  }
   0x1   :  { %v6901_v0 = vld [vmem:[%s11416_s3 + $0x38] sm:$0xff]  ;;  %v6900_v3 = vld [vmem:[%s11416_s3 + $0x30] sm:$0xff]  ;;  %v6899_v6 = vld [vmem:[%s11416_s3 + $0x28] sm:$0xff] }
   0x2   :  { %v6917_v1 = vld [vmem:[%s11416_s3 + $0xb8] sm:$0xff]  ;;  %2795 = vmatpush.bf16.msra.mxu0 %v6901_v0  ;;  %7118 = vmatpush.bf16.msra.mxu3 %v6901_v0  ;;  %v6916_v4 = vld [vmem:[%s11416_s3 + $0xb0] sm:$0xff]  ;;  %v6915_v7 = vld [vmem:[%s11416_s3 + $0xa8] sm:$0xff] }
   0x3   :  { %v7383_v2 = vld [vmem:[%s11416_s3 + $0x78] sm:$0xff]  ;;  %7134 = vmatpush.bf16.msra.mxu2 %v6917_v1  ;;  %v7395_v5 = vld [vmem:[%s11416_s3 + $0x70] sm:$0xff]  ;;  %v7407_v8 = vld [vmem:[%s11416_s3 + $0x68] sm:$0xff] }
   0x4   :  { %7126 = vmatpush.bf16.msra.mxu1 %v7383_v2  ;;  %v6898_v9 = vld [vmem:[%s11416_s3 + $0x20] sm:$0xff]  ;;  %v6897_v12 = vld [vmem:[%s11416_s3 + $0x18] sm:$0xff]  ;;  %v6896_v15 = vld [vmem:[%s11416_s3 + $0x10] sm:$0xff] }
   0x5   :  { %v6914_v10 = vld [vmem:[%s11416_s3 + $0xa0] sm:$0xff]  ;;  %v6913_v13 = vld [vmem:[%s11416_s3 + $0x98] sm:$0xff]  ;;  %v40_v17 = vld [vmem:[%s11413_s0 + $0x8] sm:$0x1] }
   0x6   :  { %2796 = vmatpush.bf16.msra.mxu0 %v6900_v3  ;;  %7119 = vmatpush.bf16.msra.mxu3 %v6900_v3  ;;  %v7419_v11 = vld [vmem:[%s11416_s3 + $0x60] sm:$0xff]  ;;  %v7431_v14 = vld [vmem:[%s11416_s3 + $0x58] sm:$0xff]  ;;  %v6912_v18 = vld [vmem:[%s11416_s3 + $0x90] sm:$0xff]  ;;  %v7526_v35 = vmul.f32 %v40_v17, %v40_v17  ;;  %v7659_v1 = vsel %vm330_vm0, %v40_v17, 0.0 }
   0x7   :  { %7135 = vmatpush.bf16.msra.mxu2 %v6916_v4  ;;  %v7439_v16 = vld [vmem:[%s11413_s0] sm:$0xff]  ;;  %v7450_v19 = vld [vmem:[%s11416_s3 + $0x50] sm:$0xff]  ;;  %v7460_v21 = vld [vmem:[%s11413_s0 + $0x18] sm:$0x1] }
   0x8   :  { %7127 = vmatpush.bf16.msra.mxu1 %v7395_v5  ;;  %v7455_v20 = vld [vmem:[%s11413_s0 + $0x10] sm:$0xff]  ;;  %v7465_v22 = vld [vmem:[%s11413_s0 + $0x98] sm:$0x1]  ;;  %v7470_v23 = vld [vmem:[%s11413_s0 + $0x28] sm:$0x1]  ;;  %11513 = vst [vmem:[#allocation15_spill] sm:$0xff] %v7526_v35  ;;  %v7530_v36 = vmul.f32 %v7460_v21, %v7460_v21  ;;  %v7571_v45 = vmul.f32 %v7439_v16, %v7439_v16 }
   0x9   :  { %11507 = vst [vmem:[#allocation9_spill] sm:$0xff] %v7465_v22  ;;  %v7475_v24 = vld [vmem:[%s11413_s0 + $0xa8] sm:$0x1]  ;;  %v7480_v25 = vld [vmem:[%s11413_s0 + $0xb8] sm:$0x1]  ;;  %v7486_v26 = vld [vmem:[%s11413_s0 + $0x20] sm:$0xff]  ;;  %v7534_v37 = vmul.f32 %v7465_v22, %v7465_v22  ;;  %v7575_v46 = vmul.f32 %v7470_v23, %v7470_v23  ;;  %v7615_v55 = vmul.f32 %v7455_v20, %v7455_v20 }
   0xa   :  { %2797 = vmatpush.bf16.msra.mxu0 %v6899_v6  ;;  %7120 = vmatpush.bf16.msra.mxu3 %v6899_v6  ;;  %11508 = vst [vmem:[#allocation10_spill] sm:$0xff] %v7475_v24  ;;  %v7491_v27 = vld [vmem:[%s11413_s0 + $0x38] sm:$0x1]  ;;  %v7496_v28 = vld [vmem:[%s11413_s0 + $0x48] sm:$0x1]  ;;  %v7501_v29 = vld [vmem:[%s11413_s0 + $0x90] sm:$0xff]  ;;  %v7579_v47 = vmul.f32 %v7475_v24, %v7475_v24  ;;  %v7583_v48 = vmul.f32 %v7480_v25, %v7480_v25 }
   0xb   :  { %7136 = vmatpush.bf16.msra.mxu2 %v6915_v7  ;;  %11509 = vst [vmem:[#allocation11_spill] sm:$0xff] %v7480_v25  ;;  %v6895_v30 = vld [vmem:[%s11416_s3 + $0x8] sm:$0xff]  ;;  %v7509_v31 = vld [vmem:[%s11413_s0 + $0x30] sm:$0xff]  ;;  %v7514_v32 = vld [vmem:[%s11413_s0 + $0xa0] sm:$0xff]  ;;  %v7619_v56 = vmul.f32 %v7491_v27, %v7491_v27  ;;  %v7623_v57 = vmul.f32 %v7501_v29, %v7501_v29 }
   0xc   :  { %7128 = vmatpush.bf16.msra.mxu1 %v7407_v8  ;;  %11510 = vst [vmem:[#allocation12_spill] sm:$0xff] %v7501_v29  ;;  %v7519_v33 = vld [vmem:[%s11413_s0 + $0xc8] sm:$0x1]  ;;  %v7524_v34 = vld [vmem:[%s11413_s0 + $0x120] sm:$0xff]  ;;  %v7552_v41 = vld [vmem:[%s11413_s0 + $0x50] sm:$0xff]  ;;  %v7648_v62 = vmul.f32 %v7514_v32, %v7514_v32 }
   0xd   :  { %11511 = vst [vmem:[#allocation13_spill] sm:$0xff] %v7514_v32  ;;  %v6911_v38 = vld [vmem:[%s11416_s3 + $0x88] sm:$0xff]  ;;  %v7547_v40 = vld [vmem:[%s11413_s0 + $0x40] sm:$0xff]  ;;  %v7557_v42 = vld [vmem:[%s11413_s0 + $0x58] sm:$0x1]  ;;  %v7652_v63 = vmul.f32 %v7519_v33, %v7519_v33  ;;  %v7656_v0 = vmul.f32 %v7524_v34, %v7524_v34 }
   0xe   :  { %2798 = vmatpush.bf16.msra.mxu0 %v6898_v9  ;;  %7121 = vmatpush.bf16.msra.mxu3 %v6898_v9  ;;  %11512 = vst [vmem:[#allocation14_spill] sm:$0xff] %v7519_v33  ;;  %v7542_v39 = vld [vmem:[%s11416_s3 + $0x48] sm:$0xff]  ;;  %v7562_v43 = vld [vmem:[%s11413_s0 + $0xb0] sm:$0xff]  ;;  %v7567_v44 = vld [vmem:[%s11413_s0 + $0xd8] sm:$0x1]  ;;  %v7681_v9 = vmul.f32 %v7486_v26, %v7486_v26 }
   0xf   :  { %7137 = vmatpush.bf16.msra.mxu2 %v6914_v10  ;;  %11514 = vst [vmem:[#allocation16_spill] sm:$0xff] %v7530_v36  ;;  %v7588_v49 = vld [vmem:[%s11413_s0 + $0x60] sm:$0xff]  ;;  %v7593_v50 = vld [vmem:[%s11413_s0 + $0x68] sm:$0x1]  ;;  %v7598_v51 = vld [vmem:[%s11413_s0 + $0x70] sm:$0xff]  ;;  %v7685_v10 = vmul.f32 %v7496_v28, %v7496_v28  ;;  %v7795_v36 = vsel %vm330_vm0, %v7460_v21, 0.0 }
  0x10   :  { %7129 = vmatpush.bf16.msra.mxu1 %v7419_v11  ;;  %11515 = vst [vmem:[#allocation17_spill] sm:$0xff] %v7534_v37  ;;  %v76_v52 = vld [vmem:[%s11413_s0 + $0x128] sm:$0x1]  ;;  %v7606_v53 = vld [vmem:[%s11413_s0 + $0x130] sm:$0xff]  ;;  %v7611_v54 = vld [vmem:[%s11413_s0 + $0x138] sm:$0x1] }
  0x11   :  { %11516 = vst [vmem:[#allocation18_spill] sm:$0xff] %v7562_v43  ;;  %v7629_v58 = vld [vmem:[%s11413_s0 + $0x78] sm:$0x1]  ;;  %v7634_v59 = vld [vmem:[%s11413_s0 + $0x80] sm:$0xff]  ;;  %v7639_v60 = vld [vmem:[%s11413_s0 + $0x88] sm:$0x1] }
  0x12   :  { %2799 = vmatpush.bf16.msra.mxu0 %v6897_v12  ;;  %7122 = vmatpush.bf16.msra.mxu3 %v6897_v12  ;;  %11517 = vst [vmem:[#allocation19_spill] sm:$0xff] %v7567_v44  ;;  %v7644_v61 = vld [vmem:[%s11413_s0 + $0xc0] sm:$0xff]  ;;  %v7667_v4 = vld [vmem:[%s11413_s0 + $0xd0] sm:$0xff]  ;;  %v7677_v7 = vld [vmem:[%s11413_s0 + $0xe8] sm:$0x1]  ;;  %v7689_v12 = vmul.f32 %v7562_v43, %v7562_v43  ;;  %v7818_v21 = vmul.f32 %v7634_v59, %v7634_v59 }
  0x13   :  { %7138 = vmatpush.bf16.msra.mxu2 %v6913_v13  ;;  %11518 = vst [vmem:[#allocation20_spill] sm:$0xff] %v7571_v45  ;;  %v6894_v3 = vld [vmem:[%s11416_s3] sm:$0xff]  ;;  %v7693_v13 = vmul.f32 %v7567_v44, %v7567_v44  ;;  %v7701_v17 = vld [vmem:[%s11413_s0 + $0xf0] sm:$0xff]  ;;  %v7740_v37 = vld [vmem:[%s11413_s0 + $0x118] sm:$0x1]  ;;  %v7858_v35 = vmul.f32 %v7677_v7, %v7677_v7  ;;  %v7862_v44 = vsel %vm330_vm0, %v7611_v54, 0.0 }
  0x14   :  { %7130 = vmatpush.bf16.msra.mxu1 %v7431_v14  ;;  %11519 = vst [vmem:[#allocation21_spill] sm:$0xff] %v7575_v46  ;;  %v7672_v6 = vld [vmem:[%s11413_s0 + $0xe0] sm:$0xff]  ;;  %v80_v46 = vld [vmem:[%s11413_s0 + $0x148] sm:$0x1] }
  0x15   :  { %11520 = vst [vmem:[#allocation22_spill] sm:$0xff] %v7579_v47  ;;  %v7730_v47 = vld [vmem:[%s11413_s0 + $0x108] sm:$0x1]  ;;  %v7854_v45 = vmul.f32 %v7672_v6, %v7672_v6  ;;  %v7974_v33 = vld [vmem:[%s11413_s0 + $0x200] sm:$0xff]  ;;  %v8004_v25 = vsel %vm330_vm0, %v80_v46, 0.0 }
  0x16   :  { %11521 = vst [vmem:[#allocation23_spill] sm:$0xff] %v7583_v48  ;;  %2800 = vmatpush.bf16.msra.mxu0 %v6896_v15  ;;  %7123 = vmatpush.bf16.msra.mxu3 %v6896_v15  ;;  %v6910_v15 = vld [vmem:[%s11416_s3 + $0x80] sm:$0xff]  ;;  %v7717_v48 = vmul.f32 %v76_v52, %v76_v52 }
  0x17   :  { %11522 = vst [vmem:[#allocation24_spill] sm:$0xff] %v7588_v49  ;;  %7139 = vmatpush.bf16.msra.mxu2 %v6912_v18  ;;  %v7706_v18 = vld [vmem:[%s11413_s0 + $0xf8] sm:$0x1]  ;;  %v8009_v32 = vld [vmem:[%s11413_s0 + $0x220] sm:$0xff] }
  0x18   :  { %11523 = vst [vmem:[#allocation25_spill] sm:$0xff] %v7593_v50  ;;  %7131 = vmatpush.bf16.msra.mxu1 %v7450_v19 }
  0x19   :  { %11524 = vst [vmem:[#allocation26_spill] sm:$0xff] %v7598_v51 }
  0x1a   :  { %11525 = vst [vmem:[#allocation27_spill] sm:$0xff] %v7615_v55  ;;  %2801 = vmatpush.bf16.msra.mxu0 %v6895_v30  ;;  %7124 = vmatpush.bf16.msra.mxu3 %v6895_v30  ;;  %v7749_v30 = vmul.f32 %v7547_v40, %v7547_v40  ;;  %v7822_v55 = vmul.f32 %v7639_v60, %v7639_v60 }
  0x1b   :  { %11526 = vst [vmem:[#allocation28_spill] sm:$0xff] %v7619_v56  ;;  %v7757_v56 = vmul.f32 %v7557_v42, %v7557_v42  ;;  %7140 = vmatpush.bf16.msra.mxu2 %v6911_v38  ;;  %v7779_v38 = vld [vmem:[%s11413_s0 + $0x160] sm:$0xff] }
  0x1c   :  { %11527 = vst [vmem:[#allocation29_spill] sm:$0xff] %v7623_v57  ;;  %v7735_v57 = vld [vmem:[%s11413_s0 + $0x110] sm:$0xff]  ;;  %7132 = vmatpush.bf16.msra.mxu1 %v7542_v39 }
  0x1d   :  { %11528 = vst [vmem:[#allocation30_spill] sm:$0xff] %v7629_v58 }
  0x1e   :  { %11529 = vst [vmem:[#allocation31_spill] sm:$0xff] %v7634_v59  ;;  %2802 = vmatpush.bf16.msra.mxu0 %v6894_v3  ;;  %7125 = vmatpush.bf16.msra.mxu3 %v6894_v3  ;;  %v7886_v3 = vmul.f32 %v7701_v17, %v7701_v17  ;;  %v8045_v59 = vld [vmem:[%s11413_s0 + $0x240] sm:$0xff] }
  0x1f   :  { %11530 = vst [vmem:[#allocation32_spill] sm:$0xff] %v7639_v60  ;;  %7141 = vmatpush.bf16.msra.mxu2 %v6910_v15  ;;  %v7922_v15 = vmul.f32 %v7730_v47, %v7730_v47 }
  0x20   :  { %11531 = vst [vmem:[#allocation33_spill] sm:$0xff] %v7644_v61 }
  0x21   :  { %11532 = vst [vmem:[#allocation34_spill] sm:$0xff] %v7648_v62  ;;  %v7725_v62 = vmul.f32 %v7611_v54, %v7611_v54  ;;  %v7882_v54 = vld [vmem:[%s11413_s0 + $0x1b8] sm:$0x1] }
  0x22   :  { %11533 = vst [vmem:[#allocation35_spill] sm:$0xff] %v7652_v63  ;;  %v7711_v63 = vld [vmem:[%s11413_s0 + $0x100] sm:$0xff]  ;;  %2844 = vmatpush.bf16.msrb.mxu0 %v7383_v2 }
  0x23   :  { %11534 = vst [vmem:[#allocation36_spill] sm:$0xff] %v7656_v0  ;;  %v7831_v0 = vld [vmem:[%s11413_s0 + $0x180] sm:$0xff] }
  0x24   :  { %11535 = vst [vmem:[#allocation37_spill] sm:$0xff] %v7667_v4 }
  0x25   :  { %11536 = vst [vmem:[#allocation38_spill] sm:$0xff] %v7672_v6  ;;  %v7894_v6 = vmul.f32 %v7711_v63, %v7711_v63 }
  0x26   :  { %11537 = vst [vmem:[#allocation39_spill] sm:$0xff] %v7677_v7  ;;  %v7898_v7 = vsel %vm330_vm0, %v7470_v23, 0.0  ;;  %v7918_v23 = vld [vmem:[%s11413_s0 + $0x1d8] sm:$0x1]  ;;  %2845 = vmatpush.bf16.msrb.mxu0 %v7395_v5 }
  0x27   :  { %11538 = vst [vmem:[#allocation40_spill] sm:$0xff] %v7681_v9  ;;  %v7760_v9 = vsel %vm330_vm0, %v76_v52, 0.0  ;;  %v7783_v52 = vmul.f32 %v7588_v49, %v7588_v49 }
  0x28   :  { %11539 = vst [vmem:[#allocation41_spill] sm:$0xff] %v7685_v10  ;;  %v7745_v10 = vld [vmem:[%s11413_s0 + $0x140] sm:$0xff] }
  0x29   :  { %11540 = vst [vmem:[#allocation42_spill] sm:$0xff] %v7689_v12  ;;  %v7721_v12 = vmul.f32 %v7606_v53, %v7606_v53 }
  0x2a   :  { %11541 = vst [vmem:[#allocation43_spill] sm:$0xff] %v7693_v13  ;;  %v7715_v13 = vmul.f32 %v7509_v31, %v7509_v31  ;;  %2846 = vmatpush.bf16.msrb.mxu0 %v7407_v8 }
  0x2b   :  { %11542 = vst [vmem:[#allocation44_spill] sm:$0xff] %v7701_v17  ;;  %v7934_v17 = vmul.f32 %v7745_v10, %v7745_v10 }
  0x2c   :  { %11543 = vst [vmem:[#allocation45_spill] sm:$0xff] %v7706_v18 }
  0x2d   :  { %11544 = vst [vmem:[#allocation46_spill] sm:$0xff] %v7711_v63  ;;  %v7930_v63 = vmul.f32 %v7740_v37, %v7740_v37 }
  0x2e   :  { %11545 = vst [vmem:[#allocation47_spill] sm:$0xff] %v7715_v13  ;;  %v7753_v13 = vmul.f32 %v7552_v41, %v7552_v41  ;;  %2847 = vmatpush.bf16.msrb.mxu0 %v7419_v11 }
  0x2f   :  { %11546 = vst [vmem:[#allocation48_spill] sm:$0xff] %v7717_v48  ;;  %v7826_v48 = vmul.f32 %v7644_v61, %v7644_v61  ;;  %v7867_v61 = vld [vmem:[%s11413_s0 + $0x1a0] sm:$0xff] }
  0x30   :  { %11547 = vst [vmem:[#allocation49_spill] sm:$0xff] %v7721_v12  ;;  %v7800_v12 = vld [vmem:[%s11413_s0 + $0x168] sm:$0x1] }
  0x31   :  { %11548 = vst [vmem:[#allocation50_spill] sm:$0xff] %v7725_v62  ;;  %v7791_v62 = vmul.f32 %v7598_v51, %v7598_v51  ;;  %v7993_v2 = vmul.f32 %v7800_v12, %v7800_v12 }
  0x32   :  { %11549 = vst [vmem:[#allocation51_spill] sm:$0xff] %v7730_v47  ;;  %v7968_v47 = vmul.f32 %v7779_v38, %v7779_v38  ;;  %2848 = vmatpush.bf16.msrb.mxu0 %v7431_v14 }
  0x33   :  { %11550 = vst [vmem:[#allocation52_spill] sm:$0xff] %v7735_v57 }
  0x34   :  { %11551 = vst [vmem:[#allocation53_spill] sm:$0xff] %v7740_v37 }
  0x35   :  { %11552 = vst [vmem:[#allocation54_spill] sm:$0xff] %v7749_v30  ;;  %v7769_v30 = vld [vmem:[%s11413_s0 + $0x150] sm:$0xff] }
  0x36   :  { %11553 = vst [vmem:[#allocation55_spill] sm:$0xff] %v7753_v13  ;;  %v7774_v13 = vld [vmem:[%s11413_s0 + $0x158] sm:$0x1]  ;;  %2849 = vmatpush.bf16.msrb.mxu0 %v7450_v19 }
  0x37   :  { %11554 = vst [vmem:[#allocation56_spill] sm:$0xff] %v7757_v56  ;;  %v7787_v56 = vmul.f32 %v7593_v50, %v7593_v50  ;;  %v7964_v37 = vmul.f32 %v7774_v13, %v7774_v13  ;;  %v8330_v50 = vld [vmem:[%s11413_s0 + $0x338] sm:$0x1] }
  0x38   :  { %11555 = vst [vmem:[#allocation57_spill] sm:$0xff] %v7783_v52  ;;  %v7805_v52 = vld [vmem:[%s11413_s0 + $0x170] sm:$0xff] }
  0x39   :  { %11556 = vst [vmem:[#allocation58_spill] sm:$0xff] %v7787_v56  ;;  %v7810_v56 = vld [vmem:[%s11413_s0 + $0x178] sm:$0x1] }
  0x3a   :  { %11557 = vst [vmem:[#allocation59_spill] sm:$0xff] %v7791_v62  ;;  %v7814_v62 = vmul.f32 %v7629_v58, %v7629_v58  ;;  %v8001_v43 = vmul.f32 %v7810_v56, %v7810_v56  ;;  %v8076_v58 = vmul.f32 %v7882_v54, %v7882_v54  ;;  %2850 = vmatpush.bf16.msrb.mxu0 %v7542_v39 }
  0x3b   :  { %11559 = vst [vmem:[#allocation61_spill] sm:$0xff] %v7818_v21  ;;  %v7841_v21 = vld [vmem:[%s11413_s0 + $0x190] sm:$0xff] }
  0x3c   :  { %11558 = vst [vmem:[#allocation60_spill] sm:$0xff] %v7814_v62  ;;  %v7836_v62 = vld [vmem:[%s11413_s0 + $0x188] sm:$0x1]  ;;  %v8036_v22 = vmul.f32 %v7841_v21, %v7841_v21 }
  0x3d   :  { %11560 = vst [vmem:[#allocation62_spill] sm:$0xff] %v7822_v55  ;;  %v7846_v55 = vld [vmem:[%s11413_s0 + $0x198] sm:$0x1]  ;;  %v8032_v24 = vmul.f32 %v7836_v62, %v7836_v62 }
  0x3e   :  { %11561 = vst [vmem:[#allocation63_spill] sm:$0xff] %v7826_v48  ;;  %v7850_v48 = vmul.f32 %v7667_v4, %v7667_v4  ;;  %v7903_v4 = vld [vmem:[%s11413_s0 + $0x1c0] sm:$0xff]  ;;  %v8040_v29 = vmul.f32 %v7846_v55, %v7846_v55 }
  0x3f   :  { %11562 = vst [vmem:[#allocation64_spill] sm:$0xff] %v7831_v0 }
  0x40   :  { %11563 = vst [vmem:[#allocation65_spill] sm:$0xff] %v7836_v62 }
  0x41   :  { %11564 = vst [vmem:[#allocation66_spill] sm:$0xff] %v7841_v21  ;;  %v8081_v21 = vld [vmem:[%s11413_s0 + $0x260] sm:$0xff] }
  0x42   :  { %11565 = vst [vmem:[#allocation67_spill] sm:$0xff] %v7846_v55  ;;  %v8282_v8 = vmul.f32 %v8081_v21, %v8081_v21 }
  0x43   :  { %11566 = vst [vmem:[#allocation68_spill] sm:$0xff] %v7850_v48  ;;  %v7872_v48 = vld [vmem:[%s11413_s0 + $0x1a8] sm:$0x1] }
  0x44   :  { %11567 = vst [vmem:[#allocation69_spill] sm:$0xff] %v7854_v45  ;;  %v7877_v45 = vld [vmem:[%s11413_s0 + $0x1b0] sm:$0xff]  ;;  %v8068_v60 = vmul.f32 %v7872_v48, %v7872_v48 }
  0x45   :  { %11568 = vst [vmem:[#allocation70_spill] sm:$0xff] %v7858_v35  ;;  %v7890_v35 = vmul.f32 %v7706_v18, %v7706_v18  ;;  %v7939_v18 = vld [vmem:[%s11413_s0 + $0x1e0] sm:$0xff]  ;;  %v8072_v55 = vmul.f32 %v7877_v45, %v7877_v45 }
  0x46   :  { %11569 = vst [vmem:[#allocation71_spill] sm:$0xff] %v7867_v61  ;;  %v8137_v5 = vmul.f32 %v7939_v18, %v7939_v18 }
  0x47   :  { %11570 = vst [vmem:[#allocation72_spill] sm:$0xff] %v7872_v48  ;;  %v8112_v48 = vmul.f32 %v7918_v23, %v7918_v23 }
  0x48   :  { %11571 = vst [vmem:[#allocation73_spill] sm:$0xff] %v7877_v45 }
  0x49   :  { %11572 = vst [vmem:[#allocation74_spill] sm:$0xff] %v7882_v54 }
  0x4a   :  { %11573 = vst [vmem:[#allocation75_spill] sm:$0xff] %v7886_v3  ;;  %v7908_v3 = vld [vmem:[%s11413_s0 + $0x1c8] sm:$0x1] }
  0x4b   :  { %11574 = vst [vmem:[#allocation76_spill] sm:$0xff] %v7890_v35  ;;  %v7913_v35 = vld [vmem:[%s11413_s0 + $0x1d0] sm:$0xff]  ;;  %v8104_v54 = vmul.f32 %v7908_v3, %v7908_v3 }
  0x4c   :  { %11575 = vst [vmem:[#allocation77_spill] sm:$0xff] %v7894_v6  ;;  %v7926_v6 = vmul.f32 %v7735_v57, %v7735_v57  ;;  %v7960_v57 = vmul.f32 %v7769_v30, %v7769_v30  ;;  %v8108_v45 = vmul.f32 %v7913_v35, %v7913_v35 }
  0x4d   :  { %11576 = vst [vmem:[#allocation78_spill] sm:$0xff] %v7903_v4 }
  0x4e   :  { %11577 = vst [vmem:[#allocation79_spill] sm:$0xff] %v7908_v3 }
  0x4f   :  { %11578 = vst [vmem:[#allocation80_spill] sm:$0xff] %v7913_v35 }
  0x50   :  { %11579 = vst [vmem:[#allocation81_spill] sm:$0xff] %v7918_v23 }
  0x51   :  { %11580 = vst [vmem:[#allocation82_spill] sm:$0xff] %v7922_v15  ;;  %v7944_v15 = vld [vmem:[%s11413_s0 + $0x1e8] sm:$0x1] }
  0x52   :  { %11581 = vst [vmem:[#allocation83_spill] sm:$0xff] %v7926_v6  ;;  %v7949_v6 = vld [vmem:[%s11413_s0 + $0x1f0] sm:$0xff] }
  0x53   :  { %11582 = vst [vmem:[#allocation84_spill] sm:$0xff] %v7930_v63  ;;  %v7954_v63 = vld [vmem:[%s11413_s0 + $0x1f8] sm:$0x1]  ;;  %v8145_v35 = vmul.f32 %v7949_v6, %v7949_v6 }
  0x54   :  { %11583 = vst [vmem:[#allocation85_spill] sm:$0xff] %v7934_v17  ;;  %v7956_v17 = vmul.f32 %v80_v46, %v80_v46  ;;  %v8024_v46 = vld [vmem:[%s11413_s0 + $0x238] sm:$0x1]  ;;  %v8149_v23 = vmul.f32 %v7954_v63, %v7954_v63 }
  0x55   :  { %11584 = vst [vmem:[#allocation86_spill] sm:$0xff] %v7939_v18  ;;  %v8190_v18 = vld [vmem:[%s11413_s0 + $0x2c0] sm:$0xff] }
  0x56   :  { %11585 = vst [vmem:[#allocation87_spill] sm:$0xff] %v7944_v15 }
  0x57   :  { %11586 = vst [vmem:[#allocation88_spill] sm:$0xff] %v7949_v6 }
  0x58   :  { %11587 = vst [vmem:[#allocation89_spill] sm:$0xff] %v7954_v63 }
  0x59   :  { %11588 = vst [vmem:[#allocation90_spill] sm:$0xff] %v7956_v17  ;;  %v7979_v17 = vld [vmem:[%s11413_s0 + $0x208] sm:$0x1] }
  0x5a   :  { %11589 = vst [vmem:[#allocation91_spill] sm:$0xff] %v7960_v57  ;;  %v7984_v57 = vld [vmem:[%s11413_s0 + $0x210] sm:$0xff]  ;;  %v8177_v63 = vmul.f32 %v7979_v17, %v7979_v17 }
  0x5b   :  { %11590 = vst [vmem:[#allocation92_spill] sm:$0xff] %v7964_v37  ;;  %v7997_v37 = vmul.f32 %v7805_v52, %v7805_v52  ;;  %v8181_v6 = vmul.f32 %v7984_v57, %v7984_v57 }
  0x5c   :  { %11591 = vst [vmem:[#allocation93_spill] sm:$0xff] %v7968_v47  ;;  %v7989_v47 = vld [vmem:[%s11413_s0 + $0x218] sm:$0x1] }
  0x5d   :  { %11592 = vst [vmem:[#allocation94_spill] sm:$0xff] %v7974_v33 }
  0x5e   :  { %11593 = vst [vmem:[#allocation95_spill] sm:$0xff] %v7979_v17  ;;  %v8221_v17 = vmul.f32 %v8024_v46, %v8024_v46 }
  0x5f   :  { %11594 = vst [vmem:[#allocation96_spill] sm:$0xff] %v7984_v57 }
  0x60   :  { %11595 = vst [vmem:[#allocation97_spill] sm:$0xff] %v7989_v47 }
  0x61   :  { %11596 = vst [vmem:[#allocation98_spill] sm:$0xff] %v7993_v2  ;;  %v8014_v2 = vld [vmem:[%s11413_s0 + $0x228] sm:$0x1] }
  0x62   :  { %11597 = vst [vmem:[#allocation99_spill] sm:$0xff] %v7997_v37  ;;  %v8019_v37 = vld [vmem:[%s11413_s0 + $0x230] sm:$0xff]  ;;  %v8213_v57 = vmul.f32 %v8014_v2, %v8014_v2 }
  0x63   :  { %11598 = vst [vmem:[#allocation100_spill] sm:$0xff] %v8001_v43  ;;  %v8028_v43 = vmul.f32 %v7831_v0, %v7831_v0  ;;  %v8299_v0 = vld [vmem:[%s11413_s0 + $0x320] sm:$0xff] }
  0x64   :  { %11599 = vst [vmem:[#allocation101_spill] sm:$0xff] %v8009_v32 }
  0x65   :  { %11600 = vst [vmem:[#allocation102_spill] sm:$0xff] %v8014_v2  ;;  %v8263_v2 = vld [vmem:[%s11413_s0 + $0x300] sm:$0xff] }
  0x66   :  { %11601 = vst [vmem:[#allocation103_spill] sm:$0xff] %v8019_v37 }
  0x67   :  { %11602 = vst [vmem:[#allocation104_spill] sm:$0xff] %v8024_v46 }
  0x68   :  { %11603 = vst [vmem:[#allocation105_spill] sm:$0xff] %v8028_v43  ;;  %v8050_v43 = vld [vmem:[%s11413_s0 + $0x248] sm:$0x1] }
  0x69   :  { %11604 = vst [vmem:[#allocation106_spill] sm:$0xff] %v8032_v24  ;;  %v8055_v24 = vld [vmem:[%s11413_s0 + $0x250] sm:$0xff] }
  0x6a   :  { %11605 = vst [vmem:[#allocation107_spill] sm:$0xff] %v8036_v22  ;;  %v8060_v22 = vld [vmem:[%s11413_s0 + $0x258] sm:$0x1]  ;;  %v8253_v46 = vmul.f32 %v8055_v24, %v8055_v24 }
  0x6b   :  { %11606 = vst [vmem:[#allocation108_spill] sm:$0xff] %v8040_v29  ;;  %v8064_v29 = vmul.f32 %v7867_v61, %v7867_v61  ;;  %v8118_v61 = vld [vmem:[%s11413_s0 + $0x280] sm:$0xff] }
  0x6c   :  { %11608 = vst [vmem:[#allocation110_spill] sm:$0xff] %v8068_v60  ;;  %v8091_v60 = vld [vmem:[%s11413_s0 + $0x270] sm:$0xff] }
  0x6d   :  { %11607 = vst [vmem:[#allocation109_spill] sm:$0xff] %v8064_v29  ;;  %v8086_v29 = vld [vmem:[%s11413_s0 + $0x268] sm:$0x1]  ;;  %v8290_v3 = vmul.f32 %v8091_v60, %v8091_v60 }
  0x6e   :  { %11609 = vst [vmem:[#allocation111_spill] sm:$0xff] %v8072_v55  ;;  %v8096_v55 = vld [vmem:[%s11413_s0 + $0x278] sm:$0x1] }
  0x6f   :  { %11610 = vst [vmem:[#allocation112_spill] sm:$0xff] %v8076_v58  ;;  %v8100_v58 = vmul.f32 %v7903_v4, %v7903_v4  ;;  %v8154_v4 = vld [vmem:[%s11413_s0 + $0x2a0] sm:$0xff]  ;;  %v8294_v51 = vmul.f32 %v8096_v55, %v8096_v55 }
  0x70   :  { %11612 = vst [vmem:[#allocation114_spill] sm:$0xff] %v8104_v54  ;;  %v8141_v54 = vmul.f32 %v7944_v15, %v7944_v15  ;;  %v8185_v15 = vmul.f32 %v7989_v47, %v7989_v47  ;;  %v8217_v47 = vmul.f32 %v8019_v37, %v8019_v37  ;;  %v8249_v37 = vmul.f32 %v8050_v43, %v8050_v43 }
  0x71   :  { %11611 = vst [vmem:[#allocation113_spill] sm:$0xff] %v8100_v58  ;;  %v8123_v58 = vld [vmem:[%s11413_s0 + $0x288] sm:$0x1] }
  0x72   :  { %11613 = vst [vmem:[#allocation115_spill] sm:$0xff] %v8108_v45  ;;  %v8128_v45 = vld [vmem:[%s11413_s0 + $0x290] sm:$0xff] }
  0x73   :  { %11614 = vst [vmem:[#allocation116_spill] sm:$0xff] %v8112_v48  ;;  %v8133_v48 = vld [vmem:[%s11413_s0 + $0x298] sm:$0x1]  ;;  %v8321_v49 = vmul.f32 %v8128_v45, %v8128_v45 }
  0x74   :  { %11615 = vst [vmem:[#allocation117_spill] sm:$0xff] %v8118_v61  ;;  %v8325_v62 = vmul.f32 %v8133_v48, %v8133_v48 }
  0x75   :  { %11616 = vst [vmem:[#allocation118_spill] sm:$0xff] %v8128_v45 }
  0x76   :  { %11617 = vst [vmem:[#allocation119_spill] sm:$0xff] %v8133_v48 }
  0x77   :  { %11618 = vst [vmem:[#allocation120_spill] sm:$0xff] %v8137_v5  ;;  %v8159_v5 = vld [vmem:[%s11413_s0 + $0x2a8] sm:$0x1] }
  0x78   :  { %11619 = vst [vmem:[#allocation121_spill] sm:$0xff] %v8141_v54  ;;  %v8164_v54 = vld [vmem:[%s11413_s0 + $0x2b0] sm:$0xff] }
  0x79   :  { %11620 = vst [vmem:[#allocation122_spill] sm:$0xff] %v8145_v35  ;;  %v8169_v35 = vld [vmem:[%s11413_s0 + $0x2b8] sm:$0x1]  ;;  %v8352_v45 = vmul.f32 %v8164_v54, %v8164_v54 }
  0x7a   :  { %11621 = vst [vmem:[#allocation123_spill] sm:$0xff] %v8149_v23  ;;  %v8173_v23 = vmul.f32 %v7974_v33, %v7974_v33  ;;  %v8226_v33 = vld [vmem:[%s11413_s0 + $0x2e0] sm:$0xff]  ;;  %v8356_v48 = vmul.f32 %v8169_v35, %v8169_v35 }
  0x7b   :  { %11622 = vst [vmem:[#allocation124_spill] sm:$0xff] %v8154_v4 }
  0x7c   :  { %11623 = vst [vmem:[#allocation125_spill] sm:$0xff] %v8164_v54 }
  0x7d   :  { %11624 = vst [vmem:[#allocation126_spill] sm:$0xff] %v8169_v35 }
  0x7e   :  { %11625 = vst [vmem:[#allocation127_spill] sm:$0xff] %v8173_v23  ;;  %v8195_v23 = vld [vmem:[%s11413_s0 + $0x2c8] sm:$0x1] }
  0x7f   :  { %11626 = vst [vmem:[#allocation128_spill] sm:$0xff] %v8177_v63  ;;  %v8200_v63 = vld [vmem:[%s11413_s0 + $0x2d0] sm:$0xff] }
  0x80   :  { %11627 = vst [vmem:[#allocation129_spill] sm:$0xff] %v8181_v6  ;;  %v8205_v6 = vld [vmem:[%s11413_s0 + $0x2d8] sm:$0x1]  ;;  %v8383_v35 = vmul.f32 %v8200_v63, %v8200_v63 }
  0x81   :  { %11628 = vst [vmem:[#allocation130_spill] sm:$0xff] %v8185_v15  ;;  %v8209_v15 = vmul.f32 %v8009_v32, %v8009_v32  ;;  %v8257_v32 = vmul.f32 %v8060_v22, %v8060_v22  ;;  %v8387_v54 = vmul.f32 %v8205_v6, %v8205_v6 }
  0x82   :  { %11629 = vst [vmem:[#allocation131_spill] sm:$0xff] %v8190_v18 }
  0x83   :  { %11630 = vst [vmem:[#allocation132_spill] sm:$0xff] %v8195_v23 }
  0x84   :  { %11631 = vst [vmem:[#allocation133_spill] sm:$0xff] %v8200_v63  ;;  %v8424_v63 = vld [vmem:[%s11413_s0 + $0x380] sm:$0xff] }
  0x85   :  { %11632 = vst [vmem:[#allocation134_spill] sm:$0xff] %v8205_v6 }
  0x86   :  { %11633 = vst [vmem:[#allocation135_spill] sm:$0xff] %v8209_v15  ;;  %v8231_v15 = vld [vmem:[%s11413_s0 + $0x2e8] sm:$0x1] }
  0x87   :  { %11634 = vst [vmem:[#allocation136_spill] sm:$0xff] %v8213_v57  ;;  %v8236_v57 = vld [vmem:[%s11413_s0 + $0x2f0] sm:$0xff]  ;;  %v8411_v11 = vmul.f32 %v8231_v15, %v8231_v15 }
  0x88   :  { %11635 = vst [vmem:[#allocation137_spill] sm:$0xff] %v8217_v47  ;;  %v8241_v47 = vld [vmem:[%s11413_s0 + $0x2f8] sm:$0x1] }
  0x89   :  { %11636 = vst [vmem:[#allocation138_spill] sm:$0xff] %v8221_v17  ;;  %v8245_v17 = vmul.f32 %v8045_v59, %v8045_v59  ;;  %v8419_v6 = vmul.f32 %v8241_v47, %v8241_v47 }
  0x8a   :  { %11637 = vst [vmem:[#allocation139_spill] sm:$0xff] %v8226_v33 }
  0x8b   :  { %11638 = vst [vmem:[#allocation140_spill] sm:$0xff] %v8231_v15  ;;  %v8609_v15 = vld [vmem:[%s11413_s0 + $0x410] sm:$0xff] }
  0x8c   :  { %11639 = vst [vmem:[#allocation141_spill] sm:$0xff] %v8236_v57 }
  0x8d   :  { %11640 = vst [vmem:[#allocation142_spill] sm:$0xff] %v8241_v47  ;;  %v8455_v47 = vld [vmem:[%s11413_s0 + $0x398] sm:$0x1] }
  0x8e   :  { %11641 = vst [vmem:[#allocation143_spill] sm:$0xff] %v8245_v17  ;;  %v8268_v17 = vld [vmem:[%s11413_s0 + $0x308] sm:$0x1] }
  0x8f   :  { %11642 = vst [vmem:[#allocation144_spill] sm:$0xff] %v8249_v37  ;;  %v8286_v37 = vmul.f32 %v8086_v29, %v8086_v29 }
  0x90   :  { %11643 = vst [vmem:[#allocation145_spill] sm:$0xff] %v8253_v46  ;;  %v8273_v46 = vld [vmem:[%s11413_s0 + $0x310] sm:$0xff] }
  0x91   :  { %11644 = vst [vmem:[#allocation146_spill] sm:$0xff] %v8257_v32  ;;  %v8278_v32 = vld [vmem:[%s11413_s0 + $0x318] sm:$0x1] }
  0x92   :  { %11645 = vst [vmem:[#allocation147_spill] sm:$0xff] %v8263_v2 }
  0x93   :  { %11646 = vst [vmem:[#allocation148_spill] sm:$0xff] %v8268_v17 }
  0x94   :  { %11647 = vst [vmem:[#allocation149_spill] sm:$0xff] %v8273_v46 }
  0x95   :  { %11648 = vst [vmem:[#allocation150_spill] sm:$0xff] %v8278_v32 }
  0x96   :  { %11649 = vst [vmem:[#allocation151_spill] sm:$0xff] %v8282_v8  ;;  %v8304_v8 = vld [vmem:[%s11413_s0 + $0x328] sm:$0x1] }
  0x97   :  { %11650 = vst [vmem:[#allocation152_spill] sm:$0xff] %v8286_v37  ;;  %v8309_v37 = vld [vmem:[%s11413_s0 + $0x330] sm:$0xff] }
  0x98   :  { %11651 = vst [vmem:[#allocation153_spill] sm:$0xff] %v8290_v3  ;;  %v8313_v3 = vmul.f32 %v8118_v61, %v8118_v61  ;;  %v8361_v61 = vld [vmem:[%s11413_s0 + $0x350] sm:$0xff] }
  0x99   :  { %11652 = vst [vmem:[#allocation154_spill] sm:$0xff] %v8294_v51  ;;  %v8317_v51 = vmul.f32 %v8123_v58, %v8123_v58 }
  0x9a   :  { %11653 = vst [vmem:[#allocation155_spill] sm:$0xff] %v8299_v0 }
  0x9b   :  { %11654 = vst [vmem:[#allocation156_spill] sm:$0xff] %v8304_v8 }
  0x9c   :  { %11655 = vst [vmem:[#allocation157_spill] sm:$0xff] %v8309_v37 }
  0x9d   :  { %11656 = vst [vmem:[#allocation158_spill] sm:$0xff] %v8313_v3  ;;  %v8335_v3 = vld [vmem:[%s11413_s0 + $0x340] sm:$0xff] }
  0x9e   :  { %11657 = vst [vmem:[#allocation159_spill] sm:$0xff] %v8317_v51  ;;  %v8340_v51 = vld [vmem:[%s11413_s0 + $0x348] sm:$0x1] }
  0x9f   :  { %11658 = vst [vmem:[#allocation160_spill] sm:$0xff] %v8321_v49  ;;  %v8344_v49 = vmul.f32 %v8154_v4, %v8154_v4  ;;  %v8393_v4 = vld [vmem:[%s11413_s0 + $0x368] sm:$0x1] }
  0xa0   :  { %11659 = vst [vmem:[#allocation161_spill] sm:$0xff] %v8325_v62  ;;  %v8348_v62 = vmul.f32 %v8159_v5, %v8159_v5  ;;  %v8536_v14 = vmul.f32 %v8393_v4, %v8393_v4 }
  0xa1   :  { %11660 = vst [vmem:[#allocation162_spill] sm:$0xff] %v8330_v50 }
  0xa2   :  { %11661 = vst [vmem:[#allocation163_spill] sm:$0xff] %v8335_v3 }
  0xa3   :  { %11662 = vst [vmem:[#allocation164_spill] sm:$0xff] %v8340_v51 }
  0xa4   :  { %11663 = vst [vmem:[#allocation165_spill] sm:$0xff] %v8344_v49  ;;  %v8366_v49 = vld [vmem:[%s11413_s0 + $0x358] sm:$0x1] }
  0xa5   :  { %11664 = vst [vmem:[#allocation166_spill] sm:$0xff] %v8348_v62  ;;  %v8371_v62 = vld [vmem:[%s11413_s0 + $0x360] sm:$0xff] }
  0xa6   :  { %11665 = vst [vmem:[#allocation167_spill] sm:$0xff] %v8352_v45  ;;  %v8375_v45 = vmul.f32 %v8190_v18, %v8190_v18 }
  0xa7   :  { %11666 = vst [vmem:[#allocation168_spill] sm:$0xff] %v8356_v48  ;;  %v8379_v48 = vmul.f32 %v8195_v23, %v8195_v23 }
  0xa8   :  { %11667 = vst [vmem:[#allocation169_spill] sm:$0xff] %v8361_v61 }
  0xa9   :  { %11668 = vst [vmem:[#allocation170_spill] sm:$0xff] %v8366_v49 }
  0xaa   :  { %11669 = vst [vmem:[#allocation171_spill] sm:$0xff] %v8375_v45  ;;  %v8398_v45 = vld [vmem:[%s11413_s0 + $0x370] sm:$0xff] }
  0xab   :  { %11670 = vst [vmem:[#allocation172_spill] sm:$0xff] %v8379_v48  ;;  %v8415_v48 = vmul.f32 %v8236_v57, %v8236_v57  ;;  %v8446_v57 = vmul.f32 %v8273_v46, %v8273_v46  ;;  %v8481_v46 = vmul.f32 %v8330_v50, %v8330_v50  ;;  %v8512_v50 = vmul.f32 %v8366_v49, %v8366_v49 }
  0xac   :  { %11671 = vst [vmem:[#allocation173_spill] sm:$0xff] %v8383_v35  ;;  %v8403_v35 = vld [vmem:[%s11413_s0 + $0x378] sm:$0x1] }
  0xad   :  { %11672 = vst [vmem:[#allocation174_spill] sm:$0xff] %v8387_v54  ;;  %v8407_v54 = vmul.f32 %v8226_v33, %v8226_v33  ;;  %v8450_v33 = vmul.f32 %v8278_v32, %v8278_v32  ;;  %v8477_v32 = vmul.f32 %v8309_v37, %v8309_v37  ;;  %v8508_v37 = vmul.f32 %v8361_v61, %v8361_v61 }
  0xae   :  { %11674 = vst [vmem:[#allocation176_spill] sm:$0xff] %v8411_v11  ;;  %v8434_v11 = vld [vmem:[%s11413_s0 + $0x390] sm:$0xff]  ;;  %v8544_v61 = vmul.f32 %v8403_v35, %v8403_v35 }
  0xaf   :  { %11673 = vst [vmem:[#allocation175_spill] sm:$0xff] %v8407_v54  ;;  %v8429_v54 = vld [vmem:[%s11413_s0 + $0x388] sm:$0x1]  ;;  %v8571_v49 = vmul.f32 %v8434_v11, %v8434_v11 }
  0xb0   :  { %11675 = vst [vmem:[#allocation177_spill] sm:$0xff] %v8415_v48  ;;  %v8438_v48 = vmul.f32 %v8263_v2, %v8263_v2  ;;  %v8486_v2 = vld [vmem:[%s11413_s0 + $0x3b0] sm:$0xff] }
  0xb1   :  { %11676 = vst [vmem:[#allocation178_spill] sm:$0xff] %v8419_v6  ;;  %v8442_v6 = vmul.f32 %v8268_v17, %v8268_v17  ;;  %v8604_v17 = vmul.f32 %v8486_v2, %v8486_v2 }
  0xb2   :  { %11677 = vst [vmem:[#allocation179_spill] sm:$0xff] %v8438_v48  ;;  %v8460_v48 = vld [vmem:[%s11413_s0 + $0x3a0] sm:$0xff] }
  0xb3   :  { %11678 = vst [vmem:[#allocation180_spill] sm:$0xff] %v8442_v6  ;;  %v8465_v6 = vld [vmem:[%s11413_s0 + $0x3a8] sm:$0x1] }
  0xb4   :  { %11679 = vst [vmem:[#allocation181_spill] sm:$0xff] %v8446_v57  ;;  %v8469_v57 = vmul.f32 %v8299_v0, %v8299_v0  ;;  %v8518_v0 = vld [vmem:[%s11413_s0 + $0x3c8] sm:$0x1] }
  0xb5   :  { %11680 = vst [vmem:[#allocation182_spill] sm:$0xff] %v8450_v33  ;;  %v8473_v33 = vmul.f32 %v8304_v8, %v8304_v8  ;;  %v8578_v8 = vld [vmem:[%s11413_s0 + $0x3f8] sm:$0x1]  ;;  %v8631_v18 = vmul.f32 %v8518_v0, %v8518_v0 }
  0xb6   :  { %11681 = vst [vmem:[#allocation183_spill] sm:$0xff] %v8469_v57  ;;  %v8491_v57 = vld [vmem:[%s11413_s0 + $0x3b8] sm:$0x1] }
  0xb7   :  { %11682 = vst [vmem:[#allocation184_spill] sm:$0xff] %v8473_v33  ;;  %v8496_v33 = vld [vmem:[%s11413_s0 + $0x3c0] sm:$0xff] }
  0xb8   :  { %11683 = vst [vmem:[#allocation185_spill] sm:$0xff] %v8477_v32  ;;  %v8500_v32 = vmul.f32 %v8335_v3, %v8335_v3  ;;  %v8549_v3 = vld [vmem:[%s11413_s0 + $0x3e0] sm:$0xff] }
  0xb9   :  { %11684 = vst [vmem:[#allocation186_spill] sm:$0xff] %v8481_v46  ;;  %v8504_v46 = vmul.f32 %v8340_v51, %v8340_v51  ;;  %v327_v51 = vadd.f32 %v7524_v34, %v7439_v16  ;;  %v8596_v16 = vmul.f32 %v8460_v48, %v8460_v48  ;;  %v8600_v34 = vmul.f32 %v8465_v6, %v8465_v6 }
  0xba   :  { %11685 = vst [vmem:[#allocation187_spill] sm:$0xff] %v8486_v2  ;;  %v8641_v2 = vld [vmem:[%s11413_s0 + $0x428] sm:$0x1]  ;;  %v8659_v19 = vmul.f32 %v8549_v3, %v8549_v3 }
  0xbb   :  { %11686 = vst [vmem:[#allocation188_spill] sm:$0xff] %v8496_v33 }
  0xbc   :  { %11687 = vst [vmem:[#allocation189_spill] sm:$0xff] %v8500_v32  ;;  %v8523_v32 = vld [vmem:[%s11413_s0 + $0x3d0] sm:$0xff] }
  0xbd   :  { %11688 = vst [vmem:[#allocation190_spill] sm:$0xff] %v8504_v46  ;;  %v8540_v46 = vmul.f32 %v8398_v45, %v8398_v45  ;;  %v8635_v23 = vmul.f32 %v8523_v32, %v8523_v32 }
  0xbe   :  { %11689 = vst [vmem:[#allocation191_spill] sm:$0xff] %v8508_v37  ;;  %v8528_v37 = vld [vmem:[%s11413_s0 + $0x3d8] sm:$0x1] }
  0xbf   :  { %11690 = vst [vmem:[#allocation192_spill] sm:$0xff] %v8512_v50  ;;  %v8532_v50 = vmul.f32 %v8371_v62, %v8371_v62 }
  0xc0   :  { %11691 = vst [vmem:[#allocation193_spill] sm:$0xff] %v8523_v32  ;;  %v328_v32 = vadd.f32 %v327_v51, %v8045_v59  ;;  %v8687_v51 = vmul.f32 %v8578_v8, %v8578_v8 }
  0xc1   :  { %11692 = vst [vmem:[#allocation194_spill] sm:$0xff] %v8528_v37 }
  0xc2   :  { %11693 = vst [vmem:[#allocation195_spill] sm:$0xff] %v8532_v50  ;;  %v8554_v50 = vld [vmem:[%s11413_s0 + $0x3e8] sm:$0x1] }
  0xc3   :  { %11694 = vst [vmem:[#allocation196_spill] sm:$0xff] %v8536_v14  ;;  %v8559_v14 = vld [vmem:[%s11413_s0 + $0x3f0] sm:$0xff] }
  0xc4   :  { %11695 = vst [vmem:[#allocation197_spill] sm:$0xff] %v8540_v46  ;;  %v8563_v46 = vmul.f32 %v8424_v63, %v8424_v63 }
  0xc5   :  { %11696 = vst [vmem:[#allocation198_spill] sm:$0xff] %v8544_v61  ;;  %v8567_v61 = vmul.f32 %v8429_v54, %v8429_v54 }
  0xc6   :  { %11697 = vst [vmem:[#allocation199_spill] sm:$0xff] %v8554_v50 }
  0xc7   :  { %11698 = vst [vmem:[#allocation200_spill] sm:$0xff] %v8559_v14 }
  0xc8   :  { %11699 = vst [vmem:[#allocation201_spill] sm:$0xff] %v8563_v46  ;;  %v8583_v46 = vld [vmem:[%s11413_s0 + $0x400] sm:$0xff] }
  0xc9   :  { %11700 = vst [vmem:[#allocation202_spill] sm:$0xff] %v8567_v61  ;;  %v8588_v61 = vld [vmem:[%s11413_s0 + $0x408] sm:$0x1]  ;;  %v8691_v59 = vmul.f32 %v8583_v46, %v8583_v46 }
  0xca   :  { %11701 = vst [vmem:[#allocation203_spill] sm:$0xff] %v8571_v49  ;;  %v8592_v49 = vmul.f32 %v8455_v47, %v8455_v47 }
  0xcb   :  { %11702 = vst [vmem:[#allocation204_spill] sm:$0xff] %v8583_v46  ;;  %v334_v46 = vsel %vm330_vm0, %v8050_v43, 0.0 }
  0xcc   :  { %11703 = vst [vmem:[#allocation205_spill] sm:$0xff] %v8588_v61 }
  0xcd   :  { %11704 = vst [vmem:[#allocation206_spill] sm:$0xff] %v8592_v49  ;;  %v8614_v49 = vld [vmem:[%s11413_s0 + $0x418] sm:$0x1] }
  0xce   :  { %11705 = vst [vmem:[#allocation207_spill] sm:$0xff] %v8596_v16  ;;  %v8619_v16 = vld [vmem:[%s11413_s0 + $0x420] sm:$0xff] }
  0xcf   :  { %11706 = vst [vmem:[#allocation208_spill] sm:$0xff] %v8600_v34  ;;  %v8623_v34 = vmul.f32 %v8491_v57, %v8491_v57 }
  0xd0   :  { %11707 = vst [vmem:[#allocation209_spill] sm:$0xff] %v8604_v17  ;;  %v8627_v17 = vmul.f32 %v8496_v33, %v8496_v33  ;;  %v8669_v33 = vld [vmem:[%s11413_s0 + $0x440] sm:$0xff] }
  0xd1   :  { %11708 = vst [vmem:[#allocation210_spill] sm:$0xff] %v8623_v34  ;;  %v8646_v34 = vld [vmem:[%s11413_s0 + $0x430] sm:$0xff] }
  0xd2   :  { %11709 = vst [vmem:[#allocation211_spill] sm:$0xff] %v8627_v17  ;;  %v8651_v17 = vld [vmem:[%s11413_s0 + $0x438] sm:$0x1] }
  0xd3   :  { %11710 = vst [vmem:[#allocation212_spill] sm:$0xff] %v8631_v18  ;;  %v8663_v18 = vmul.f32 %v8554_v50, %v8554_v50  ;;  %v8700_v50 = vld [vmem:[%s11413_s0 + $0x458] sm:$0x1]  ;;  %v8738_v43 = vmul.f32 %v8651_v17, %v8651_v17 }
  0xd4   :  { %11711 = vst [vmem:[#allocation213_spill] sm:$0xff] %v8635_v23  ;;  %v8655_v23 = vmul.f32 %v8528_v37, %v8528_v37  ;;  %v8674_v37 = vld [vmem:[%s11413_s0 + $0x448] sm:$0x1] }
  0xd5   :  { %11713 = vst [vmem:[#allocation215_spill] sm:$0xff] %v8659_v19  ;;  %v8679_v19 = vld [vmem:[%s11413_s0 + $0x450] sm:$0xff] }
  0xd6   :  { %11712 = vst [vmem:[#allocation214_spill] sm:$0xff] %v8655_v23  ;;  %v8695_v23 = vmul.f32 %v8588_v61, %v8588_v61  ;;  %v8722_v61 = vld [vmem:[%s11413_s0 + $0x468] sm:$0x1] }
  0xd7   :  { %11714 = vst [vmem:[#allocation216_spill] sm:$0xff] %v8663_v18  ;;  %v8683_v18 = vmul.f32 %v8559_v14, %v8559_v14  ;;  %v8726_v14 = vmul.f32 %v8619_v16, %v8619_v16 }
  0xd8   :  { %11716 = vst [vmem:[#allocation218_spill] sm:$0xff] %v8687_v51  ;;  %v8709_v51 = vmul.f32 %v8609_v15, %v8609_v15 }
  0xd9   :  { %11715 = vst [vmem:[#allocation217_spill] sm:$0xff] %v8683_v18  ;;  %v8705_v18 = vld [vmem:[%s11413_s0 + $0x460] sm:$0xff] }
  0xda   :  { %11717 = vst [vmem:[#allocation219_spill] sm:$0xff] %v8691_v59  ;;  %v8713_v59 = vmul.f32 %v8614_v49, %v8614_v49 }
  0xdb   :  { %11718 = vst [vmem:[#allocation220_spill] sm:$0xff] %v8695_v23  ;;  %v333_v23 = vadd.f32 %v7760_v9, %v7659_v1  ;;  %v8743_v1 = vmul.f32 %v8669_v33, %v8669_v33  ;;  %v8747_v9 = vmul.f32 %v8674_v37, %v8674_v37 }
  0xdc   :  { %11719 = vst [vmem:[#allocation221_spill] sm:$0xff] %v8709_v51  ;;  %v8730_v51 = vmul.f32 %v8641_v2, %v8641_v2 }
  0xdd   :  { %11720 = vst [vmem:[#allocation222_spill] sm:$0xff] %v8713_v59  ;;  %v8734_v59 = vmul.f32 %v8646_v34, %v8646_v34 }
  0xde   :  { %11721 = vst [vmem:[#allocation223_spill] sm:$0xff] %v8726_v14  ;;  %v8751_v14 = vmul.f32 %v8679_v19, %v8679_v19 }
  0xdf   :  { %11722 = vst [vmem:[#allocation224_spill] sm:$0xff] %v8734_v59  ;;  %v8754_v59 = vadd.f32 %v328_v32, %v8371_v62 }
  0xe0   :  { %11723 = vst [vmem:[#allocation225_spill] sm:$0xff] %v8738_v43 }
  0xe1   :  { %11724 = vst [vmem:[#allocation226_spill] sm:$0xff] %v8743_v1 }
  0xe2   :  { %11725 = vst [vmem:[#allocation227_spill] sm:$0xff] %v8747_v9 }
  0xe3   :  { %11726 = vst [vmem:[#allocation228_spill] sm:$0xff] %v8751_v14 }
  0xe4   :  { %11727 = vst [vmem:[#allocation229_spill] sm:$0xff] %v8754_v59 }
  0xe5   :  { %16 = vsyncpa [#allocation7], 0  ;;  %v8759_v39 = vld [vmem:[%s11413_s0 + $0x470] sm:$0xff]  ;;  %v8764_v1 = vld [vmem:[%s11413_s0 + $0x478] sm:$0x1]  ;;  %v8768_v9 = vmul.f32 %v8700_v50, %v8700_v50  ;;  %v338_v14 = vadd.f32 %v7606_v53, %v7455_v20  ;;  %v343_v32 = vadd.f32 %v7862_v44, %v7795_v36  ;;  %v348_v62 = vadd.f32 %v7745_v10, %v7486_v26  ;;  %s5626_s21 = sshll.u32 %s11424_s11, 4  ;;  %s5627_s21 = int_to_ptr.hbm [resolvable:$true] %s5626_s21 }
  0xe6   :  { %v8778_v59 = vmul.f32 %v8705_v18, %v8705_v18  ;;  %v8782_v43 = vmul.f32 %v8722_v61, %v8722_v61  ;;  %v353_v20 = vadd.f32 %v8004_v25, %v7898_v7  ;;  %v335_v53 = vadd.f32 %v334_v46, %v333_v23  ;;  %s7312_s22 = smov 128   ;;  %s7313_s23 = smov 8  }
  0xe7   :  { %11728 = vst [vmem:[#allocation230_spill] sm:$0xff] %v8768_v9  ;;  %v344_v9 = vsel %vm330_vm0, %v8060_v22, 0.0  ;;  %v354_v36 = vsel %vm330_vm0, %v8086_v29, 0.0  ;;  %v361_v26 = vsel %vm330_vm0, %v7491_v27, 0.0  ;;  %v362_v44 = vsel %vm330_vm0, %v7774_v13, 0.0 }
  0xe8   :  { %11729 = vst [vmem:[#allocation231_spill] sm:$0xff] %v8778_v59  ;;  %v8796_v10 = vmul.f32 %v8759_v39, %v8759_v39  ;;  %v8800_v22 = vmul.f32 %v8764_v1, %v8764_v1  ;;  %v336_v25 = vsel %vm330_vm0, %v8393_v4, 0.0  ;;  %v358_v29 = vadd.f32 %v7769_v30, %v7509_v31 }
  0xe9   :  { %v339_v7 = vadd.f32 %v338_v14, %v8055_v24  ;;  %v345_v27 = vadd.f32 %v344_v9, %v343_v32  ;;  %v346_v13 = vsel %vm330_vm0, %v8403_v35, 0.0  ;;  %v349_v23 = vadd.f32 %v348_v62, %v8081_v21 }
  0xea   :  { %11730 = vst [vmem:[#allocation232_spill] sm:$0xff] %v8796_v10  ;;  %v355_v46 = vadd.f32 %v354_v36, %v353_v20  ;;  %v363_v10 = vadd.f32 %v362_v44, %v361_v26  ;;  %v371_v59 = vsel %vm330_vm0, %v7496_v28, 0.0  ;;  %v8814_v4 = vadd.f32 %v336_v25, %v335_v53  ;;  %v11735_v36 = vld [vmem:[#allocation119_spill] sm:$0xff]  ;;  %v11739_v25 = vld [vmem:[#allocation66_spill] sm:$0xff] }
  0xeb   :  { %11731 = vst [vmem:[#allocation233_spill] sm:$0xff] %v8800_v22  ;;  %v372_v22 = vsel %vm330_vm0, %v7800_v12, 0.0  ;;  %v356_v31 = vsel %vm330_vm0, %v8429_v54, 0.0  ;;  %v364_v24 = vsel %vm330_vm0, %v8096_v55, 0.0  ;;  %v368_v35 = vadd.f32 %v7779_v38, %v7547_v40  ;;  %v11732_v38 = vld [vmem:[#allocation25_spill] sm:$0xff] }
  0xec   :  { %v359_v30 = vadd.f32 %v358_v29, %v8091_v60  ;;  %v373_v21 = vadd.f32 %v372_v22, %v371_v59  ;;  %v381_v28 = vsel %vm330_vm0, %v7557_v42, 0.0  ;;  %v382_v12 = vsel %vm330_vm0, %v7810_v56, 0.0  ;;  %v11733_v59 = vld [vmem:[#allocation117_spill] sm:$0xff]  ;;  %v11738_v22 = vld [vmem:[#allocation26_spill] sm:$0xff] }
  0xed   :  { %v8828_v14 = vadd.f32 %v339_v7, %v8398_v45  ;;  %v8830_v9 = vadd.f32 %v346_v13, %v345_v27  ;;  %v8833_v54 = vadd.f32 %v349_v23, %v8424_v63  ;;  %v374_v40 = vsel %vm330_vm0, %v8123_v58, 0.0  ;;  %v11734_v63 = vld [vmem:[#allocation65_spill] sm:$0xff]  ;;  %v11740_v29 = vld [vmem:[#allocation30_spill] sm:$0xff]  ;;  %v11741_v27 = vld [vmem:[#allocation67_spill] sm:$0xff] }
  0xee   :  { %v8837_v55 = vadd.f32 %v356_v31, %v355_v46  ;;  %v365_v60 = vadd.f32 %v364_v24, %v363_v10  ;;  %v378_v42 = vadd.f32 %v7805_v52, %v7552_v41  ;;  %v391_v56 = vsel %vm330_vm0, %v11732_v38, 0.0  ;;  %v11736_v41 = vld [vmem:[#allocation24_spill] sm:$0xff]  ;;  %v11742_v46 = vld [vmem:[#allocation118_spill] sm:$0xff] }
  0xef   :  { %v366_v45 = vsel %vm330_vm0, %v8455_v47, 0.0  ;;  %v369_v32 = vadd.f32 %v368_v35, %v11733_v59  ;;  %v383_v62 = vadd.f32 %v382_v12, %v381_v28  ;;  %v392_v20 = vsel %vm330_vm0, %v11734_v63, 0.0  ;;  %v11737_v52 = vld [vmem:[#allocation64_spill] sm:$0xff]  ;;  %v11749_v63 = vld [vmem:[#allocation126_spill] sm:$0xff] }
  0xf0   :  { %v8849_v58 = vadd.f32 %v359_v30, %v8434_v11  ;;  %v375_v53 = vadd.f32 %v374_v40, %v373_v21  ;;  %v384_v26 = vsel %vm330_vm0, %v11735_v36, 0.0  ;;  %v388_v44 = vadd.f32 %v11737_v52, %v11736_v41  ;;  %v11743_v28 = vld [vmem:[#allocation32_spill] sm:$0xff] }
  0xf1   :  { %v393_v10 = vadd.f32 %v392_v20, %v391_v56  ;;  %v398_v47 = vadd.f32 %v11739_v25, %v11738_v22  ;;  %v401_v7 = vsel %vm330_vm0, %v11740_v29, 0.0  ;;  %v402_v13 = vsel %vm330_vm0, %v11741_v27, 0.0  ;;  %v11744_v40 = vld [vmem:[#allocation124_spill] sm:$0xff]  ;;  %v11745_v56 = vld [vmem:[#allocation31_spill] sm:$0xff]  ;;  %v11754_v29 = vld [vmem:[#allocation9_spill] sm:$0xff] }
  0xf2   :  { %v8861_v23 = vadd.f32 %v366_v45, %v365_v60  ;;  %v376_v11 = vsel %vm330_vm0, %v8465_v6, 0.0  ;;  %v379_v31 = vadd.f32 %v378_v42, %v11742_v46  ;;  %v394_v24 = vsel %vm330_vm0, %v8159_v5, 0.0  ;;  %v11746_v6 = vld [vmem:[#allocation71_spill] sm:$0xff]  ;;  %v11747_v42 = vld [vmem:[#allocation72_spill] sm:$0xff] }
  0xf3   :  { %v8869_v35 = vadd.f32 %v369_v32, %v8460_v48  ;;  %v385_v30 = vadd.f32 %v384_v26, %v383_v62  ;;  %v386_v21 = vsel %vm330_vm0, %v8491_v57, 0.0  ;;  %v411_v12 = vsel %vm330_vm0, %v11743_v28, 0.0  ;;  %v11748_v32 = vld [vmem:[#allocation125_spill] sm:$0xff]  ;;  %v11750_v20 = vld [vmem:[#allocation187_spill] sm:$0xff]  ;;  %v11751_v52 = vld [vmem:[#allocation12_spill] sm:$0xff] }
  0xf4   :  { %v389_v60 = vadd.f32 %v388_v44, %v11744_v40  ;;  %v403_v38 = vadd.f32 %v402_v13, %v401_v7  ;;  %v408_v45 = vadd.f32 %v11746_v6, %v11745_v56  ;;  %v412_v59 = vsel %vm330_vm0, %v11747_v42, 0.0  ;;  %v11752_v44 = vld [vmem:[#allocation73_spill] sm:$0xff]  ;;  %v11755_v7 = vld [vmem:[#allocation74_spill] sm:$0xff]  ;;  %v11756_v13 = vld [vmem:[#allocation188_spill] sm:$0xff] }
  0xf5   :  { %v8880_v5 = vadd.f32 %v376_v11, %v375_v53  ;;  %v395_v48 = vadd.f32 %v394_v24, %v393_v10  ;;  %v399_v62 = vadd.f32 %v398_v47, %v11748_v32  ;;  %v404_v57 = vsel %vm330_vm0, %v11749_v63, 0.0  ;;  %v11753_v53 = vld [vmem:[#allocation132_spill] sm:$0xff]  ;;  %v11758_v24 = vld [vmem:[#allocation10_spill] sm:$0xff]  ;;  %v11761_v6 = vld [vmem:[#allocation79_spill] sm:$0xff] }
  0xf6   :  { %v8886_v36 = vadd.f32 %v379_v31, %v11750_v20  ;;  %v396_v26 = vsel %vm330_vm0, %v8518_v0, 0.0  ;;  %v413_v41 = vadd.f32 %v412_v59, %v411_v12  ;;  %v418_v22 = vadd.f32 %v11752_v44, %v11751_v52  ;;  %v11757_v0 = vld [vmem:[#allocation131_spill] sm:$0xff]  ;;  %v11760_v40 = vld [vmem:[#allocation194_spill] sm:$0xff]  ;;  %v11767_v44 = vld [vmem:[#allocation81_spill] sm:$0xff] }
  0xf7   :  { %v8892_v25 = vadd.f32 %v386_v21, %v385_v30  ;;  %v414_v10 = vsel %vm330_vm0, %v11753_v53, 0.0  ;;  %v421_v47 = vsel %vm330_vm0, %v11754_v29, 0.0  ;;  %v422_v27 = vsel %vm330_vm0, %v11755_v7, 0.0  ;;  %v11759_v21 = vld [vmem:[#allocation193_spill] sm:$0xff]  ;;  %v11763_v63 = vld [vmem:[#allocation134_spill] sm:$0xff]  ;;  %v11766_v52 = vld [vmem:[#allocation11_spill] sm:$0xff] }
  0xf8   :  { %v8901_v11 = vadd.f32 %v389_v60, %v11756_v13  ;;  %v405_v46 = vadd.f32 %v404_v57, %v403_v38  ;;  %v409_v31 = vadd.f32 %v408_v45, %v11757_v0  ;;  %v431_v28 = vsel %vm330_vm0, %v11758_v24, 0.0  ;;  %v11762_v60 = vld [vmem:[#allocation133_spill] sm:$0xff]  ;;  %v11765_v20 = vld [vmem:[#allocation78_spill] sm:$0xff]  ;;  %v11772_v0 = vld [vmem:[#allocation80_spill] sm:$0xff] }
  0xf9   :  { %v8906_v30 = vadd.f32 %v396_v26, %v395_v48  ;;  %v8909_v12 = vadd.f32 %v399_v62, %v11759_v21  ;;  %v406_v56 = vsel %vm330_vm0, %v11760_v40, 0.0  ;;  %v432_v42 = vsel %vm330_vm0, %v11761_v6, 0.0  ;;  %v11764_v57 = vld [vmem:[#allocation13_spill] sm:$0xff]  ;;  %v11771_v13 = vld [vmem:[#allocation18_spill] sm:$0xff] }
  0xfa   :  { %v415_v59 = vadd.f32 %v414_v10, %v413_v41  ;;  %v419_v32 = vadd.f32 %v418_v22, %v11762_v60  ;;  %v423_v38 = vadd.f32 %v422_v27, %v421_v47  ;;  %v424_v45 = vsel %vm330_vm0, %v11763_v63, 0.0  ;;  %v11769_v22 = vld [vmem:[#allocation199_spill] sm:$0xff]  ;;  %v11770_v47 = vld [vmem:[#allocation140_spill] sm:$0xff]  ;;  %v11773_v21 = vld [vmem:[#allocation14_spill] sm:$0xff] }
  0xfb   :  { %v428_v48 = vadd.f32 %v11765_v20, %v11764_v57  ;;  %v433_v26 = vadd.f32 %v432_v42, %v431_v28  ;;  %v441_v62 = vsel %vm330_vm0, %v11766_v52, 0.0  ;;  %v442_v53 = vsel %vm330_vm0, %v11767_v44, 0.0  ;;  %v11776_v6 = vld [vmem:[#allocation86_spill] sm:$0xff]  ;;  %v11777_v60 = vld [vmem:[#allocation87_spill] sm:$0xff] }
  0xfc   :  { %v8924_v29 = vadd.f32 %v406_v56, %v405_v46  ;;  %v8927_v41 = vadd.f32 %v409_v31, %v8549_v3  ;;  %v416_v10 = vsel %vm330_vm0, %v11769_v22, 0.0  ;;  %v434_v7 = vsel %vm330_vm0, %v11770_v47, 0.0  ;;  %v11774_v56 = vld [vmem:[#allocation142_spill] sm:$0xff]  ;;  %v11775_v31 = vld [vmem:[#allocation33_spill] sm:$0xff]  ;;  %v11780_v52 = vld [vmem:[#allocation139_spill] sm:$0xff] }
  0xfd   :  { %v426_v27 = vsel %vm330_vm0, %v8578_v8, 0.0  ;;  %v438_v24 = vadd.f32 %v11772_v0, %v11771_v13  ;;  %v443_v28 = vadd.f32 %v442_v53, %v441_v62  ;;  %v451_v46 = vsel %vm330_vm0, %v11773_v21, 0.0  ;;  %v11779_v8 = vld [vmem:[#allocation200_spill] sm:$0xff]  ;;  %v11781_v22 = vld [vmem:[#allocation37_spill] sm:$0xff]  ;;  %v11783_v47 = vld [vmem:[#allocation19_spill] sm:$0xff] }
  0xfe   :  { %11768 = vst [vmem:[#allocation25_spill] sm:$0xff] %v8927_v41  ;;  %v425_v40 = vadd.f32 %v424_v45, %v423_v38  ;;  %v444_v3 = vsel %vm330_vm0, %v11774_v56, 0.0  ;;  %v448_v42 = vadd.f32 %v11776_v6, %v11775_v31  ;;  %v452_v63 = vsel %vm330_vm0, %v11777_v60, 0.0  ;;  %v11782_v38 = vld [vmem:[#allocation88_spill] sm:$0xff]  ;;  %v11784_v0 = vld [vmem:[#allocation89_spill] sm:$0xff]  ;;  %v11853_v41 = vld [vmem:[#allocation55_spill] sm:$0xff] }
  0xff   :  { %v8945_v57 = vadd.f32 %v416_v10, %v415_v59  ;;  %v8948_v20 = vadd.f32 %v419_v32, %v11779_v8  ;;  %v429_v62 = vadd.f32 %v428_v48, %v11780_v52  ;;  %v435_v44 = vadd.f32 %v434_v7, %v433_v26  ;;  %v11785_v56 = vld [vmem:[#allocation205_spill] sm:$0xff]  ;;  %v11787_v6 = vld [vmem:[#allocation148_spill] sm:$0xff] }
 0x100   :  { %v453_v53 = vadd.f32 %v452_v63, %v451_v46  ;;  %v458_v45 = vadd.f32 %v11782_v38, %v11781_v22  ;;  %v461_v13 = vsel %vm330_vm0, %v11783_v47, 0.0  ;;  %v462_v21 = vsel %vm330_vm0, %v11784_v0, 0.0  ;;  %v11786_v10 = vld [vmem:[#allocation141_spill] sm:$0xff]  ;;  %v11788_v46 = vld [vmem:[#allocation147_spill] sm:$0xff]  ;;  %v11790_v52 = vld [vmem:[#allocation204_spill] sm:$0xff] }
 0x101   :  { %11778 = vst [vmem:[#allocation117_spill] sm:$0xff] %v8945_v57  ;;  %v436_v59 = vsel %vm330_vm0, %v11785_v56, 0.0  ;;  %v439_v31 = vadd.f32 %v438_v24, %v11786_v10  ;;  %v445_v32 = vadd.f32 %v444_v3, %v443_v28  ;;  %v454_v48 = vsel %vm330_vm0, %v11787_v6, 0.0  ;;  %v11789_v63 = vld [vmem:[#allocation39_spill] sm:$0xff]  ;;  %v11791_v47 = vld [vmem:[#allocation38_spill] sm:$0xff]  ;;  %v11794_v56 = vld [vmem:[#allocation149_spill] sm:$0xff] }
 0x102   :  { %v8962_v26 = vadd.f32 %v426_v27, %v425_v40  ;;  %v446_v7 = vsel %vm330_vm0, %v8614_v49, 0.0  ;;  %v449_v60 = vadd.f32 %v448_v42, %v11788_v46  ;;  %v471_v8 = vsel %vm330_vm0, %v11789_v63, 0.0  ;;  %v11792_v24 = vld [vmem:[#allocation94_spill] sm:$0xff]  ;;  %v11793_v3 = vld [vmem:[#allocation95_spill] sm:$0xff] }
 0x103   :  { %v8970_v22 = vadd.f32 %v429_v62, %v11790_v52  ;;  %v463_v38 = vadd.f32 %v462_v21, %v461_v13  ;;  %v468_v28 = vadd.f32 %v11792_v24, %v11791_v47  ;;  %v472_v0 = vsel %vm330_vm0, %v11793_v3, 0.0  ;;  %v11795_v10 = vld [vmem:[#allocation150_spill] sm:$0xff]  ;;  %v11801_v52 = vld [vmem:[#allocation96_spill] sm:$0xff] }
 0x104   :  { %v8976_v27 = vadd.f32 %v436_v59, %v435_v44  ;;  %v455_v40 = vadd.f32 %v454_v48, %v453_v53  ;;  %v459_v49 = vadd.f32 %v458_v45, %v11794_v56  ;;  %v464_v42 = vsel %vm330_vm0, %v11795_v10, 0.0  ;;  %v11796_v44 = vld [vmem:[#allocation156_spill] sm:$0xff]  ;;  %v11797_v59 = vld [vmem:[#allocation45_spill] sm:$0xff]  ;;  %v11803_v3 = vld [vmem:[#allocation102_spill] sm:$0xff] }
 0x105   :  { %v8982_v6 = vadd.f32 %v439_v31, %v8609_v15  ;;  %v8984_v62 = vadd.f32 %v446_v7, %v445_v32  ;;  %v456_v13 = vsel %vm330_vm0, %v8641_v2, 0.0  ;;  %v473_v21 = vadd.f32 %v472_v0, %v471_v8  ;;  %v11798_v48 = vld [vmem:[#allocation97_spill] sm:$0xff]  ;;  %v11799_v31 = vld [vmem:[#allocation155_spill] sm:$0xff]  ;;  %v11800_v7 = vld [vmem:[#allocation44_spill] sm:$0xff] }
 0x106   :  { %v8989_v46 = vadd.f32 %v449_v60, %v8619_v16  ;;  %v474_v53 = vsel %vm330_vm0, %v11796_v44, 0.0  ;;  %v481_v45 = vsel %vm330_vm0, %v11797_v59, 0.0  ;;  %v482_v63 = vsel %vm330_vm0, %v11798_v48, 0.0  ;;  %v11802_v2 = vld [vmem:[#allocation51_spill] sm:$0xff]  ;;  %v11804_v10 = vld [vmem:[#allocation162_spill] sm:$0xff]  ;;  %v11808_v48 = vld [vmem:[#allocation104_spill] sm:$0xff] }
 0x107   :  { %v465_v15 = vadd.f32 %v464_v42, %v463_v38  ;;  %v469_v32 = vadd.f32 %v468_v28, %v11799_v31  ;;  %v478_v47 = vadd.f32 %v11801_v52, %v11800_v7  ;;  %v491_v8 = vsel %vm330_vm0, %v11802_v2, 0.0  ;;  %v11805_v44 = vld [vmem:[#allocation46_spill] sm:$0xff]  ;;  %v11811_v52 = vld [vmem:[#allocation52_spill] sm:$0xff]  ;;  %v11812_v2 = vld [vmem:[#allocation103_spill] sm:$0xff] }
 0x108   :  { %v9002_v16 = vadd.f32 %v456_v13, %v455_v40  ;;  %v9005_v60 = vadd.f32 %v459_v49, %v8646_v34  ;;  %v466_v24 = vsel %vm330_vm0, %v8651_v17, 0.0  ;;  %v492_v0 = vsel %vm330_vm0, %v11803_v3, 0.0  ;;  %v11806_v40 = vld [vmem:[#allocation101_spill] sm:$0xff] }
 0x109   :  { %v475_v38 = vadd.f32 %v474_v53, %v473_v21  ;;  %v476_v28 = vsel %vm330_vm0, %v8674_v37, 0.0  ;;  %v483_v56 = vadd.f32 %v482_v63, %v481_v45  ;;  %v484_v42 = vsel %vm330_vm0, %v11804_v10, 0.0  ;;  %v11807_v34 = vld [vmem:[#allocation53_spill] sm:$0xff]  ;;  %v11810_v45 = vld [vmem:[#allocation164_spill] sm:$0xff] }
 0x10a   :  { %v488_v13 = vadd.f32 %v11806_v40, %v11805_v44  ;;  %v493_v59 = vadd.f32 %v492_v0, %v491_v8  ;;  %v501_v49 = vsel %vm330_vm0, %v11807_v34, 0.0  ;;  %v502_v17 = vsel %vm330_vm0, %v11808_v48, 0.0  ;;  %v11809_v37 = vld [vmem:[#allocation157_spill] sm:$0xff]  ;;  %v11813_v0 = vld [vmem:[#allocation15_spill] sm:$0xff]  ;;  %v11816_v44 = vld [vmem:[#allocation36_spill] sm:$0xff] }
 0x10b   :  { %v9021_v31 = vadd.f32 %v466_v24, %v465_v15  ;;  %v9024_v21 = vadd.f32 %v469_v32, %v8669_v33  ;;  %v479_v53 = vadd.f32 %v478_v47, %v11809_v37  ;;  %v494_v63 = vsel %vm330_vm0, %v11810_v45, 0.0  ;;  %v11814_v24 = vld [vmem:[#allocation170_spill] sm:$0xff]  ;;  %v11815_v32 = vld [vmem:[#allocation20_spill] sm:$0xff] }
 0x10c   :  { %v486_v7 = vsel %vm330_vm0, %v8700_v50, 0.0  ;;  %v498_v8 = vadd.f32 %v11812_v2, %v11811_v52  ;;  %v503_v3 = vadd.f32 %v502_v17, %v501_v49  ;;  %v511_v10 = vsel %vm330_vm0, %v11813_v0, 0.0  ;;  %v11817_v40 = vld [vmem:[#allocation48_spill] sm:$0xff]  ;;  %v11818_v50 = vld [vmem:[#allocation163_spill] sm:$0xff]  ;;  %v11821_v0 = vld [vmem:[#allocation49_spill] sm:$0xff] }
 0x10d   :  { %v485_v15 = vadd.f32 %v484_v42, %v483_v56  ;;  %v504_v33 = vsel %vm330_vm0, %v11814_v24, 0.0  ;;  %v508_v47 = vadd.f32 %v11816_v44, %v11815_v32  ;;  %v512_v34 = vsel %vm330_vm0, %v11817_v40, 0.0  ;;  %v11819_v42 = vld [vmem:[#allocation144_spill] sm:$0xff]  ;;  %v11820_v2 = vld [vmem:[#allocation27_spill] sm:$0xff]  ;;  %v11822_v32 = vld [vmem:[#allocation169_spill] sm:$0xff] }
 0x10e   :  { %v9041_v48 = vadd.f32 %v476_v28, %v475_v38  ;;  %v489_v37 = vadd.f32 %v488_v13, %v11818_v50  ;;  %v495_v45 = vadd.f32 %v494_v63, %v493_v59  ;;  %v513_v52 = vadd.f32 %v512_v34, %v511_v10  ;;  %v11823_v28 = vld [vmem:[#allocation16_spill] sm:$0xff]  ;;  %v11824_v59 = vld [vmem:[#allocation50_spill] sm:$0xff]  ;;  %v11826_v40 = vld [vmem:[#allocation21_spill] sm:$0xff] }
 0x10f   :  { %v9045_v49 = vadd.f32 %v479_v53, %v8679_v19  ;;  %v496_v56 = vsel %vm330_vm0, %v8722_v61, 0.0  ;;  %v514_v17 = vsel %vm330_vm0, %v11819_v42, 0.0  ;;  %v518_v24 = vadd.f32 %v11821_v0, %v11820_v2  ;;  %v11825_v53 = vld [vmem:[#allocation143_spill] sm:$0xff]  ;;  %v11829_v2 = vld [vmem:[#allocation196_spill] sm:$0xff] }
 0x110   :  { %v499_v44 = vadd.f32 %v498_v8, %v11822_v32  ;;  %v505_v38 = vadd.f32 %v504_v33, %v503_v3  ;;  %v521_v13 = vsel %vm330_vm0, %v11823_v28, 0.0  ;;  %v522_v63 = vsel %vm330_vm0, %v11824_v59, 0.0  ;;  %v11828_v33 = vld [vmem:[#allocation90_spill] sm:$0xff]  ;;  %v11831_v32 = vld [vmem:[#allocation40_spill] sm:$0xff] }
 0x111   :  { %v9058_v19 = vadd.f32 %v486_v7, %v485_v15  ;;  %v506_v61 = vsel %vm330_vm0, %v8764_v1, 0.0  ;;  %v509_v10 = vadd.f32 %v508_v47, %v11825_v53  ;;  %v531_v34 = vsel %vm330_vm0, %v11826_v40, 0.0  ;;  %v11830_v15 = vld [vmem:[#allocation145_spill] sm:$0xff]  ;;  %v11838_v53 = vld [vmem:[#allocation152_spill] sm:$0xff] }
 0x112   :  { %v9066_v50 = vadd.f32 %v489_v37, %v8705_v18  ;;  %v9068_v8 = vadd.f32 %v496_v56, %v495_v45  ;;  %v515_v3 = vadd.f32 %v514_v17, %v513_v52  ;;  %v532_v42 = vsel %vm330_vm0, %v11828_v33, 0.0  ;;  %v11832_v47 = vld [vmem:[#allocation85_spill] sm:$0xff]  ;;  %v11835_v37 = vld [vmem:[#allocation146_spill] sm:$0xff]  ;;  %v11836_v56 = vld [vmem:[#allocation195_spill] sm:$0xff] }
 0x113   :  { %v516_v7 = vsel %vm330_vm0, %v11829_v2, 0.0  ;;  %v519_v0 = vadd.f32 %v518_v24, %v11830_v15  ;;  %v523_v1 = vadd.f32 %v522_v63, %v521_v13  ;;  %v528_v28 = vadd.f32 %v11832_v47, %v11831_v32  ;;  %v11839_v24 = vld [vmem:[#allocation28_spill] sm:$0xff]  ;;  %v11844_v2 = vld [vmem:[#allocation91_spill] sm:$0xff]  ;;  %v11846_v15 = vld [vmem:[#allocation197_spill] sm:$0xff] }
 0x114   :  { %11827 = vst [vmem:[#allocation65_spill] sm:$0xff] %v9066_v50  ;;  %v9078_v59 = vadd.f32 %v499_v44, %v8759_v39  ;;  %v9080_v18 = vadd.f32 %v506_v61, %v505_v38  ;;  %v524_v45 = vsel %vm330_vm0, %v11835_v37, 0.0  ;;  %v533_v52 = vadd.f32 %v532_v42, %v531_v34  ;;  %v11840_v63 = vld [vmem:[#allocation92_spill] sm:$0xff]  ;;  %v11842_v44 = vld [vmem:[#allocation198_spill] sm:$0xff]  ;;  %v11843_v61 = vld [vmem:[#allocation47_spill] sm:$0xff] }
 0x115   :  { %v9085_v17 = vadd.f32 %v509_v10, %v11836_v56  ;;  %v534_v40 = vsel %vm330_vm0, %v11838_v53, 0.0  ;;  %v541_v13 = vsel %vm330_vm0, %v11839_v24, 0.0  ;;  %v542_v33 = vsel %vm330_vm0, %v11840_v63, 0.0  ;;  %v11845_v42 = vld [vmem:[#allocation41_spill] sm:$0xff]  ;;  %v11848_v37 = vld [vmem:[#allocation151_spill] sm:$0xff]  ;;  %v11849_v53 = vld [vmem:[#allocation98_spill] sm:$0xff] }
 0x116   :  { %11833 = vst [vmem:[#allocation119_spill] sm:$0xff] %v9078_v59  ;;  %v9093_v39 = vadd.f32 %v516_v7, %v515_v3  ;;  %v526_v38 = vsel %vm330_vm0, %v11842_v44, 0.0  ;;  %v538_v34 = vadd.f32 %v11844_v2, %v11843_v61  ;;  %v551_v10 = vsel %vm330_vm0, %v11845_v42, 0.0  ;;  %v11850_v63 = vld [vmem:[#allocation154_spill] sm:$0xff]  ;;  %v11852_v59 = vld [vmem:[#allocation93_spill] sm:$0xff]  ;;  %v11854_v42 = vld [vmem:[#allocation99_spill] sm:$0xff] }
 0x117   :  { %11834 = vst [vmem:[#allocation24_spill] sm:$0xff] %v9080_v18  ;;  %v9102_v32 = vadd.f32 %v519_v0, %v11846_v15  ;;  %v525_v47 = vadd.f32 %v524_v45, %v523_v1  ;;  %v529_v56 = vadd.f32 %v528_v28, %v11848_v37  ;;  %v552_v24 = vsel %vm330_vm0, %v11849_v53, 0.0  ;;  %v11855_v0 = vld [vmem:[#allocation56_spill] sm:$0xff]  ;;  %v11857_v15 = vld [vmem:[#allocation202_spill] sm:$0xff] }
 0x118   :  { %11837 = vst [vmem:[#allocation64_spill] sm:$0xff] %v9085_v17  ;;  %v535_v3 = vadd.f32 %v534_v40, %v533_v52  ;;  %v543_v7 = vadd.f32 %v542_v33, %v541_v13  ;;  %v544_v44 = vsel %vm330_vm0, %v11850_v63, 0.0  ;;  %v11851_v17 = vld [vmem:[#allocation54_spill] sm:$0xff]  ;;  %v553_v2 = vadd.f32 %v552_v24, %v551_v10  ;;  %v11856_v45 = vld [vmem:[#allocation100_spill] sm:$0xff]  ;;  %v11858_v40 = vld [vmem:[#allocation153_spill] sm:$0xff] }
 0x119   :  { %11841 = vst [vmem:[#allocation26_spill] sm:$0xff] %v9093_v39  ;;  %v548_v61 = vadd.f32 %v11852_v59, %v11851_v17  ;;  %v558_v39 = vadd.f32 %v11854_v42, %v11853_v41  ;;  %v561_v1 = vsel %vm330_vm0, %v11855_v0, 0.0  ;;  %v562_v28 = vsel %vm330_vm0, %v11856_v45, 0.0  ;;  %v11859_v33 = vld [vmem:[#allocation159_spill] sm:$0xff]  ;;  %v11861_v17 = vld [vmem:[#allocation201_spill] sm:$0xff]  ;;  %v11864_v63 = vld [vmem:[#allocation58_spill] sm:$0xff] }
 0x11a   :  { %11847 = vst [vmem:[#allocation66_spill] sm:$0xff] %v9102_v32  ;;  %v536_v52 = vsel %vm330_vm0, %v11857_v15, 0.0  ;;  %v539_v13 = vadd.f32 %v538_v34, %v11858_v40  ;;  %v554_v37 = vsel %vm330_vm0, %v11859_v33, 0.0  ;;  %v563_v53 = vadd.f32 %v562_v28, %v561_v1  ;;  %v11863_v41 = vld [vmem:[#allocation161_spill] sm:$0xff]  ;;  %v11865_v45 = vld [vmem:[#allocation206_spill] sm:$0xff] }
 0x11b   :  { %v9122_v59 = vadd.f32 %v526_v38, %v525_v47  ;;  %v9125_v10 = vadd.f32 %v529_v56, %v11861_v17  ;;  %v564_v24 = vsel %vm330_vm0, %v11863_v41, 0.0  ;;  %v571_v42 = vsel %vm330_vm0, %v11864_v63, 0.0  ;;  %v11866_v34 = vld [vmem:[#allocation57_spill] sm:$0xff]  ;;  %v11868_v33 = vld [vmem:[#allocation106_spill] sm:$0xff]  ;;  %v11871_v17 = vld [vmem:[#allocation160_spill] sm:$0xff] }
 0x11c   :  { %v545_v0 = vadd.f32 %v544_v44, %v543_v7  ;;  %v546_v15 = vsel %vm330_vm0, %v11865_v45, 0.0  ;;  %v11867_v40 = vld [vmem:[#allocation105_spill] sm:$0xff]  ;;  %v572_v38 = vsel %vm330_vm0, %v11868_v33, 0.0  ;;  %v9137_v47 = vadd.f32 %v536_v52, %v535_v3  ;;  %v11870_v56 = vld [vmem:[#allocation158_spill] sm:$0xff]  ;;  %v11874_v7 = vld [vmem:[#allocation208_spill] sm:$0xff] }
 0x11d   :  { %11860 = vst [vmem:[#allocation30_spill] sm:$0xff] %v9122_v59  ;;  %v568_v32 = vadd.f32 %v11867_v40, %v11866_v34  ;;  %v549_v1 = vadd.f32 %v548_v61, %v11870_v56  ;;  %v555_v28 = vadd.f32 %v554_v37, %v553_v2  ;;  %v559_v41 = vadd.f32 %v558_v39, %v11871_v17  ;;  %v11875_v18 = vld [vmem:[#allocation210_spill] sm:$0xff]  ;;  %v11877_v52 = vld [vmem:[#allocation60_spill] sm:$0xff]  ;;  %v11881_v33 = vld [vmem:[#allocation59_spill] sm:$0xff] }
 0x11e   :  { %11862 = vst [vmem:[#allocation67_spill] sm:$0xff] %v9125_v10  ;;  %v11872_v10 = vld [vmem:[#allocation203_spill] sm:$0xff]  ;;  %v556_v44 = vsel %vm330_vm0, %v11874_v7, 0.0  ;;  %v565_v63 = vadd.f32 %v564_v24, %v563_v53  ;;  %v573_v45 = vadd.f32 %v572_v38, %v571_v42  ;;  %v566_v34 = vsel %vm330_vm0, %v11875_v18, 0.0  ;;  %v11876_v40 = vld [vmem:[#allocation166_spill] sm:$0xff]  ;;  %v11878_v2 = vld [vmem:[#allocation108_spill] sm:$0xff] }
 0x11f   :  { %11869 = vst [vmem:[#allocation118_spill] sm:$0xff] %v9137_v47  ;;  %v9142_v59 = vadd.f32 %v539_v13, %v11872_v10  ;;  %v574_v3 = vsel %vm330_vm0, %v11876_v40, 0.0  ;;  %v581_v61 = vsel %vm330_vm0, %v11877_v52, 0.0  ;;  %v582_v39 = vsel %vm330_vm0, %v11878_v2, 0.0  ;;  %v11880_v13 = vld [vmem:[#allocation165_spill] sm:$0xff]  ;;  %v11882_v56 = vld [vmem:[#allocation107_spill] sm:$0xff] }
 0x120   :  { %v9154_v37 = vadd.f32 %v546_v15, %v545_v0  ;;  %v569_v10 = vadd.f32 %v568_v32, %v11880_v13  ;;  %v578_v53 = vadd.f32 %v11882_v56, %v11881_v33  ;;  %v11883_v24 = vld [vmem:[#allocation62_spill] sm:$0xff]  ;;  %v11884_v18 = vld [vmem:[#allocation207_spill] sm:$0xff]  ;;  %v9164_v17 = vadd.f32 %v556_v44, %v555_v28  ;;  %v11887_v7 = vld [vmem:[#allocation209_spill] sm:$0xff] }
 0x121   :  { %11873 = vst [vmem:[#allocation32_spill] sm:$0xff] %v9142_v59  ;;  %v591_v42 = vsel %vm330_vm0, %v11883_v24, 0.0  ;;  %v9162_v38 = vadd.f32 %v549_v1, %v11884_v18  ;;  %v9167_v40 = vadd.f32 %v559_v41, %v11887_v7  ;;  %v11889_v52 = vld [vmem:[#allocation110_spill] sm:$0xff]  ;;  %v9171_v15 = vadd.f32 %v566_v34, %v565_v63  ;;  %v11891_v2 = vld [vmem:[#allocation212_spill] sm:$0xff]  ;;  %v11892_v56 = vld [vmem:[#allocation61_spill] sm:$0xff] }
 0x122   :  { %11879 = vst [vmem:[#allocation124_spill] sm:$0xff] %v9154_v37  ;;  %v592_v0 = vsel %vm330_vm0, %v11889_v52, 0.0  ;;  %v575_v32 = vadd.f32 %v574_v3, %v573_v45  ;;  %v576_v13 = vsel %vm330_vm0, %v11891_v2, 0.0  ;;  %v583_v33 = vadd.f32 %v582_v39, %v581_v61  ;;  %v11893_v24 = vld [vmem:[#allocation109_spill] sm:$0xff]  ;;  %v11895_v44 = vld [vmem:[#allocation112_spill] sm:$0xff]  ;;  %v11896_v7 = vld [vmem:[#allocation211_spill] sm:$0xff] }
 0x123   :  { %11885 = vst [vmem:[#allocation31_spill] sm:$0xff] %v9162_v38  ;;  %v588_v59 = vadd.f32 %v11893_v24, %v11892_v56  ;;  %v593_v1 = vadd.f32 %v592_v0, %v591_v42  ;;  %v11894_v18 = vld [vmem:[#allocation17_spill] sm:$0xff]  ;;  %v602_v41 = vsel %vm330_vm0, %v11895_v44, 0.0  ;;  %v11898_v63 = vld [vmem:[#allocation167_spill] sm:$0xff]  ;;  %v11899_v45 = vld [vmem:[#allocation168_spill] sm:$0xff] }
 0x124   :  { %11886 = vst [vmem:[#allocation71_spill] sm:$0xff] %v9164_v17  ;;  %v601_v28 = vsel %vm330_vm0, %v11894_v18, 0.0  ;;  %v579_v34 = vadd.f32 %v578_v53, %v11898_v63  ;;  %v584_v3 = vsel %vm330_vm0, %v11899_v45, 0.0  ;;  %v11900_v52 = vld [vmem:[#allocation172_spill] sm:$0xff]  ;;  %v11901_v39 = vld [vmem:[#allocation214_spill] sm:$0xff]  ;;  %v11902_v0 = vld [vmem:[#allocation29_spill] sm:$0xff] }
 0x125   :  { %11888 = vst [vmem:[#allocation72_spill] sm:$0xff] %v9167_v40  ;;  %v9182_v40 = vadd.f32 %v569_v10, %v11896_v7  ;;  %v594_v61 = vsel %vm330_vm0, %v11900_v52, 0.0  ;;  %v586_v42 = vsel %vm330_vm0, %v11901_v39, 0.0  ;;  %v11903_v2 = vld [vmem:[#allocation111_spill] sm:$0xff]  ;;  %v603_v24 = vadd.f32 %v602_v41, %v601_v28  ;;  %v11904_v18 = vld [vmem:[#allocation22_spill] sm:$0xff]  ;;  %v11908_v45 = vld [vmem:[#allocation113_spill] sm:$0xff] }
 0x126   :  { %11890 = vst [vmem:[#allocation125_spill] sm:$0xff] %v9171_v15  ;;  %v598_v56 = vadd.f32 %v11903_v2, %v11902_v0  ;;  %v611_v44 = vsel %vm330_vm0, %v11904_v18, 0.0  ;;  %v9195_v10 = vadd.f32 %v576_v13, %v575_v32  ;;  %v11906_v7 = vld [vmem:[#allocation174_spill] sm:$0xff]  ;;  %v585_v38 = vadd.f32 %v584_v3, %v583_v33  ;;  %v11910_v39 = vld [vmem:[#allocation171_spill] sm:$0xff]  ;;  %v11911_v0 = vld [vmem:[#allocation216_spill] sm:$0xff] }
 0x127   :  { %11897 = vst [vmem:[#allocation126_spill] sm:$0xff] %v9182_v40  ;;  %v604_v53 = vsel %vm330_vm0, %v11906_v7, 0.0  ;;  %v11907_v63 = vld [vmem:[#allocation34_spill] sm:$0xff]  ;;  %v589_v17 = vadd.f32 %v588_v59, %v11910_v39  ;;  %v595_v37 = vadd.f32 %v594_v61, %v593_v1  ;;  %v596_v28 = vsel %vm330_vm0, %v11911_v0, 0.0  ;;  %v11913_v32 = vld [vmem:[#allocation115_spill] sm:$0xff]  ;;  %v11917_v33 = vld [vmem:[#allocation176_spill] sm:$0xff] }
 0x128   :  { %11905 = vst [vmem:[#allocation187_spill] sm:$0xff] %v9195_v10  ;;  %v608_v40 = vadd.f32 %v11908_v45, %v11907_v63  ;;  %v11909_v15 = vld [vmem:[#allocation114_spill] sm:$0xff]  ;;  %v11914_v18 = vld [vmem:[#allocation23_spill] sm:$0xff]  ;;  %v11915_v10 = vld [vmem:[#allocation116_spill] sm:$0xff]  ;;  %v614_v59 = vsel %vm330_vm0, %v11917_v33, 0.0 }
 0x129   :  { %v612_v52 = vsel %vm330_vm0, %v11909_v15, 0.0  ;;  %v11912_v2 = vld [vmem:[#allocation42_spill] sm:$0xff]  ;;  %v621_v7 = vsel %vm330_vm0, %v11914_v18, 0.0  ;;  %v622_v63 = vsel %vm330_vm0, %v11915_v10, 0.0  ;;  %v11916_v45 = vld [vmem:[#allocation173_spill] sm:$0xff]  ;;  %v605_v15 = vadd.f32 %v604_v53, %v603_v24  ;;  %v11921_v39 = vld [vmem:[#allocation175_spill] sm:$0xff] }
 0x12a   :  { %v613_v41 = vadd.f32 %v612_v52, %v611_v44  ;;  %v618_v13 = vadd.f32 %v11913_v32, %v11912_v2  ;;  %v599_v47 = vadd.f32 %v598_v56, %v11916_v45  ;;  %v623_v1 = vadd.f32 %v622_v63, %v621_v7  ;;  %v11918_v3 = vld [vmem:[#allocation213_spill] sm:$0xff]  ;;  %v11920_v44 = vld [vmem:[#allocation218_spill] sm:$0xff]  ;;  %v11924_v10 = vld [vmem:[#allocation215_spill] sm:$0xff] }
 0x12b   :  { %v9216_v61 = vadd.f32 %v579_v34, %v11918_v3  ;;  %v606_v52 = vsel %vm330_vm0, %v11920_v44, 0.0  ;;  %v609_v0 = vadd.f32 %v608_v40, %v11921_v39  ;;  %v11922_v2 = vld [vmem:[#allocation178_spill] sm:$0xff]  ;;  %v9223_v18 = vadd.f32 %v586_v42, %v585_v38  ;;  %v11927_v53 = vld [vmem:[#allocation63_spill] sm:$0xff]  ;;  %v11928_v7 = vld [vmem:[#allocation120_spill] sm:$0xff] }
 0x12c   :  { %v624_v32 = vsel %vm330_vm0, %v11922_v2, 0.0  ;;  %v9226_v56 = vadd.f32 %v589_v17, %v11924_v10  ;;  %v9228_v24 = vadd.f32 %v596_v28, %v595_v37  ;;  %v628_v63 = vadd.f32 %v11928_v7, %v11927_v53  ;;  %v11929_v45 = vld [vmem:[#allocation177_spill] sm:$0xff]  ;;  %v11930_v3 = vld [vmem:[#allocation35_spill] sm:$0xff]  ;;  %v11935_v17 = vld [vmem:[#allocation220_spill] sm:$0xff] }
 0x12d   :  { %11919 = vst [vmem:[#allocation12_spill] sm:$0xff] %v9216_v61  ;;  %v615_v34 = vadd.f32 %v614_v59, %v613_v41  ;;  %v619_v33 = vadd.f32 %v618_v13, %v11929_v45  ;;  %v631_v44 = vsel %vm330_vm0, %v11930_v3, 0.0  ;;  %v11931_v40 = vld [vmem:[#allocation121_spill] sm:$0xff]  ;;  %v9240_v42 = vadd.f32 %v606_v52, %v605_v15  ;;  %v11936_v10 = vld [vmem:[#allocation219_spill] sm:$0xff]  ;;  %v11938_v41 = vld [vmem:[#allocation222_spill] sm:$0xff] }
 0x12e   :  { %11923 = vst [vmem:[#allocation73_spill] sm:$0xff] %v9223_v18  ;;  %v632_v39 = vsel %vm330_vm0, %v11931_v40, 0.0  ;;  %v11932_v2 = vld [vmem:[#allocation217_spill] sm:$0xff]  ;;  %v616_v37 = vsel %vm330_vm0, %v11935_v17, 0.0  ;;  %v625_v28 = vadd.f32 %v624_v32, %v623_v1  ;;  %v9245_v53 = vadd.f32 %v609_v0, %v11936_v10  ;;  %v11939_v59 = vld [vmem:[#allocation43_spill] sm:$0xff]  ;;  %v11942_v52 = vld [vmem:[#allocation68_spill] sm:$0xff] }
 0x12f   :  { %11925 = vst [vmem:[#allocation132_spill] sm:$0xff] %v9226_v56  ;;  %v9238_v38 = vadd.f32 %v599_v47, %v11932_v2  ;;  %v626_v13 = vsel %vm330_vm0, %v11938_v41, 0.0  ;;  %v641_v7 = vsel %vm330_vm0, %v11939_v59, 0.0  ;;  %v11940_v45 = vld [vmem:[#allocation123_spill] sm:$0xff]  ;;  %v633_v15 = vadd.f32 %v632_v39, %v631_v44  ;;  %v11943_v2 = vld [vmem:[#allocation122_spill] sm:$0xff]  ;;  %v11946_v32 = vld [vmem:[#allocation221_spill] sm:$0xff] }
 0x130   :  { %11926 = vst [vmem:[#allocation9_spill] sm:$0xff] %v9228_v24  ;;  %v642_v3 = vsel %vm330_vm0, %v11940_v45, 0.0  ;;  %v11941_v47 = vld [vmem:[#allocation179_spill] sm:$0xff]  ;;  %v638_v56 = vadd.f32 %v11943_v2, %v11942_v52  ;;  %v11944_v17 = vld [vmem:[#allocation70_spill] sm:$0xff]  ;;  %v9258_v0 = vadd.f32 %v616_v37, %v615_v34  ;;  %v9261_v10 = vadd.f32 %v619_v33, %v11946_v32  ;;  %v11948_v41 = vld [vmem:[#allocation180_spill] sm:$0xff] }
 0x131   :  { %11933 = vst [vmem:[#allocation74_spill] sm:$0xff] %v9238_v38  ;;  %v629_v40 = vadd.f32 %v628_v63, %v11941_v47  ;;  %v651_v1 = vsel %vm330_vm0, %v11944_v17, 0.0  ;;  %v634_v59 = vsel %vm330_vm0, %v11948_v41, 0.0  ;;  %v11949_v61 = vld [vmem:[#allocation128_spill] sm:$0xff]  ;;  %v9267_v24 = vadd.f32 %v626_v13, %v625_v28  ;;  %v11951_v39 = vld [vmem:[#allocation182_spill] sm:$0xff]  ;;  %v11952_v34 = vld [vmem:[#allocation69_spill] sm:$0xff] }
 0x132   :  { %11934 = vst [vmem:[#allocation188_spill] sm:$0xff] %v9240_v42  ;;  %v652_v45 = vsel %vm330_vm0, %v11949_v61, 0.0  ;;  %v636_v63 = vsel %vm330_vm0, %v8730_v51, 0.0  ;;  %v643_v44 = vadd.f32 %v642_v3, %v641_v7  ;;  %v644_v47 = vsel %vm330_vm0, %v11951_v39, 0.0  ;;  %v11953_v37 = vld [vmem:[#allocation127_spill] sm:$0xff]  ;;  %v11954_v2 = vld [vmem:[#allocation76_spill] sm:$0xff] }
 0x133   :  { %11937 = vst [vmem:[#allocation131_spill] sm:$0xff] %v9245_v53  ;;  %v648_v52 = vadd.f32 %v11953_v37, %v11952_v34  ;;  %v653_v33 = vadd.f32 %v652_v45, %v651_v1  ;;  %v661_v17 = vsel %vm330_vm0, %v11954_v2, 0.0  ;;  %v11955_v32 = vld [vmem:[#allocation130_spill] sm:$0xff]  ;;  %v11956_v61 = vld [vmem:[#allocation223_spill] sm:$0xff]  ;;  %v635_v13 = vadd.f32 %v634_v59, %v633_v15  ;;  %v11958_v18 = vld [vmem:[#allocation181_spill] sm:$0xff] }
 0x134   :  { %11945 = vst [vmem:[#allocation10_spill] sm:$0xff] %v9258_v0  ;;  %v662_v41 = vsel %vm330_vm0, %v11955_v32, 0.0  ;;  %v9280_v28 = vadd.f32 %v629_v40, %v11956_v61  ;;  %v639_v51 = vadd.f32 %v638_v56, %v11958_v18  ;;  %v11959_v7 = vld [vmem:[#allocation184_spill] sm:$0xff]  ;;  %v11960_v39 = vld [vmem:[#allocation75_spill] sm:$0xff]  ;;  %v11962_v1 = vld [vmem:[#allocation77_spill] sm:$0xff]  ;;  %v645_v32 = vadd.f32 %v644_v47, %v643_v44 }
 0x135   :  { %11947 = vst [vmem:[#allocation193_spill] sm:$0xff] %v9261_v10  ;;  %v654_v3 = vsel %vm330_vm0, %v11959_v7, 0.0  ;;  %v11961_v10 = vld [vmem:[#allocation129_spill] sm:$0xff]  ;;  %v663_v34 = vadd.f32 %v662_v41, %v661_v17  ;;  %v11963_v45 = vld [vmem:[#allocation135_spill] sm:$0xff]  ;;  %v11964_v2 = vld [vmem:[#allocation82_spill] sm:$0xff] }
 0x136   :  { %11950 = vst [vmem:[#allocation194_spill] sm:$0xff] %v9267_v24  ;;  %v658_v53 = vadd.f32 %v11961_v10, %v11960_v39  ;;  %v668_v37 = vadd.f32 %v11963_v45, %v11962_v1  ;;  %v671_v24 = vsel %vm330_vm0, %v11964_v2, 0.0  ;;  %v11965_v0 = vld [vmem:[#allocation225_spill] sm:$0xff]  ;;  %v11966_v15 = vld [vmem:[#allocation186_spill] sm:$0xff]  ;;  %v11967_v56 = vld [vmem:[#allocation136_spill] sm:$0xff]  ;;  %v655_v10 = vadd.f32 %v654_v3, %v653_v33 }
 0x137   :  { %11957 = vst [vmem:[#allocation79_spill] sm:$0xff] %v9280_v28  ;;  %v646_v40 = vsel %vm330_vm0, %v11965_v0, 0.0  ;;  %v664_v18 = vsel %vm330_vm0, %v11966_v15, 0.0  ;;  %v672_v59 = vsel %vm330_vm0, %v11967_v56, 0.0  ;;  %v11968_v61 = vld [vmem:[#allocation183_spill] sm:$0xff]  ;;  %v11970_v1 = vld [vmem:[#allocation190_spill] sm:$0xff] }
 0x138   :  { %v649_v7 = vadd.f32 %v648_v52, %v11968_v61  ;;  %v11969_v17 = vld [vmem:[#allocation227_spill] sm:$0xff]  ;;  %v673_v39 = vadd.f32 %v672_v59, %v671_v24  ;;  %v674_v45 = vsel %vm330_vm0, %v11970_v1, 0.0  ;;  %v11972_v47 = vld [vmem:[#allocation137_spill] sm:$0xff]  ;;  %v11973_v0 = vld [vmem:[#allocation84_spill] sm:$0xff]  ;;  %v665_v52 = vadd.f32 %v664_v18, %v663_v34 }
 0x139   :  { %v656_v41 = vsel %vm330_vm0, %v11969_v17, 0.0  ;;  %v11971_v44 = vld [vmem:[#allocation83_spill] sm:$0xff]  ;;  %v681_v28 = vsel %vm330_vm0, %v11973_v0, 0.0  ;;  %v11974_v15 = vld [vmem:[#allocation138_spill] sm:$0xff]  ;;  %v11975_v56 = vld [vmem:[#allocation185_spill] sm:$0xff]  ;;  %v9310_v17 = vadd.f32 %v636_v63, %v635_v13  ;;  %v9319_v57 = vadd.f32 %v646_v40, %v645_v32 }
 0x13a   :  { %v678_v2 = vadd.f32 %v11972_v47, %v11971_v44  ;;  %v682_v38 = vsel %vm330_vm0, %v11974_v15, 0.0  ;;  %v659_v42 = vadd.f32 %v658_v53, %v11975_v56  ;;  %v11976_v33 = vld [vmem:[#allocation189_spill] sm:$0xff]  ;;  %v11977_v24 = vld [vmem:[#allocation224_spill] sm:$0xff]  ;;  %v11978_v1 = vld [vmem:[#allocation230_spill] sm:$0xff]  ;;  %v675_v53 = vadd.f32 %v674_v45, %v673_v39 }
 0x13b   :  { %v669_v3 = vadd.f32 %v668_v37, %v11976_v33  ;;  %v683_v61 = vadd.f32 %v682_v38, %v681_v28  ;;  %v9313_v59 = vadd.f32 %v639_v51, %v11977_v24  ;;  %v666_v44 = vsel %vm330_vm0, %v11978_v1, 0.0  ;;  %v11979_v47 = vld [vmem:[#allocation192_spill] sm:$0xff]  ;;  %v11980_v15 = vld [vmem:[#allocation226_spill] sm:$0xff]  ;;  %v11981_v34 = vld [vmem:[#allocation191_spill] sm:$0xff] }
 0x13c   :  { %v684_v0 = vsel %vm330_vm0, %v11979_v47, 0.0  ;;  %v9322_v50 = vadd.f32 %v649_v7, %v11980_v15  ;;  %v679_v37 = vadd.f32 %v678_v2, %v11981_v34  ;;  %v9325_v38 = vadd.f32 %v656_v41, %v655_v10  ;;  %v11982_v51 = vld [vmem:[#allocation228_spill] sm:$0xff]  ;;  %v11983_v18 = vld [vmem:[#allocation231_spill] sm:$0xff]  ;;  %v11984_v45 = vld [vmem:[#allocation233_spill] sm:$0xff] }
 0x13d   :  { %v676_v63 = vsel %vm330_vm0, %v8782_v43, 0.0  ;;  %v689_v28 = vsel %vm330_vm0, %v8814_v4, 0.0  ;;  %v690_v13 = vsel %vm330_vm0, %v8962_v26, 0.0  ;;  %v9334_v32 = vadd.f32 %v659_v42, %v11982_v51  ;;  %v11985_v41 = vld [vmem:[#allocation229_spill] sm:$0xff]  ;;  %v11986_v42 = vld [vmem:[#allocation232_spill] sm:$0xff] }
 0x13e   :  { %v667_v40 = vadd.f32 %v666_v44, %v665_v52  ;;  %v9337_v7 = vadd.f32 %v669_v3, %v11983_v18  ;;  %v685_v39 = vadd.f32 %v684_v0, %v683_v61  ;;  %v686_v10 = vsel %vm330_vm0, %v11984_v45, 0.0  ;;  %v11997_v18 = vld [vmem:[#allocation10_spill] sm:$0xff] }
 0x13f   :  { %v688_v43 = vadd.f32 %v8948_v20, %v11985_v41  ;;  %v693_v4 = vsel %vm330_vm0, %v8830_v9, 0.0  ;;  %v694_v26 = vsel %vm330_vm0, %v8976_v27, 0.0  ;;  %v9347_v2 = vadd.f32 %v676_v63, %v675_v53  ;;  %v11995_v63 = vld [vmem:[#allocation74_spill] sm:$0xff] }
 0x140   :  { %v9350_v56 = vadd.f32 %v679_v37, %v11986_v42  ;;  %v691_v52 = vadd.f32 %v690_v13, %v689_v28  ;;  %v692_v33 = vadd.f32 %v8970_v22, %v8828_v14  ;;  %v697_v3 = vsel %vm330_vm0, %v8837_v55, 0.0  ;;  %v11996_v13 = vld [vmem:[#allocation30_spill] sm:$0xff] }
 0x141   :  { %v698_v20 = vsel %vm330_vm0, %v8984_v62, 0.0  ;;  %v701_v9 = vsel %vm330_vm0, %v8861_v23, 0.0  ;;  %v702_v27 = vsel %vm330_vm0, %v9002_v16, 0.0  ;;  %v9362_v61 = vadd.f32 %v686_v10, %v685_v39  ;;  %v11998_v45 = vld [vmem:[#allocation118_spill] sm:$0xff] }
 0x142   :  { %v695_v24 = vadd.f32 %v694_v26, %v693_v4  ;;  %v696_v1 = vadd.f32 %v8982_v6, %v8833_v54  ;;  %v700_v14 = vadd.f32 %v8989_v46, %v8849_v58  ;;  %v705_v55 = vsel %vm330_vm0, %v8880_v5, 0.0  ;;  %v11999_v41 = vld [vmem:[#allocation194_spill] sm:$0xff] }
 0x143   :  { %v706_v22 = vsel %vm330_vm0, %v9021_v31, 0.0  ;;  %v709_v23 = vsel %vm330_vm0, %v8892_v25, 0.0  ;;  %v710_v62 = vsel %vm330_vm0, %v9041_v48, 0.0  ;;  %v699_v16 = vadd.f32 %v698_v20, %v697_v3  ;;  %v12000_v3 = vld [vmem:[#allocation66_spill] sm:$0xff]  ;;  %v12001_v20 = vld [vmem:[#allocation131_spill] sm:$0xff] }
 0x144   :  { %v703_v44 = vadd.f32 %v702_v27, %v701_v9  ;;  %v9378_v54 = vadd.f32 %v9005_v60, %v8869_v35  ;;  %v9382_v58 = vadd.f32 %v9024_v21, %v8886_v36  ;;  %v713_v5 = vsel %vm330_vm0, %v8906_v30, 0.0  ;;  %v11987_v36 = vld [vmem:[#allocation65_spill] sm:$0xff]  ;;  %v12002_v27 = vld [vmem:[#allocation67_spill] sm:$0xff] }
 0x145   :  { %v714_v6 = vsel %vm330_vm0, %v9058_v19, 0.0  ;;  %v717_v25 = vsel %vm330_vm0, %v8924_v29, 0.0  ;;  %v718_v46 = vsel %vm330_vm0, %v9068_v8, 0.0  ;;  %v707_v31 = vadd.f32 %v706_v22, %v705_v55  ;;  %v11988_v30 = vld [vmem:[#allocation117_spill] sm:$0xff]  ;;  %v11989_v19 = vld [vmem:[#allocation24_spill] sm:$0xff]  ;;  %v11990_v29 = vld [vmem:[#allocation26_spill] sm:$0xff] }
 0x146   :  { %v711_v48 = vadd.f32 %v710_v62, %v709_v23  ;;  %v9394_v35 = vadd.f32 %v9045_v49, %v8901_v11  ;;  %v9398_v60 = vadd.f32 %v11987_v36, %v8909_v12  ;;  %v721_v21 = vsel %vm330_vm0, %v11988_v30, 0.0  ;;  %v11991_v8 = vld [vmem:[#allocation188_spill] sm:$0xff]  ;;  %v11992_v11 = vld [vmem:[#allocation25_spill] sm:$0xff]  ;;  %v11993_v49 = vld [vmem:[#allocation119_spill] sm:$0xff] }
 0x147   :  { %v722_v47 = vsel %vm330_vm0, %v11989_v19, 0.0  ;;  %v725_v0 = vsel %vm330_vm0, %v11990_v29, 0.0  ;;  %v726_v15 = vsel %vm330_vm0, %v11991_v8, 0.0  ;;  %v715_v53 = vadd.f32 %v714_v6, %v713_v5  ;;  %v11994_v12 = vld [vmem:[#allocation64_spill] sm:$0xff]  ;;  %v12003_v55 = vld [vmem:[#allocation193_spill] sm:$0xff]  ;;  %v12005_v6 = vld [vmem:[#allocation71_spill] sm:$0xff] }
 0x148   :  { %v9408_v34 = vadd.f32 %v718_v46, %v717_v25  ;;  %v9412_v37 = vadd.f32 %v11993_v49, %v11992_v11  ;;  %v724_v28 = vadd.f32 %v11995_v63, %v11994_v12  ;;  %v729_v51 = vsel %vm330_vm0, %v11996_v13, 0.0  ;;  %v12004_v23 = vld [vmem:[#allocation124_spill] sm:$0xff]  ;;  %v12007_v19 = vld [vmem:[#allocation79_spill] sm:$0xff]  ;;  %v12009_v8 = vld [vmem:[#allocation125_spill] sm:$0xff] }
 0x149   :  { %v730_v39 = vsel %vm330_vm0, %v11997_v18, 0.0  ;;  %v733_v10 = vsel %vm330_vm0, %v11998_v45, 0.0  ;;  %v734_v4 = vsel %vm330_vm0, %v11999_v41, 0.0  ;;  %v9424_v26 = vadd.f32 %v722_v47, %v721_v21  ;;  %v12006_v21 = vld [vmem:[#allocation32_spill] sm:$0xff]  ;;  %v12008_v29 = vld [vmem:[#allocation31_spill] sm:$0xff] }
 0x14a   :  { %v727_v42 = vadd.f32 %v726_v15, %v725_v0  ;;  %v728_v9 = vadd.f32 %v12001_v20, %v12000_v3  ;;  %v732_v22 = vadd.f32 %v12003_v55, %v12002_v27  ;;  %v737_v62 = vsel %vm330_vm0, %v12004_v23, 0.0  ;;  %v12010_v11 = vld [vmem:[#allocation187_spill] sm:$0xff]  ;;  %v12011_v18 = vld [vmem:[#allocation72_spill] sm:$0xff] }
 0x14b   :  { %v738_v5 = vsel %vm330_vm0, %v9310_v17, 0.0  ;;  %v741_v25 = vsel %vm330_vm0, %v12005_v6, 0.0  ;;  %v742_v46 = vsel %vm330_vm0, %v9319_v57, 0.0  ;;  %v731_v36 = vadd.f32 %v730_v39, %v729_v51 }
 0x14c   :  { %v735_v30 = vadd.f32 %v734_v4, %v733_v10  ;;  %v736_v47 = vadd.f32 %v12007_v19, %v12006_v21  ;;  %v740_v0 = vadd.f32 %v9313_v59, %v12008_v29  ;;  %v745_v15 = vsel %vm330_vm0, %v12009_v8, 0.0  ;;  %v12012_v59 = vld [vmem:[#allocation126_spill] sm:$0xff] }
 0x14d   :  { %v746_v17 = vsel %vm330_vm0, %v9325_v38, 0.0  ;;  %v749_v49 = vsel %vm330_vm0, %v12010_v11, 0.0  ;;  %v750_v12 = vsel %vm330_vm0, %v667_v40, 0.0  ;;  %v739_v57 = vadd.f32 %v738_v5, %v737_v62  ;;  %v12013_v40 = vld [vmem:[#allocation73_spill] sm:$0xff] }
 0x14e   :  { %v743_v63 = vadd.f32 %v742_v46, %v741_v25  ;;  %v760_v13 = vadd.f32 %v692_v33, %v688_v43  ;;  %v768_v51 = vsel %vm330_vm0, %v691_v52, 0.0  ;;  %v744_v39 = vadd.f32 %v9322_v50, %v12011_v18  ;;  %v12014_v5 = vld [vmem:[#allocation9_spill] sm:$0xff] }
 0x14f   :  { %v748_v45 = vadd.f32 %v9334_v32, %v12012_v59  ;;  %v769_v10 = vsel %vm330_vm0, %v695_v24, 0.0  ;;  %v771_v38 = vsel %vm330_vm0, %v699_v16, 0.0  ;;  %v747_v41 = vadd.f32 %v746_v17, %v745_v15 }
 0x150   :  { %v751_v4 = vadd.f32 %v750_v12, %v749_v49  ;;  %v761_v3 = vadd.f32 %v760_v13, %v696_v1  ;;  %v770_v20 = vadd.f32 %v769_v10, %v768_v51  ;;  %v753_v27 = vsel %vm330_vm0, %v12013_v40, 0.0 }
 0x151   :  { %v773_v43 = vsel %vm330_vm0, %v703_v44, 0.0  ;;  %v785_v52 = vadd.f32 %v728_v9, %v724_v28  ;;  %v793_v33 = vsel %vm330_vm0, %v727_v42, 0.0  ;;  %v794_v32 = vsel %vm330_vm0, %v731_v36, 0.0 }
 0x152   :  { %v762_v50 = vadd.f32 %v761_v3, %v700_v14  ;;  %v772_v55 = vadd.f32 %v771_v38, %v770_v20  ;;  %v796_v24 = vsel %vm330_vm0, %v735_v30, 0.0  ;;  %v754_v16 = vsel %vm330_vm0, %v9347_v2, 0.0 }
 0x153   :  { %v775_v1 = vsel %vm330_vm0, %v707_v31, 0.0  ;;  %v786_v23 = vadd.f32 %v785_v52, %v732_v22  ;;  %v795_v62 = vadd.f32 %v794_v32, %v793_v33  ;;  %v757_v6 = vsel %vm330_vm0, %v12014_v5, 0.0 }
 0x154   :  { %v763_v44 = vadd.f32 %v762_v50, %v9378_v54  ;;  %v774_v28 = vadd.f32 %v773_v43, %v772_v55  ;;  %v798_v14 = vsel %vm330_vm0, %v739_v57, 0.0  ;;  %v758_v42 = vsel %vm330_vm0, %v9362_v61, 0.0 }
 0x155   :  { %v777_v9 = vsel %vm330_vm0, %v711_v48, 0.0  ;;  %v787_v25 = vadd.f32 %v786_v23, %v736_v47  ;;  %v797_v46 = vadd.f32 %v796_v24, %v795_v62  ;;  %v800_v22 = vsel %vm330_vm0, %v743_v63, 0.0  ;;  %v12015_v48 = vld [vmem:[#allocation12_spill] sm:$0xff] }
 0x156   :  { %v764_v2 = vadd.f32 %v763_v44, %v9382_v58  ;;  %v776_v31 = vadd.f32 %v775_v1, %v774_v28  ;;  %v779_v36 = vsel %vm330_vm0, %v715_v53, 0.0  ;;  %v7307_v54 = vmov 512.0   ;;  %v12016_v63 = vld [vmem:[#allocation132_spill] sm:$0xff] }
 0x157   :  { %v788_v30 = vadd.f32 %v787_v25, %v740_v0  ;;  %v799_v21 = vadd.f32 %v798_v14, %v797_v46  ;;  %7151 = vrcp.f32 %v7307_v54  ;;  %v755_v19 = vadd.f32 %v754_v16, %v753_v27 }
 0x158   :  { %v765_v29 = vadd.f32 %v764_v2, %v9394_v35  ;;  %v778_v8 = vadd.f32 %v777_v9, %v776_v31  ;;  %v802_v61 = vsel %vm330_vm0, %v747_v41, 0.0  ;;  %v752_v47 = vadd.f32 %v9337_v7, %v12015_v48 }
 0x159   :  { %v781_v58 = vsel %vm330_vm0, %v9408_v34, 0.0  ;;  %v789_v15 = vadd.f32 %v788_v30, %v744_v39  ;;  %v801_v17 = vadd.f32 %v800_v22, %v799_v21  ;;  %v759_v11 = vadd.f32 %v758_v42, %v757_v6  ;;  %v838_v21 = vld [vmem:[%s11414_s1] sm:$0x1] }
 0x15a   :  { %v766_v53 = vadd.f32 %v765_v29, %v9398_v60  ;;  %v780_v0 = vadd.f32 %v779_v36, %v778_v8  ;;  %v804_v49 = vsel %vm330_vm0, %v751_v4, 0.0  ;;  %v783_v35 = vsel %vm330_vm0, %v9424_v26, 0.0  ;;  %v851_v8 = vld [vmem:[%s11415_s2] sm:$0x1] }
 0x15b   :  { %v790_v12 = vadd.f32 %v789_v15, %v748_v45  ;;  %v803_v57 = vadd.f32 %v802_v61, %v801_v17  ;;  %v756_v13 = vadd.f32 %v9350_v56, %v12016_v63  ;;  %v806_v51 = vsel %vm330_vm0, %v755_v19, 0.0 }
 0x15c   :  { %v782_v7 = vadd.f32 %v781_v58, %v780_v0  ;;  %v767_v18 = vadd.f32 %v766_v53, %v9412_v37  ;;  %v808_v10 = vsel %vm330_vm0, %v759_v11, 0.0  ;;  %v7308_v14 = vmov 0.0   ;;  %v7161_v58 = vld [vmem:[%s11413_s0 + $0x10] sm:$0xff] }
 0x15d   :  { %v7152_v34 = vpop.eup %7151  ;;  %v791_v39 = vadd.f32 %v790_v12, %v752_v47  ;;  %v805_v59 = vadd.f32 %v804_v49, %v803_v57  ;;  %854 = vst [vmem:[#allocation2] sm:$0xff] %v7308_v14 }
 0x15e   :  { %v784_v60 = vadd.f32 %v783_v35, %v782_v7  ;;  %v827_v38 = vmul.f32 512.0, %v7152_v34  ;;  %vm831_vm1 = vweird.f32 %v7152_v34  ;;  %858 = vst [vmem:[#allocation2] sm:$0x1] %v7308_v14  ;;  %v7162_v7 = vld [vmem:[%s11413_s0 + $0x40] sm:$0xff] }
 0x15f   :  { %v807_v41 = vadd.f32 %v806_v51, %v805_v59  ;;  %v792_v4 = vadd.f32 %v791_v39, %v756_v13  ;;  %859 = vst [vmem:[#allocation2 + $0x10] sm:$0x1] %v7308_v14  ;;  %v6925_v39 = vld [vmem:[%s11416_s3 + $0xf8] sm:$0xff] }
 0x160   :  { %v810_v26 = vsel %vm330_vm0, %v784_v60, 0.0  ;;  %v828_v45 = vsub.f32 1.0, %v827_v38  ;;  %855 = vst [vmem:[#allocation2 + $0x8] sm:$0x1] %v7308_v14  ;;  %2942 = vmatpush.bf16.msrb.mxu3 %v6925_v39 }
 0x161   :  { %v809_v3 = vadd.f32 %v808_v10, %v807_v41  ;;  %v811_v20 = vadd.f32 %v810_v26, %v767_v18  ;;  %856 = vst [vmem:[#allocation2 + $0x90] sm:$0xff] %v7308_v14  ;;  %v7164_v41 = vld [vmem:[%s11413_s0 + $0x48] sm:$0x1]  ;;  %v6902_v26 = vld [vmem:[%s11416_s3 + $0x40] sm:$0xff] }
 0x162   :  { %v829_v43 = vmul.f32 %v7152_v34, %v828_v45  ;;  %857 = vst [vmem:[#allocation2 + $0x98] sm:$0x1] %v7308_v14  ;;  %v7165_v45 = vld [vmem:[%s11413_s0 + $0x160] sm:$0xff]  ;;  %7133 = vmatpush.bf16.msra.mxu1 %v6902_v26  ;;  %2851 = vmatpush.bf16.msrb.mxu0 %v6902_v26 }
 0x163   :  { %v812_v56 = vrot.slane %v811_v20, 4  ;;  %v818_v40 = vsel %vm330_vm0, %v809_v3, 0.0  ;;  %860 = vst [vmem:[#allocation2 + $0x20] sm:$0x1] %v7308_v14 }
 0x164   :  { %v819_v27 = vadd.f32 %v818_v40, %v792_v4  ;;  %v830_v55 = vadd.f32 %v7152_v34, %v829_v43  ;;  %861 = vst [vmem:[#allocation2 + $0x30] sm:$0x1] %v7308_v14  ;;  %v7167_v40 = vld [vmem:[%s11413_s0 + $0x170] sm:$0xff] }
 0x165   :  { %v813_v52 = vadd.f32 %v812_v56, %v811_v20  ;;  %v1339_v0 = vld [vmem:[#allocation2] sm:$0xff]  ;;  %862 = vst [vmem:[#allocation2 + $0x40] sm:$0x1] %v7308_v14  ;;  %v7166_v20 = vld [vmem:[%s11413_s0 + $0x58] sm:$0x1]  ;;  %v6924_v43 = vld [vmem:[%s11416_s3 + $0xf0] sm:$0xff] }
 0x166   :  { %v820_v37 = vrot.slane %v819_v27, 4  ;;  %v832_v23 = vsel %vm831_vm1, %v7152_v34, %v830_v55  ;;  %v1355_v35 = vpack.c.bf16 %v1339_v0, %v1339_v0  ;;  %863 = vst [vmem:[#allocation2 + $0x50] sm:$0x1] %v7308_v14  ;;  %v7163_v34 = vld [vmem:[%s11413_s0 + $0x50] sm:$0xff]  ;;  %2943 = vmatpush.bf16.msrb.mxu3 %v6924_v43 }
 0x167   :  { %v814_v33 = vrot.slane %v813_v52, 2  ;;  %864 = vst [vmem:[#allocation2 + $0x60] sm:$0x1] %v7308_v14 }
 0x168   :  { %v821_v50 = vadd.f32 %v820_v37, %v819_v27  ;;  %1371 = vst [vmem:[#allocation4] sm:$0xf] %v1355_v35 }
 0x169   :  { %v815_v32 = vadd.f32 %v814_v33, %v813_v52  ;;  %865 = vst [vmem:[#allocation2 + $0x70] sm:$0x1] %v7308_v14  ;;  %v7168_v52 = vld [vmem:[%s11416_s3 + $0xb8] sm:$0xff] }
 0x16a   :  { %v822_v24 = vrot.slane %v821_v50, 2  ;;  %866 = vst [vmem:[#allocation2 + $0x80] sm:$0x1] %v7308_v14 }
 0x16b   :  { %v816_v16 = vrot.slane %v815_v32, 1  ;;  %868 = vst [vmem:[#allocation2 + $0xa0] sm:$0x1] %v7308_v14 }
 0x16c   :  { %v823_v1 = vadd.f32 %v822_v24, %v821_v50  ;;  %869 = vst [vmem:[#allocation2 + $0xb0] sm:$0x1] %v7308_v14  ;;  %v7169_v24 = vld [vmem:[%s11413_s0 + $0x20] sm:$0xff] }
 0x16d   :  { %v817_v62 = vadd.f32 %v816_v16, %v815_v32  ;;  %870 = vst [vmem:[#allocation2 + $0xc0] sm:$0x1] %v7308_v14 }
 0x16e   :  { %v824_v5 = vrot.slane %v823_v1, 1  ;;  %871 = vst [vmem:[#allocation2 + $0xd0] sm:$0x1] %v7308_v14 }
 0x16f   :  { %v833_v6 = vmul.f32 %v832_v23, %v817_v62  ;;  %v5640_v57 = vld [vmem:[#allocation4] sm:$0xf]  ;;  %872 = vst [vmem:[#allocation2 + $0xe0] sm:$0x1] %v7308_v14  ;;  %v7170_v62 = vld [vmem:[%s11413_s0 + $0x30] sm:$0xff] }
 0x170   :  { %v825_v44 = vadd.f32 %v824_v5, %v823_v1  ;;  %873 = vst [vmem:[#allocation2 + $0xf0] sm:$0x1] %v7308_v14 }
 0x171   :  { %v835_v28 = vmul.f32 %v833_v6, %v833_v6  ;;  %874 = vst [vmem:[#allocation2 + $0x100] sm:$0x1] %v7308_v14 }
 0x172   :  { %v834_v42 = vmul.f32 %v832_v23, %v825_v44  ;;  %875 = vst [vmem:[#allocation2 + $0x110] sm:$0x1] %v7308_v14 }
 0x173   :  { %1105 = vst [vmem:[#allocation2 + $0x240] sm:$0x1] %v7308_v14 }
 0x174   :  { %v836_v9 = vsub.f32 %v834_v42, %v835_v28  ;;  %1106 = vst [vmem:[#allocation2 + $0x250] sm:$0x1] %v7308_v14 }
 0x175   :  { %1107 = vst [vmem:[#allocation2 + $0x260] sm:$0x1] %v7308_v14 }
 0x176   :  { %v837_v25 = vmax.f32 %v836_v9, 0.0  ;;  %1108 = vst [vmem:[#allocation2 + $0x270] sm:$0x1] %v7308_v14  ;;  %v7172_v9 = vld [vmem:[%s11413_s0 + $0x60] sm:$0xff] }
 0x177   :  { %1109 = vst [vmem:[#allocation2 + $0x280] sm:$0x1] %v7308_v14 }
 0x178   :  { %v839_v46 = vadd.f32 1e-05, %v837_v25  ;;  %1110 = vst [vmem:[#allocation2 + $0x290] sm:$0x1] %v7308_v14 }
 0x179   :  { %1111 = vst [vmem:[#allocation2 + $0x2a0] sm:$0x1] %v7308_v14 }
 0x17a   :  { %7153 = vrsqrt.f32 %v839_v46  ;;  %vm846_vm2 = vweird.f32 %v839_v46  ;;  %1112 = vst [vmem:[#allocation2 + $0x2b0] sm:$0x1] %v7308_v14 }
 0x17b   :  { %1114 = vst [vmem:[#allocation2 + $0x2d0] sm:$0x1] %v7308_v14 }
 0x17c   :  { %1115 = vst [vmem:[#allocation2 + $0x2e0] sm:$0x1] %v7308_v14 }
 0x17d   :  { %1116 = vst [vmem:[#allocation2 + $0x2f0] sm:$0x1] %v7308_v14 }
 0x17e   :  { %1117 = vst [vmem:[#allocation2 + $0x300] sm:$0x1] %v7308_v14 }
 0x17f   :  { %1118 = vst [vmem:[#allocation2 + $0x310] sm:$0x1] %v7308_v14 }
 0x180   :  { %v7154_v2 = vpop.eup %7153  ;;  %1119 = vst [vmem:[#allocation2 + $0x320] sm:$0x1] %v7308_v14 }
 0x181   :  { %v841_v31 = vmul.f32 %v7154_v2, %v839_v46  ;;  %vm847_vm3 = vweird.f32 %v7154_v2  ;;  %1120 = vst [vmem:[#allocation2 + $0x330] sm:$0x1] %v7308_v14 }
 0x182   :  { %vm848_vm4 = vmor %vm846_vm2, %vm847_vm3  ;;  %1121 = vst [vmem:[#allocation2 + $0x340] sm:$0x1] %v7308_v14 }
 0x183   :  { %v842_v22 = vmul.f32 %v7154_v2, %v841_v31  ;;  %3387 = vst [vmem:[#allocation3] sm:$0xff] %v7308_v14  ;;  %v7173_v31 = vld [vmem:[%s11413_s0 + $0x70] sm:$0xff] }
 0x184   :  { %3388 = vst [vmem:[#allocation3 + $0x8] sm:$0x3] %v7308_v14 }
 0x185   :  { %v843_v36 = vmul.f32 0.5, %v842_v22  ;;  %3389 = vst [vmem:[#allocation3 + $0xa0] sm:$0xff] %v7308_v14 }
 0x186   :  { %3390 = vst [vmem:[#allocation3 + $0xa8] sm:$0x3] %v7308_v14 }
 0x187   :  { %v844_v30 = vsub.f32 1.5, %v843_v36  ;;  %3392 = vst [vmem:[#allocation3 + $0x90] sm:$0xff] %v7308_v14 }
 0x188   :  { %3393 = vst [vmem:[#allocation3 + $0x98] sm:$0x3] %v7308_v14 }
 0x189   :  { %v845_v54 = vmul.f32 %v7154_v2, %v844_v30  ;;  %3394 = vst [vmem:[#allocation3 + $0x130] sm:$0xff] %v7308_v14 }
 0x18a   :  { %3395 = vst [vmem:[#allocation3 + $0x138] sm:$0x3] %v7308_v14 }
 0x18b   :  { %v849_v19 = vsel %vm848_vm4, %v7154_v2, %v845_v54  ;;  %3397 = vst [vmem:[#allocation3 + $0x10] sm:$0x1] %v7308_v14 }
 0x18c   :  { %v850_v29 = vmul.f32 %v849_v19, %v838_v21  ;;  %3398 = vst [vmem:[#allocation3 + $0x20] sm:$0x1] %v7308_v14  ;;  %v7174_v21 = vld [vmem:[%s11416_s3 + $0xa8] sm:$0xff] }
 0x18d   :  { %3399 = vst [vmem:[#allocation3 + $0x30] sm:$0x1] %v7308_v14 }
 0x18e   :  { %v852_v61 = vmul.f32 %v850_v29, %v833_v6  ;;  %v9501_v48 = vperm.slane %v850_v29, 0  ;;  %3400 = vst [vmem:[#allocation3 + $0x40] sm:$0x1] %v7308_v14  ;;  %v7171_v6 = vld [vmem:[%s11416_s3 + $0xb0] sm:$0xff]  ;;  %v7175_v29 = vld [vmem:[%s11413_s0 + $0x68] sm:$0x1] }
 0x18f   :  { %3401 = vst [vmem:[#allocation3 + $0x50] sm:$0x1] %v7308_v14 }
 0x190   :  { %v853_v47 = vsub.f32 %v851_v8, %v852_v61  ;;  %v879_v15 = vmul.f32 %v7161_v58, %v9501_v48  ;;  %3402 = vst [vmem:[#allocation3 + $0x60] sm:$0x1] %v7308_v14  ;;  %v885_v51 = vmul.f32 %v7162_v7, %v9501_v48  ;;  %v887_v18 = vmul.f32 %v7163_v34, %v9501_v48 }
 0x191   :  { %3403 = vst [vmem:[#allocation3 + $0x70] sm:$0x1] %v7308_v14  ;;  %v886_v4 = vmul.f32 %v7164_v41, %v9501_v48  ;;  %v1037_v3 = vmul.f32 %v7165_v45, %v9501_v48  ;;  %v888_v56 = vmul.f32 %v7166_v20, %v9501_v48  ;;  %v1038_v27 = vmul.f32 %v7167_v40, %v9501_v48 }
 0x192   :  { %v9507_v17 = vperm.slane %v853_v47, 0  ;;  %3404 = vst [vmem:[#allocation3 + $0x80] sm:$0x1] %v7308_v14  ;;  %v881_v16 = vmul.f32 %v7169_v24, %v9501_v48  ;;  %v883_v5 = vmul.f32 %v7170_v62, %v9501_v48  ;;  %v889_v25 = vmul.f32 %v7172_v9, %v9501_v48  ;;  %v7176_v47 = vld [vmem:[%s11413_s0 + $0x78] sm:$0x1] }
 0x193   :  { %3407 = vst [vmem:[#allocation3 + $0xb0] sm:$0x1] %v7308_v14  ;;  %v891_v22 = vmul.f32 %v7173_v31, %v9501_v48  ;;  %v890_v8 = vmul.f32 %v7175_v29, %v9501_v48  ;;  %v892_v58 = vmul.f32 %v7176_v47, %v9501_v48  ;;  %v7185_v9 = vld [vmem:[%s11413_s0 + $0xa8] sm:$0x1]  ;;  %v7187_v29 = vld [vmem:[%s11416_s3 + $0x80] sm:$0xff] }
 0x194   :  { %v914_v11 = vadd.f32 %v9507_v17, %v879_v15  ;;  %3408 = vst [vmem:[#allocation3 + $0xc0] sm:$0x1] %v7308_v14  ;;  %v920_v59 = vadd.f32 %v9507_v17, %v885_v51  ;;  %v922_v60 = vadd.f32 %v9507_v17, %v887_v18  ;;  %v921_v37 = vadd.f32 %v9507_v17, %v886_v4  ;;  %v7179_v51 = vld [vmem:[%s11413_s0 + $0x190] sm:$0xff]  ;;  %v6923_v18 = vld [vmem:[%s11416_s3 + $0xe8] sm:$0xff] }
 0x195   :  { %3409 = vst [vmem:[#allocation3 + $0xd0] sm:$0x1] %v7308_v14  ;;  %v1053_v33 = vadd.f32 %v1037_v3, %v9507_v17  ;;  %v923_v50 = vadd.f32 %v9507_v17, %v888_v56  ;;  %v1054_v55 = vadd.f32 %v1038_v27, %v9507_v17  ;;  %v916_v36 = vadd.f32 %v9507_v17, %v881_v16  ;;  %v7181_v56 = vld [vmem:[%s11413_s0 + $0xa0] sm:$0xff]  ;;  %v7182_v27 = vld [vmem:[%s11416_s3 + $0x90] sm:$0xff] }
 0x196   :  { %v946_v53 = vmax.f32 %v914_v11, 0.0  ;;  %3410 = vst [vmem:[#allocation3 + $0xe0] sm:$0x1] %v7308_v14  ;;  %v952_v10 = vmax.f32 %v920_v59, 0.0  ;;  %v954_v38 = vmax.f32 %v922_v60, 0.0  ;;  %v953_v28 = vmax.f32 %v921_v37, 0.0  ;;  %2944 = vmatpush.bf16.msrb.mxu3 %v6923_v18 }
 0x197   :  { %3411 = vst [vmem:[#allocation3 + $0xf0] sm:$0x1] %v7308_v14  ;;  %v1069_v42 = vmax.f32 %v1053_v33, 0.0  ;;  %v955_v46 = vmax.f32 %v923_v50, 0.0  ;;  %v1070_v2 = vmax.f32 %v1054_v55, 0.0  ;;  %v918_v30 = vadd.f32 %v9507_v17, %v883_v5  ;;  %v7180_v60 = vld [vmem:[%s11416_s3 + $0x98] sm:$0xff] }
 0x198   :  { %979 = vst [vmem:[#allocation2 + $0x10] sm:$0xfe] %v946_v53  ;;  %v924_v19 = vadd.f32 %v9507_v17, %v889_v25  ;;  %v948_v15 = vmax.f32 %v916_v36, 0.0  ;;  %v7177_v53 = vld [vmem:[%s11416_s3 + $0xa0] sm:$0xff]  ;;  %v925_v35 = vadd.f32 %v9507_v17, %v890_v8  ;;  %v927_v7 = vadd.f32 %v9507_v17, %v892_v58  ;;  %v7183_v37 = vld [vmem:[%s11413_s0 + $0x130] sm:$0xff]  ;;  %v7184_v5 = vld [vmem:[%s11416_s3 + $0x88] sm:$0xff] }
 0x199   :  { %3412 = vst [vmem:[#allocation3 + $0x100] sm:$0x1] %v7308_v14  ;;  %v1407_v54 = vpack.c.bf16 %v1069_v42, %v1069_v42  ;;  %v1408_v61 = vpack.c.bf16 %v1070_v2, %v1070_v2  ;;  %v950_v11 = vmax.f32 %v918_v30, 0.0  ;;  %v1040_v34 = vmul.f32 %v7179_v51, %v9501_v48 }
 0x19a   :  { %3413 = vst [vmem:[#allocation3 + $0x110] sm:$0x1] %v7308_v14  ;;  %v957_v41 = vmax.f32 %v925_v35, 0.0  ;;  %v959_v45 = vmax.f32 %v927_v7, 0.0  ;;  %v895_v40 = vmul.f32 %v7181_v56, %v9501_v48  ;;  %v1034_v33 = vmul.f32 %v7183_v37, %v9501_v48  ;;  %v1443_v35 = vld [vmem:[#allocation2 + $0x91] sm:$0xff]  ;;  %v7189_v7 = vld [vmem:[%s11413_s0 + $0xc0] sm:$0xff] }
 0x19b   :  { %3414 = vst [vmem:[#allocation3 + $0x120] sm:$0x1] %v7308_v14  ;;  %v1056_v3 = vadd.f32 %v1040_v34, %v9507_v17  ;;  %v896_v25 = vmul.f32 %v7185_v9, %v9501_v48  ;;  %v899_v51 = vmul.f32 %v7189_v7, %v9501_v48  ;;  %v7190_v34 = vld [vmem:[%s11413_s0 + $0x140] sm:$0xff] }
 0x19c   :  { %3417 = vst [vmem:[#allocation3 + $0x19] sm:$0x1] %v7308_v14  ;;  %v930_v62 = vadd.f32 %v9507_v17, %v895_v40  ;;  %v1035_v18 = vmul.f32 %v7190_v34, %v9501_v48 }
 0x19d   :  { %3418 = vst [vmem:[#allocation3 + $0x29] sm:$0x1] %v7308_v14  ;;  %v931_v58 = vadd.f32 %v9507_v17, %v896_v25 }
 0x19e   :  { %3419 = vst [vmem:[#allocation3 + $0x39] sm:$0x1] %v7308_v14 }
 0x19f   :  { %v1340_v49 = vld [vmem:[#allocation2 + $0x10] sm:$0xff]  ;;  %3420 = vst [vmem:[#allocation3 + $0x49] sm:$0x1] %v7308_v14 }
 0x1a0   :  { %v1356_v12 = vpack.c.bf16 %v1340_v49, %v1340_v49  ;;  %3421 = vst [vmem:[#allocation3 + $0x59] sm:$0x1] %v7308_v14  ;;  %v956_v49 = vmax.f32 %v924_v19, 0.0 }
 0x1a1   :  { %3422 = vst [vmem:[#allocation3 + $0x69] sm:$0x1] %v7308_v14 }
 0x1a2   :  { %1372 = vst [vmem:[#allocation4 + $0x24] sm:$0xf] %v1356_v12  ;;  %v7178_v12 = vld [vmem:[%s11413_s0 + $0x180] sm:$0xff] }
 0x1a3   :  { %3423 = vst [vmem:[#allocation3 + $0x79] sm:$0x1] %v7308_v14 }
 0x1a4   :  { %3424 = vst [vmem:[#allocation3 + $0x89] sm:$0x1] %v7308_v14 }
 0x1a5   :  { %3427 = vst [vmem:[#allocation3 + $0xb9] sm:$0x1] %v7308_v14 }
 0x1a6   :  { %3428 = vst [vmem:[#allocation3 + $0xc9] sm:$0x1] %v7308_v14 }
 0x1a7   :  { %3429 = vst [vmem:[#allocation3 + $0xd9] sm:$0x1] %v7308_v14 }
 0x1a8   :  { %3430 = vst [vmem:[#allocation3 + $0xe9] sm:$0x1] %v7308_v14 }
 0x1a9   :  { %v6826_v63 = vld [vmem:[#allocation4 + $0x20] sm:$0xf0]  ;;  %3431 = vst [vmem:[#allocation3 + $0xf9] sm:$0x1] %v7308_v14 }
 0x1aa   :  { %v5641_v13 = vor.u32 %v6826_v63, %v5640_v57  ;;  %3432 = vst [vmem:[#allocation3 + $0x109] sm:$0x1] %v7308_v14  ;;  %v1039_v57 = vmul.f32 %v7178_v12, %v9501_v48  ;;  %v7188_v12 = vld [vmem:[%s11413_s0 + $0xb0] sm:$0xff] }
 0x1ab   :  { %3433 = vst [vmem:[#allocation3 + $0x119] sm:$0x1] %v7308_v14 }
 0x1ac   :  { %2803 = vmatmul.bf16.vlgmr.msra.gmra.mxu0 %v5641_v13  ;;  %3434 = vst [vmem:[#allocation3 + $0x129] sm:$0x1] %v7308_v14  ;;  %v1055_v4 = vadd.f32 %v1039_v57, %v9507_v17  ;;  %v897_v57 = vmul.f32 %v7188_v12, %v9501_v48 }
 0x1ad   :  { %985 = vst [vmem:[#allocation2 + $0x40] sm:$0xfe] %v952_v10  ;;  %2893 = vmatpush.bf16.msra.mxu0 %v7168_v52 }
 0x1ae   :  { %987 = vst [vmem:[#allocation2 + $0x50] sm:$0xfe] %v954_v38  ;;  %v1071_v52 = vmax.f32 %v1055_v4, 0.0  ;;  %v932_v56 = vadd.f32 %v9507_v17, %v897_v57 }
 0x1af   :  { %867 = vst [vmem:[#allocation2 + $0x90] sm:$0x1] %v7308_v14 }
 0x1b0   :  { %3396 = vst [vmem:[#allocation3] sm:$0x1] %v7308_v14 }
 0x1b1   :  { %3405 = vst [vmem:[#allocation3 + $0x90] sm:$0x1] %v7308_v14  ;;  %2894 = vmatpush.bf16.msra.mxu0 %v7171_v6 }
 0x1b2   :  { %3406 = vst [vmem:[#allocation3 + $0xa0] sm:$0x1] %v7308_v14 }
 0x1b3   :  { %3415 = vst [vmem:[#allocation3 + $0x130] sm:$0x1] %v7308_v14 }
 0x1b4   :  { %v1343_v32 = vld [vmem:[#allocation2 + $0x40] sm:$0xff]  ;;  %3416 = vst [vmem:[#allocation3 + $0x9] sm:$0x1] %v7308_v14 }
 0x1b5   :  { %v1344_v1 = vld [vmem:[#allocation2 + $0x50] sm:$0xff]  ;;  %v1359_v23 = vpack.c.bf16 %v1343_v32, %v1343_v32  ;;  %3425 = vst [vmem:[#allocation3 + $0x99] sm:$0x1] %v7308_v14  ;;  %2895 = vmatpush.bf16.msra.mxu0 %v7174_v21  ;;  %v1072_v32 = vmax.f32 %v1056_v3, 0.0 }
 0x1b6   :  { %v1360_v44 = vpack.c.bf16 %v1344_v1, %v1344_v1  ;;  %3426 = vst [vmem:[#allocation3 + $0xa9] sm:$0x1] %v7308_v14  ;;  %v1347_v21 = vld [vmem:[#allocation2 + $0x90] sm:$0xff] }
 0x1b7   :  { %1375 = vst [vmem:[#allocation4 + $0x90] sm:$0xf] %v1359_v23  ;;  %v1410_v31 = vpack.c.bf16 %v1072_v32, %v1072_v32 }
 0x1b8   :  { %1376 = vst [vmem:[#allocation4 + $0xb4] sm:$0xf] %v1360_v44 }
 0x1b9   :  { %3435 = vst [vmem:[#allocation3 + $0x139] sm:$0x1] %v7308_v14  ;;  %v926_v14 = vadd.f32 %v9507_v17, %v891_v22  ;;  %2896 = vmatpush.bf16.msra.mxu0 %v7177_v53  ;;  %v7186_v22 = vld [vmem:[%s11413_s0 + $0x1c0] sm:$0xff] }
 0x1ba   :  { %986 = vst [vmem:[#allocation2 + $0x48] sm:$0x1] %v953_v28  ;;  %v1409_v28 = vpack.c.bf16 %v1071_v52, %v1071_v52  ;;  %v1042_v36 = vmul.f32 %v7186_v22, %v9501_v48  ;;  %v6922_v53 = vld [vmem:[%s11416_s3 + $0xe0] sm:$0xff] }
 0x1bb   :  { %988 = vst [vmem:[#allocation2 + $0x58] sm:$0x1] %v955_v46  ;;  %v958_v13 = vmax.f32 %v926_v14, 0.0  ;;  %v962_v14 = vmax.f32 %v930_v62, 0.0  ;;  %2945 = vmatpush.bf16.msrb.mxu3 %v6922_v53  ;;  %v964_v62 = vmax.f32 %v932_v56, 0.0  ;;  %v7197_v53 = vld [vmem:[%s11413_s0 + $0xe0] sm:$0xff] }
 0x1bc   :  { %1086 = vst [vmem:[#allocation2 + $0x160] sm:$0xff] %v1069_v42  ;;  %v1050_v42 = vadd.f32 %v1034_v33, %v9507_v17 }
 0x1bd   :  { %1087 = vst [vmem:[#allocation2 + $0x170] sm:$0xff] %v1070_v2  ;;  %2897 = vmatpush.bf16.msra.mxu0 %v7180_v60 }
 0x1be   :  { %v5712_v0 = vld [vmem:[#allocation4 + $0x90] sm:$0xf]  ;;  %1423 = vst [vmem:[#allocation4 + $0x94] sm:$0xf] %v1407_v54  ;;  %v1066_v47 = vmax.f32 %v1050_v42, 0.0 }
 0x1bf   :  { %v6844_v63 = vld [vmem:[#allocation4 + $0xb0] sm:$0xf0]  ;;  %1424 = vst [vmem:[#allocation4 + $0xb8] sm:$0xf] %v1408_v61 }
 0x1c0   :  { %v5713_v39 = vor.u32 %v6844_v63, %v5712_v0  ;;  %981 = vst [vmem:[#allocation2 + $0x20] sm:$0xfe] %v948_v15  ;;  %v1058_v0 = vadd.f32 %v1042_v36, %v9507_v17 }
 0x1c1   :  { %v1439_v59 = vld [vmem:[#allocation2 + $0x41] sm:$0xff]  ;;  %983 = vst [vmem:[#allocation2 + $0x30] sm:$0xfe] %v950_v11  ;;  %2898 = vmatpush.bf16.msra.mxu0 %v7182_v27  ;;  %v1363_v11 = vpack.c.bf16 %v1347_v21, %v1347_v21  ;;  %v934_v27 = vadd.f32 %v9507_v17, %v899_v51 }
 0x1c2   :  { %2813 = vmatmul.bf16.vlgmr.msra.gmra.mxu3 %v5713_v39  ;;  %v1440_v10 = vld [vmem:[#allocation2 + $0x51] sm:$0xff]  ;;  %v1455_v38 = vpack.c.bf16 %v1439_v59, %v1439_v59  ;;  %989 = vst [vmem:[#allocation2 + $0x60] sm:$0xfe] %v956_v49 }
 0x1c3   :  { %v1456_v26 = vpack.c.bf16 %v1440_v10, %v1440_v10  ;;  %991 = vst [vmem:[#allocation2 + $0x70] sm:$0xfe] %v958_v13  ;;  %v1404_v13 = vpack.c.bf16 %v1066_v47, %v1066_v47  ;;  %v7191_v39 = vld [vmem:[%s11413_s0 + $0x150] sm:$0xff]  ;;  %v966_v9 = vmax.f32 %v934_v27, 0.0 }
 0x1c4   :  { %1471 = vst [vmem:[#allocation4 + $0x98] sm:$0xf] %v1455_v38  ;;  %v1036_v59 = vmul.f32 %v7191_v39, %v9501_v48  ;;  %v963_v38 = vmax.f32 %v931_v58, 0.0 }
 0x1c5   :  { %1472 = vst [vmem:[#allocation4 + $0xbc] sm:$0xf] %v1456_v26  ;;  %v6840_v20 = vld [vmem:[#allocation4 + $0x94] sm:$0xf]  ;;  %2899 = vmatpush.bf16.msra.mxu0 %v7184_v5  ;;  %v1459_v26 = vpack.c.bf16 %v1443_v35, %v1443_v35  ;;  %v7193_v5 = vld [vmem:[%s11413_s0 + $0xc8] sm:$0x1] }
 0x1c6   :  { %v5714_v43 = vld [vmem:[#allocation4 + $0xb4] sm:$0xf0]  ;;  %990 = vst [vmem:[#allocation2 + $0x68] sm:$0x1] %v957_v41  ;;  %v1074_v41 = vmax.f32 %v1058_v0, 0.0  ;;  %v903_v0 = vmul.f32 %v7197_v53, %v9501_v48  ;;  %v6919_v53 = vld [vmem:[%s11416_s3 + $0xc8] sm:$0xff] }
 0x1c7   :  { %v5717_v50 = vor.u32 %v6840_v20, %v5714_v43  ;;  %v1341_v55 = vld [vmem:[#allocation2 + $0x20] sm:$0xff]  ;;  %992 = vst [vmem:[#allocation2 + $0x78] sm:$0x1] %v959_v45  ;;  %v7309_v20 = vmov 0.0|0.0   ;;  %v1051_v43 = vadd.f32 %v1035_v18, %v9507_v17 }
 0x1c8   :  { %v1342_v24 = vld [vmem:[#allocation2 + $0x30] sm:$0xff]  ;;  %v9701_v16 = vpack.c.bf16 %v1341_v55, %v1341_v55  ;;  %1088 = vst [vmem:[#allocation2 + $0x180] sm:$0xff] %v1071_v52  ;;  %v1052_v52 = vadd.f32 %v1036_v59, %v9507_v17  ;;  %v1412_v33 = vpack.c.bf16 %v1074_v41, %v1074_v41  ;;  %v938_v39 = vadd.f32 %v9507_v17, %v903_v0  ;;  %v7198_v59 = vld [vmem:[%s11413_s0 + $0x18] sm:$0x1] }
 0x1c9   :  { %2862 = vmatmul.bf16.vlgmr.msra.gmra.mxu1 %v5717_v50  ;;  %v1358_v1 = vpack.c.bf16 %v1342_v24, %v1342_v24  ;;  %v1345_v23 = vld [vmem:[#allocation2 + $0x60] sm:$0xff]  ;;  %1089 = vst [vmem:[#allocation2 + $0x190] sm:$0xff] %v1072_v32  ;;  %2900 = vmatpush.bf16.msra.mxu0 %v7187_v29  ;;  %v6921_v50 = vld [vmem:[%s11416_s3 + $0xd8] sm:$0xff]  ;;  %v1067_v25 = vmax.f32 %v1051_v43, 0.0 }
 0x1ca   :  { %1373 = vst [vmem:[#allocation4 + $0x48] sm:$0xf] %v9701_v16  ;;  %v1346_v6 = vld [vmem:[#allocation2 + $0x70] sm:$0xff]  ;;  %v1361_v44 = vpack.c.bf16 %v1345_v23, %v1345_v23  ;;  %v7192_v24 = vld [vmem:[%s11413_s0 + $0xb8] sm:$0x1]  ;;  %2946 = vmatpush.bf16.msrb.mxu3 %v6921_v50  ;;  %v7202_v43 = vld [vmem:[%s11413_s0 + $0x200] sm:$0xff] }
 0x1cb   :  { %v5720_v46 = vld [vmem:[#allocation4 + $0x98] sm:$0xf]  ;;  %1374 = vst [vmem:[#allocation4 + $0x6c] sm:$0xf] %v1358_v1  ;;  %v1362_v2 = vpack.c.bf16 %v1346_v6, %v1346_v6  ;;  %v898_v1 = vmul.f32 %v7192_v24, %v9501_v48  ;;  %v900_v6 = vmul.f32 %v7193_v5, %v9501_v48 }
 0x1cc   :  { %v6845_v30 = vld [vmem:[#allocation4 + $0xb8] sm:$0xf0]  ;;  %1377 = vst [vmem:[#allocation4 + $0xd8] sm:$0xf] %v1361_v44  ;;  %v7194_v44 = vld [vmem:[%s11413_s0 + $0x1d0] sm:$0xff] }
 0x1cd   :  { %v5721_v54 = vor.u32 %v6845_v30, %v5720_v46  ;;  %1378 = vst [vmem:[#allocation4 + $0xfc] sm:$0xf] %v1362_v2  ;;  %v1441_v19 = vld [vmem:[#allocation2 + $0x61] sm:$0xff]  ;;  %v1068_v46 = vmax.f32 %v1052_v52, 0.0  ;;  %v933_v36 = vadd.f32 %v9507_v17, %v898_v1  ;;  %v935_v21 = vadd.f32 %v9507_v17, %v900_v6  ;;  %v6941_v0 = vld [vmem:[%s11416_s3 + $0x178] sm:$0xff] }
 0x1ce   :  { %v1442_v8 = vld [vmem:[#allocation2 + $0x71] sm:$0xff]  ;;  %v1457_v61 = vpack.c.bf16 %v1441_v19, %v1441_v19  ;;  %1425 = vst [vmem:[#allocation4 + $0xdc] sm:$0xf] %v1409_v28  ;;  %v1043_v28 = vmul.f32 %v7194_v44, %v9501_v48  ;;  %v1046_v52 = vmul.f32 %v7202_v43, %v9501_v48  ;;  %v970_v6 = vmax.f32 %v938_v39, 0.0  ;;  %3040 = vmatpush.bf16.msrb.mxu1 %v6941_v0  ;;  %v6918_v0 = vld [vmem:[%s11416_s3 + $0xc0] sm:$0xff] }
 0x1cf   :  { %2911 = vmatmul.bf16.vlgmr.msra.gmra.mxu2 %v5721_v54  ;;  %v1458_v15 = vpack.c.bf16 %v1442_v8, %v1442_v8  ;;  %1426 = vst [vmem:[#allocation4 + $0x100] sm:$0xf] %v1410_v31  ;;  %v7195_v31 = vld [vmem:[%s11413_s0 + $0x1e0] sm:$0xff]  ;;  %v1405_v8 = vpack.c.bf16 %v1067_v25, %v1067_v25  ;;  %v967_v57 = vmax.f32 %v935_v21, 0.0  ;;  %v7206_v39 = vld [vmem:[%s11413_s0 + $0x38] sm:$0x1] }
 0x1d0   :  { %1473 = vst [vmem:[#allocation4 + $0xe0] sm:$0xf] %v1457_v61  ;;  %v1044_v22 = vmul.f32 %v7195_v31, %v9501_v48  ;;  %v1059_v54 = vadd.f32 %v1043_v28, %v9507_v17  ;;  %v1406_v61 = vpack.c.bf16 %v1068_v46, %v1068_v46  ;;  %v1062_v28 = vadd.f32 %v1046_v52, %v9507_v17 }
 0x1d1   :  { %v5676_v49 = vld [vmem:[#allocation4 + $0x48] sm:$0xf]  ;;  %1474 = vst [vmem:[#allocation4 + $0x104] sm:$0xf] %v1458_v15 }
 0x1d2   :  { %v6835_v63 = vld [vmem:[#allocation4 + $0x68] sm:$0xf0]  ;;  %995 = vst [vmem:[#allocation2 + $0xa0] sm:$0xfe] %v962_v14  ;;  %v7196_v14 = vld [vmem:[%s11413_s0 + $0xd0] sm:$0xff]  ;;  %v1060_v15 = vadd.f32 %v1044_v22, %v9507_v17 }
 0x1d3   :  { %v5677_v60 = vor.u32 %v6835_v63, %v5676_v49  ;;  %v5748_v10 = vld [vmem:[#allocation4 + $0xd8] sm:$0xf]  ;;  %1379 = vst [vmem:[#allocation4 + $0x120] sm:$0xf] %v1363_v11  ;;  %v6920_v11 = vld [vmem:[%s11416_s3 + $0xd0] sm:$0xff]  ;;  %v965_v49 = vmax.f32 %v933_v36, 0.0 }
 0x1d4   :  { %v6853_v4 = vld [vmem:[#allocation4 + $0xf8] sm:$0xf0]  ;;  %1083 = vst [vmem:[#allocation2 + $0x130] sm:$0xff] %v1066_v47  ;;  %v901_v47 = vmul.f32 %v7196_v14, %v9501_v48  ;;  %v1075_v63 = vmax.f32 %v1059_v54, 0.0  ;;  %2947 = vmatpush.bf16.msrb.mxu3 %v6920_v11  ;;  %v1076_v34 = vmax.f32 %v1060_v15, 0.0  ;;  %v6932_v14 = vld [vmem:[%s11416_s3 + $0x130] sm:$0xff] }
 0x1d5   :  { %2808 = vmatmul.bf16.gmra.mxu0 %v5677_v60  ;;  %v5749_v45 = vor.u32 %v6853_v4, %v5748_v10  ;;  %v6849_v3 = vld [vmem:[#allocation4 + $0xdc] sm:$0xf]  ;;  %1419 = vst [vmem:[#allocation4 + $0x4] sm:$0xf] %v7309_v20  ;;  %v880_v60 = vmul.f32 %v7198_v59, %v9501_v48  ;;  %v884_v59 = vmul.f32 %v7206_v39, %v9501_v48  ;;  %v7213_v39 = vld [vmem:[%s11413_s0 + $0x360] sm:$0xff] }
 0x1d6   :  { %v5750_v40 = vld [vmem:[#allocation4 + $0xfc] sm:$0xf0]  ;;  %1420 = vst [vmem:[#allocation4 + $0x28] sm:$0xf] %v1404_v13  ;;  %v936_v18 = vadd.f32 %v9507_v17, %v901_v47  ;;  %v1414_v50 = vpack.c.bf16 %v1076_v34, %v1076_v34  ;;  %v6949_v47 = vld [vmem:[%s11416_s3 + $0x1b8] sm:$0xff] }
 0x1d7   :  { %2818 = vmatmul.bf16.gmra.mxu3 %v5749_v45  ;;  %v5753_v37 = vor.u32 %v6849_v3, %v5750_v40  ;;  %996 = vst [vmem:[#allocation2 + $0xa8] sm:$0x1] %v963_v38  ;;  %v5756_v55 = vld [vmem:[#allocation4 + $0xe0] sm:$0xf]  ;;  %v7201_v3 = vld [vmem:[%s11413_s0 + $0x1f0] sm:$0xff]  ;;  %3089 = vmatpush.bf16.msrb.mxu2 %v6949_v47 }
 0x1d8   :  { %v6854_v32 = vld [vmem:[#allocation4 + $0x100] sm:$0xf0]  ;;  %1475 = vst [vmem:[#allocation4 + $0x128] sm:$0xf] %v1459_v26  ;;  %v7200_v26 = vld [vmem:[%s11413_s0 + $0xe8] sm:$0x1]  ;;  %2948 = vmatpush.bf16.msrb.mxu3 %v6919_v53 }
 0x1d9   :  { %2867 = vmatmul.bf16.gmra.mxu1 %v5753_v37  ;;  %v1348_v23 = vld [vmem:[#allocation2 + $0xa0] sm:$0xff]  ;;  %1091 = vst [vmem:[#allocation2 + $0x1c0] sm:$0xff] %v1074_v41  ;;  %v5757_v2 = vor.u32 %v6854_v32, %v5756_v55  ;;  %v7199_v41 = vld [vmem:[%s11413_s0 + $0xd8] sm:$0x1]  ;;  %v904_v45 = vmul.f32 %v7200_v26, %v9501_v48  ;;  %v968_v55 = vmax.f32 %v936_v18, 0.0 }
 0x1da   :  { %v1364_v42 = vpack.c.bf16 %v1348_v23, %v1348_v23  ;;  %1427 = vst [vmem:[#allocation4 + $0x124] sm:$0xf] %v7309_v20  ;;  %v5784_v35 = vld [vmem:[#allocation4 + $0x120] sm:$0xf]  ;;  %v902_v4 = vmul.f32 %v7199_v41, %v9501_v48  ;;  %v1045_v20 = vmul.f32 %v7201_v3, %v9501_v48  ;;  %v6933_v32 = vld [vmem:[%s11416_s3 + $0x138] sm:$0xff]  ;;  %v915_v23 = vadd.f32 %v9507_v17, %v880_v60 }
 0x1db   :  { %1428 = vst [vmem:[#allocation4 + $0x148] sm:$0xf] %v1412_v33  ;;  %v1413_v33 = vpack.c.bf16 %v1075_v63, %v1075_v63  ;;  %v939_v5 = vadd.f32 %v9507_v17, %v904_v45  ;;  %v7207_v3 = vld [vmem:[%s11413_s0 + $0xf8] sm:$0x1] }
 0x1dc   :  { %1380 = vst [vmem:[#allocation4 + $0x144] sm:$0xf] %v1364_v42  ;;  %v6822_v30 = vld [vmem:[#allocation4 + $0x4] sm:$0xf]  ;;  %v1061_v44 = vadd.f32 %v1045_v20, %v9507_v17  ;;  %v947_v31 = vmax.f32 %v915_v23, 0.0  ;;  %v906_v20 = vmul.f32 %v7207_v3, %v9501_v48  ;;  %2949 = vmatpush.bf16.msrb.mxu3 %v6918_v0 }
 0x1dd   :  { %997 = vst [vmem:[#allocation2 + $0xb0] sm:$0xfe] %v964_v62  ;;  %v5642_v19 = vld [vmem:[#allocation4 + $0x24] sm:$0xf0]  ;;  %v937_v62 = vadd.f32 %v9507_v17, %v902_v4  ;;  %v971_v36 = vmax.f32 %v939_v5, 0.0  ;;  %v7217_v0 = vld [vmem:[%s11413_s0 + $0x260] sm:$0xff] }
 0x1de   :  { %v1444_v29 = vld [vmem:[#allocation2 + $0xa1] sm:$0xff]  ;;  %999 = vst [vmem:[#allocation2 + $0xc0] sm:$0xfe] %v966_v9  ;;  %v5645_v12 = vor.u32 %v6822_v30, %v5642_v19  ;;  %v9809_v54 = vmax.f32 %v1061_v44, 0.0  ;;  %v9811_v19 = vmax.f32 %v1062_v28, 0.0  ;;  %v919_v28 = vadd.f32 %v9507_v17, %v884_v59 }
 0x1df   :  { %2916 = vmatmul.bf16.gmra.mxu2 %v5757_v2  ;;  %v1460_v58 = vpack.c.bf16 %v1444_v29, %v1444_v29  ;;  %1084 = vst [vmem:[#allocation2 + $0x140] sm:$0xff] %v1067_v25  ;;  %v5792_v24 = vld [vmem:[#allocation4 + $0x128] sm:$0xf]  ;;  %v969_v22 = vmax.f32 %v937_v62, 0.0  ;;  %v1275_v59 = vmul.f32 %v7213_v39, %v9501_v48  ;;  %v6965_v39 = vld [vmem:[%s11416_s3 + $0x238] sm:$0xff] }
 0x1e0   :  { %1085 = vst [vmem:[#allocation2 + $0x150] sm:$0xff] %v1068_v46  ;;  %v1435_v42 = vld [vmem:[#allocation2 + $0x1] sm:$0xff]  ;;  %v1416_v41 = vpack.c.bf16 %v9811_v19, %v9811_v19 }
 0x1e1   :  { %1476 = vst [vmem:[#allocation4 + $0x14c] sm:$0xf] %v1460_v58  ;;  %v6858_v13 = vld [vmem:[#allocation4 + $0x124] sm:$0xf]  ;;  %v1451_v21 = vpack.c.bf16 %v1435_v42, %v1435_v42  ;;  %v7203_v58 = vld [vmem:[%s11413_s0 + $0xf0] sm:$0xff]  ;;  %v941_v42 = vadd.f32 %v9507_v17, %v906_v20 }
 0x1e2   :  { %v5786_v7 = vld [vmem:[#allocation4 + $0x144] sm:$0xf0]  ;;  %1421 = vst [vmem:[#allocation4 + $0x4c] sm:$0xf] %v1405_v8  ;;  %v905_v15 = vmul.f32 %v7203_v58, %v9501_v48 }
 0x1e3   :  { %v6862_v51 = vld [vmem:[#allocation4 + $0x140] sm:$0xf0]  ;;  %1422 = vst [vmem:[#allocation4 + $0x70] sm:$0xf] %v1406_v61  ;;  %v5789_v56 = vor.u32 %v6858_v13, %v5786_v7  ;;  %v6940_v13 = vld [vmem:[%s11416_s3 + $0x170] sm:$0xff] }
 0x1e4   :  { %v5785_v10 = vor.u32 %v6862_v51, %v5784_v35  ;;  %v1349_v38 = vld [vmem:[#allocation2 + $0xb0] sm:$0xff]  ;;  %998 = vst [vmem:[#allocation2 + $0xb8] sm:$0x1] %v965_v49  ;;  %v7204_v7 = vld [vmem:[%s11413_s0 + $0x100] sm:$0xff]  ;;  %v940_v4 = vadd.f32 %v9507_v17, %v905_v15  ;;  %3041 = vmatpush.bf16.msrb.mxu1 %v6940_v13  ;;  %v6939_v15 = vld [vmem:[%s11416_s3 + $0x168] sm:$0xff] }
 0x1e5   :  { %2852 = vmatmul.bf16.vlgmr.msrb.gmra.mxu0 %v5645_v12  ;;  %v1350_v40 = vld [vmem:[#allocation2 + $0xc0] sm:$0xff]  ;;  %v1365_v27 = vpack.c.bf16 %v1349_v38, %v1349_v38  ;;  %1000 = vst [vmem:[#allocation2 + $0xc8] sm:$0x1] %v967_v57  ;;  %v6948_v12 = vld [vmem:[%s11416_s3 + $0x1b0] sm:$0xff]  ;;  %v907_v51 = vmul.f32 %v7204_v7, %v9501_v48  ;;  %v1415_v38 = vpack.c.bf16 %v9809_v54, %v9809_v54 }
 0x1e6   :  { %v1366_v37 = vpack.c.bf16 %v1350_v40, %v1350_v40  ;;  %1092 = vst [vmem:[#allocation2 + $0x1d0] sm:$0xff] %v1075_v63  ;;  %2991 = vmatpush.bf16.msrb.mxu0 %v6933_v32  ;;  %v6931_v63 = vld [vmem:[%s11416_s3 + $0x128] sm:$0xff]  ;;  %3090 = vmatpush.bf16.msrb.mxu2 %v6948_v12  ;;  %v6930_v32 = vld [vmem:[%s11416_s3 + $0x120] sm:$0xff]  ;;  %v972_v23 = vmax.f32 %v940_v4, 0.0 }
 0x1e7   :  { %2823 = vmatmul.bf16.gmra.mxu3 %v5785_v10  ;;  %1381 = vst [vmem:[#allocation4 + $0x168] sm:$0xf] %v1365_v27  ;;  %v7209_v27 = vld [vmem:[%s11413_s0 + $0x210] sm:$0xff]  ;;  %v6938_v12 = vld [vmem:[%s11416_s3 + $0x160] sm:$0xff]  ;;  %v6927_v4 = vld [vmem:[%s11416_s3 + $0x108] sm:$0xff] }
 0x1e8   :  { %v6863_v1 = vld [vmem:[#allocation4 + $0x148] sm:$0xf0]  ;;  %1382 = vst [vmem:[#allocation4 + $0x18c] sm:$0xf] %v1366_v37  ;;  %v1047_v43 = vmul.f32 %v7209_v27, %v9501_v48  ;;  %3042 = vmatpush.bf16.msrb.mxu1 %v6939_v15  ;;  %v7211_v7 = vld [vmem:[%s11413_s0 + $0x240] sm:$0xff]  ;;  %v6944_v27 = vld [vmem:[%s11416_s3 + $0x190] sm:$0xff] }
 0x1e9   :  { %2872 = vmatmul.bf16.gmra.mxu1 %v5789_v56  ;;  %1093 = vst [vmem:[#allocation2 + $0x1e0] sm:$0xff] %v1076_v34  ;;  %v5793_v9 = vor.u32 %v6863_v1, %v5792_v24  ;;  %v6831_v29 = vld [vmem:[#allocation4 + $0x4c] sm:$0xf]  ;;  %v7205_v34 = vld [vmem:[%s11413_s0 + $0x28] sm:$0x1]  ;;  %v942_v24 = vadd.f32 %v9507_v17, %v907_v51  ;;  %v1123_v51 = vmul.f32 %v7211_v7, %v9501_v48  ;;  %v7220_v7 = vld [vmem:[%s11413_s0 + $0x390] sm:$0xff] }
 0x1ea   :  { %1429 = vst [vmem:[#allocation4 + $0x16c] sm:$0xf] %v1413_v33  ;;  %v5678_v8 = vld [vmem:[#allocation4 + $0x6c] sm:$0xf0]  ;;  %2992 = vmatpush.bf16.msrb.mxu0 %v6932_v14  ;;  %v882_v18 = vmul.f32 %v7205_v34, %v9501_v48  ;;  %v7208_v56 = vld [vmem:[%s11413_s0 + $0x108] sm:$0x1] }
 0x1eb   :  { %v1445_v25 = vld [vmem:[#allocation2 + $0xb1] sm:$0xff]  ;;  %1430 = vst [vmem:[#allocation4 + $0x190] sm:$0xf] %v1414_v50  ;;  %v5681_v49 = vor.u32 %v6831_v29, %v5678_v8  ;;  %v908_v40 = vmul.f32 %v7208_v56, %v9501_v48  ;;  %v6947_v33 = vld [vmem:[%s11416_s3 + $0x1a8] sm:$0xff]  ;;  %v7210_v50 = vld [vmem:[%s11413_s0 + $0x220] sm:$0xff]  ;;  %v951_v29 = vmax.f32 %v919_v28, 0.0 }
 0x1ec   :  { %v1446_v46 = vld [vmem:[#allocation2 + $0xc1] sm:$0xff]  ;;  %v1461_v2 = vpack.c.bf16 %v1445_v25, %v1445_v25  ;;  %1001 = vst [vmem:[#allocation2 + $0xd0] sm:$0xfe] %v968_v55  ;;  %v1048_v55 = vmul.f32 %v7210_v50, %v9501_v48  ;;  %v917_v62 = vadd.f32 %v9507_v17, %v882_v18  ;;  %3091 = vmatpush.bf16.msrb.mxu2 %v6947_v33  ;;  %v973_v8 = vmax.f32 %v941_v42, 0.0  ;;  %v7212_v34 = vld [vmem:[%s11413_s0 + $0x250] sm:$0xff] }
 0x1ed   :  { %v1462_v30 = vpack.c.bf16 %v1446_v46, %v1446_v46  ;;  %1003 = vst [vmem:[#allocation2 + $0xe0] sm:$0xfe] %v970_v6  ;;  %v943_v25 = vadd.f32 %v9507_v17, %v908_v40  ;;  %v1063_v46 = vadd.f32 %v1047_v43, %v9507_v17  ;;  %v1125_v18 = vmul.f32 %v7212_v34, %v9501_v48  ;;  %v6937_v40 = vld [vmem:[%s11416_s3 + $0x158] sm:$0xff] }
 0x1ee   :  { %1477 = vst [vmem:[#allocation4 + $0x170] sm:$0xf] %v1461_v2  ;;  %v5820_v61 = vld [vmem:[#allocation4 + $0x168] sm:$0xf]  ;;  %2993 = vmatpush.bf16.msrb.mxu0 %v6931_v63  ;;  %v1064_v2 = vadd.f32 %v1048_v55, %v9507_v17  ;;  %3043 = vmatpush.bf16.msrb.mxu1 %v6938_v12  ;;  %v1291_v33 = vadd.f32 %v1275_v59, %v9507_v17 }
 0x1ef   :  { %2921 = vmatmul.bf16.gmra.mxu2 %v5793_v9  ;;  %1478 = vst [vmem:[#allocation4 + $0x194] sm:$0xf] %v1462_v30  ;;  %v6871_v11 = vld [vmem:[#allocation4 + $0x188] sm:$0xf0]  ;;  %v6929_v30 = vld [vmem:[%s11416_s3 + $0x118] sm:$0xff]  ;;  %v1079_v14 = vmax.f32 %v1063_v46, 0.0 }
 0x1f0   :  { %980 = vst [vmem:[#allocation2 + $0x18] sm:$0x1] %v947_v31  ;;  %v5821_v60 = vor.u32 %v6871_v11, %v5820_v61  ;;  %v975_v61 = vmax.f32 %v943_v25, 0.0  ;;  %v1080_v47 = vmax.f32 %v1064_v2, 0.0  ;;  %v6946_v11 = vld [vmem:[%s11416_s3 + $0x1a0] sm:$0xff]  ;;  %v6943_v25 = vld [vmem:[%s11416_s3 + $0x188] sm:$0xff] }
 0x1f1   :  { %v6867_v35 = vld [vmem:[#allocation4 + $0x16c] sm:$0xf]  ;;  %1467 = vst [vmem:[#allocation4 + $0x8] sm:$0xf] %v1451_v21  ;;  %3092 = vmatpush.bf16.msrb.mxu2 %v6946_v11  ;;  %v7215_v46 = vld [vmem:[%s11413_s0 + $0x248] sm:$0x1] }
 0x1f2   :  { %v5822_v57 = vld [vmem:[#allocation4 + $0x18c] sm:$0xf0]  ;;  %1002 = vst [vmem:[#allocation2 + $0xd8] sm:$0x1] %v969_v22  ;;  %2994 = vmatpush.bf16.msrb.mxu0 %v6930_v32  ;;  %v1418_v56 = vpack.c.bf16 %v1080_v47, %v1080_v47  ;;  %3044 = vmatpush.bf16.msrb.mxu1 %v6937_v40  ;;  %v1124_v2 = vmul.f32 %v7215_v46, %v9501_v48 }
 0x1f3   :  { %v1351_v10 = vld [vmem:[#allocation2 + $0xd0] sm:$0xff]  ;;  %1004 = vst [vmem:[#allocation2 + $0xe8] sm:$0x1] %v971_v36  ;;  %v5825_v52 = vor.u32 %v6867_v35, %v5822_v57  ;;  %v974_v36 = vmax.f32 %v942_v24, 0.0  ;;  %v6945_v57 = vld [vmem:[%s11416_s3 + $0x198] sm:$0xff]  ;;  %v6926_v24 = vld [vmem:[%s11416_s3 + $0x100] sm:$0xff] }
 0x1f4   :  { %v1352_v26 = vld [vmem:[#allocation2 + $0xe0] sm:$0xff]  ;;  %v1367_v45 = vpack.c.bf16 %v1351_v10, %v1351_v10  ;;  %1094 = vst [vmem:[#allocation2 + $0x1f0] sm:$0xff] %v9809_v54  ;;  %v1156_v15 = vadd.f32 %v1124_v2, %v9507_v17 }
 0x1f5   :  { %2857 = vmatmul.bf16.gmra.mxu0 %v5681_v49  ;;  %v1368_v37 = vpack.c.bf16 %v1352_v26, %v1352_v26  ;;  %1095 = vst [vmem:[#allocation2 + $0x200] sm:$0xff] %v9811_v19  ;;  %v5828_v5 = vld [vmem:[#allocation4 + $0x170] sm:$0xf]  ;;  %v949_v19 = vmax.f32 %v917_v62, 0.0  ;;  %3093 = vmatpush.bf16.msrb.mxu2 %v6945_v57 }
 0x1f6   :  { %1383 = vst [vmem:[#allocation4 + $0x1b0] sm:$0xf] %v1367_v45  ;;  %v6872_v6 = vld [vmem:[#allocation4 + $0x190] sm:$0xf0]  ;;  %2995 = vmatpush.bf16.msrb.mxu0 %v6929_v30  ;;  %v1307_v30 = vmax.f32 %v1291_v33, 0.0 }
 0x1f7   :  { %2828 = vmatmul.bf16.gmra.mxu3 %v5821_v60  ;;  %1384 = vst [vmem:[#allocation4 + $0x1d4] sm:$0xf] %v1368_v37  ;;  %v1436_v1 = vld [vmem:[#allocation2 + $0x11] sm:$0xff]  ;;  %v5829_v21 = vor.u32 %v6872_v6, %v5828_v5  ;;  %v1155_v37 = vadd.f32 %v1123_v51, %v9507_v17  ;;  %v1278_v51 = vmul.f32 %v7220_v7, %v9501_v48 }
 0x1f8   :  { %v1452_v44 = vpack.c.bf16 %v1436_v1, %v1436_v1  ;;  %1431 = vst [vmem:[#allocation4 + $0x1b4] sm:$0xf] %v1415_v38  ;;  %v5648_v58 = vld [vmem:[#allocation4 + $0x8] sm:$0xf]  ;;  %v6928_v49 = vld [vmem:[%s11416_s3 + $0x110] sm:$0xff]  ;;  %v1157_v1 = vadd.f32 %v1125_v18, %v9507_v17  ;;  %v1547_v11 = vpack.c.bf16 %v1307_v30, %v1307_v30  ;;  %v7224_v30 = vld [vmem:[%s11413_s0 + $0x3a0] sm:$0xff] }
 0x1f9   :  { %2877 = vmatmul.bf16.gmra.mxu1 %v5825_v52  ;;  %v1447_v9 = vld [vmem:[#allocation2 + $0xd1] sm:$0xff]  ;;  %1432 = vst [vmem:[#allocation4 + $0x1d8] sm:$0xf] %v1416_v41  ;;  %v1417_v41 = vpack.c.bf16 %v1079_v14, %v1079_v14  ;;  %3094 = vmatpush.bf16.msrb.mxu2 %v6944_v27  ;;  %v1294_v27 = vadd.f32 %v1278_v51, %v9507_v17 }
 0x1fa   :  { %1468 = vst [vmem:[#allocation4 + $0x2c] sm:$0xf] %v1452_v44  ;;  %v1448_v31 = vld [vmem:[#allocation2 + $0xe1] sm:$0xff]  ;;  %v1463_v22 = vpack.c.bf16 %v1447_v9, %v1447_v9  ;;  %2996 = vmatpush.bf16.msrb.mxu0 %v6928_v49  ;;  %v7214_v26 = vld [vmem:[%s11413_s0 + $0x370] sm:$0xff]  ;;  %v6957_v44 = vld [vmem:[%s11416_s3 + $0x1f8] sm:$0xff]  ;;  %v1127_v49 = vmul.f32 %v7217_v0, %v9501_v48 }
 0x1fb   :  { %v1464_v54 = vpack.c.bf16 %v1448_v31, %v1448_v31  ;;  %1005 = vst [vmem:[#allocation2 + $0xf0] sm:$0xfe] %v972_v23  ;;  %v1276_v45 = vmul.f32 %v7214_v26, %v9501_v48  ;;  %v6936_v6 = vld [vmem:[%s11416_s3 + $0x150] sm:$0xff]  ;;  %3138 = vmatpush.bf16.msra.mxu3 %v6957_v44  ;;  %v7221_v44 = vld [vmem:[%s11413_s0 + $0x268] sm:$0x1] }
 0x1fc   :  { %1479 = vst [vmem:[#allocation4 + $0x1b8] sm:$0xf] %v1463_v22  ;;  %3045 = vmatpush.bf16.msrb.mxu1 %v6936_v6  ;;  %v1159_v26 = vadd.f32 %v1127_v49, %v9507_v17 }
 0x1fd   :  { %1480 = vst [vmem:[#allocation4 + $0x1dc] sm:$0xf] %v1464_v54  ;;  %v5856_v53 = vld [vmem:[#allocation4 + $0x1b0] sm:$0xf]  ;;  %v1292_v23 = vadd.f32 %v1276_v45, %v9507_v17  ;;  %3095 = vmatpush.bf16.msrb.mxu2 %v6943_v25  ;;  %v7222_v25 = vld [vmem:[%s11413_s0 + $0x278] sm:$0x1] }
 0x1fe   :  { %1007 = vst [vmem:[#allocation2 + $0x100] sm:$0xfe] %v974_v36  ;;  %v6880_v35 = vld [vmem:[#allocation4 + $0x1d0] sm:$0xf0]  ;;  %2997 = vmatpush.bf16.msrb.mxu0 %v6927_v4  ;;  %v1187_v36 = vmax.f32 %v1155_v37, 0.0  ;;  %v1130_v46 = vmul.f32 %v7222_v25, %v9501_v48 }
 0x1ff   :  { %2926 = vmatmul.bf16.gmra.mxu2 %v5829_v21  ;;  %982 = vst [vmem:[#allocation2 + $0x28] sm:$0x1] %v949_v19  ;;  %v6876_v13 = vld [vmem:[#allocation4 + $0x1b4] sm:$0xf]  ;;  %v5857_v3 = vor.u32 %v6880_v35, %v5856_v53  ;;  %v7216_v21 = vld [vmem:[%s11413_s0 + $0x258] sm:$0x1] }
 0x200   :  { %984 = vst [vmem:[#allocation2 + $0x38] sm:$0x1] %v951_v29  ;;  %v5858_v10 = vld [vmem:[#allocation4 + $0x1d4] sm:$0xf0]  ;;  %v1126_v54 = vmul.f32 %v7216_v21, %v9501_v48  ;;  %v1189_v29 = vmax.f32 %v1157_v1, 0.0  ;;  %v7218_v35 = vld [vmem:[%s11413_s0 + $0x380] sm:$0xff]  ;;  %v1279_v21 = vmul.f32 %v7224_v30, %v9501_v48 }
 0x201   :  { %v6827_v63 = vld [vmem:[#allocation4 + $0x28] sm:$0xf0]  ;;  %1006 = vst [vmem:[#allocation2 + $0xf8] sm:$0x1] %v973_v8  ;;  %v5861_v43 = vor.u32 %v6876_v13, %v5858_v10  ;;  %v1308_v8 = vmax.f32 %v1292_v23, 0.0  ;;  %v1277_v12 = vmul.f32 %v7218_v35, %v9501_v48  ;;  %v6934_v10 = vld [vmem:[%s11416_s3 + $0x140] sm:$0xff]  ;;  %v1162_v35 = vadd.f32 %v1130_v46, %v9507_v17 }
 0x202   :  { %v5649_v60 = vor.u32 %v6827_v63, %v5648_v58  ;;  %v1353_v38 = vld [vmem:[#allocation2 + $0xf0] sm:$0xff]  ;;  %1008 = vst [vmem:[#allocation2 + $0x108] sm:$0x1] %v975_v61  ;;  %2998 = vmatpush.bf16.msrb.mxu0 %v6926_v24  ;;  %v1158_v53 = vadd.f32 %v1126_v54, %v9507_v17  ;;  %v1310_v23 = vmax.f32 %v1294_v27, 0.0 }
 0x203   :  { %v1369_v20 = vpack.c.bf16 %v1353_v38, %v1353_v38  ;;  %1096 = vst [vmem:[#allocation2 + $0x210] sm:$0xff] %v1079_v14  ;;  %v5864_v50 = vld [vmem:[#allocation4 + $0x1b8] sm:$0xf]  ;;  %v6935_v14 = vld [vmem:[%s11416_s3 + $0x148] sm:$0xff]  ;;  %v1627_v58 = vld [vmem:[#allocation2 + $0x10] sm:$0xff]  ;;  %v1548_v57 = vpack.c.bf16 %v1308_v8, %v1308_v8  ;;  %v1293_v45 = vadd.f32 %v1277_v12, %v9507_v17 }
 0x204   :  { %1097 = vst [vmem:[#allocation2 + $0x220] sm:$0xff] %v1080_v47  ;;  %v6881_v28 = vld [vmem:[#allocation4 + $0x1d8] sm:$0xf0]  ;;  %v6942_v47 = vld [vmem:[%s11416_s3 + $0x180] sm:$0xff]  ;;  %v7219_v63 = vld [vmem:[%s11413_s0 + $0x270] sm:$0xff]  ;;  %v1643_v18 = vpack.c.bf16 %v1627_v58, %v1627_v58  ;;  %3046 = vmatpush.bf16.msrb.mxu1 %v6935_v14  ;;  %v1190_v4 = vmax.f32 %v1158_v53, 0.0 }
 0x205   :  { %2901 = vmatmul.bf16.vlgmr.msra.gmra.mxu0 %v5649_v60  ;;  %v1354_v52 = vld [vmem:[#allocation2 + $0x100] sm:$0xff]  ;;  %1385 = vst [vmem:[#allocation4 + $0x1f8] sm:$0xf] %v1369_v20  ;;  %v5865_v61 = vor.u32 %v6881_v28, %v5864_v50  ;;  %v1129_v13 = vmul.f32 %v7219_v63, %v9501_v48  ;;  %3096 = vmatpush.bf16.msrb.mxu2 %v6942_v47  ;;  %v7226_v8 = vld [vmem:[%s11413_s0 + $0x3b0] sm:$0xff] }
 0x206   :  { %v1370_v55 = vpack.c.bf16 %v1354_v52, %v1354_v52  ;;  %v1437_v32 = vld [vmem:[#allocation2 + $0x21] sm:$0xff]  ;;  %1433 = vst [vmem:[#allocation4 + $0x1fc] sm:$0xf] %v1417_v41  ;;  %3187 = vmatpush.bf16.msra.mxu0 %v6965_v39  ;;  %v1188_v41 = vmax.f32 %v1156_v15, 0.0  ;;  %v1128_v28 = vmul.f32 %v7221_v44, %v9501_v48 }
 0x207   :  { %2833 = vmatmul.bf16.gmra.mxu3 %v5857_v3  ;;  %v1438_v62 = vld [vmem:[#allocation2 + $0x31] sm:$0xff]  ;;  %v1453_v5 = vpack.c.bf16 %v1437_v32, %v1437_v32  ;;  %1434 = vst [vmem:[#allocation4 + $0x220] sm:$0xf] %v1418_v56  ;;  %v1161_v40 = vadd.f32 %v1129_v13, %v9507_v17  ;;  %v1309_v32 = vmax.f32 %v1293_v45, 0.0  ;;  %v1295_v13 = vadd.f32 %v1279_v21, %v9507_v17 }
 0x208   :  { %1386 = vst [vmem:[#allocation4 + $0x21c] sm:$0xf] %v1370_v55  ;;  %v1454_v42 = vpack.c.bf16 %v1438_v62, %v1438_v62  ;;  %v1449_v9 = vld [vmem:[#allocation2 + $0xf1] sm:$0xff]  ;;  %3047 = vmatpush.bf16.msrb.mxu1 %v6934_v10  ;;  %v1191_v55 = vmax.f32 %v1159_v26, 0.0  ;;  %v1160_v15 = vadd.f32 %v1128_v28, %v9507_v17 }
 0x209   :  { %2882 = vmatmul.bf16.gmra.mxu1 %v5861_v43  ;;  %1469 = vst [vmem:[#allocation4 + $0x50] sm:$0xf] %v1453_v5  ;;  %v1450_v31 = vld [vmem:[#allocation2 + $0x101] sm:$0xff]  ;;  %v1465_v22 = vpack.c.bf16 %v1449_v9, %v1449_v9  ;;  %v1193_v1 = vmax.f32 %v1161_v40, 0.0  ;;  %v6956_v62 = vld [vmem:[%s11416_s3 + $0x1f0] sm:$0xff]  ;;  %v1549_v6 = vpack.c.bf16 %v1309_v32, %v1309_v32  ;;  %v1311_v45 = vmax.f32 %v1295_v13, 0.0 }
 0x20a   :  { %1470 = vst [vmem:[#allocation4 + $0x74] sm:$0xf] %v1454_v42  ;;  %v1466_v19 = vpack.c.bf16 %v1450_v31, %v1450_v31  ;;  %3139 = vmatpush.bf16.msra.mxu3 %v6956_v62  ;;  %v1550_v42 = vpack.c.bf16 %v1310_v23, %v1310_v23  ;;  %v1629_v9 = vld [vmem:[#allocation2 + $0x30] sm:$0xff]  ;;  %v1630_v31 = vld [vmem:[#allocation2 + $0x40] sm:$0xff]  ;;  %v1192_v10 = vmax.f32 %v1160_v15, 0.0 }
 0x20b   :  { %1481 = vst [vmem:[#allocation4 + $0x200] sm:$0xf] %v1465_v22  ;;  %v7223_v22 = vld [vmem:[%s11413_s0 + $0x280] sm:$0xff]  ;;  %v1645_v58 = vpack.c.bf16 %v1629_v9, %v1629_v9  ;;  %v1646_v49 = vpack.c.bf16 %v1630_v31, %v1630_v31 }
 0x20c   :  { %1482 = vst [vmem:[#allocation4 + $0x224] sm:$0xf] %v1466_v19  ;;  %v5892_v34 = vld [vmem:[#allocation4 + $0x1f8] sm:$0xf]  ;;  %v7225_v19 = vld [vmem:[%s11413_s0 + $0x290] sm:$0xff] }
 0x20d   :  { %1219 = vst [vmem:[#allocation2 + $0x240] sm:$0xfe] %v1187_v36  ;;  %v6885_v20 = vld [vmem:[#allocation4 + $0x1fc] sm:$0xf]  ;;  %v1131_v36 = vmul.f32 %v7223_v22, %v9501_v48  ;;  %v7232_v22 = vld [vmem:[%s11413_s0 + $0x3d0] sm:$0xff] }
 0x20e   :  { %1221 = vst [vmem:[#allocation2 + $0x250] sm:$0xfe] %v1189_v29  ;;  %v5894_v56 = vld [vmem:[#allocation4 + $0x21c] sm:$0xf0]  ;;  %v1133_v29 = vmul.f32 %v7225_v19, %v9501_v48 }
 0x20f   :  { %2931 = vmatmul.bf16.gmra.mxu2 %v5865_v61  ;;  %v6889_v59 = vld [vmem:[#allocation4 + $0x218] sm:$0xf0]  ;;  %1563 = vst [vmem:[#allocation4 + $0x10] sm:$0xf] %v1547_v11  ;;  %v5897_v37 = vor.u32 %v6885_v20, %v5894_v56  ;;  %v1280_v61 = vmul.f32 %v7226_v8, %v9501_v48  ;;  %v1163_v63 = vadd.f32 %v1131_v36, %v9507_v17 }
 0x210   :  { %v5684_v60 = vld [vmem:[#allocation4 + $0x50] sm:$0xf]  ;;  %1564 = vst [vmem:[#allocation4 + $0x34] sm:$0xf] %v1548_v57  ;;  %v5893_v43 = vor.u32 %v6889_v59, %v5892_v34  ;;  %v1165_v34 = vadd.f32 %v1133_v29, %v9507_v17  ;;  %v1282_v36 = vmul.f32 %v7232_v22, %v9501_v48 }
 0x211   :  { %v6836_v38 = vld [vmem:[#allocation4 + $0x70] sm:$0xf0]  ;;  %1659 = vst [vmem:[#allocation4 + $0x18] sm:$0xf] %v1643_v18  ;;  %v1296_v18 = vadd.f32 %v1280_v61, %v9507_v17  ;;  %v1195_v26 = vmax.f32 %v1163_v63, 0.0 }
 0x212   :  { %v5685_v3 = vor.u32 %v6836_v38, %v5684_v60  ;;  %1660 = vst [vmem:[#allocation4 + $0x3c] sm:$0xf] %v9701_v16  ;;  %v5900_v5 = vld [vmem:[#allocation4 + $0x200] sm:$0xf]  ;;  %v6964_v57 = vld [vmem:[%s11416_s3 + $0x230] sm:$0xff]  ;;  %v1298_v15 = vadd.f32 %v1282_v36, %v9507_v17 }
 0x213   :  { %1220 = vst [vmem:[#allocation2 + $0x248] sm:$0x1] %v1188_v41  ;;  %v6890_v16 = vld [vmem:[#allocation4 + $0x220] sm:$0xf0]  ;;  %3188 = vmatpush.bf16.msra.mxu0 %v6964_v57  ;;  %v1194_v41 = vmax.f32 %v1162_v35, 0.0  ;;  %v1312_v20 = vmax.f32 %v1296_v18, 0.0 }
 0x214   :  { %v1483_v52 = vld [vmem:[#allocation2 + $0x240] sm:$0xff]  ;;  %1222 = vst [vmem:[#allocation2 + $0x258] sm:$0x1] %v1190_v4  ;;  %v5901_v2 = vor.u32 %v6890_v16, %v5900_v5 }
 0x215   :  { %2906 = vmatmul.bf16.gmra.mxu0 %v5685_v3  ;;  %v1484_v33 = vld [vmem:[#allocation2 + $0x250] sm:$0xff]  ;;  %v1499_v50 = vpack.c.bf16 %v1483_v52, %v1483_v52  ;;  %1223 = vst [vmem:[#allocation2 + $0x260] sm:$0xfe] %v1191_v55  ;;  %v1197_v3 = vmax.f32 %v1165_v34, 0.0  ;;  %v7227_v55 = vld [vmem:[%s11413_s0 + $0x288] sm:$0x1]  ;;  %v1552_v62 = vpack.c.bf16 %v1312_v20, %v1312_v20 }
 0x216   :  { %v1500_v24 = vpack.c.bf16 %v1484_v33, %v1484_v33  ;;  %1225 = vst [vmem:[#allocation2 + $0x270] sm:$0xfe] %v1193_v1  ;;  %v5656_v11 = vld [vmem:[#allocation4 + $0x10] sm:$0xf]  ;;  %v6955_v33 = vld [vmem:[%s11416_s3 + $0x1e8] sm:$0xff]  ;;  %v1132_v32 = vmul.f32 %v7227_v55, %v9501_v48  ;;  %v7229_v16 = vld [vmem:[%s11413_s0 + $0x2a0] sm:$0xff] }
 0x217   :  { %2838 = vmatmul.bf16.gmra.mxu3 %v5893_v43  ;;  %1515 = vst [vmem:[#allocation4 + $0xc] sm:$0xf] %v1499_v50  ;;  %v6828_v53 = vld [vmem:[#allocation4 + $0x30] sm:$0xf0]  ;;  %v1632_v50 = vld [vmem:[#allocation2 + $0x60] sm:$0xff] }
 0x218   :  { %1516 = vst [vmem:[#allocation4 + $0x30] sm:$0xf] %v1500_v24  ;;  %v5657_v39 = vor.u32 %v6828_v53, %v5656_v11  ;;  %v5664_v56 = vld [vmem:[#allocation4 + $0x18] sm:$0xf]  ;;  %v1631_v43 = vld [vmem:[#allocation2 + $0x50] sm:$0xff]  ;;  %3140 = vmatpush.bf16.msra.mxu3 %v6955_v33  ;;  %v1648_v28 = vpack.c.bf16 %v1632_v50, %v1632_v50  ;;  %v1164_v25 = vadd.f32 %v1132_v32, %v9507_v17  ;;  %v7233_v35 = vld [vmem:[%s11413_s0 + $0x80] sm:$0xff] }
 0x219   :  { %2887 = vmatmul.bf16.gmra.mxu1 %v5897_v37  ;;  %1565 = vst [vmem:[#allocation4 + $0x58] sm:$0xf] %v1549_v6  ;;  %v6829_v40 = vld [vmem:[#allocation4 + $0x38] sm:$0xf0]  ;;  %v1551_v37 = vpack.c.bf16 %v1311_v45, %v1311_v45  ;;  %v7228_v24 = vld [vmem:[%s11413_s0 + $0x298] sm:$0x1]  ;;  %v1647_v5 = vpack.c.bf16 %v1631_v43, %v1631_v43  ;;  %v1135_v6 = vmul.f32 %v7229_v16, %v9501_v48 }
 0x21a   :  { %v1579_v54 = vld [vmem:[#allocation2 + $0x241] sm:$0xff]  ;;  %1566 = vst [vmem:[#allocation4 + $0x7c] sm:$0xf] %v1550_v42  ;;  %v1134_v1 = vmul.f32 %v7228_v24, %v9501_v48  ;;  %v5665_v44 = vor.u32 %v6829_v40, %v5664_v56  ;;  %v7230_v42 = vld [vmem:[%s11413_s0 + $0x2b0] sm:$0xff]  ;;  %v7235_v56 = vld [vmem:[%s11413_s0 + $0x2b8] sm:$0x1] }
 0x21b   :  { %v1580_v14 = vld [vmem:[#allocation2 + $0x251] sm:$0xff]  ;;  %v1595_v47 = vpack.c.bf16 %v1579_v54, %v1579_v54  ;;  %1661 = vst [vmem:[#allocation4 + $0x60] sm:$0xf] %v1645_v58  ;;  %v1137_v9 = vmul.f32 %v7230_v42, %v9501_v48  ;;  %v1167_v29 = vadd.f32 %v1135_v6, %v9507_v17  ;;  %v1138_v40 = vmul.f32 %v7235_v56, %v9501_v48  ;;  %v7237_v32 = vld [vmem:[%s11413_s0 + $0x2e0] sm:$0xff] }
 0x21c   :  { %v1596_v0 = vpack.c.bf16 %v1580_v14, %v1580_v14  ;;  %v1485_v51 = vld [vmem:[#allocation2 + $0x260] sm:$0xff]  ;;  %1662 = vst [vmem:[#allocation4 + $0x84] sm:$0xf] %v1646_v49  ;;  %v1166_v46 = vadd.f32 %v1134_v1, %v9507_v17  ;;  %v1633_v20 = vld [vmem:[#allocation2 + $0x70] sm:$0xff]  ;;  %v1141_v24 = vmul.f32 %v7237_v32, %v9501_v48 }
 0x21d   :  { %1611 = vst [vmem:[#allocation4 + $0x14] sm:$0xf] %v1595_v47  ;;  %v1486_v59 = vld [vmem:[#allocation2 + $0x270] sm:$0xff]  ;;  %v1501_v60 = vpack.c.bf16 %v1485_v51, %v1485_v51  ;;  %v1169_v58 = vadd.f32 %v1137_v9, %v9507_v17  ;;  %v1199_v51 = vmax.f32 %v1167_v29, 0.0  ;;  %v1649_v55 = vpack.c.bf16 %v1633_v20, %v1633_v20 }
 0x21e   :  { %v6823_v12 = vld [vmem:[#allocation4 + $0xc] sm:$0xf]  ;;  %1612 = vst [vmem:[#allocation4 + $0x38] sm:$0xf] %v1596_v0  ;;  %v1502_v38 = vpack.c.bf16 %v1486_v59, %v1486_v59  ;;  %v1196_v0 = vmax.f32 %v1164_v25, 0.0  ;;  %v1198_v49 = vmax.f32 %v1166_v46, 0.0  ;;  %v1173_v22 = vadd.f32 %v1141_v24, %v9507_v17 }
 0x21f   :  { %2936 = vmatmul.bf16.gmra.mxu2 %v5901_v2  ;;  %v5650_v7 = vld [vmem:[#allocation4 + $0x2c] sm:$0xf0]  ;;  %1517 = vst [vmem:[#allocation4 + $0x54] sm:$0xf] %v1501_v60  ;;  %v7231_v2 = vld [vmem:[%s11413_s0 + $0x3c0] sm:$0xff]  ;;  %v1201_v18 = vmax.f32 %v1169_v58, 0.0 }
 0x220   :  { %v5653_v4 = vor.u32 %v6823_v12, %v5650_v7  ;;  %1518 = vst [vmem:[#allocation4 + $0x78] sm:$0xf] %v1502_v38  ;;  %v1281_v31 = vmul.f32 %v7231_v2, %v9501_v48  ;;  %v5692_v21 = vld [vmem:[#allocation4 + $0x58] sm:$0xf]  ;;  %v893_v12 = vmul.f32 %v7233_v35, %v9501_v48  ;;  %v6963_v60 = vld [vmem:[%s11416_s3 + $0x228] sm:$0xff]  ;;  %v7238_v42 = vld [vmem:[%s11413_s0 + $0x3f0] sm:$0xff] }
 0x221   :  { %1224 = vst [vmem:[#allocation2 + $0x268] sm:$0x1] %v1192_v10  ;;  %v6837_v61 = vld [vmem:[#allocation4 + $0x78] sm:$0xf0]  ;;  %3189 = vmatpush.bf16.msra.mxu0 %v6963_v60  ;;  %v1283_v9 = vmul.f32 %v7238_v42, %v9501_v48  ;;  %v7239_v25 = vld [vmem:[%s11413_s0 + $0x400] sm:$0xff]  ;;  %v7242_v20 = vld [vmem:[%s11413_s0 + $0x2f0] sm:$0xff] }
 0x222   :  { %1226 = vst [vmem:[#allocation2 + $0x278] sm:$0x1] %v1194_v41  ;;  %v1297_v8 = vadd.f32 %v1281_v31, %v9507_v17  ;;  %v5693_v7 = vor.u32 %v6837_v61, %v5692_v21  ;;  %v928_v10 = vadd.f32 %v9507_v17, %v893_v12  ;;  %v5700_v38 = vld [vmem:[#allocation4 + $0x60] sm:$0xf]  ;;  %v1284_v46 = vmul.f32 %v7239_v25, %v9501_v48  ;;  %v6953_v42 = vld [vmem:[%s11416_s3 + $0x1d8] sm:$0xff]  ;;  %v7244_v25 = vld [vmem:[%s11413_s0 + $0x410] sm:$0xff] }
 0x223   :  { %1227 = vst [vmem:[#allocation2 + $0x280] sm:$0xfe] %v1195_v26  ;;  %v1143_v56 = vmul.f32 %v7242_v20, %v9501_v48 }
 0x224   :  { %v6824_v27 = vld [vmem:[#allocation4 + $0x14] sm:$0xf]  ;;  %1229 = vst [vmem:[#allocation2 + $0x290] sm:$0xfe] %v1197_v3  ;;  %v1313_v34 = vmax.f32 %v1297_v8, 0.0  ;;  %v1300_v29 = vadd.f32 %v1284_v46, %v9507_v17  ;;  %v1285_v46 = vmul.f32 %v7244_v25, %v9501_v48 }
 0x225   :  { %2999 = vmatmul.bf16.vlgmr.msrb.gmra.mxu0 %v5657_v39  ;;  %v5658_v52 = vld [vmem:[#allocation4 + $0x34] sm:$0xf0]  ;;  %1567 = vst [vmem:[#allocation4 + $0xa0] sm:$0xf] %v1551_v37  ;;  %v1314_v39 = vmax.f32 %v1298_v15, 0.0  ;;  %v7236_v37 = vld [vmem:[%s11413_s0 + $0x2d0] sm:$0xff] }
 0x226   :  { %v5661_v23 = vor.u32 %v6824_v27, %v5658_v52  ;;  %1568 = vst [vmem:[#allocation4 + $0xc4] sm:$0xf] %v1552_v62  ;;  %v6832_v57 = vld [vmem:[#allocation4 + $0x54] sm:$0xf]  ;;  %v1553_v41 = vpack.c.bf16 %v1313_v34, %v1313_v34  ;;  %v6838_v27 = vld [vmem:[#allocation4 + $0x80] sm:$0xf0]  ;;  %v1139_v33 = vmul.f32 %v7236_v37, %v9501_v48 }
 0x227   :  { %2950 = vmatmul.bf16.vlgmr.msrb.gmra.mxu3 %v5653_v4  ;;  %1663 = vst [vmem:[#allocation4 + $0xa8] sm:$0xf] %v1647_v5  ;;  %v5686_v63 = vld [vmem:[#allocation4 + $0x74] sm:$0xf0]  ;;  %v7234_v4 = vld [vmem:[%s11413_s0 + $0x2a8] sm:$0x1]  ;;  %v1554_v3 = vpack.c.bf16 %v1314_v39, %v1314_v39  ;;  %v1170_v5 = vadd.f32 %v1138_v40, %v9507_v17 }
 0x228   :  { %v1581_v30 = vld [vmem:[#allocation2 + $0x261] sm:$0xff]  ;;  %1664 = vst [vmem:[#allocation4 + $0xcc] sm:$0xf] %v1648_v28  ;;  %v5689_v59 = vor.u32 %v6832_v57, %v5686_v63  ;;  %v1136_v26 = vmul.f32 %v7234_v4, %v9501_v48  ;;  %v960_v52 = vmax.f32 %v928_v10, 0.0  ;;  %v1171_v28 = vadd.f32 %v1139_v33, %v9507_v17  ;;  %v7240_v34 = vld [vmem:[%s11413_s0 + $0x2d8] sm:$0x1] }
 0x229   :  { %3048 = vmatmul.bf16.vlgmr.msrb.gmra.mxu1 %v5661_v23  ;;  %v1582_v54 = vld [vmem:[#allocation2 + $0x271] sm:$0xff]  ;;  %v1597_v19 = vpack.c.bf16 %v1581_v30, %v1581_v30  ;;  %1228 = vst [vmem:[#allocation2 + $0x288] sm:$0x1] %v1196_v0  ;;  %v5701_v23 = vor.u32 %v6838_v27, %v5700_v38  ;;  %v10101_v8 = vpop.f32.mrf.mxu0  ;;  %v1316_v35 = vmax.f32 %v1300_v29, 0.0  ;;  %v7241_v10 = vld [vmem:[%s11413_s0 + $0x2e8] sm:$0x1] }
 0x22a   :  { %v1598_v14 = vpack.c.bf16 %v1582_v54, %v1582_v54  ;;  %v1487_v47 = vld [vmem:[#allocation2 + $0x280] sm:$0xff]  ;;  %1230 = vst [vmem:[#allocation2 + $0x298] sm:$0x1] %v1198_v49  ;;  %v1168_v1 = vadd.f32 %v1136_v26, %v9507_v17  ;;  %v1203_v15 = vmax.f32 %v1171_v28, 0.0  ;;  %v1142_v38 = vmul.f32 %v7241_v10, %v9501_v48 }
 0x22b   :  { %1613 = vst [vmem:[#allocation4 + $0x5c] sm:$0xf] %v1597_v19  ;;  %v1488_v11 = vld [vmem:[#allocation2 + $0x290] sm:$0xff]  ;;  %v1503_v53 = vpack.c.bf16 %v1487_v47, %v1487_v47  ;;  %v1299_v19 = vadd.f32 %v1283_v9, %v9507_v17  ;;  %v1202_v47 = vmax.f32 %v1170_v5, 0.0  ;;  %v1556_v60 = vpack.c.bf16 %v1316_v35, %v1316_v35  ;;  %v7243_v40 = vld [vmem:[%s11413_s0 + $0x300] sm:$0xff] }
 0x22c   :  { %1614 = vst [vmem:[#allocation4 + $0x80] sm:$0xf] %v1598_v14  ;;  %v1504_v13 = vpack.c.bf16 %v1488_v11, %v1488_v11  ;;  %v5728_v36 = vld [vmem:[#allocation4 + $0xa0] sm:$0xf]  ;;  %v1200_v54 = vmax.f32 %v1168_v1, 0.0  ;;  %v1145_v27 = vmul.f32 %v7243_v40, %v9501_v48 }
 0x22d   :  { %1519 = vst [vmem:[#allocation4 + $0x9c] sm:$0xf] %v1503_v53  ;;  %v6846_v61 = vld [vmem:[#allocation4 + $0xc0] sm:$0xf0]  ;;  %v1205_v53 = vmax.f32 %v1173_v22, 0.0  ;;  %v1315_v0 = vmax.f32 %v1299_v19, 0.0  ;;  %v1301_v19 = vadd.f32 %v1285_v46, %v9507_v17 }
 0x22e   :  { %1520 = vst [vmem:[#allocation4 + $0xc0] sm:$0xf] %v1504_v13  ;;  %v5729_v49 = vor.u32 %v6846_v61, %v5728_v36  ;;  %v6962_v13 = vld [vmem:[%s11416_s3 + $0x220] sm:$0xff]  ;;  %v5736_v4 = vld [vmem:[#allocation4 + $0xa8] sm:$0xf] }
 0x22f   :  { %3097 = vmatmul.bf16.vlgmr.msrb.gmra.mxu2 %v5665_v44  ;;  %1231 = vst [vmem:[#allocation2 + $0x2a0] sm:$0xfe] %v1199_v51  ;;  %v6954_v44 = vld [vmem:[%s11416_s3 + $0x1e0] sm:$0xff]  ;;  %v1555_v51 = vpack.c.bf16 %v1315_v0, %v1315_v0  ;;  %v6847_v26 = vld [vmem:[#allocation4 + $0xc8] sm:$0xf0]  ;;  %3190 = vmatpush.bf16.msra.mxu0 %v6962_v13  ;;  %v1317_v0 = vmax.f32 %v1301_v19, 0.0 }
 0x230   :  { %1233 = vst [vmem:[#allocation2 + $0x2b0] sm:$0xfe] %v1201_v18  ;;  %v1583_v62 = vld [vmem:[#allocation2 + $0x281] sm:$0xff]  ;;  %3141 = vmatpush.bf16.msra.mxu3 %v6954_v44  ;;  %v1140_v18 = vmul.f32 %v7240_v34, %v9501_v48  ;;  %v5737_v32 = vor.u32 %v6847_v26, %v5736_v4  ;;  %v7248_v26 = vld [vmem:[%s11413_s0 + $0x310] sm:$0xff] }
 0x231   :  { %1569 = vst [vmem:[#allocation4 + $0xe8] sm:$0xf] %v1553_v41  ;;  %v1584_v16 = vld [vmem:[#allocation2 + $0x291] sm:$0xff]  ;;  %v1599_v6 = vpack.c.bf16 %v1583_v62, %v1583_v62  ;;  %v10122_v37 = vpop.f32.mrf.mxu0  ;;  %v1557_v34 = vpack.c.bf16 %v1317_v0, %v1317_v0 }
 0x232   :  { %v6833_v45 = vld [vmem:[#allocation4 + $0x5c] sm:$0xf]  ;;  %1570 = vst [vmem:[#allocation4 + $0x10c] sm:$0xf] %v1554_v3  ;;  %v1600_v2 = vpack.c.bf16 %v1584_v16, %v1584_v16  ;;  %v1635_v3 = vld [vmem:[#allocation2 + $0xa0] sm:$0xff]  ;;  %v1175_v16 = vadd.f32 %v1143_v56, %v9507_v17 }
 0x233   :  { %v5694_v43 = vld [vmem:[#allocation4 + $0x7c] sm:$0xf0]  ;;  %993 = vst [vmem:[#allocation2 + $0x80] sm:$0xfe] %v960_v52  ;;  %v1651_v52 = vpack.c.bf16 %v1635_v3, %v1635_v3 }
 0x234   :  { %v5697_v50 = vor.u32 %v6833_v45, %v5694_v43  ;;  %1665 = vst [vmem:[#allocation4 + $0xf0] sm:$0xf] %v1649_v55  ;;  %v6841_v58 = vld [vmem:[#allocation4 + $0x9c] sm:$0xf]  ;;  %v1172_v55 = vadd.f32 %v1140_v18, %v9507_v17  ;;  %3142 = vmatpush.bf16.msra.mxu3 %v6953_v42  ;;  %v7247_v18 = vld [vmem:[%s11413_s0 + $0x308] sm:$0x1] }
 0x235   :  { %3004 = vmatmul.bf16.gmra.mxu0 %v5693_v7  ;;  %1615 = vst [vmem:[#allocation4 + $0xa4] sm:$0xf] %v1599_v6  ;;  %v5722_v11 = vld [vmem:[#allocation4 + $0xbc] sm:$0xf0]  ;;  %v1177_v6 = vadd.f32 %v1145_v27, %v9507_v17 }
 0x236   :  { %v1489_v31 = vld [vmem:[#allocation2 + $0x2a0] sm:$0xff]  ;;  %1616 = vst [vmem:[#allocation4 + $0xc8] sm:$0xf] %v1600_v2  ;;  %v5725_v57 = vor.u32 %v6841_v58, %v5722_v11  ;;  %v1204_v36 = vmax.f32 %v1172_v55, 0.0  ;;  %v7246_v58 = vld [vmem:[%s11413_s0 + $0x2f8] sm:$0x1] }
 0x237   :  { %2955 = vmatmul.bf16.gmra.mxu3 %v5689_v59  ;;  %v1490_v30 = vld [vmem:[#allocation2 + $0x2b0] sm:$0xff]  ;;  %v1505_v21 = vpack.c.bf16 %v1489_v31, %v1489_v31  ;;  %1232 = vst [vmem:[#allocation2 + $0x2a8] sm:$0x1] %v1200_v54  ;;  %v7245_v2 = vld [vmem:[%s11413_s0 + $0x420] sm:$0xff] }
 0x238   :  { %v1506_v14 = vpack.c.bf16 %v1490_v30, %v1490_v30  ;;  %1234 = vst [vmem:[#allocation2 + $0x2b8] sm:$0x1] %v1202_v47  ;;  %v1286_v31 = vmul.f32 %v7245_v2, %v9501_v48  ;;  %v1207_v47 = vmax.f32 %v1175_v16, 0.0  ;;  %v7249_v3 = vld [vmem:[%s11413_s0 + $0x320] sm:$0xff]  ;;  %v1638_v55 = vld [vmem:[#allocation2 + $0xd0] sm:$0xff] }
 0x239   :  { %3053 = vmatmul.bf16.gmra.mxu1 %v5697_v50  ;;  %1521 = vst [vmem:[#allocation4 + $0xe4] sm:$0xf] %v1505_v21  ;;  %v1636_v50 = vld [vmem:[#allocation2 + $0xb0] sm:$0xff]  ;;  %v5764_v21 = vld [vmem:[#allocation4 + $0xe8] sm:$0xf]  ;;  %v1149_v20 = vmul.f32 %v7249_v3, %v9501_v48  ;;  %v1654_v25 = vpack.c.bf16 %v1638_v55, %v1638_v55 }
 0x23a   :  { %1522 = vst [vmem:[#allocation4 + $0x108] sm:$0xf] %v1506_v14  ;;  %v1634_v12 = vld [vmem:[#allocation2 + $0x80] sm:$0xff]  ;;  %v1652_v9 = vpack.c.bf16 %v1636_v50, %v1636_v50  ;;  %v1302_v29 = vadd.f32 %v1286_v31, %v9507_v17  ;;  %v6855_v14 = vld [vmem:[#allocation4 + $0x108] sm:$0xf0] }
 0x23b   :  { %v1650_v63 = vpack.c.bf16 %v1634_v12, %v1634_v12  ;;  %1235 = vst [vmem:[#allocation2 + $0x2d0] sm:$0xfe] %v1203_v15  ;;  %v1144_v15 = vmul.f32 %v7246_v58, %v9501_v48  ;;  %v5772_v40 = vld [vmem:[#allocation4 + $0xf0] sm:$0xf]  ;;  %v1181_v16 = vadd.f32 %v1149_v20, %v9507_v17 }
 0x23c   :  { %v6842_v7 = vld [vmem:[#allocation4 + $0xa4] sm:$0xf]  ;;  %1237 = vst [vmem:[#allocation2 + $0x2e0] sm:$0xfe] %v1205_v53  ;;  %v1209_v53 = vmax.f32 %v1177_v6, 0.0 }
 0x23d   :  { %v5730_v59 = vld [vmem:[#allocation4 + $0xc4] sm:$0xf0]  ;;  %1666 = vst [vmem:[#allocation4 + $0x114] sm:$0xf] %v1650_v63  ;;  %v5765_v63 = vor.u32 %v6855_v14, %v5764_v21  ;;  %v7250_v21 = vld [vmem:[%s11413_s0 + $0x430] sm:$0xff] }
 0x23e   :  { %v5733_v45 = vor.u32 %v6842_v7, %v5730_v59  ;;  %v1585_v33 = vld [vmem:[#allocation2 + $0x2a1] sm:$0xff]  ;;  %1571 = vst [vmem:[#allocation4 + $0x130] sm:$0xf] %v1555_v51 }
 0x23f   :  { %3102 = vmatmul.bf16.gmra.mxu2 %v5701_v23  ;;  %v1586_v24 = vld [vmem:[#allocation2 + $0x2b1] sm:$0xff]  ;;  %v1601_v1 = vpack.c.bf16 %v1585_v33, %v1585_v33  ;;  %1572 = vst [vmem:[#allocation4 + $0x154] sm:$0xf] %v1556_v60  ;;  %v1174_v23 = vadd.f32 %v1142_v38, %v9507_v17 }
 0x240   :  { %v1602_v62 = vpack.c.bf16 %v1586_v24, %v1586_v24  ;;  %1667 = vst [vmem:[#allocation4 + $0x138] sm:$0xf] %v1651_v52  ;;  %v6850_v35 = vld [vmem:[#allocation4 + $0xe4] sm:$0xf]  ;;  %v6961_v38 = vld [vmem:[%s11416_s3 + $0x218] sm:$0xff] }
 0x241   :  { %1617 = vst [vmem:[#allocation4 + $0xec] sm:$0xf] %v1601_v1  ;;  %v1206_v54 = vmax.f32 %v1174_v23, 0.0  ;;  %v5758_v12 = vld [vmem:[#allocation4 + $0x104] sm:$0xf0]  ;;  %3191 = vmatpush.bf16.msra.mxu0 %v6961_v38 }
 0x242   :  { %v1491_v5 = vld [vmem:[#allocation2 + $0x2d0] sm:$0xff]  ;;  %1618 = vst [vmem:[#allocation4 + $0x110] sm:$0xf] %v1602_v62  ;;  %v5761_v60 = vor.u32 %v6850_v35, %v5758_v12 }
 0x243   :  { %v1492_v44 = vld [vmem:[#allocation2 + $0x2e0] sm:$0xff]  ;;  %v1507_v28 = vpack.c.bf16 %v1491_v5, %v1491_v5  ;;  %1668 = vst [vmem:[#allocation4 + $0x15c] sm:$0xf] %v1652_v9 }
 0x244   :  { %v1508_v22 = vpack.c.bf16 %v1492_v44, %v1492_v44  ;;  %1236 = vst [vmem:[#allocation2 + $0x2d8] sm:$0x1] %v1204_v36  ;;  %v6856_v33 = vld [vmem:[#allocation4 + $0x110] sm:$0xf0] }
 0x245   :  { %3009 = vmatmul.bf16.gmra.mxu0 %v5729_v49  ;;  %v2814_v39 = vpop.f32.mrf.mxu3  ;;  %1523 = vst [vmem:[#allocation4 + $0x12c] sm:$0xf] %v1507_v28  ;;  %v1318_v49 = vmax.f32 %v1302_v29, 0.0  ;;  %v5773_v28 = vor.u32 %v6856_v33, %v5772_v40  ;;  %v7251_v29 = vld [vmem:[%s11413_s0 + $0x440] sm:$0xff]  ;;  %v5800_v14 = vld [vmem:[#allocation4 + $0x130] sm:$0xf] }
 0x246   :  { %v2863_v41 = vpop.f32.mrf.mxu1  ;;  %1524 = vst [vmem:[#allocation4 + $0x150] sm:$0xf] %v1508_v22  ;;  %v6864_v12 = vld [vmem:[#allocation4 + $0x150] sm:$0xf0] }
 0x247   :  { %2960 = vmatmul.bf16.gmra.mxu3 %v5725_v57  ;;  %v2864_v43 = vadd.f32 %v2863_v41, %v2814_v39  ;;  %v1176_v57 = vadd.f32 %v1144_v15, %v9507_v17  ;;  %1238 = vst [vmem:[#allocation2 + $0x2e8] sm:$0x1] %v1206_v54  ;;  %v1146_v39 = vmul.f32 %v7247_v18, %v9501_v48  ;;  %v7252_v15 = vld [vmem:[%s11413_s0 + $0x318] sm:$0x1]  ;;  %v7254_v33 = vld [vmem:[%s11413_s0 + $0x330] sm:$0xff] }
 0x248   :  { %v6851_v51 = vld [vmem:[#allocation4 + $0xec] sm:$0xf]  ;;  %1239 = vst [vmem:[#allocation2 + $0x2f0] sm:$0xfe] %v1207_v47  ;;  %v1558_v41 = vpack.c.bf16 %v1318_v49, %v1318_v49  ;;  %v1287_v54 = vmul.f32 %v7250_v21, %v9501_v48  ;;  %v1213_v47 = vmax.f32 %v1181_v16, 0.0 }
 0x249   :  { %3058 = vmatmul.bf16.gmra.mxu1 %v5733_v45  ;;  %v5766_v10 = vld [vmem:[#allocation4 + $0x10c] sm:$0xf0]  ;;  %1241 = vst [vmem:[#allocation2 + $0x300] sm:$0xfe] %v1209_v53  ;;  %v1208_v4 = vmax.f32 %v1176_v57, 0.0  ;;  %v1147_v45 = vmul.f32 %v7248_v26, %v9501_v48  ;;  %v1178_v52 = vadd.f32 %v1146_v39, %v9507_v17 }
 0x24a   :  { %v5769_v27 = vor.u32 %v6851_v51, %v5766_v10  ;;  %1573 = vst [vmem:[#allocation4 + $0x178] sm:$0xf] %v1557_v34  ;;  %v1303_v58 = vadd.f32 %v1287_v54, %v9507_v17  ;;  %v7253_v53 = vld [vmem:[%s11413_s0 + $0x328] sm:$0x1]  ;;  %v5801_v10 = vor.u32 %v6864_v12, %v5800_v14  ;;  %v7256_v54 = vld [vmem:[%s11413_s0 + $0x110] sm:$0xff]  ;;  %v7258_v12 = vld [vmem:[%s11413_s0 + $0x460] sm:$0xff] }
 0x24b   :  { %v1587_v50 = vld [vmem:[#allocation2 + $0x2d1] sm:$0xff]  ;;  %1574 = vst [vmem:[#allocation4 + $0x19c] sm:$0xf] %v1558_v41  ;;  %v1179_v23 = vadd.f32 %v1147_v45, %v9507_v17  ;;  %v1210_v46 = vmax.f32 %v1178_v52, 0.0  ;;  %v1150_v0 = vmul.f32 %v7253_v53, %v9501_v48 }
 0x24c   :  { %v1603_v1 = vpack.c.bf16 %v1587_v50, %v1587_v50  ;;  %1240 = vst [vmem:[#allocation2 + $0x2f8] sm:$0x1] %v1208_v4  ;;  %v6859_v35 = vld [vmem:[#allocation4 + $0x12c] sm:$0xf]  ;;  %v1319_v51 = vmax.f32 %v1303_v58, 0.0  ;;  %v1151_v50 = vmul.f32 %v7254_v33, %v9501_v48 }
 0x24d   :  { %v2816_v30 = vpop.f32.mrf.mxu3  ;;  %v1211_v19 = vmax.f32 %v1179_v23, 0.0  ;;  %1670 = vst [vmem:[#allocation4 + $0x1a4] sm:$0xf] %v1654_v25  ;;  %v5808_v23 = vld [vmem:[#allocation4 + $0x138] sm:$0xf] }
 0x24e   :  { %v2865_v61 = vpop.f32.mrf.mxu1  ;;  %v1588_v24 = vld [vmem:[#allocation2 + $0x2e1] sm:$0xff]  ;;  %1619 = vst [vmem:[#allocation4 + $0x134] sm:$0xf] %v1603_v1  ;;  %v1559_v38 = vpack.c.bf16 %v1319_v51, %v1319_v51 }
 0x24f   :  { %3107 = vmatmul.bf16.gmra.mxu2 %v5737_v32  ;;  %v2866_v11 = vadd.f32 %v2865_v61, %v2816_v30  ;;  %v1604_v62 = vpack.c.bf16 %v1588_v24, %v1588_v24  ;;  %v1493_v5 = vld [vmem:[#allocation2 + $0x2f0] sm:$0xff]  ;;  %v1288_v61 = vmul.f32 %v7251_v29, %v9501_v48  ;;  %1242 = vst [vmem:[#allocation2 + $0x308] sm:$0x1] %v1210_v46  ;;  %v7255_v24 = vld [vmem:[%s11413_s0 + $0x340] sm:$0xff] }
 0x250   :  { %v1494_v42 = vld [vmem:[#allocation2 + $0x300] sm:$0xff]  ;;  %v1509_v9 = vpack.c.bf16 %v1493_v5, %v1493_v5  ;;  %v6952_v30 = vld [vmem:[%s11416_s3 + $0x1d0] sm:$0xff]  ;;  %1243 = vst [vmem:[#allocation2 + $0x310] sm:$0xfe] %v1211_v19  ;;  %v1153_v1 = vmul.f32 %v7255_v24, %v9501_v48  ;;  %v909_v19 = vmul.f32 %v7256_v54, %v9501_v48 }
 0x251   :  { %1620 = vst [vmem:[#allocation4 + $0x158] sm:$0xf] %v1604_v62  ;;  %v1510_v36 = vpack.c.bf16 %v1494_v42, %v1494_v42  ;;  %3143 = vmatpush.bf16.msra.mxu3 %v6952_v30  ;;  %v1304_v57 = vadd.f32 %v1288_v61, %v9507_v17  ;;  %v6865_v42 = vld [vmem:[#allocation4 + $0x158] sm:$0xf0]  ;;  %v5836_v51 = vld [vmem:[#allocation4 + $0x178] sm:$0xf] }
 0x252   :  { %v2912_v13 = vpop.f32.mrf.mxu2  ;;  %v10146_v7 = vpop.f32.mrf.mxu0  ;;  %1525 = vst [vmem:[#allocation4 + $0x174] sm:$0xf] %v1509_v9  ;;  %v5809_v14 = vor.u32 %v6865_v42, %v5808_v23 }
 0x253   :  { %v10152_v59 = vadd.f32 %v2912_v13, %v2864_v43  ;;  %v1637_v43 = vld [vmem:[#allocation2 + $0xc0] sm:$0xff]  ;;  %1526 = vst [vmem:[#allocation4 + $0x198] sm:$0xf] %v1510_v36  ;;  %v1589_v13 = vld [vmem:[#allocation2 + $0x2f1] sm:$0xff]  ;;  %v1320_v39 = vmax.f32 %v1304_v57, 0.0  ;;  %v1290_v57 = vmul.f32 %v7258_v12, %v9501_v48 }
 0x254   :  { %v1653_v32 = vpack.c.bf16 %v1637_v43, %v1637_v43  ;;  %v1605_v18 = vpack.c.bf16 %v1589_v13, %v1589_v13  ;;  %1245 = vst [vmem:[#allocation2 + $0x320] sm:$0xfe] %v1213_v47  ;;  %v6960_v43 = vld [vmem:[%s11416_s3 + $0x210] sm:$0xff]  ;;  %v944_v13 = vadd.f32 %v9507_v17, %v909_v19 }
 0x255   :  { %3014 = vmatmul.bf16.gmra.mxu0 %v5765_v63  ;;  %v5794_v63 = vld [vmem:[#allocation4 + $0x14c] sm:$0xf0]  ;;  %v6860_v45 = vld [vmem:[#allocation4 + $0x134] sm:$0xf]  ;;  %v1560_v3 = vpack.c.bf16 %v1320_v39, %v1320_v39  ;;  %1575 = vst [vmem:[#allocation4 + $0x1c0] sm:$0xf] %v1559_v38 }
 0x256   :  { %v2868_v56 = vpop.f32.mrf.mxu1  ;;  %1669 = vst [vmem:[#allocation4 + $0x180] sm:$0xf] %v1653_v32  ;;  %v5797_v26 = vor.u32 %v6859_v35, %v5794_v63  ;;  %3192 = vmatpush.bf16.msra.mxu0 %v6960_v43  ;;  %v1590_v16 = vld [vmem:[#allocation2 + $0x301] sm:$0xff]  ;;  %v7259_v39 = vld [vmem:[%s11413_s0 + $0x338] sm:$0x1] }
 0x257   :  { %2965 = vmatmul.bf16.gmra.mxu3 %v5761_v60  ;;  %v1182_v60 = vadd.f32 %v1150_v0, %v9507_v17  ;;  %1621 = vst [vmem:[#allocation4 + $0x17c] sm:$0xf] %v1605_v18  ;;  %v1606_v9 = vpack.c.bf16 %v1590_v16, %v1590_v16  ;;  %v1495_v25 = vld [vmem:[#allocation2 + $0x310] sm:$0xff]  ;;  %v6951_v0 = vld [vmem:[%s11416_s3 + $0x1c8] sm:$0xff]  ;;  %v1306_v18 = vadd.f32 %v1290_v57, %v9507_v17 }
 0x258   :  { %1576 = vst [vmem:[#allocation4 + $0x1e4] sm:$0xf] %v1560_v3  ;;  %3144 = vmatpush.bf16.msra.mxu3 %v6951_v0 }
 0x259   :  { %3063 = vmatmul.bf16.gmra.mxu1 %v5769_v27  ;;  %v5802_v27 = vld [vmem:[#allocation4 + $0x154] sm:$0xf0]  ;;  %v1214_v32 = vmax.f32 %v1182_v60, 0.0  ;;  %1622 = vst [vmem:[#allocation4 + $0x1a0] sm:$0xf] %v1606_v9  ;;  %v1152_v60 = vmul.f32 %v7259_v39, %v9501_v48  ;;  %v1322_v3 = vmax.f32 %v1306_v18, 0.0 }
 0x25a   :  { %v2914_v6 = vpop.f32.mrf.mxu2  ;;  %v2819_v44 = vpop.f32.mrf.mxu3  ;;  %v5805_v5 = vor.u32 %v6860_v45, %v5802_v27  ;;  %v5830_v27 = vld [vmem:[#allocation4 + $0x194] sm:$0xf0] }
 0x25b   :  { %v10168_v2 = vadd.f32 %v2914_v6, %v2866_v11  ;;  %v2869_v31 = vadd.f32 %v2868_v56, %v2819_v44  ;;  %v10170_v22 = vpop.f32.mrf.mxu0  ;;  %v1148_v11 = vmul.f32 %v7252_v15, %v9501_v48  ;;  %v1639_v6 = vld [vmem:[#allocation2 + $0xe0] sm:$0xff]  ;;  %v1640_v44 = vld [vmem:[#allocation2 + $0xf0] sm:$0xff]  ;;  %1246 = vst [vmem:[#allocation2 + $0x328] sm:$0x1] %v1214_v32 }
 0x25c   :  { %v1496_v46 = vld [vmem:[#allocation2 + $0x320] sm:$0xff]  ;;  %v1655_v36 = vpack.c.bf16 %v1639_v6, %v1639_v6  ;;  %v1656_v21 = vpack.c.bf16 %v1640_v44, %v1640_v44 }
 0x25d   :  { %v1180_v34 = vadd.f32 %v1148_v11, %v9507_v17  ;;  %v1512_v30 = vpack.c.bf16 %v1496_v46, %v1496_v46  ;;  %v5844_v54 = vld [vmem:[#allocation4 + $0x180] sm:$0xf] }
 0x25e   :  { %v2870_v49 = vpop.f32.mrf.mxu1  ;;  %1671 = vst [vmem:[#allocation4 + $0x1c8] sm:$0xf] %v1655_v36  ;;  %v6869_v23 = vld [vmem:[#allocation4 + $0x17c] sm:$0xf] }
 0x25f   :  { %3112 = vmatmul.bf16.gmra.mxu2 %v5773_v28  ;;  %v1212_v52 = vmax.f32 %v1180_v34, 0.0  ;;  %v1185_v28 = vadd.f32 %v1153_v1, %v9507_v17  ;;  %1528 = vst [vmem:[#allocation4 + $0x1e0] sm:$0xf] %v1512_v30 }
 0x260   :  { %1672 = vst [vmem:[#allocation4 + $0x1ec] sm:$0xf] %v1656_v21  ;;  %v5838_v44 = vld [vmem:[#allocation4 + $0x19c] sm:$0xf0] }
 0x261   :  { %1244 = vst [vmem:[#allocation2 + $0x318] sm:$0x1] %v1212_v52  ;;  %v1217_v58 = vmax.f32 %v1185_v28, 0.0  ;;  %v7260_v52 = vld [vmem:[%s11413_s0 + $0x348] sm:$0x1]  ;;  %v1641_v21 = vld [vmem:[#allocation2 + $0x100] sm:$0xff] }
 0x262   :  { %v2917_v41 = vpop.f32.mrf.mxu2  ;;  %v2821_v4 = vpop.f32.mrf.mxu3  ;;  %v1154_v33 = vmul.f32 %v7260_v52, %v9501_v48 }
 0x263   :  { %v10195_v20 = vadd.f32 %v2917_v41, %v2869_v31  ;;  %v2871_v56 = vadd.f32 %v2870_v49, %v2821_v4  ;;  %v2853_v40 = vpop.f32.mrf.mxu0  ;;  %v1511_v31 = vpack.c.bf16 %v1495_v25, %v1495_v25  ;;  %v7257_v49 = vld [vmem:[%s11413_s0 + $0x450] sm:$0xff]  ;;  %v976_v41 = vmax.f32 %v944_v13, 0.0  ;;  %v1592_v4 = vld [vmem:[#allocation2 + $0x321] sm:$0xff]  ;;  %1249 = vst [vmem:[#allocation2 + $0x340] sm:$0xfe] %v1217_v58 }
 0x264   :  { %v10205_v55 = vadd.f32 %v2853_v40, %v10101_v8  ;;  %v1183_v8 = vadd.f32 %v1151_v50, %v9507_v17  ;;  %v1289_v35 = vmul.f32 %v7257_v49, %v9501_v48  ;;  %v6868_v40 = vld [vmem:[#allocation4 + $0x174] sm:$0xf]  ;;  %v1608_v43 = vpack.c.bf16 %v1592_v4, %v1592_v4  ;;  %v5872_v13 = vld [vmem:[#allocation4 + $0x1c0] sm:$0xf] }
 0x265   :  { %3019 = vmatmul.bf16.gmra.mxu0 %v5801_v10  ;;  %1527 = vst [vmem:[#allocation4 + $0x1bc] sm:$0xf] %v1511_v31  ;;  %v5833_v6 = vor.u32 %v6868_v40, %v5830_v27  ;;  %v1186_v9 = vadd.f32 %v1154_v33, %v9507_v17  ;;  %v5841_v31 = vor.u32 %v6869_v23, %v5838_v44 }
 0x266   :  { %v2873_v62 = vpop.f32.mrf.mxu1  ;;  %v1215_v47 = vmax.f32 %v1183_v8, 0.0  ;;  %v1305_v34 = vadd.f32 %v1289_v35, %v9507_v17  ;;  %1009 = vst [vmem:[#allocation2 + $0x110] sm:$0xfe] %v976_v41  ;;  %v6959_v8 = vld [vmem:[%s11416_s3 + $0x208] sm:$0xff]  ;;  %v6950_v35 = vld [vmem:[%s11416_s3 + $0x1c0] sm:$0xff] }
 0x267   :  { %2970 = vmatmul.bf16.gmra.mxu3 %v5797_v26  ;;  %1624 = vst [vmem:[#allocation4 + $0x1e8] sm:$0xf] %v1608_v43  ;;  %3193 = vmatpush.bf16.msra.mxu0 %v6959_v8  ;;  %v5880_v8 = vld [vmem:[#allocation4 + $0x1c8] sm:$0xf] }
 0x268   :  { %v1591_v38 = vld [vmem:[#allocation2 + $0x311] sm:$0xff]  ;;  %1247 = vst [vmem:[#allocation2 + $0x330] sm:$0xfe] %v1215_v47  ;;  %v1321_v45 = vmax.f32 %v1305_v34, 0.0  ;;  %v1218_v47 = vmax.f32 %v1186_v9, 0.0  ;;  %3145 = vmatpush.bf16.msra.mxu3 %v6950_v35 }
 0x269   :  { %3068 = vmatmul.bf16.gmra.mxu1 %v5805_v5  ;;  %v1607_v26 = vpack.c.bf16 %v1591_v38, %v1591_v38  ;;  %v1676_v38 = vld [vmem:[#allocation2 + $0x140] sm:$0xff] }
 0x26a   :  { %v2919_v29 = vpop.f32.mrf.mxu2  ;;  %v2824_v61 = vpop.f32.mrf.mxu3  ;;  %v1561_v32 = vpack.c.bf16 %v1321_v45, %v1321_v45  ;;  %v1498_v36 = vld [vmem:[#allocation2 + $0x340] sm:$0xff]  ;;  %1250 = vst [vmem:[#allocation2 + $0x348] sm:$0x1] %v1218_v47  ;;  %v1723_v45 = vld [vmem:[#allocation2 + $0x11] sm:$0xff] }
 0x26b   :  { %v10217_v15 = vadd.f32 %v2919_v29, %v2871_v56  ;;  %v2874_v11 = vadd.f32 %v2873_v62, %v2824_v61  ;;  %v2855_v53 = vpop.f32.mrf.mxu0  ;;  %v1184_v56 = vadd.f32 %v1152_v60, %v9507_v17  ;;  %1623 = vst [vmem:[#allocation4 + $0x1c4] sm:$0xf] %v1607_v26  ;;  %v1562_v62 = vpack.c.bf16 %v1322_v3, %v1322_v3  ;;  %v5866_v60 = vld [vmem:[#allocation4 + $0x1dc] sm:$0xf0] }
 0x26c   :  { %v10231_v63 = vadd.f32 %v2855_v53, %v10122_v37  ;;  %v6873_v37 = vld [vmem:[#allocation4 + $0x198] sm:$0xf0]  ;;  %1577 = vst [vmem:[#allocation4 + $0x208] sm:$0xf] %v1561_v32  ;;  %v1514_v19 = vpack.c.bf16 %v1498_v36, %v1498_v36  ;;  %v1657_v61 = vpack.c.bf16 %v1641_v21, %v1641_v21  ;;  %v1692_v26 = vpack.c.bf16 %v1676_v38, %v1676_v38  ;;  %v6958_v32 = vld [vmem:[%s11416_s3 + $0x200] sm:$0xff] }
 0x26d   :  { %v5837_v50 = vor.u32 %v6873_v37, %v5836_v51  ;;  %v1216_v28 = vmax.f32 %v1184_v56, 0.0  ;;  %1578 = vst [vmem:[#allocation4 + $0x22c] sm:$0xf] %v1562_v62  ;;  %v1642_v29 = vld [vmem:[#allocation2 + $0x110] sm:$0xff]  ;;  %v6882_v51 = vld [vmem:[#allocation4 + $0x1e0] sm:$0xf0]  ;;  %v1739_v27 = vpack.c.bf16 %v1723_v45, %v1723_v45  ;;  %3194 = vmatpush.bf16.msra.mxu0 %v6958_v32 }
 0x26e   :  { %v10240_v10 = vpop.f32.mrf.mxu1  ;;  %1530 = vst [vmem:[#allocation4 + $0x228] sm:$0xf] %v1514_v19  ;;  %v6877_v18 = vld [vmem:[#allocation4 + $0x1bc] sm:$0xf]  ;;  %v1675_v37 = vld [vmem:[#allocation2 + $0x130] sm:$0xff]  ;;  %v5873_v41 = vor.u32 %v6882_v51, %v5872_v13 }
 0x26f   :  { %3117 = vmatmul.bf16.gmra.mxu2 %v5809_v14  ;;  %v1497_v25 = vld [vmem:[#allocation2 + $0x330] sm:$0xff]  ;;  %1248 = vst [vmem:[#allocation2 + $0x338] sm:$0x1] %v1216_v28  ;;  %v1658_v14 = vpack.c.bf16 %v1642_v29, %v1642_v29  ;;  %v1691_v4 = vpack.c.bf16 %v1675_v37, %v1675_v37  ;;  %v5869_v33 = vor.u32 %v6877_v18, %v5866_v60  ;;  %v6883_v28 = vld [vmem:[#allocation4 + $0x1e8] sm:$0xf0] }
 0x270   :  { %v1513_v30 = vpack.c.bf16 %v1497_v25, %v1497_v25  ;;  %1673 = vst [vmem:[#allocation4 + $0x210] sm:$0xf] %v1657_v61  ;;  %v1677_v61 = vld [vmem:[#allocation2 + $0x150] sm:$0xff] }
 0x271   :  { %1674 = vst [vmem:[#allocation4 + $0x234] sm:$0xf] %v1658_v14  ;;  %v1725_v14 = vld [vmem:[#allocation2 + $0x31] sm:$0xff] }
 0x272   :  { %v2922_v24 = vpop.f32.mrf.mxu2  ;;  %v10247_v1 = vpop.f32.mrf.mxu3  ;;  %1529 = vst [vmem:[#allocation4 + $0x204] sm:$0xf] %v1513_v30  ;;  %v6878_v40 = vld [vmem:[#allocation4 + $0x1c4] sm:$0xf] }
 0x273   :  { %v10249_v5 = vadd.f32 %v2922_v24, %v2874_v11  ;;  %v2858_v16 = vpop.f32.mrf.mxu0  ;;  %v1594_v24 = vld [vmem:[#allocation2 + $0x341] sm:$0xff]  ;;  %1707 = vst [vmem:[#allocation4 + $0x1c] sm:$0xf] %v1691_v4 }
 0x274   :  { %v10255_v42 = vadd.f32 %v2858_v16, %v10146_v7  ;;  %v6874_v7 = vld [vmem:[#allocation4 + $0x1a0] sm:$0xf0]  ;;  %v1610_v16 = vpack.c.bf16 %v1594_v24, %v1594_v24  ;;  %1708 = vst [vmem:[#allocation4 + $0x40] sm:$0xf] %v1692_v26  ;;  %v5908_v21 = vld [vmem:[#allocation4 + $0x208] sm:$0xf] }
 0x275   :  { %3024 = vmatmul.bf16.gmra.mxu0 %v5837_v50  ;;  %v5845_v49 = vor.u32 %v6874_v7, %v5844_v54  ;;  %v5874_v50 = vld [vmem:[#allocation4 + $0x1e4] sm:$0xf0]  ;;  %1755 = vst [vmem:[#allocation4 + $0x20] sm:$0xf] %v1739_v27  ;;  %v6891_v54 = vld [vmem:[#allocation4 + $0x228] sm:$0xf0] }
 0x276   :  { %v2878_v46 = vpop.f32.mrf.mxu1  ;;  %v1593_v34 = vld [vmem:[#allocation2 + $0x331] sm:$0xff]  ;;  %v5877_v44 = vor.u32 %v6878_v40, %v5874_v50  ;;  %1626 = vst [vmem:[#allocation4 + $0x230] sm:$0xf] %v1610_v16  ;;  %v5902_v29 = vld [vmem:[#allocation4 + $0x224] sm:$0xf0]  ;;  %v1678_v7 = vld [vmem:[#allocation2 + $0x160] sm:$0xff]  ;;  %v5909_v47 = vor.u32 %v6891_v54, %v5908_v21 }
 0x277   :  { %2975 = vmatmul.bf16.gmra.mxu3 %v5833_v6  ;;  %v1609_v39 = vpack.c.bf16 %v1593_v34, %v1593_v34  ;;  %v5916_v4 = vld [vmem:[#allocation4 + $0x210] sm:$0xf]  ;;  %v1680_v16 = vld [vmem:[#allocation2 + $0x180] sm:$0xff] }
 0x278   :  { %v6892_v26 = vld [vmem:[#allocation4 + $0x230] sm:$0xf0] }
 0x279   :  { %3073 = vmatmul.bf16.gmra.mxu1 %v5841_v31  ;;  %1625 = vst [vmem:[#allocation4 + $0x20c] sm:$0xf] %v1609_v39  ;;  %v6886_v19 = vld [vmem:[#allocation4 + $0x204] sm:$0xf]  ;;  %v5917_v27 = vor.u32 %v6892_v26, %v5916_v4 }
 0x27a   :  { %v10258_v58 = vpop.f32.mrf.mxu2  ;;  %v2829_v11 = vpop.f32.mrf.mxu3  ;;  %v5905_v18 = vor.u32 %v6886_v19, %v5902_v29  ;;  %v6825_v32 = vld [vmem:[#allocation4 + $0x1c] sm:$0xf]  ;;  %v7261_v29 = vld [vmem:[%s11413_s0 + $0x88] sm:$0x1] }
 0x27b   :  { %v2879_v53 = vadd.f32 %v2878_v46, %v2829_v11  ;;  %v2860_v0 = vpop.f32.mrf.mxu0  ;;  %v1693_v11 = vpack.c.bf16 %v1677_v61, %v1677_v61  ;;  %v5666_v24 = vld [vmem:[#allocation4 + $0x3c] sm:$0xf0]  ;;  %v894_v61 = vmul.f32 %v7261_v29, %v9501_v48 }
 0x27c   :  { %v10264_v12 = vadd.f32 %v2860_v0, %v10170_v22  ;;  %v1724_v22 = vld [vmem:[#allocation2 + $0x21] sm:$0xff]  ;;  %v5669_v19 = vor.u32 %v6825_v32, %v5666_v24 }
 0x27d   :  { %v1740_v23 = vpack.c.bf16 %v1724_v22, %v1724_v22  ;;  %v1726_v0 = vld [vmem:[#allocation2 + $0x41] sm:$0xff]  ;;  %v5910_v60 = vld [vmem:[#allocation4 + $0x22c] sm:$0xf0]  ;;  %1709 = vst [vmem:[#allocation4 + $0x64] sm:$0xf] %v1693_v11 }
 0x27e   :  { %v10266_v57 = vpop.f32.mrf.mxu1 }
 0x27f   :  { %3122 = vmatmul.bf16.gmra.mxu2 %v5845_v49  ;;  %1756 = vst [vmem:[#allocation4 + $0x44] sm:$0xf] %v1740_v23  ;;  %v1741_v49 = vpack.c.bf16 %v1725_v14, %v1725_v14  ;;  %v1679_v23 = vld [vmem:[#allocation2 + $0x170] sm:$0xff] }
 0x280   :  { %v6887_v39 = vld [vmem:[#allocation4 + $0x20c] sm:$0xf] }
 0x281   :  { %1757 = vst [vmem:[#allocation4 + $0x68] sm:$0xf] %v1741_v49 }
 0x282   :  { %v2927_v3 = vpop.f32.mrf.mxu2  ;;  %v10268_v56 = vpop.f32.mrf.mxu3 }
 0x283   :  { %v10270_v43 = vadd.f32 %v2927_v3, %v2879_v53  ;;  %v2902_v52 = vpop.f32.mrf.mxu0  ;;  %v1694_v53 = vpack.c.bf16 %v1678_v7, %v1678_v7  ;;  %v929_v7 = vadd.f32 %v9507_v17, %v894_v61 }
 0x284   :  { %v10276_v62 = vadd.f32 %v2902_v52, %v10205_v55  ;;  %v5881_v55 = vor.u32 %v6883_v28, %v5880_v8  ;;  %v1695_v8 = vpack.c.bf16 %v1679_v23, %v1679_v23  ;;  %v1696_v28 = vpack.c.bf16 %v1680_v16, %v1680_v16  ;;  %v6834_v4 = vld [vmem:[#allocation4 + $0x64] sm:$0xf] }
 0x285   :  { %3029 = vmatmul.bf16.gmra.mxu0 %v5873_v41  ;;  %1710 = vst [vmem:[#allocation4 + $0x88] sm:$0xf] %v1694_v53  ;;  %v5913_v41 = vor.u32 %v6887_v39, %v5910_v60 }
 0x286   :  { %v2883_v6 = vpop.f32.mrf.mxu1  ;;  %1711 = vst [vmem:[#allocation4 + $0xac] sm:$0xf] %v1695_v8 }
 0x287   :  { %2980 = vmatmul.bf16.gmra.mxu3 %v5869_v33  ;;  %v6830_v33 = vld [vmem:[#allocation4 + $0x40] sm:$0xf0]  ;;  %1712 = vst [vmem:[#allocation4 + $0xd0] sm:$0xf] %v1696_v28 }
 0x288   :  { %v5708_v39 = vld [vmem:[#allocation4 + $0x68] sm:$0xf] }
 0x289   :  { %3078 = vmatmul.bf16.gmra.mxu1 %v5877_v44 }
 0x28a   :  { %v10278_v9 = vpop.f32.mrf.mxu2  ;;  %v2834_v25 = vpop.f32.mrf.mxu3 }
 0x28b   :  { %v2884_v46 = vadd.f32 %v2883_v6, %v2834_v25  ;;  %v2904_v31 = vpop.f32.mrf.mxu0  ;;  %v1727_v6 = vld [vmem:[#allocation2 + $0x51] sm:$0xff]  ;;  %v1728_v25 = vld [vmem:[#allocation2 + $0x61] sm:$0xff] }
 0x28c   :  { %v10281_v36 = vadd.f32 %v2904_v31, %v10231_v63  ;;  %v1742_v63 = vpack.c.bf16 %v1726_v0, %v1726_v0  ;;  %v5702_v26 = vld [vmem:[#allocation4 + $0x84] sm:$0xf0] }
 0x28d   :  { %v5705_v28 = vor.u32 %v6834_v4, %v5702_v26 }
 0x28e   :  { %v10283_v30 = vpop.f32.mrf.mxu1  ;;  %1758 = vst [vmem:[#allocation4 + $0x8c] sm:$0xf] %v1742_v63 }
 0x28f   :  { %3127 = vmatmul.bf16.gmra.mxu2 %v5881_v55 }
 0x292   :  { %v2932_v35 = vpop.f32.mrf.mxu2  ;;  %v10285_v13 = vpop.f32.mrf.mxu3 }
 0x293   :  { %v10287_v51 = vadd.f32 %v2932_v35, %v2884_v46  ;;  %v2907_v34 = vpop.f32.mrf.mxu0  ;;  %v1743_v46 = vpack.c.bf16 %v1727_v6, %v1727_v6  ;;  %v7262_v35 = vld [vmem:[%s11413_s0 + $0x1a0] sm:$0xff] }
 0x294   :  { %v10290_v37 = vadd.f32 %v2907_v34, %v10255_v42  ;;  %v5672_v42 = vld [vmem:[#allocation4 + $0x20] sm:$0xf]  ;;  %v1041_v63 = vmul.f32 %v7262_v35, %v9501_v48 }
 0x295   :  { %3034 = vmatmul.bf16.gmra.mxu0 %v5909_v47  ;;  %v5673_v44 = vor.u32 %v6830_v33, %v5672_v42  ;;  %1759 = vst [vmem:[#allocation4 + $0xb0] sm:$0xf] %v1743_v46  ;;  %v961_v47 = vmax.f32 %v929_v7, 0.0  ;;  %v6839_v60 = vld [vmem:[#allocation4 + $0x88] sm:$0xf0] }
 0x296   :  { %v2888_v38 = vpop.f32.mrf.mxu1 }
 0x297   :  { %2985 = vmatmul.bf16.gmra.mxu3 %v5905_v18  ;;  %994 = vst [vmem:[#allocation2 + $0x88] sm:$0x1] %v961_v47  ;;  %v1057_v18 = vadd.f32 %v1041_v63, %v9507_v17  ;;  %v5738_v47 = vld [vmem:[#allocation4 + $0xcc] sm:$0xf0] }
 0x299   :  { %3083 = vmatmul.bf16.gmra.mxu1 %v5913_v41 }
 0x29a   :  { %v10292_v45 = vpop.f32.mrf.mxu2  ;;  %v2839_v22 = vpop.f32.mrf.mxu3 }
 0x29b   :  { %v2889_v3 = vadd.f32 %v2888_v38, %v2839_v22  ;;  %v2909_v40 = vpop.f32.mrf.mxu0  ;;  %v1073_v22 = vmax.f32 %v1057_v18, 0.0 }
 0x29c   :  { %v10295_v52 = vadd.f32 %v2909_v40, %v10264_v12  ;;  %v1744_v12 = vpack.c.bf16 %v1728_v25, %v1728_v25  ;;  %v5744_v61 = vld [vmem:[#allocation4 + $0xb0] sm:$0xf] }
 0x29d   :  { %v1698_v33 = vpack.c.bf16 %v1073_v22, %v1073_v22 }
 0x29e   :  { %v10297_v50 = vpop.f32.mrf.mxu1  ;;  %1760 = vst [vmem:[#allocation4 + $0xd4] sm:$0xf] %v1744_v12  ;;  %v1730_v40 = vld [vmem:[#allocation2 + $0x81] sm:$0xff] }
 0x29f   :  { %3132 = vmatmul.bf16.gmra.mxu2 %v5917_v27  ;;  %v5709_v27 = vor.u32 %v6839_v60, %v5708_v39  ;;  %v1746_v16 = vpack.c.bf16 %v1730_v40, %v1730_v40  ;;  %1714 = vst [vmem:[#allocation4 + $0x118] sm:$0xf] %v1698_v33  ;;  %v1732_v39 = vld [vmem:[#allocation2 + $0xb1] sm:$0xff] }
 0x2a1   :  { %1762 = vst [vmem:[#allocation4 + $0x11c] sm:$0xf] %v1746_v16 }
 0x2a2   :  { %v2937_v31 = vpop.f32.mrf.mxu2  ;;  %v10299_v55 = vpop.f32.mrf.mxu3 }
 0x2a3   :  { %v10301_v21 = vadd.f32 %v2937_v31, %v2889_v3  ;;  %v3000_v54 = vpop.f32.mrf.mxu0  ;;  %v1681_v3 = vld [vmem:[#allocation2 + $0x190] sm:$0xff] }
 0x2a4   :  { %v1697_v42 = vpack.c.bf16 %v1681_v3, %v1681_v3 }
 0x2a5   :  { %3195 = vmatmul.bf16.vlgmr.msra.gmra.mxu0 %v5673_v44 }
 0x2a6   :  { %v3049_v14 = vpop.f32.mrf.mxu1  ;;  %1713 = vst [vmem:[#allocation4 + $0xf4] sm:$0xf] %v1697_v42 }
 0x2a7   :  { %3146 = vmatmul.bf16.vlgmr.msra.gmra.mxu3 %v5669_v19 }
 0x2aa   :  { %v10308_v11 = vpop.f32.mrf.mxu2  ;;  %v2951_v53 = vpop.f32.mrf.mxu3 }
 0x2ab   :  { %v2952_v0 = vadd.f32 %v2951_v53, %v10276_v62  ;;  %v3002_v49 = vpop.f32.mrf.mxu0  ;;  %v1729_v62 = vld [vmem:[#allocation2 + $0x71] sm:$0xff]  ;;  %v1683_v53 = vld [vmem:[#allocation2 + $0x1c0] sm:$0xff] }
 0x2ac   :  { %v1745_v32 = vpack.c.bf16 %v1729_v62, %v1729_v62 }
 0x2ad   :  { %v3001_v34 = vadd.f32 %v3000_v54, %v2952_v0  ;;  %v1684_v0 = vld [vmem:[#allocation2 + $0x1d0] sm:$0xff] }
 0x2ae   :  { %v10316_v41 = vpop.f32.mrf.mxu1  ;;  %1761 = vst [vmem:[#allocation4 + $0xf8] sm:$0xf] %v1745_v32  ;;  %v1700_v18 = vpack.c.bf16 %v1684_v0, %v1684_v0 }
 0x2af   :  { %v3050_v38 = vadd.f32 %v3049_v14, %v3001_v34  ;;  %v6843_v14 = vld [vmem:[#allocation4 + $0xac] sm:$0xf]  ;;  %v1699_v34 = vpack.c.bf16 %v1683_v53, %v1683_v53 }
 0x2b0   :  { %v5741_v62 = vor.u32 %v6843_v14, %v5738_v47  ;;  %1716 = vst [vmem:[#allocation4 + $0x160] sm:$0xf] %v1700_v18 }
 0x2b1   :  { %1715 = vst [vmem:[#allocation4 + $0x13c] sm:$0xf] %v1699_v34 }
 0x2b2   :  { %v3098_v24 = vpop.f32.mrf.mxu2  ;;  %v2953_v23 = vpop.f32.mrf.mxu3 }
 0x2b3   :  { %v10318_v6 = vadd.f32 %v3098_v24, %v3050_v38  ;;  %v2954_v44 = vadd.f32 %v2953_v23, %v10281_v36  ;;  %v3005_v8 = vpop.f32.mrf.mxu0  ;;  %v6848_v36 = vld [vmem:[#allocation4 + $0xd0] sm:$0xf0] }
 0x2b4   :  { %v5745_v63 = vor.u32 %v6848_v36, %v5744_v61  ;;  %v1734_v36 = vld [vmem:[#allocation2 + $0xd1] sm:$0xff] }
 0x2b5   :  { %v10321_v25 = vadd.f32 %v3002_v49, %v2954_v44  ;;  %3200 = vmatmul.bf16.gmra.mxu0 %v5709_v27  ;;  %v1731_v49 = vld [vmem:[#allocation2 + $0xa1] sm:$0xff]  ;;  %v5780_v16 = vld [vmem:[#allocation4 + $0xf8] sm:$0xf]  ;;  %v1750_v53 = vpack.c.bf16 %v1734_v36, %v1734_v36 }
 0x2b6   :  { %v3054_v46 = vpop.f32.mrf.mxu1  ;;  %v1747_v60 = vpack.c.bf16 %v1731_v49, %v1731_v49 }
 0x2b7   :  { %3151 = vmatmul.bf16.gmra.mxu3 %v5705_v28  ;;  %v5774_v28 = vld [vmem:[#allocation4 + $0x114] sm:$0xf0]  ;;  %1766 = vst [vmem:[#allocation4 + $0x1ac] sm:$0xf] %v1750_v53 }
 0x2b8   :  { %1763 = vst [vmem:[#allocation4 + $0x140] sm:$0xf] %v1747_v60 }
 0x2ba   :  { %v10323_v31 = vpop.f32.mrf.mxu2  ;;  %v2956_v12 = vpop.f32.mrf.mxu3 }
 0x2bb   :  { %v2957_v54 = vadd.f32 %v2956_v12, %v10290_v37  ;;  %v3007_v19 = vpop.f32.mrf.mxu0  ;;  %v1748_v37 = vpack.c.bf16 %v1732_v39, %v1732_v39  ;;  %v1686_v12 = vld [vmem:[#allocation2 + $0x1f0] sm:$0xff] }
 0x2bc   :  { %v1702_v61 = vpack.c.bf16 %v1686_v12, %v1686_v12 }
 0x2bd   :  { %v3006_v29 = vadd.f32 %v3005_v8, %v2957_v54  ;;  %1764 = vst [vmem:[#allocation4 + $0x164] sm:$0xf] %v1748_v37  ;;  %v6852_v8 = vld [vmem:[#allocation4 + $0xf4] sm:$0xf]  ;;  %v1733_v54 = vld [vmem:[#allocation2 + $0xc1] sm:$0xff] }
 0x2be   :  { %v10326_v35 = vpop.f32.mrf.mxu1  ;;  %1718 = vst [vmem:[#allocation4 + $0x1a8] sm:$0xf] %v1702_v61 }
 0x2bf   :  { %v3055_v7 = vadd.f32 %v3054_v46, %v3006_v29  ;;  %v1685_v46 = vld [vmem:[#allocation2 + $0x1e0] sm:$0xff] }
 0x2c0   :  { %v1701_v29 = vpack.c.bf16 %v1685_v46, %v1685_v46  ;;  %v7263_v46 = vld [vmem:[%s11413_s0 + $0x118] sm:$0x1] }
 0x2c1   :  { %v910_v12 = vmul.f32 %v7263_v46, %v9501_v48 }
 0x2c2   :  { %v3103_v38 = vpop.f32.mrf.mxu2  ;;  %v2958_v4 = vpop.f32.mrf.mxu3  ;;  %1717 = vst [vmem:[#allocation4 + $0x184] sm:$0xf] %v1701_v29 }
 0x2c3   :  { %v10328_v26 = vadd.f32 %v3103_v38, %v3055_v7  ;;  %v2959_v22 = vadd.f32 %v2958_v4, %v10295_v52  ;;  %v3010_v3 = vpop.f32.mrf.mxu0  ;;  %v6857_v52 = vld [vmem:[#allocation4 + $0x118] sm:$0xf0]  ;;  %v1749_v7 = vpack.c.bf16 %v1733_v54, %v1733_v54  ;;  %v5816_v4 = vld [vmem:[#allocation4 + $0x140] sm:$0xf] }
 0x2c4   :  { %v6866_v37 = vld [vmem:[#allocation4 + $0x160] sm:$0xf0] }
 0x2c5   :  { %v10331_v40 = vadd.f32 %v3007_v19, %v2959_v22  ;;  %3205 = vmatmul.bf16.gmra.mxu0 %v5745_v63  ;;  %v5781_v19 = vor.u32 %v6857_v52, %v5780_v16  ;;  %v5777_v63 = vor.u32 %v6852_v8, %v5774_v28  ;;  %1765 = vst [vmem:[#allocation4 + $0x188] sm:$0xf] %v1749_v7  ;;  %v6861_v22 = vld [vmem:[#allocation4 + $0x13c] sm:$0xf]  ;;  %v7264_v7 = vld [vmem:[%s11413_s0 + $0x230] sm:$0xff] }
 0x2c6   :  { %v3059_v24 = vpop.f32.mrf.mxu1 }
 0x2c7   :  { %3156 = vmatmul.bf16.gmra.mxu3 %v5741_v62  ;;  %v1688_v62 = vld [vmem:[#allocation2 + $0x210] sm:$0xff] }
 0x2ca   :  { %v10333_v27 = vpop.f32.mrf.mxu2  ;;  %v2961_v42 = vpop.f32.mrf.mxu3 }
 0x2cb   :  { %v2962_v33 = vadd.f32 %v2961_v42, %v10152_v59  ;;  %v3012_v32 = vpop.f32.mrf.mxu0  ;;  %v1735_v42 = vld [vmem:[#allocation2 + $0xe1] sm:$0xff] }
 0x2cc   :  { %v1751_v16 = vpack.c.bf16 %v1735_v42, %v1735_v42 }
 0x2cd   :  { %v3011_v23 = vadd.f32 %v3010_v3, %v2962_v33  ;;  %v1687_v3 = vld [vmem:[#allocation2 + $0x200] sm:$0xff]  ;;  %v5817_v33 = vor.u32 %v6866_v37, %v5816_v4 }
 0x2ce   :  { %1767 = vst [vmem:[#allocation4 + $0x1d0] sm:$0xf] %v1751_v16  ;;  %v1737_v4 = vld [vmem:[#allocation2 + $0x101] sm:$0xff] }
 0x2cf   :  { %v3060_v44 = vadd.f32 %v3059_v24, %v3011_v23  ;;  %v1704_v24 = vpack.c.bf16 %v1688_v62, %v1688_v62  ;;  %v1736_v23 = vld [vmem:[#allocation2 + $0xf1] sm:$0xff] }
 0x2d1   :  { %1720 = vst [vmem:[#allocation4 + $0x1f0] sm:$0xf] %v1704_v24 }
 0x2d2   :  { %v3108_v14 = vpop.f32.mrf.mxu2  ;;  %v2963_v47 = vpop.f32.mrf.mxu3 }
 0x2d3   :  { %v10336_v59 = vadd.f32 %v3108_v14, %v3060_v44  ;;  %v2964_v0 = vadd.f32 %v2963_v47, %v10168_v2  ;;  %v3015_v49 = vpop.f32.mrf.mxu0  ;;  %v5810_v2 = vld [vmem:[#allocation4 + $0x15c] sm:$0xf0]  ;;  %v1752_v44 = vpack.c.bf16 %v1736_v23, %v1736_v23  ;;  %v1049_v14 = vmul.f32 %v7264_v7, %v9501_v48 }
 0x2d4   :  { %v5813_v28 = vor.u32 %v6861_v22, %v5810_v2 }
 0x2d5   :  { %v10339_v34 = vadd.f32 %v3012_v32, %v2964_v0  ;;  %3210 = vmatmul.bf16.gmra.mxu0 %v5781_v19  ;;  %v1703_v32 = vpack.c.bf16 %v1687_v3, %v1687_v3  ;;  %v945_v19 = vadd.f32 %v9507_v17, %v910_v12  ;;  %1768 = vst [vmem:[#allocation4 + $0x1f4] sm:$0xf] %v1752_v44  ;;  %v5852_v0 = vld [vmem:[#allocation4 + $0x188] sm:$0xf]  ;;  %v5888_v16 = vld [vmem:[#allocation4 + $0x1d0] sm:$0xf] }
 0x2d6   :  { %v1065_v53 = vadd.f32 %v1049_v14, %v9507_v17  ;;  %v1753_v3 = vpack.c.bf16 %v1737_v4, %v1737_v4  ;;  %v7114_v4 = vld [vmem:[%s11420_s7 + $0x20] sm:$0xff] }
 0x2d7   :  { %3161 = vmatmul.bf16.gmra.mxu3 %v5777_v63  ;;  %1719 = vst [vmem:[#allocation4 + $0x1cc] sm:$0xf] %v1703_v32  ;;  %v977_v29 = vmax.f32 %v945_v19, 0.0  ;;  %v6870_v63 = vld [vmem:[#allocation4 + $0x184] sm:$0xf] }
 0x2d8   :  { %1769 = vst [vmem:[#allocation4 + $0x218] sm:$0xf] %v1753_v3  ;;  %v7113_v3 = vld [vmem:[%s11420_s7 + $0x18] sm:$0xff] }
 0x2d9   :  { %1010 = vst [vmem:[#allocation2 + $0x118] sm:$0x1] %v977_v29 }
 0x2da   :  { %v2966_v18 = vpop.f32.mrf.mxu3 }
 0x2db   :  { %v2967_v39 = vadd.f32 %v2966_v18, %v10195_v20  ;;  %v3017_v60 = vpop.f32.mrf.mxu0  ;;  %v5846_v18 = vld [vmem:[#allocation4 + $0x1a4] sm:$0xf0] }
 0x2dd   :  { %v10342_v38 = vadd.f32 %v3015_v49, %v2967_v39  ;;  %v6875_v49 = vld [vmem:[#allocation4 + $0x1a8] sm:$0xf0]  ;;  %v1081_v39 = vmax.f32 %v1065_v53, 0.0  ;;  %v7116_v53 = vld [vmem:[%s11420_s7 + $0x30] sm:$0xff] }
 0x2de   :  { %v5853_v37 = vor.u32 %v6875_v49, %v5852_v0  ;;  %v6879_v44 = vld [vmem:[#allocation4 + $0x1cc] sm:$0xf] }
 0x2df   :  { %v1706_v2 = vpack.c.bf16 %v1081_v39, %v1081_v39  ;;  %v5924_v7 = vld [vmem:[#allocation4 + $0x218] sm:$0xf] }
 0x2e1   :  { %1722 = vst [vmem:[#allocation4 + $0x238] sm:$0xf] %v1706_v2 }
 0x2e2   :  { %v2968_v52 = vpop.f32.mrf.mxu3 }
 0x2e3   :  { %v2969_v8 = vadd.f32 %v2968_v52, %v10217_v15  ;;  %v3020_v20 = vpop.f32.mrf.mxu0  ;;  %v6884_v52 = vld [vmem:[#allocation4 + $0x1f0] sm:$0xf0] }
 0x2e5   :  { %v10349_v54 = vadd.f32 %v3017_v60, %v2969_v8  ;;  %3215 = vmatmul.bf16.gmra.mxu0 %v5817_v33  ;;  %v1689_v60 = vld [vmem:[#allocation2 + $0x220] sm:$0xff]  ;;  %v5849_v33 = vor.u32 %v6870_v63, %v5846_v18  ;;  %v5882_v8 = vld [vmem:[#allocation4 + $0x1ec] sm:$0xf0] }
 0x2e6   :  { %v1705_v22 = vpack.c.bf16 %v1689_v60, %v1689_v60  ;;  %v5885_v12 = vor.u32 %v6879_v44, %v5882_v8  ;;  %v7115_v60 = vld [vmem:[%s11420_s7 + $0x28] sm:$0xff]  ;;  %v7265_v44 = vld [vmem:[%s11413_s0 + $0x360] sm:$0xff]  ;;  %v7266_v8 = vld [vmem:[%s11413_s0 + $0x370] sm:$0xff] }
 0x2e7   :  { %3166 = vmatmul.bf16.gmra.mxu3 %v5813_v28 }
 0x2e8   :  { %1721 = vst [vmem:[#allocation4 + $0x214] sm:$0xf] %v1705_v22  ;;  %v5918_v49 = vld [vmem:[#allocation4 + $0x234] sm:$0xf0] }
 0x2ea   :  { %v2971_v15 = vpop.f32.mrf.mxu3 }
 0x2eb   :  { %v2972_v61 = vadd.f32 %v2971_v15, %v10249_v5  ;;  %v10353_v36 = vpop.f32.mrf.mxu0  ;;  %v1738_v5 = vld [vmem:[#allocation2 + $0x111] sm:$0xff] }
 0x2ec   :  { %v1754_v42 = vpack.c.bf16 %v1738_v5, %v1738_v5 }
 0x2ed   :  { %v10359_v47 = vadd.f32 %v3020_v20, %v2972_v61  ;;  %v5889_v20 = vor.u32 %v6884_v52, %v5888_v16  ;;  %v7117_v61 = vld [vmem:[%s11420_s7 + $0x38] sm:$0xff] }
 0x2ee   :  { %1770 = vst [vmem:[#allocation4 + $0x23c] sm:$0xf] %v1754_v42  ;;  %4186 = vmatpush.bf16.msra.mxu1 %v7117_v61  ;;  %v7112_v42 = vld [vmem:[%s11420_s7 + $0x10] sm:$0xff] }
 0x2ef   :  { %v6888_v0 = vld [vmem:[#allocation4 + $0x214] sm:$0xf] }
 0x2f0   :  { %v5921_v39 = vor.u32 %v6888_v0, %v5918_v49  ;;  %v3110_v0 = vpop.f32.mrf.mxu2 }
 0x2f2   :  { %v10362_v62 = vpop.f32.mrf.mxu3  ;;  %4187 = vmatpush.bf16.msra.mxu1 %v7116_v53 }
 0x2f3   :  { %v3025_v48 = vpop.f32.mrf.mxu0 }
 0x2f5   :  { %3220 = vmatmul.bf16.gmra.mxu0 %v5853_v37  ;;  %v6893_v14 = vld [vmem:[#allocation4 + $0x238] sm:$0xf0] }
 0x2f6   :  { %v5925_v63 = vor.u32 %v6893_v14, %v5924_v7  ;;  %4188 = vmatpush.bf16.msra.mxu1 %v7115_v60  ;;  %v3061_v7 = vpop.f32.mrf.mxu1 }
 0x2f7   :  { %3171 = vmatmul.bf16.gmra.mxu3 %v5849_v33 }
 0x2fa   :  { %v2976_v17 = vpop.f32.mrf.mxu3  ;;  %4189 = vmatpush.bf16.msra.mxu1 %v7114_v4 }
 0x2fb   :  { %v2977_v32 = vadd.f32 %v2976_v17, %v10270_v43  ;;  %v10365_v24 = vpop.f32.mrf.mxu0  ;;  %v7110_v17 = vld [vmem:[%s11420_s7] sm:$0xff] }
 0x2fd   :  { %v10367_v23 = vadd.f32 %v3025_v48, %v2977_v32 }
 0x2fe   :  { %4190 = vmatpush.bf16.msra.mxu1 %v7113_v3  ;;  %v3064_v4 = vpop.f32.mrf.mxu1 }
 0x302   :  { %v10369_v28 = vpop.f32.mrf.mxu3  ;;  %4191 = vmatpush.bf16.msra.mxu1 %v7112_v42 }
 0x303   :  { %v3030_v46 = vpop.f32.mrf.mxu0 }
 0x305   :  { %3225 = vmatmul.bf16.gmra.mxu0 %v5889_v20  ;;  %v4110_v20 = vpack.c.bf16 %v7266_v8, %v7265_v44  ;;  %v3062_v8 = vadd.f32 %v3061_v7, %v10339_v34 }
 0x307   :  { %3176 = vmatmul.bf16.gmra.mxu3 %v5885_v12 }
 0x30a   :  { %v2981_v19 = vpop.f32.mrf.mxu3 }
 0x30b   :  { %v2982_v29 = vadd.f32 %v2981_v19, %v10287_v51  ;;  %v10372_v15 = vpop.f32.mrf.mxu0 }
 0x30d   :  { %v10374_v43 = vadd.f32 %v3030_v46, %v2982_v29  ;;  %v3052_v46 = vadd.f32 %v10316_v41, %v10321_v25  ;;  %v7267_v41 = vld [vmem:[%s11413_s0 + $0x380] sm:$0xff]  ;;  %v7268_v25 = vld [vmem:[%s11413_s0 + $0x390] sm:$0xff] }
 0x30f   :  { %v3101_v19 = vadd.f32 %v10323_v31, %v3052_v46  ;;  %v4111_v31 = vpack.c.bf16 %v7268_v25, %v7267_v41 }
 0x312   :  { %v10382_v18 = vpop.f32.mrf.mxu3 }
 0x313   :  { %v3035_v51 = vpop.f32.mrf.mxu0 }
 0x315   :  { %3230 = vmatmul.bf16.gmra.mxu0 %v5925_v63 }
 0x317   :  { %3181 = vmatmul.bf16.gmra.mxu3 %v5921_v39  ;;  %v3057_v39 = vadd.f32 %v10326_v35, %v10331_v40 }
 0x31a   :  { %v2986_v5 = vpop.f32.mrf.mxu3 }
 0x31b   :  { %v2987_v37 = vadd.f32 %v2986_v5, %v10301_v21  ;;  %v10391_v22 = vpop.f32.mrf.mxu0  ;;  %v7111_v21 = vld [vmem:[%s11420_s7 + $0x8] sm:$0xff] }
 0x31c   :  { %4192 = vmatpush.bf16.msra.mxu1 %v7111_v21 }
 0x31d   :  { %v10393_v2 = vadd.f32 %v3035_v51, %v2987_v37 }
 0x320   :  { %4193 = vmatpush.bf16.msra.mxu1 %v7110_v17 }
 0x322   :  { %v10401_v48 = vpop.f32.mrf.mxu3 }
 0x323   :  { %v3196_v33 = vpop.f32.mrf.mxu0  ;;  %4194 = vmatmul.bf16.vlgmr.msra.gmra.mxu1 %v4110_v20 }
 0x32a   :  { %v3147_v32 = vpop.f32.mrf.mxu3 }
 0x32b   :  { %v3148_v16 = vadd.f32 %v3147_v32, %v10318_v6  ;;  %v3198_v52 = vpop.f32.mrf.mxu0  ;;  %v3066_v32 = vpop.f32.mrf.mxu1 }
 0x32d   :  { %v10418_v12 = vadd.f32 %v3196_v33, %v3148_v16  ;;  %v3113_v33 = vpop.f32.mrf.mxu2 }
 0x332   :  { %v3149_v6 = vpop.f32.mrf.mxu3 }
 0x333   :  { %v3150_v29 = vadd.f32 %v3149_v6, %v3101_v19  ;;  %v3201_v61 = vpop.f32.mrf.mxu0  ;;  %4199 = vmatmul.bf16.gmra.mxu1 %v4111_v31  ;;  %v3111_v6 = vadd.f32 %v3110_v0, %v3062_v8  ;;  %v7272_v0 = vld [vmem:[%s11413_s0 + $0x3d0] sm:$0xff] }
 0x335   :  { %v10421_v14 = vadd.f32 %v3198_v52, %v3150_v29  ;;  %v7269_v52 = vld [vmem:[%s11413_s0 + $0x3a0] sm:$0xff]  ;;  %v3115_v46 = vpop.f32.mrf.mxu2  ;;  %v3069_v29 = vpop.f32.mrf.mxu1 }
 0x337   :  { %v3236_v53 = vadd.f32 %v10421_v14, %v10418_v12 }
 0x33a   :  { %v3152_v49 = vpop.f32.mrf.mxu3 }
 0x33b   :  { %v3153_v63 = vadd.f32 %v3152_v49, %v10328_v26  ;;  %v3203_v51 = vpop.f32.mrf.mxu0  ;;  %v3106_v26 = vadd.f32 %v10333_v27, %v3057_v39  ;;  %v7270_v27 = vld [vmem:[%s11413_s0 + $0x3b0] sm:$0xff]  ;;  %v3065_v49 = vadd.f32 %v3064_v4, %v10342_v38  ;;  %v7271_v39 = vld [vmem:[%s11413_s0 + $0x3c0] sm:$0xff]  ;;  %v3067_v38 = vadd.f32 %v3066_v32, %v10349_v54 }
 0x33c   :  { %v4112_v44 = vpack.c.bf16 %v7270_v27, %v7269_v52  ;;  %v3070_v52 = vadd.f32 %v3069_v29, %v10359_v47  ;;  %v7274_v47 = vld [vmem:[%s11413_s0 + $0x400] sm:$0xff] }
 0x33d   :  { %v10434_v60 = vadd.f32 %v3201_v61, %v3153_v63  ;;  %v3118_v41 = vpop.f32.mrf.mxu2  ;;  %v3114_v25 = vadd.f32 %v3113_v33, %v3065_v49  ;;  %v3071_v4 = vpop.f32.mrf.mxu1 }
 0x33f   :  { %v3237_v5 = vadd.f32 %v3236_v53, %v10434_v60 }
 0x342   :  { %v3154_v37 = vpop.f32.mrf.mxu3 }
 0x343   :  { %v3155_v3 = vadd.f32 %v3154_v37, %v3106_v26  ;;  %v3206_v42 = vpop.f32.mrf.mxu0  ;;  %4204 = vmatmul.bf16.gmra.mxu1 %v4112_v44  ;;  %v2876_v37 = vadd.f32 %v10240_v10, %v10247_v1  ;;  %v3119_v10 = vadd.f32 %v3118_v41, %v3070_v52 }
 0x345   :  { %v10438_v21 = vadd.f32 %v3203_v51, %v3155_v3  ;;  %v3120_v33 = vpop.f32.mrf.mxu2  ;;  %v3074_v27 = vpop.f32.mrf.mxu1 }
 0x347   :  { %v3238_v17 = vadd.f32 %v3237_v5, %v10438_v21  ;;  %v4113_v5 = vpack.c.bf16 %v7272_v0, %v7271_v39 }
 0x34a   :  { %v3157_v16 = vpop.f32.mrf.mxu3 }
 0x34b   :  { %v3158_v35 = vadd.f32 %v3157_v16, %v10336_v59  ;;  %v3208_v40 = vpop.f32.mrf.mxu0  ;;  %v2925_v16 = vadd.f32 %v10258_v58, %v2876_v37  ;;  %v7273_v58 = vld [vmem:[%s11413_s0 + $0x3f0] sm:$0xff] }
 0x34d   :  { %v10449_v20 = vadd.f32 %v3206_v42, %v3158_v35  ;;  %v3116_v42 = vadd.f32 %v3115_v46, %v3067_v38  ;;  %v2974_v54 = vadd.f32 %v10362_v62, %v2925_v16  ;;  %v4114_v62 = vpack.c.bf16 %v7274_v47, %v7273_v58  ;;  %v3076_v49 = vpop.f32.mrf.mxu1 }
 0x34f   :  { %v3239_v19 = vadd.f32 %v3238_v17, %v10449_v20  ;;  %v3023_v1 = vadd.f32 %v10353_v36, %v2974_v54 }
 0x352   :  { %v3159_v59 = vpop.f32.mrf.mxu3 }
 0x353   :  { %v3160_v61 = vadd.f32 %v3159_v59, %v3111_v6  ;;  %v3211_v53 = vpop.f32.mrf.mxu0  ;;  %4209 = vmatmul.bf16.gmra.mxu1 %v4113_v5  ;;  %v3123_v6 = vpop.f32.mrf.mxu2  ;;  %v3072_v59 = vadd.f32 %v3071_v4, %v3023_v1 }
 0x355   :  { %v10453_v63 = vadd.f32 %v3208_v40, %v3160_v61  ;;  %v2881_v61 = vadd.f32 %v10266_v57, %v10268_v56  ;;  %v7045_v57 = vld [vmem:[%s11419_s6 + $0x38] sm:$0xff]  ;;  %v3079_v4 = vpop.f32.mrf.mxu1 }
 0x356   :  { %5163 = vmatpush.bf16.msra.mxu2 %v7045_v57 }
 0x357   :  { %v3240_v51 = vadd.f32 %v3239_v19, %v10453_v63  ;;  %v2930_v41 = vadd.f32 %v10278_v9, %v2881_v61 }
 0x35a   :  { %v3162_v34 = vpop.f32.mrf.mxu3 }
 0x35b   :  { %v3163_v7 = vadd.f32 %v3162_v34, %v3114_v25  ;;  %v3213_v31 = vpop.f32.mrf.mxu0  ;;  %v3125_v0 = vpop.f32.mrf.mxu2 }
 0x35d   :  { %v10463_v26 = vadd.f32 %v3211_v53, %v3163_v7  ;;  %v3121_v53 = vadd.f32 %v3120_v33, %v3072_v59  ;;  %v3075_v7 = vadd.f32 %v3074_v27, %v10367_v23  ;;  %v7275_v23 = vld [vmem:[%s11413_s0 + $0x410] sm:$0xff]  ;;  %v3081_v1 = vpop.f32.mrf.mxu1 }
 0x35f   :  { %v3241_v3 = vadd.f32 %v3240_v51, %v10463_v26  ;;  %v3124_v56 = vadd.f32 %v3123_v6, %v3075_v7 }
 0x362   :  { %v3164_v17 = vpop.f32.mrf.mxu3 }
 0x363   :  { %v3165_v35 = vadd.f32 %v3164_v17, %v3116_v42  ;;  %v3216_v40 = vpop.f32.mrf.mxu0  ;;  %4214 = vmatmul.bf16.gmra.mxu1 %v4114_v62 }
 0x365   :  { %v10471_v32 = vadd.f32 %v3213_v31, %v3165_v35  ;;  %v2979_v31 = vadd.f32 %v10369_v28, %v2930_v41  ;;  %v7276_v28 = vld [vmem:[%s11413_s0 + $0x420] sm:$0xff]  ;;  %v3128_v35 = vpop.f32.mrf.mxu2 }
 0x367   :  { %v3242_v44 = vadd.f32 %v3241_v3, %v10471_v32  ;;  %v3028_v38 = vadd.f32 %v10365_v24, %v2979_v31  ;;  %v4115_v3 = vpack.c.bf16 %v7276_v28, %v7275_v23  ;;  %v2886_v24 = vadd.f32 %v10283_v30, %v10285_v13 }
 0x369   :  { %v3077_v33 = vadd.f32 %v3076_v49, %v3028_v38  ;;  %v2935_v54 = vadd.f32 %v10292_v45, %v2886_v24  ;;  %v2891_v45 = vadd.f32 %v10297_v50, %v10299_v55  ;;  %v7310_v55 = vmov 128.0  }
 0x36a   :  { %v3167_v8 = vpop.f32.mrf.mxu3  ;;  %7155 = vrcp.f32 %v7310_v55 }
 0x36b   :  { %v3168_v46 = vadd.f32 %v3167_v8, %v3119_v10  ;;  %v3218_v19 = vpop.f32.mrf.mxu0  ;;  %v2984_v10 = vadd.f32 %v10382_v18, %v2935_v54  ;;  %v2940_v49 = vadd.f32 %v10308_v11, %v2891_v45 }
 0x36d   :  { %v10481_v29 = vadd.f32 %v3216_v40, %v3168_v46  ;;  %v3126_v40 = vadd.f32 %v3125_v0, %v3077_v33  ;;  %v3033_v13 = vadd.f32 %v10372_v15, %v2984_v10  ;;  %v3130_v58 = vpop.f32.mrf.mxu2  ;;  %v7279_v10 = vld [vmem:[%s11413_s0 + $0x450] sm:$0xff] }
 0x36f   :  { %v3243_v36 = vadd.f32 %v3242_v44, %v10481_v29  ;;  %v3080_v44 = vadd.f32 %v3079_v4, %v10374_v43  ;;  %v3082_v6 = vadd.f32 %v3081_v1, %v3033_v13  ;;  %v3084_v43 = vpop.f32.mrf.mxu1  ;;  %v7280_v1 = vld [vmem:[%s11413_s0 + $0x460] sm:$0xff] }
 0x370   :  { %v3085_v15 = vadd.f32 %v3084_v43, %v10393_v2  ;;  %v7277_v2 = vld [vmem:[%s11413_s0 + $0x430] sm:$0xff] }
 0x371   :  { %v3129_v30 = vadd.f32 %v3128_v35, %v3080_v44 }
 0x372   :  { %v3169_v51 = vpop.f32.mrf.mxu3 }
 0x373   :  { %v3170_v25 = vadd.f32 %v3169_v51, %v3121_v53  ;;  %v3221_v34 = vpop.f32.mrf.mxu0  ;;  %4219 = vmatmul.bf16.gmra.mxu1 %v4115_v3 }
 0x375   :  { %v10489_v39 = vadd.f32 %v3218_v19, %v3170_v25  ;;  %v3133_v41 = vpop.f32.mrf.mxu2  ;;  %v2989_v25 = vadd.f32 %v10401_v48, %v2940_v49  ;;  %v7278_v48 = vld [vmem:[%s11413_s0 + $0x440] sm:$0xff] }
 0x376   :  { %v3134_v31 = vadd.f32 %v3133_v41, %v3085_v15  ;;  %v4116_v4 = vpack.c.bf16 %v7278_v48, %v7277_v2 }
 0x377   :  { %v3244_v5 = vadd.f32 %v3243_v36, %v10489_v39  ;;  %v3131_v36 = vadd.f32 %v3130_v58, %v3082_v6  ;;  %v3038_v0 = vadd.f32 %v10391_v22, %v2989_v25  ;;  %v3086_v50 = vpop.f32.mrf.mxu1 }
 0x379   :  { %v3087_v38 = vadd.f32 %v3086_v50, %v3038_v0 }
 0x37a   :  { %v3172_v9 = vpop.f32.mrf.mxu3 }
 0x37b   :  { %v3173_v37 = vadd.f32 %v3172_v9, %v3124_v56  ;;  %v3223_v42 = vpop.f32.mrf.mxu0 }
 0x37d   :  { %v10502_v17 = vadd.f32 %v3221_v34, %v3173_v37  ;;  %v3135_v11 = vpop.f32.mrf.mxu2  ;;  %v7156_v37 = vpop.eup %7155 }
 0x37e   :  { %v3136_v23 = vadd.f32 %v3135_v11, %v3087_v38  ;;  %v3258_v3 = vmul.f32 128.0, %v7156_v37  ;;  %vm3262_vm5 = vweird.f32 %v7156_v37 }
 0x37f   :  { %v3245_v16 = vadd.f32 %v3244_v5, %v10502_v17 }
 0x382   :  { %v3174_v52 = vpop.f32.mrf.mxu3 }
 0x383   :  { %v3175_v27 = vadd.f32 %v3174_v52, %v3126_v40  ;;  %v3226_v46 = vpop.f32.mrf.mxu0  ;;  %4224 = vmatmul.bf16.gmra.mxu1 %v4116_v4 }
 0x385   :  { %v10510_v8 = vadd.f32 %v3223_v42, %v3175_v27 }
 0x387   :  { %v3246_v19 = vadd.f32 %v3245_v16, %v10510_v8  ;;  %v3259_v16 = vsub.f32 1.0, %v3258_v3 }
 0x389   :  { %v3260_v52 = vmul.f32 %v7156_v37, %v3259_v16 }
 0x38a   :  { %v3177_v47 = vpop.f32.mrf.mxu3 }
 0x38b   :  { %v3178_v62 = vadd.f32 %v3177_v47, %v3129_v30  ;;  %v3228_v61 = vpop.f32.mrf.mxu0  ;;  %v3261_v44 = vadd.f32 %v7156_v37, %v3260_v52 }
 0x38d   :  { %v10514_v59 = vadd.f32 %v3226_v46, %v3178_v62  ;;  %v4117_v46 = vpack.c.bf16 %v7280_v1, %v7279_v10  ;;  %v10535_v13 = vsel %vm3262_vm5, %v7156_v37, %v3261_v44 }
 0x38f   :  { %v3247_v18 = vadd.f32 %v3246_v19, %v10514_v59 }
 0x392   :  { %v3179_v53 = vpop.f32.mrf.mxu3 }
 0x393   :  { %v3180_v51 = vadd.f32 %v3179_v53, %v3131_v36  ;;  %v3231_v5 = vpop.f32.mrf.mxu0  ;;  %4229 = vmatmul.bf16.gmra.mxu1 %v4117_v46 }
 0x395   :  { %v3229_v34 = vadd.f32 %v3228_v61, %v3180_v51 }
 0x397   :  { %v3248_v7 = vadd.f32 %v3247_v18, %v3229_v34 }
 0x39a   :  { %v3182_v57 = vpop.f32.mrf.mxu3 }
 0x39b   :  { %v3183_v56 = vadd.f32 %v3182_v57, %v3134_v31  ;;  %v3233_v33 = vpop.f32.mrf.mxu0 }
 0x39d   :  { %v3232_v9 = vadd.f32 %v3231_v5, %v3183_v56 }
 0x39f   :  { %v3249_v22 = vadd.f32 %v3248_v7, %v3232_v9 }
 0x3a2   :  { %v3184_v28 = vpop.f32.mrf.mxu3 }
 0x3a3   :  { %v3185_v42 = vadd.f32 %v3184_v28, %v3136_v23 }
 0x3a5   :  { %v3234_v24 = vadd.f32 %v3233_v33, %v3185_v42 }
 0x3a7   :  { %v3250_v35 = vadd.f32 %v3249_v22, %v3234_v24 }
 0x3a9   :  { %v3251_v40 = vrot.slane %v3250_v35, 4 }
 0x3ab   :  { %v3252_v54 = vadd.f32 %v3251_v40, %v3250_v35 }
 0x3ad   :  { %v3253_v27 = vrot.slane %v3252_v54, 2 }
 0x3af   :  { %v3254_v19 = vadd.f32 %v3253_v27, %v3252_v54 }
 0x3b1   :  { %v3255_v30 = vrot.slane %v3254_v19, 1 }
 0x3b3   :  { %v3256_v58 = vadd.f32 %v3255_v30, %v3254_v19  ;;  %v7053_v19 = vld [vmem:[%s11419_s6 + $0x78] sm:$0xff] }
 0x3b4   :  { %5212 = vmatpush.bf16.msrb.mxu3 %v7053_v19  ;;  %v7056_v19 = vld [vmem:[%s11419_s6 + $0x90] sm:$0xff] }
 0x3b5   :  { %v3264_v47 = vmul.f32 %v10535_v13, %v3256_v58 }
 0x3b7   :  { %v10539_v62 = vsub.f32 %v10418_v12, %v3264_v47  ;;  %v10542_v6 = vsub.f32 %v10421_v14, %v3264_v47  ;;  %v10545_v45 = vsub.f32 %v10434_v60, %v3264_v47  ;;  %v10548_v43 = vsub.f32 %v10438_v21, %v3264_v47 }
 0x3b8   :  { %v10551_v18 = vsub.f32 %v10449_v20, %v3264_v47  ;;  %v10554_v61 = vsub.f32 %v10453_v63, %v3264_v47  ;;  %v10557_v36 = vsub.f32 %v10463_v26, %v3264_v47  ;;  %v10560_v12 = vsub.f32 %v10471_v32, %v3264_v47 }
 0x3b9   :  { %v10563_v14 = vsub.f32 %v10481_v29, %v3264_v47  ;;  %v10566_v60 = vsub.f32 %v10489_v39, %v3264_v47  ;;  %v10569_v21 = vsub.f32 %v10502_v17, %v3264_v47  ;;  %v10572_v20 = vsub.f32 %v10510_v8, %v3264_v47  ;;  %v10587_v17 = vpop.f32.mrf.mxu1 }
 0x3ba   :  { %v10575_v63 = vsub.f32 %v10514_v59, %v3264_v47  ;;  %v10577_v26 = vsub.f32 %v3229_v34, %v3264_v47  ;;  %v10579_v53 = vsub.f32 %v3232_v9, %v3264_v47  ;;  %v10581_v32 = vsub.f32 %v3234_v24, %v3264_v47  ;;  %v7052_v47 = vld [vmem:[%s11419_s6 + $0x70] sm:$0xff] }
 0x3bb   :  { %v3281_v29 = vmul.f32 %v10539_v62, %v10539_v62  ;;  %v3282_v39 = vmul.f32 %v10542_v6, %v10542_v6  ;;  %v3283_v8 = vmul.f32 %v10545_v45, %v10545_v45  ;;  %v3284_v59 = vmul.f32 %v10548_v43, %v10548_v43  ;;  %5213 = vmatpush.bf16.msrb.mxu3 %v7052_v47 }
 0x3bc   :  { %v3285_v41 = vmul.f32 %v10551_v18, %v10551_v18  ;;  %v3286_v25 = vmul.f32 %v10554_v61, %v10554_v61  ;;  %v3287_v31 = vmul.f32 %v10557_v36, %v10557_v36  ;;  %v3288_v50 = vmul.f32 %v10560_v12, %v10560_v12 }
 0x3bd   :  { %v3297_v49 = vadd.f32 %v3282_v39, %v3281_v29  ;;  %v3289_v5 = vmul.f32 %v10563_v14, %v10563_v14  ;;  %v3290_v56 = vmul.f32 %v10566_v60, %v10566_v60  ;;  %v3291_v11 = vmul.f32 %v10569_v21, %v10569_v21  ;;  %v7061_v39 = vld [vmem:[%s11419_s6 + $0xb8] sm:$0xff] }
 0x3be   :  { %v3292_v48 = vmul.f32 %v10572_v20, %v10572_v20  ;;  %v3293_v37 = vmul.f32 %v10575_v63, %v10575_v63  ;;  %v3294_v23 = vmul.f32 %v10577_v26, %v10577_v26  ;;  %v3295_v42 = vmul.f32 %v10579_v53, %v10579_v53  ;;  %5261 = vmatpush.bf16.msrb.mxu0 %v7061_v39  ;;  %v10734_v39 = vld [vmem:[%s11418_s5] ss:$0 sm:$0xff] }
 0x3bf   :  { %v3298_v51 = vadd.f32 %v3297_v49, %v3283_v8  ;;  %v3296_v24 = vmul.f32 %v10581_v32, %v10581_v32  ;;  %v7069_v8 = vld [vmem:[%s11419_s6 + $0xf8] sm:$0xff]  ;;  %v7051_v49 = vld [vmem:[%s11419_s6 + $0x68] sm:$0xff] }
 0x3c0   :  { %5310 = vmatpush.bf16.msrb.mxu1 %v7069_v8  ;;  %5214 = vmatpush.bf16.msrb.mxu3 %v7051_v49  ;;  %v7064_v8 = vld [vmem:[%s11419_s6 + $0xd0] sm:$0xff] }
 0x3c1   :  { %v3299_v15 = vadd.f32 %v3298_v51, %v3284_v59  ;;  %v10597_v7 = vpop.f32.mrf.mxu1  ;;  %v7044_v51 = vld [vmem:[%s11419_s6 + $0x30] sm:$0xff] }
 0x3c2   :  { %5164 = vmatpush.bf16.msra.mxu2 %v7044_v51 }
 0x3c3   :  { %v3300_v34 = vadd.f32 %v3299_v15, %v3285_v41  ;;  %v7060_v41 = vld [vmem:[%s11419_s6 + $0xb0] sm:$0xff] }
 0x3c4   :  { %v7068_v15 = vld [vmem:[%s11419_s6 + $0xf0] sm:$0xff]  ;;  %5262 = vmatpush.bf16.msrb.mxu0 %v7060_v41 }
 0x3c5   :  { %v3301_v0 = vadd.f32 %v3300_v34, %v3286_v25  ;;  %v7050_v34 = vld [vmem:[%s11419_s6 + $0x60] sm:$0xff]  ;;  %5311 = vmatpush.bf16.msrb.mxu1 %v7068_v15 }
 0x3c6   :  { %5215 = vmatpush.bf16.msrb.mxu3 %v7050_v34 }
 0x3c7   :  { %v3302_v55 = vadd.f32 %v3301_v0, %v3287_v31 }
 0x3c9   :  { %v3303_v57 = vadd.f32 %v3302_v55, %v3288_v50  ;;  %v10607_v9 = vpop.f32.mrf.mxu1  ;;  %v7043_v50 = vld [vmem:[%s11419_s6 + $0x28] sm:$0xff] }
 0x3ca   :  { %v7059_v55 = vld [vmem:[%s11419_s6 + $0xa8] sm:$0xff]  ;;  %5165 = vmatpush.bf16.msra.mxu2 %v7043_v50 }
 0x3cb   :  { %v3304_v38 = vadd.f32 %v3303_v57, %v3289_v5  ;;  %v7067_v5 = vld [vmem:[%s11419_s6 + $0xe8] sm:$0xff]  ;;  %5263 = vmatpush.bf16.msrb.mxu0 %v7059_v55 }
 0x3cc   :  { %5312 = vmatpush.bf16.msrb.mxu1 %v7067_v5 }
 0x3cd   :  { %v3305_v2 = vadd.f32 %v3304_v38, %v3290_v56  ;;  %v7049_v56 = vld [vmem:[%s11419_s6 + $0x58] sm:$0xff] }
 0x3ce   :  { %5216 = vmatpush.bf16.msrb.mxu3 %v7049_v56 }
 0x3cf   :  { %v3306_v4 = vadd.f32 %v3305_v2, %v3291_v11  ;;  %v7042_v11 = vld [vmem:[%s11419_s6 + $0x20] sm:$0xff] }
 0x3d0   :  { %v7058_v2 = vld [vmem:[%s11419_s6 + $0xa0] sm:$0xff]  ;;  %5166 = vmatpush.bf16.msra.mxu2 %v7042_v11 }
 0x3d1   :  { %v3307_v22 = vadd.f32 %v3306_v4, %v3292_v48  ;;  %v10617_v3 = vpop.f32.mrf.mxu1  ;;  %v7066_v48 = vld [vmem:[%s11419_s6 + $0xe0] sm:$0xff]  ;;  %5264 = vmatpush.bf16.msrb.mxu0 %v7058_v2 }
 0x3d2   :  { %v3319_v4 = vld [vmem:[%s11417_s4] sm:$0x1]  ;;  %5313 = vmatpush.bf16.msrb.mxu1 %v7066_v48 }
 0x3d3   :  { %v3308_v28 = vadd.f32 %v3307_v22, %v3293_v37  ;;  %v10686_v22 = vld [vmem:[%s11421_s8] ss:$0 sm:$0xff] }
 0x3d5   :  { %v3309_v33 = vadd.f32 %v3308_v28, %v3294_v23  ;;  %v7041_v23 = vld [vmem:[%s11419_s6 + $0x18] sm:$0xff] }
 0x3d6   :  { %5167 = vmatpush.bf16.msra.mxu2 %v7041_v23 }
 0x3d7   :  { %v3310_v16 = vadd.f32 %v3309_v33, %v3295_v42  ;;  %v7057_v42 = vld [vmem:[%s11419_s6 + $0x98] sm:$0xff] }
 0x3d8   :  { %5265 = vmatpush.bf16.msrb.mxu0 %v7057_v42 }
 0x3d9   :  { %v3311_v35 = vadd.f32 %v3310_v16, %v3296_v24  ;;  %v10623_v52 = vpop.f32.mrf.mxu1  ;;  %v10698_v24 = vadd.f32 %v10686_v22, %v10587_v17  ;;  %v10702_v16 = vadd.f32 %v10686_v22, %v10597_v7  ;;  %v7047_v7 = vld [vmem:[%s11419_s6 + $0x48] sm:$0xff] }
 0x3db   :  { %v3312_v40 = vrot.slane %v3311_v35, 4  ;;  %v4235_v17 = vadd.f32 %v10702_v16, %v10698_v24 }
 0x3dc   :  { %5266 = vmatpush.bf16.msrb.mxu0 %v7056_v19 }
 0x3dd   :  { %v3313_v54 = vadd.f32 %v3312_v40, %v3311_v35  ;;  %v10706_v35 = vadd.f32 %v10686_v22, %v10607_v9  ;;  %v7065_v40 = vld [vmem:[%s11419_s6 + $0xd8] sm:$0xff] }
 0x3de   :  { %5314 = vmatpush.bf16.msrb.mxu1 %v7065_v40  ;;  %v10803_v40 = vadd.f32 %v10686_v22, %v10623_v52 }
 0x3df   :  { %v3314_v27 = vrot.slane %v3313_v54, 2 }
 0x3e1   :  { %v3315_v44 = vadd.f32 %v3314_v27, %v3313_v54  ;;  %v10625_v1 = vpop.f32.mrf.mxu1  ;;  %v7048_v54 = vld [vmem:[%s11419_s6 + $0x50] sm:$0xff] }
 0x3e2   :  { %5217 = vmatpush.bf16.msrb.mxu3 %v7048_v54  ;;  %5315 = vmatpush.bf16.msrb.mxu1 %v7064_v8 }
 0x3e3   :  { %v3316_v10 = vrot.slane %v3315_v44, 1 }
 0x3e5   :  { %v3317_v46 = vadd.f32 %v3316_v10, %v3315_v44  ;;  %v7040_v44 = vld [vmem:[%s11419_s6 + $0x10] sm:$0xff]  ;;  %v3453_v10 = vld [vmem:[#allocation3] sm:$0xff] }
 0x3e6   :  { %5218 = vmatpush.bf16.msrb.mxu3 %v7047_v7  ;;  %5168 = vmatpush.bf16.msra.mxu2 %v7040_v44 }
 0x3e7   :  { %v3318_v30 = vmul.f32 %v3317_v46, %v10535_v13  ;;  %v10723_v46 = vadd.f32 %v4235_v17, %v10706_v35 }
 0x3e9   :  { %v3320_v58 = vadd.f32 1e-05, %v3318_v30  ;;  %v10634_v29 = vpop.f32.mrf.mxu1 }
 0x3ea   :  { %v10831_v8 = vadd.f32 %v10686_v22, %v10634_v29 }
 0x3eb   :  { %7157 = vrsqrt.f32 %v3320_v58  ;;  %vm3327_vm7 = vweird.f32 %v3320_v58 }
 0x3f1   :  { %v7158_v59 = vpop.eup %7157  ;;  %v10657_v31 = vpop.f32.mrf.mxu1 }
 0x3f2   :  { %v3322_v25 = vmul.f32 %v7158_v59, %v3320_v58  ;;  %vm3328_vm6 = vweird.f32 %v7158_v59 }
 0x3f3   :  { %vm3329_vm8 = vmor %vm3327_vm7, %vm3328_vm6 }
 0x3f4   :  { %v3323_v0 = vmul.f32 %v7158_v59, %v3322_v25 }
 0x3f6   :  { %v3324_v57 = vmul.f32 0.5, %v3323_v0 }
 0x3f8   :  { %v3325_v38 = vsub.f32 1.5, %v3324_v57 }
 0x3f9   :  { %v10691_v28 = vpop.f32.mrf.mxu1 }
 0x3fa   :  { %v3326_v37 = vmul.f32 %v7158_v59, %v3325_v38  ;;  %v10779_v38 = vadd.f32 %v10686_v22, %v10617_v3 }
 0x3fc   :  { %v3330_v33 = vsel %vm3329_vm8, %v7158_v59, %v3326_v37  ;;  %v7062_v37 = vld [vmem:[%s11419_s6 + $0xc0] sm:$0xff] }
 0x3fd   :  { %v3331_v27 = vmul.f32 %v3330_v33, %v3319_v4 }
 0x3ff   :  { %v3333_v9 = vperm.slane %v3331_v27, 0  ;;  %v7077_v27 = vld [vmem:[%s11419_s6 + $0x138] sm:$0xff] }
 0x401   :  { %v3335_v30 = vmul.f32 %v3333_v9, %v10539_v62  ;;  %v3336_v58 = vmul.f32 %v3333_v9, %v10542_v6  ;;  %v3337_v47 = vmul.f32 %v3333_v9, %v10545_v45  ;;  %v3338_v49 = vmul.f32 %v3333_v9, %v10548_v43  ;;  %v7046_v62 = vld [vmem:[%s11419_s6 + $0x40] sm:$0xff]  ;;  %v7039_v43 = vld [vmem:[%s11419_s6 + $0x8] sm:$0xff] }
 0x402   :  { %v3339_v59 = vmul.f32 %v3333_v9, %v10551_v18  ;;  %v3340_v51 = vmul.f32 %v3333_v9, %v10554_v61  ;;  %v3469_v6 = vpack.c.bf16 %v3453_v10, %v3453_v10  ;;  %v3343_v45 = vmul.f32 %v3333_v9, %v10563_v14  ;;  %v10752_v18 = vpop.f32.mrf.mxu1  ;;  %v3501_v61 = vld [vmem:[#allocation3 + $0x1] sm:$0xff]  ;;  %5219 = vmatpush.bf16.msrb.mxu3 %v7046_v62 }
 0x403   :  { %v3344_v41 = vmul.f32 %v3333_v9, %v10566_v60  ;;  %v3345_v15 = vmul.f32 %v3333_v9, %v10569_v21  ;;  %v3346_v25 = vmul.f32 %v3333_v9, %v10572_v20  ;;  %v3347_v34 = vmul.f32 %v3333_v9, %v10575_v63  ;;  %v7055_v21 = vld [vmem:[%s11419_s6 + $0x88] sm:$0xff]  ;;  %5169 = vmatpush.bf16.msra.mxu2 %v7039_v43 }
 0x404   :  { %v3348_v0 = vmul.f32 %v3333_v9, %v10577_v26  ;;  %v3349_v14 = vmul.f32 %v3333_v9, %v10579_v53  ;;  %v10758_v60 = vmul.f32 %v3333_v9, %v10581_v32  ;;  %v3341_v20 = vmul.f32 %v3333_v9, %v10557_v36  ;;  %v7063_v26 = vld [vmem:[%s11419_s6 + $0xc8] sm:$0xff]  ;;  %v7038_v36 = vld [vmem:[%s11419_s6] sm:$0xff]  ;;  %5267 = vmatpush.bf16.msrb.mxu0 %v7055_v21 }
 0x405   :  { %v3355_v50 = vadd.f32 %v10734_v39, %v3335_v30  ;;  %v3356_v55 = vadd.f32 %v10734_v39, %v3336_v58  ;;  %v3357_v63 = vadd.f32 %v10734_v39, %v3337_v47  ;;  %v3342_v53 = vmul.f32 %v3333_v9, %v10560_v12  ;;  %v7054_v12 = vld [vmem:[%s11419_s6 + $0x80] sm:$0xff]  ;;  %5316 = vmatpush.bf16.msrb.mxu1 %v7063_v26 }
 0x406   :  { %v3358_v32 = vadd.f32 %v10734_v39, %v3338_v49  ;;  %v3517_v5 = vpack.c.bf16 %v3501_v61, %v3501_v61  ;;  %v3359_v57 = vadd.f32 %v10734_v39, %v3339_v59  ;;  %v3360_v56 = vadd.f32 %v10734_v39, %v3340_v51  ;;  %3485 = vst [vmem:[#allocation5] sm:$0xf] %v3469_v6 }
 0x407   :  { %v3361_v11 = vadd.f32 %v10734_v39, %v3341_v20  ;;  %v10785_v2 = vmax.f32 %v3355_v50, 0.0  ;;  %v10787_v48 = vmax.f32 %v3356_v55, 0.0  ;;  %v10789_v4 = vmax.f32 %v3357_v63, 0.0  ;;  %5170 = vmatpush.bf16.msra.mxu2 %v7038_v36 }
 0x408   :  { %v3362_v3 = vadd.f32 %v10734_v39, %v3342_v53  ;;  %v10795_v23 = vmax.f32 %v3358_v32, 0.0  ;;  %3533 = vst [vmem:[#allocation5 + $0x4] sm:$0xf] %v3517_v5  ;;  %v3363_v42 = vadd.f32 %v10734_v39, %v3343_v45  ;;  %v10798_v33 = vmax.f32 %v3359_v57, 0.0  ;;  %5268 = vmatpush.bf16.msrb.mxu0 %v7054_v12  ;;  %v7076_v5 = vld [vmem:[%s11419_s6 + $0x130] sm:$0xff] }
 0x409   :  { %3437 = vst [vmem:[#allocation3 + $0x11] sm:$0xff] %v10785_v2  ;;  %v3364_v17 = vadd.f32 %v10734_v39, %v3344_v41  ;;  %v10809_v7 = vmax.f32 %v3360_v56, 0.0  ;;  %v10814_v9 = vadd.f32 %v10686_v22, %v10625_v1  ;;  %v3365_v52 = vadd.f32 %v10734_v39, %v3345_v15  ;;  %5317 = vmatpush.bf16.msrb.mxu1 %v7062_v37 }
 0x40a   :  { %v4220_v54 = vpop.f32.mrf.mxu1  ;;  %3438 = vst [vmem:[#allocation3 + $0x21] sm:$0xff] %v10787_v48  ;;  %v10817_v44 = vmax.f32 %v3361_v11, 0.0  ;;  %v4237_v10 = vadd.f32 %v10723_v46, %v10779_v38  ;;  %v3366_v19 = vadd.f32 %v10734_v39, %v3346_v25  ;;  %v3378_v30 = vmax.f32 %v3362_v3, 0.0 }
 0x40b   :  { %3439 = vst [vmem:[#allocation3 + $0x31] sm:$0xff] %v10789_v4  ;;  %5359 = vmatpush.bf16.msrb.mxu2 %v7077_v27  ;;  %v3367_v1 = vadd.f32 %v10734_v39, %v3347_v34  ;;  %v10825_v58 = vmax.f32 %v3363_v42, 0.0  ;;  %v3368_v46 = vadd.f32 %v10734_v39, %v3348_v0  ;;  %v10834_v49 = vmax.f32 %v3364_v17, 0.0 }
 0x40c   :  { %3440 = vst [vmem:[#allocation3 + $0x41] sm:$0xff] %v10795_v23  ;;  %v4238_v47 = vadd.f32 %v4237_v10, %v10803_v40  ;;  %v3369_v59 = vadd.f32 %v10734_v39, %v3349_v14  ;;  %v10838_v51 = vmax.f32 %v3365_v52, 0.0  ;;  %v10844_v6 = vadd.f32 %v10686_v22, %v10657_v31 }
 0x40d   :  { %3441 = vst [vmem:[#allocation3 + $0x51] sm:$0xff] %v10798_v33  ;;  %v3370_v29 = vadd.f32 %v10734_v39, %v10758_v60  ;;  %v3382_v45 = vmax.f32 %v3366_v19, 0.0  ;;  %v3383_v41 = vmax.f32 %v3367_v1, 0.0  ;;  %v10852_v25 = vadd.f32 %v10686_v22, %v10691_v28  ;;  %v3549_v60 = vld [vmem:[#allocation3 + $0x2] sm:$0xff] }
 0x40e   :  { %3442 = vst [vmem:[#allocation3 + $0x61] sm:$0xff] %v10809_v7  ;;  %v4239_v62 = vadd.f32 %v4238_v47, %v10814_v9  ;;  %v3384_v61 = vmax.f32 %v3368_v46, 0.0  ;;  %v3385_v34 = vmax.f32 %v3369_v59, 0.0  ;;  %v10859_v0 = vadd.f32 %v10686_v22, %v10752_v18  ;;  %v6248_v17 = vld [vmem:[#allocation5] sm:$0xf] }
 0x40f   :  { %3443 = vst [vmem:[#allocation3 + $0x71] sm:$0xff] %v10817_v44  ;;  %v3386_v14 = vmax.f32 %v3370_v29, 0.0  ;;  %v10863_v21 = vadd.f32 %v10686_v22, %v4220_v54  ;;  %v3518_v55 = vpack.c.bf16 %v10785_v2, %v10785_v2  ;;  %v3565_v18 = vpack.c.bf16 %v3549_v60, %v3549_v60  ;;  %5360 = vmatpush.bf16.msrb.mxu2 %v7076_v5  ;;  %v6966_v10 = vld [vmem:[#allocation5 + $0x4] sm:$0xf] }
 0x410   :  { %3444 = vst [vmem:[#allocation3 + $0x81] sm:$0xff] %v3378_v30  ;;  %v4240_v15 = vadd.f32 %v4239_v62, %v10831_v8  ;;  %v3454_v31 = vld [vmem:[#allocation3 + $0x10] sm:$0xff]  ;;  %v3519_v54 = vpack.c.bf16 %v10787_v48, %v10787_v48  ;;  %v3520_v52 = vpack.c.bf16 %v10789_v4, %v10789_v4 }
 0x411   :  { %3445 = vst [vmem:[#allocation3 + $0xb1] sm:$0xff] %v10825_v58  ;;  %v3470_v20 = vpack.c.bf16 %v3454_v31, %v3454_v31  ;;  %v3550_v50 = vld [vmem:[#allocation3 + $0x12] sm:$0xff]  ;;  %v3598_v26 = vld [vmem:[#allocation3 + $0x20] sm:$0xff] }
 0x412   :  { %v4222_v43 = vpop.f32.mrf.mxu1  ;;  %3446 = vst [vmem:[#allocation3 + $0xc1] sm:$0xff] %v10834_v49  ;;  %v4241_v39 = vadd.f32 %v4240_v15, %v10844_v6  ;;  %v3566_v32 = vpack.c.bf16 %v3550_v50, %v3550_v50  ;;  %v3456_v56 = vld [vmem:[#allocation3 + $0x30] sm:$0xff]  ;;  %v3614_v12 = vpack.c.bf16 %v3598_v26, %v3598_v26  ;;  %v3551_v3 = vld [vmem:[#allocation3 + $0x22] sm:$0xff] }
 0x413   :  { %3447 = vst [vmem:[#allocation3 + $0xd1] sm:$0xff] %v10838_v51  ;;  %v10869_v53 = vadd.f32 %v10686_v22, %v4222_v43  ;;  %v10879_v37 = vpack.c.bf16 %v3456_v56, %v3456_v56  ;;  %v3552_v27 = vld [vmem:[#allocation3 + $0x32] sm:$0xff]  ;;  %v10886_v19 = vpack.c.bf16 %v3551_v3, %v3551_v3  ;;  %v3600_v30 = vld [vmem:[#allocation3 + $0x40] sm:$0xff] }
 0x414   :  { %3448 = vst [vmem:[#allocation3 + $0xe1] sm:$0xff] %v3382_v45  ;;  %v4242_v28 = vadd.f32 %v4241_v39, %v10852_v25  ;;  %v3568_v47 = vpack.c.bf16 %v3552_v27, %v3552_v27  ;;  %v3458_v48 = vld [vmem:[#allocation3 + $0x50] sm:$0xff]  ;;  %v3524_v27 = vpack.c.bf16 %v10817_v44, %v10817_v44 }
 0x415   :  { %3449 = vst [vmem:[#allocation3 + $0xf1] sm:$0xff] %v3383_v41  ;;  %v3616_v41 = vpack.c.bf16 %v3600_v30, %v3600_v30  ;;  %v3474_v31 = vpack.c.bf16 %v3458_v48, %v3458_v48  ;;  %v3554_v60 = vld [vmem:[#allocation3 + $0x52] sm:$0xff]  ;;  %v3555_v56 = vld [vmem:[#allocation3 + $0x62] sm:$0xff] }
 0x416   :  { %3450 = vst [vmem:[#allocation3 + $0x101] sm:$0xff] %v3384_v61  ;;  %v4243_v63 = vadd.f32 %v4242_v28, %v10859_v0 }
 0x417   :  { %3451 = vst [vmem:[#allocation3 + $0x111] sm:$0xff] %v3385_v34  ;;  %v3553_v34 = vld [vmem:[#allocation3 + $0x42] sm:$0xff] }
 0x418   :  { %3452 = vst [vmem:[#allocation3 + $0x121] sm:$0xff] %v3386_v14  ;;  %v4244_v57 = vadd.f32 %v4243_v63, %v10863_v21  ;;  %v3521_v14 = vpack.c.bf16 %v10795_v23, %v10795_v23  ;;  %v10898_v50 = vpack.c.bf16 %v3553_v34, %v3553_v34  ;;  %v7075_v23 = vld [vmem:[%s11419_s6 + $0x128] sm:$0xff]  ;;  %v3604_v3 = vld [vmem:[#allocation3 + $0x80] sm:$0xff] }
 0x419   :  { %3486 = vst [vmem:[#allocation5 + $0x24] sm:$0xf] %v3470_v20  ;;  %5361 = vmatpush.bf16.msrb.mxu2 %v7075_v23  ;;  %v10923_v44 = vpack.c.bf16 %v3604_v3, %v3604_v3 }
 0x41a   :  { %v4225_v36 = vpop.f32.mrf.mxu1  ;;  %3534 = vst [vmem:[#allocation5 + $0x28] sm:$0xf] %v3518_v55  ;;  %v4245_v2 = vadd.f32 %v4244_v57, %v10869_v53  ;;  %v3602_v55 = vld [vmem:[#allocation3 + $0x60] sm:$0xff] }
 0x41b   :  { %v10876_v11 = vadd.f32 %v10686_v22, %v4225_v36  ;;  %3581 = vst [vmem:[#allocation5 + $0x8] sm:$0xf] %v3565_v18  ;;  %v3570_v18 = vpack.c.bf16 %v3554_v60, %v3554_v60 }
 0x41c   :  { %3582 = vst [vmem:[#allocation5 + $0x2c] sm:$0xf] %v3566_v32  ;;  %v3460_v32 = vld [vmem:[#allocation3 + $0x70] sm:$0xff] }
 0x41d   :  { %3629 = vst [vmem:[#allocation5 + $0xc] sm:$0xf] %v3470_v20  ;;  %v4246_v42 = vadd.f32 %v4245_v2, %v10876_v11  ;;  %v3522_v20 = vpack.c.bf16 %v10798_v33, %v10798_v33  ;;  %v3618_v33 = vpack.c.bf16 %v3602_v55, %v3602_v55  ;;  %v10909_v36 = vpack.c.bf16 %v3460_v32, %v3460_v32  ;;  %v3556_v2 = vld [vmem:[#allocation3 + $0x72] sm:$0xff] }
 0x41e   :  { %3630 = vst [vmem:[#allocation5 + $0x30] sm:$0xf] %v3614_v12  ;;  %v10918_v30 = vpack.c.bf16 %v3556_v2, %v3556_v2 }
 0x41f   :  { %3487 = vst [vmem:[#allocation5 + $0x48] sm:$0xf] %v3614_v12  ;;  %v3523_v12 = vpack.c.bf16 %v10809_v7, %v10809_v7 }
 0x420   :  { %v6970_v1 = vld [vmem:[#allocation5 + $0x20] sm:$0xf0]  ;;  %3488 = vst [vmem:[#allocation5 + $0x6c] sm:$0xf] %v10879_v37 }
 0x421   :  { %v6249_v46 = vor.u32 %v6970_v1, %v6248_v17  ;;  %v6250_v59 = vld [vmem:[#allocation5 + $0x24] sm:$0xf0]  ;;  %3535 = vst [vmem:[#allocation5 + $0x4c] sm:$0xf] %v3519_v54  ;;  %v3461_v1 = vld [vmem:[#allocation3 + $0xa0] sm:$0xff] }
 0x422   :  { %v4227_v62 = vpop.f32.mrf.mxu1  ;;  %v6253_v29 = vor.u32 %v6966_v10, %v6250_v59  ;;  %v6256_v45 = vld [vmem:[#allocation5 + $0x8] sm:$0xf]  ;;  %3536 = vst [vmem:[#allocation5 + $0x70] sm:$0xf] %v3520_v52  ;;  %v10915_v10 = vpack.c.bf16 %v3555_v56, %v3555_v56 }
 0x423   :  { %5171 = vmatmul.bf16.vlgmr.msra.gmra.mxu2 %v6249_v46  ;;  %v6971_v4 = vld [vmem:[#allocation5 + $0x28] sm:$0xf0]  ;;  %3583 = vst [vmem:[#allocation5 + $0x50] sm:$0xf] %v10886_v19  ;;  %v10891_v61 = vadd.f32 %v10686_v22, %v4227_v62 }
 0x424   :  { %5220 = vmatmul.bf16.vlgmr.msrb.gmra.mxu3 %v6253_v29  ;;  %v6257_v15 = vor.u32 %v6971_v4, %v6256_v45  ;;  %v6967_v43 = vld [vmem:[#allocation5 + $0xc] sm:$0xf]  ;;  %3584 = vst [vmem:[#allocation5 + $0x74] sm:$0xf] %v3568_v47  ;;  %v3462_v47 = vld [vmem:[#allocation3 + $0xb0] sm:$0xff]  ;;  %v3509_v45 = vld [vmem:[#allocation3 + $0xa1] sm:$0xff] }
 0x425   :  { %v6258_v39 = vld [vmem:[#allocation5 + $0x2c] sm:$0xf0]  ;;  %3631 = vst [vmem:[#allocation5 + $0x54] sm:$0xf] %v10879_v37  ;;  %v4247_v63 = vadd.f32 %v4246_v42, %v10891_v61  ;;  %v3478_v34 = vpack.c.bf16 %v3462_v47, %v3462_v47 }
 0x426   :  { %5269 = vmatmul.bf16.vlgmr.msrb.gmra.mxu0 %v6257_v15  ;;  %v6261_v28 = vor.u32 %v6967_v43, %v6258_v39  ;;  %3632 = vst [vmem:[#allocation5 + $0x78] sm:$0xf] %v3616_v41  ;;  %v6284_v42 = vld [vmem:[#allocation5 + $0x48] sm:$0xf]  ;;  %v3477_v15 = vpack.c.bf16 %v3461_v1, %v3461_v1 }
 0x427   :  { %3489 = vst [vmem:[#allocation5 + $0x90] sm:$0xf] %v3616_v41  ;;  %v6979_v54 = vld [vmem:[#allocation5 + $0x68] sm:$0xf0]  ;;  %v3557_v39 = vld [vmem:[#allocation3 + $0xa2] sm:$0xff] }
 0x428   :  { %5318 = vmatmul.bf16.vlgmr.msrb.gmra.mxu1 %v6261_v28  ;;  %3490 = vst [vmem:[#allocation5 + $0xb4] sm:$0xf] %v3474_v31  ;;  %v6975_v17 = vld [vmem:[#allocation5 + $0x4c] sm:$0xf]  ;;  %v6285_v7 = vor.u32 %v6979_v54, %v6284_v42  ;;  %v3573_v55 = vpack.c.bf16 %v3557_v39, %v3557_v39  ;;  %v3528_v54 = vpack.c.bf16 %v10838_v51, %v10838_v51  ;;  %v3608_v51 = vld [vmem:[#allocation3 + $0xe0] sm:$0xff] }
 0x429   :  { %3537 = vst [vmem:[#allocation5 + $0x94] sm:$0xf] %v3521_v14  ;;  %v6286_v52 = vld [vmem:[#allocation5 + $0x6c] sm:$0xf0] }
 0x42a   :  { %v4230_v26 = vpop.f32.mrf.mxu1  ;;  %3538 = vst [vmem:[#allocation5 + $0xb8] sm:$0xf] %v3522_v20  ;;  %v6292_v46 = vld [vmem:[#allocation5 + $0x50] sm:$0xf]  ;;  %v6289_v48 = vor.u32 %v6975_v17, %v6286_v52  ;;  %v3526_v20 = vpack.c.bf16 %v10825_v58, %v10825_v58  ;;  %v3527_v58 = vpack.c.bf16 %v10834_v49, %v10834_v49 }
 0x42b   :  { %v10905_v5 = vadd.f32 %v10686_v22, %v4230_v26  ;;  %3585 = vst [vmem:[#allocation5 + $0x98] sm:$0xf] %v10898_v50  ;;  %v6980_v59 = vld [vmem:[#allocation5 + $0x70] sm:$0xf0] }
 0x42c   :  { %3586 = vst [vmem:[#allocation5 + $0xbc] sm:$0xf] %v3570_v18  ;;  %v6976_v41 = vld [vmem:[#allocation5 + $0x54] sm:$0xf]  ;;  %v6293_v43 = vor.u32 %v6980_v59, %v6292_v46 }
 0x42d   :  { %v4248_v57 = vadd.f32 %v4247_v63, %v10905_v5  ;;  %3633 = vst [vmem:[#allocation5 + $0x9c] sm:$0xf] %v3474_v31  ;;  %v6294_v4 = vld [vmem:[#allocation5 + $0x74] sm:$0xf0]  ;;  %v3606_v63 = vld [vmem:[#allocation3 + $0xc0] sm:$0xff]  ;;  %v3464_v26 = vld [vmem:[#allocation3 + $0xd0] sm:$0xff] }
 0x42e   :  { %3634 = vst [vmem:[#allocation5 + $0xc0] sm:$0xf] %v3618_v33  ;;  %v3558_v14 = vld [vmem:[#allocation3 + $0xb2] sm:$0xff]  ;;  %v6297_v60 = vor.u32 %v6976_v41, %v6294_v4  ;;  %v10932_v56 = vpack.c.bf16 %v3464_v26, %v3464_v26 }
 0x42f   :  { %3491 = vst [vmem:[#allocation5 + $0xd8] sm:$0xf] %v3618_v33  ;;  %v3574_v23 = vpack.c.bf16 %v3558_v14, %v3558_v14  ;;  %v3622_v33 = vpack.c.bf16 %v3606_v63, %v3606_v63  ;;  %v6320_v2 = vld [vmem:[#allocation5 + $0x90] sm:$0xf]  ;;  %v6988_v3 = vld [vmem:[#allocation5 + $0xb0] sm:$0xf0] }
 0x430   :  { %3492 = vst [vmem:[#allocation5 + $0xfc] sm:$0xf] %v10909_v36  ;;  %v6984_v17 = vld [vmem:[#allocation5 + $0x94] sm:$0xf]  ;;  %v3513_v14 = vld [vmem:[#allocation3 + $0xe1] sm:$0xff] }
 0x431   :  { %3539 = vst [vmem:[#allocation5 + $0xdc] sm:$0xf] %v3523_v12  ;;  %v3559_v12 = vld [vmem:[#allocation3 + $0xc2] sm:$0xff]  ;;  %v6322_v52 = vld [vmem:[#allocation5 + $0xb4] sm:$0xf0]  ;;  %v10990_v63 = vpack.c.bf16 %v3513_v14, %v3513_v14 }
 0x432   :  { %v4232_v62 = vpop.f32.mrf.mxu1  ;;  %3540 = vst [vmem:[#allocation5 + $0x100] sm:$0xf] %v3524_v27  ;;  %v3560_v27 = vld [vmem:[#allocation3 + $0xd2] sm:$0xff]  ;;  %v10938_v1 = vpack.c.bf16 %v3559_v12, %v3559_v12 }
 0x433   :  { %v10921_v29 = vadd.f32 %v10686_v22, %v4232_v62  ;;  %5176 = vmatmul.bf16.gmra.mxu2 %v6285_v7  ;;  %3587 = vst [vmem:[#allocation5 + $0xe0] sm:$0xf] %v10915_v10  ;;  %v3525_v22 = vpack.c.bf16 %v3509_v45, %v3509_v45  ;;  %v6321_v7 = vor.u32 %v6988_v3, %v6320_v2  ;;  %v6328_v46 = vld [vmem:[#allocation5 + $0x98] sm:$0xf]  ;;  %v6989_v59 = vld [vmem:[#allocation5 + $0xb8] sm:$0xf0] }
 0x434   :  { %5225 = vmatmul.bf16.gmra.mxu3 %v6289_v48  ;;  %3588 = vst [vmem:[#allocation5 + $0x104] sm:$0xf] %v10918_v30  ;;  %v3576_v49 = vpack.c.bf16 %v3560_v27, %v3560_v27  ;;  %v6325_v62 = vor.u32 %v6984_v17, %v6322_v52  ;;  %v6985_v45 = vld [vmem:[#allocation5 + $0x9c] sm:$0xf]  ;;  %v6329_v4 = vor.u32 %v6989_v59, %v6328_v46  ;;  %v3468_v2 = vld [vmem:[#allocation3 + $0x110] sm:$0xff]  ;;  %v3515_v3 = vld [vmem:[#allocation3 + $0x101] sm:$0xff] }
 0x435   :  { %v4249_v31 = vadd.f32 %v4248_v57, %v10921_v29  ;;  %3635 = vst [vmem:[#allocation5 + $0xe4] sm:$0xf] %v10909_v36  ;;  %v6330_v41 = vld [vmem:[#allocation5 + $0xbc] sm:$0xf0]  ;;  %v11006_v59 = vpack.c.bf16 %v3468_v2, %v3468_v2 }
 0x436   :  { %5274 = vmatmul.bf16.gmra.mxu0 %v6293_v43  ;;  %3636 = vst [vmem:[#allocation5 + $0x108] sm:$0xf] %v10923_v44  ;;  %v6356_v52 = vld [vmem:[#allocation5 + $0xd8] sm:$0xf] }
 0x437   :  { %v4250_v28 = vrot.slane %v4249_v31, 4  ;;  %3493 = vst [vmem:[#allocation5 + $0x120] sm:$0xf] %v3477_v15 }
 0x438   :  { %5323 = vmatmul.bf16.gmra.mxu1 %v6297_v60  ;;  %3494 = vst [vmem:[#allocation5 + $0x144] sm:$0xf] %v3478_v34  ;;  %v6333_v60 = vor.u32 %v6985_v45, %v6330_v41 }
 0x439   :  { %v4251_v18 = vadd.f32 %v4250_v28, %v4249_v31  ;;  %3541 = vst [vmem:[#allocation5 + $0x124] sm:$0xf] %v3525_v22  ;;  %v3514_v28 = vld [vmem:[#allocation3 + $0xf1] sm:$0xff]  ;;  %v6358_v46 = vld [vmem:[#allocation5 + $0xfc] sm:$0xf0] }
 0x43a   :  { %3542 = vst [vmem:[#allocation5 + $0x148] sm:$0xf] %v3526_v20  ;;  %v6364_v45 = vld [vmem:[#allocation5 + $0xe0] sm:$0xf] }
 0x43b   :  { %v4252_v32 = vrot.slane %v4251_v18, 2  ;;  %3589 = vst [vmem:[#allocation5 + $0x128] sm:$0xf] %v3573_v55  ;;  %v3561_v55 = vld [vmem:[#allocation3 + $0xe2] sm:$0xff] }
 0x43c   :  { %3590 = vst [vmem:[#allocation5 + $0x14c] sm:$0xf] %v3574_v23  ;;  %v10994_v26 = vpack.c.bf16 %v3561_v55, %v3561_v55  ;;  %v6998_v41 = vld [vmem:[#allocation5 + $0x100] sm:$0xf0] }
 0x43d   :  { %v4253_v57 = vadd.f32 %v4252_v32, %v4251_v18  ;;  %3637 = vst [vmem:[#allocation5 + $0x12c] sm:$0xf] %v3478_v34  ;;  %v3466_v34 = vld [vmem:[#allocation3 + $0xf0] sm:$0xff]  ;;  %v3610_v32 = vld [vmem:[#allocation3 + $0x100] sm:$0xff] }
 0x43e   :  { %3638 = vst [vmem:[#allocation5 + $0x150] sm:$0xf] %v3622_v33  ;;  %v3482_v20 = vpack.c.bf16 %v3466_v34, %v3466_v34  ;;  %v3562_v18 = vld [vmem:[#allocation3 + $0xf2] sm:$0xff]  ;;  %v3612_v55 = vld [vmem:[#allocation3 + $0x120] sm:$0xff] }
 0x43f   :  { %v4254_v42 = vrot.slane %v4253_v57, 1  ;;  %3495 = vst [vmem:[#allocation5 + $0x168] sm:$0xf] %v3622_v33  ;;  %v3628_v2 = vpack.c.bf16 %v3612_v55, %v3612_v55 }
 0x440   :  { %3496 = vst [vmem:[#allocation5 + $0x18c] sm:$0xf] %v10932_v56 }
 0x441   :  { %v4255_v47 = vadd.f32 %v4254_v42, %v4253_v57  ;;  %3543 = vst [vmem:[#allocation5 + $0x16c] sm:$0xf] %v3527_v58  ;;  %v3626_v58 = vpack.c.bf16 %v3610_v32, %v3610_v32  ;;  %v3516_v42 = vld [vmem:[#allocation3 + $0x111] sm:$0xff] }
 0x442   :  { %3544 = vst [vmem:[#allocation5 + $0x190] sm:$0xf] %v3528_v54  ;;  %v3563_v54 = vld [vmem:[#allocation3 + $0x102] sm:$0xff] }
 0x443   :  { %v10942_v48 = vmul.f32 %v4255_v47, %v10535_v13  ;;  %5181 = vmatmul.bf16.gmra.mxu2 %v6321_v7  ;;  %3591 = vst [vmem:[#allocation5 + $0x170] sm:$0xf] %v10938_v1  ;;  %v6997_v47 = vld [vmem:[#allocation5 + $0xf8] sm:$0xf0] }
 0x444   :  { %5230 = vmatmul.bf16.gmra.mxu3 %v6325_v62  ;;  %3592 = vst [vmem:[#allocation5 + $0x194] sm:$0xf] %v3576_v49  ;;  %v6993_v7 = vld [vmem:[#allocation5 + $0xdc] sm:$0xf]  ;;  %v6357_v34 = vor.u32 %v6997_v47, %v6356_v52 }
 0x445   :  { %v10947_v15 = vsub.f32 %v10698_v24, %v10942_v48  ;;  %v10951_v43 = vsub.f32 %v10702_v16, %v10942_v48  ;;  %v10955_v31 = vsub.f32 %v10706_v35, %v10942_v48  ;;  %v10959_v39 = vsub.f32 %v10803_v40, %v10942_v48  ;;  %3639 = vst [vmem:[#allocation5 + $0x174] sm:$0xf] %v10932_v56 }
 0x446   :  { %v10963_v22 = vsub.f32 %v10831_v8, %v10942_v48  ;;  %v3624_v24 = vpack.c.bf16 %v3608_v51, %v3608_v51  ;;  %5279 = vmatmul.bf16.gmra.mxu0 %v6329_v4  ;;  %v10967_v16 = vsub.f32 %v10852_v25, %v10942_v48  ;;  %v10971_v35 = vsub.f32 %v10863_v21, %v10942_v48 }
 0x447   :  { %v10975_v40 = vsub.f32 %v10876_v11, %v10942_v48  ;;  %v10979_v8 = vsub.f32 %v10905_v5, %v10942_v48  ;;  %v10984_v25 = vsub.f32 %v10779_v38, %v10942_v48  ;;  %v4273_v21 = vmul.f32 %v10947_v15, %v10947_v15  ;;  %3498 = vst [vmem:[#allocation5 + $0x1d4] sm:$0xf] %v3482_v20 }
 0x448   :  { %5328 = vmatmul.bf16.gmra.mxu1 %v6333_v60  ;;  %v4274_v11 = vmul.f32 %v10951_v43, %v10951_v43  ;;  %3640 = vst [vmem:[#allocation5 + $0x198] sm:$0xf] %v3624_v24  ;;  %v3530_v5 = vpack.c.bf16 %v3514_v28, %v3514_v28  ;;  %v4275_v23 = vmul.f32 %v10955_v31, %v10955_v31 }
 0x449   :  { %3497 = vst [vmem:[#allocation5 + $0x1b0] sm:$0xf] %v3624_v24  ;;  %v3578_v38 = vpack.c.bf16 %v3562_v18, %v3562_v18  ;;  %v10998_v33 = vsub.f32 %v10814_v9, %v10942_v48  ;;  %v4276_v57 = vmul.f32 %v10984_v25, %v10984_v25  ;;  %v4277_v27 = vmul.f32 %v10959_v39, %v10959_v39  ;;  %v3564_v9 = vld [vmem:[#allocation3 + $0x112] sm:$0xff]  ;;  %v6994_v18 = vld [vmem:[#allocation5 + $0xe4] sm:$0xf] }
 0x44a   :  { %v4289_v12 = vadd.f32 %v4274_v11, %v4273_v21  ;;  %3545 = vst [vmem:[#allocation5 + $0x1b4] sm:$0xf] %v10990_v63  ;;  %v11010_v49 = vsub.f32 %v10844_v6, %v10942_v48  ;;  %v11014_v4 = vpack.c.bf16 %v3515_v3, %v3515_v3  ;;  %v11016_v24 = vpack.c.bf16 %v3516_v42, %v3516_v42  ;;  %v3645_v21 = vld [vmem:[#allocation3 + $0x11] sm:$0xff] }
 0x44b   :  { %3546 = vst [vmem:[#allocation5 + $0x1d8] sm:$0xf] %v3530_v5  ;;  %v4278_v62 = vmul.f32 %v10998_v33, %v10998_v33  ;;  %v4279_v14 = vmul.f32 %v10963_v22, %v10963_v22  ;;  %v6361_v28 = vor.u32 %v6993_v7, %v6358_v46  ;;  %v11020_v6 = vpack.c.bf16 %v3563_v54, %v3563_v54 }
 0x44c   :  { %v4290_v17 = vadd.f32 %v4289_v12, %v4275_v23  ;;  %3593 = vst [vmem:[#allocation5 + $0x1b8] sm:$0xf] %v10994_v26  ;;  %v6365_v11 = vor.u32 %v6998_v41, %v6364_v45  ;;  %v3580_v5 = vpack.c.bf16 %v3564_v9, %v3564_v9  ;;  %v11025_v23 = vsub.f32 %v10859_v0, %v10942_v48  ;;  %v3693_v12 = vld [vmem:[#allocation3 + $0x12] sm:$0xff] }
 0x44d   :  { %3594 = vst [vmem:[#allocation5 + $0x1dc] sm:$0xf] %v3578_v38  ;;  %v4280_v32 = vmul.f32 %v11010_v49, %v11010_v49  ;;  %v4281_v3 = vmul.f32 %v10967_v16, %v10967_v16  ;;  %v11036_v52 = vsub.f32 %v10869_v53, %v10942_v48  ;;  %v4283_v7 = vmul.f32 %v10971_v35, %v10971_v35 }
 0x44e   :  { %v4291_v51 = vadd.f32 %v4290_v17, %v4276_v57  ;;  %3641 = vst [vmem:[#allocation5 + $0x1bc] sm:$0xf] %v3482_v20  ;;  %v6366_v20 = vld [vmem:[#allocation5 + $0x104] sm:$0xf0]  ;;  %v3742_v17 = vld [vmem:[#allocation3 + $0x20] sm:$0xff]  ;;  %v4282_v47 = vmul.f32 %v11025_v23, %v11025_v23  ;;  %v11045_v53 = vsub.f32 %v10891_v61, %v10942_v48  ;;  %v4285_v55 = vmul.f32 %v10975_v40, %v10975_v40 }
 0x44f   :  { %3642 = vst [vmem:[#allocation5 + $0x1e0] sm:$0xf] %v3626_v58  ;;  %v3646_v57 = vld [vmem:[#allocation3 + $0x21] sm:$0xff]  ;;  %v6369_v0 = vor.u32 %v6994_v18, %v6366_v20  ;;  %v4284_v45 = vmul.f32 %v11036_v52, %v11036_v52 }
 0x450   :  { %v4292_v60 = vadd.f32 %v4291_v51, %v4277_v27  ;;  %3499 = vst [vmem:[#allocation5 + $0x1f8] sm:$0xf] %v3626_v58  ;;  %v3661_v58 = vpack.c.bf16 %v3645_v21, %v3645_v21  ;;  %v3662_v54 = vpack.c.bf16 %v3646_v57, %v3646_v57  ;;  %v3709_v27 = vpack.c.bf16 %v3693_v12, %v3693_v12  ;;  %v3791_v51 = vld [vmem:[#allocation3 + $0x31] sm:$0xff]  ;;  %v7002_v18 = vld [vmem:[#allocation5 + $0x124] sm:$0xf] }
 0x451   :  { %3500 = vst [vmem:[#allocation5 + $0x21c] sm:$0xf] %v11006_v59  ;;  %v6394_v61 = vld [vmem:[#allocation5 + $0x144] sm:$0xf0]  ;;  %v3745_v12 = vld [vmem:[#allocation3 + $0x50] sm:$0xff] }
 0x452   :  { %v4293_v38 = vadd.f32 %v4292_v60, %v4278_v62  ;;  %3547 = vst [vmem:[#allocation5 + $0x1fc] sm:$0xf] %v11014_v4  ;;  %v3758_v62 = vpack.c.bf16 %v3742_v17, %v3742_v17  ;;  %v3807_v60 = vpack.c.bf16 %v3791_v51, %v3791_v51  ;;  %v6402_v17 = vld [vmem:[#allocation5 + $0x14c] sm:$0xf0] }
 0x453   :  { %5186 = vmatmul.bf16.gmra.mxu2 %v6357_v34  ;;  %3548 = vst [vmem:[#allocation5 + $0x220] sm:$0xf] %v11016_v24  ;;  %v3648_v34 = vld [vmem:[#allocation3 + $0x41] sm:$0xff]  ;;  %v3697_v51 = vld [vmem:[#allocation3 + $0x52] sm:$0xff] }
 0x454   :  { %5235 = vmatmul.bf16.gmra.mxu3 %v6361_v28  ;;  %v4294_v42 = vadd.f32 %v4293_v38, %v4279_v14  ;;  %3595 = vst [vmem:[#allocation5 + $0x200] sm:$0xf] %v11020_v6  ;;  %v6392_v14 = vld [vmem:[#allocation5 + $0x120] sm:$0xf]  ;;  %v3695_v28 = vld [vmem:[#allocation3 + $0x32] sm:$0xff]  ;;  %v3664_v20 = vpack.c.bf16 %v3648_v34, %v3648_v34 }
 0x455   :  { %3596 = vst [vmem:[#allocation5 + $0x224] sm:$0xf] %v3580_v5  ;;  %v3744_v5 = vld [vmem:[#allocation3 + $0x40] sm:$0xff]  ;;  %v11059_v57 = vpack.c.bf16 %v3695_v28, %v3695_v28  ;;  %v11067_v28 = vpack.c.bf16 %v3697_v51, %v3697_v51 }
 0x456   :  { %5284 = vmatmul.bf16.gmra.mxu0 %v6365_v11  ;;  %v4295_v9 = vadd.f32 %v4294_v42, %v4280_v32  ;;  %3643 = vst [vmem:[#allocation5 + $0x204] sm:$0xf] %v11006_v59  ;;  %v7006_v11 = vld [vmem:[#allocation5 + $0x140] sm:$0xf0]  ;;  %v11055_v32 = vsub.f32 %v10921_v29, %v10942_v48  ;;  %v3760_v29 = vpack.c.bf16 %v3744_v5, %v3744_v5  ;;  %v3793_v48 = vld [vmem:[#allocation3 + $0x51] sm:$0xff] }
 0x457   :  { %3644 = vst [vmem:[#allocation5 + $0x228] sm:$0xf] %v3628_v2  ;;  %v6393_v2 = vor.u32 %v7006_v11, %v6392_v14  ;;  %v3746_v14 = vld [vmem:[#allocation3 + $0x60] sm:$0xff]  ;;  %v3795_v11 = vld [vmem:[#allocation3 + $0x71] sm:$0xff]  ;;  %v7011_v5 = vld [vmem:[#allocation5 + $0x16c] sm:$0xf] }
 0x458   :  { %5333 = vmatmul.bf16.gmra.mxu1 %v6369_v0  ;;  %v4296_v46 = vadd.f32 %v4295_v9, %v4281_v3  ;;  %3677 = vst [vmem:[#allocation5 + $0x10] sm:$0xf] %v3661_v58  ;;  %v6400_v58 = vld [vmem:[#allocation5 + $0x128] sm:$0xf]  ;;  %v7007_v3 = vld [vmem:[#allocation5 + $0x148] sm:$0xf0]  ;;  %v6397_v0 = vor.u32 %v7002_v18, %v6394_v61 }
 0x459   :  { %3678 = vst [vmem:[#allocation5 + $0x34] sm:$0xf] %v3662_v54  ;;  %v6428_v18 = vld [vmem:[#allocation5 + $0x168] sm:$0xf]  ;;  %v7015_v61 = vld [vmem:[#allocation5 + $0x188] sm:$0xf0] }
 0x45a   :  { %v4297_v41 = vadd.f32 %v4296_v46, %v4282_v47  ;;  %3725 = vst [vmem:[#allocation5 + $0x14] sm:$0xf] %v3709_v27  ;;  %v7003_v27 = vld [vmem:[#allocation5 + $0x12c] sm:$0xf]  ;;  %v4288_v47 = vmul.f32 %v11055_v32, %v11055_v32  ;;  %v3650_v46 = vld [vmem:[#allocation3 + $0x61] sm:$0xff] }
 0x45b   :  { %3726 = vst [vmem:[#allocation5 + $0x38] sm:$0xf] %v10886_v19  ;;  %v4286_v19 = vmul.f32 %v11045_v53, %v11045_v53  ;;  %v3666_v34 = vpack.c.bf16 %v3650_v46, %v3650_v46  ;;  %v7012_v46 = vld [vmem:[#allocation5 + $0x174] sm:$0xf] }
 0x45c   :  { %v4298_v21 = vadd.f32 %v4297_v41, %v4283_v7  ;;  %3774 = vst [vmem:[#allocation5 + $0x18] sm:$0xf] %v3758_v62  ;;  %v6401_v7 = vor.u32 %v7007_v3, %v6400_v58  ;;  %v3809_v62 = vpack.c.bf16 %v3793_v48, %v3793_v48  ;;  %v6405_v41 = vor.u32 %v7003_v27, %v6402_v17  ;;  %v7093_v58 = vld [vmem:[%s11419_s6 + $0x1b8] sm:$0xff]  ;;  %v3652_v3 = vld [vmem:[#allocation3 + $0x81] sm:$0xff]  ;;  %v7016_v48 = vld [vmem:[#allocation5 + $0x190] sm:$0xf0] }
 0x45d   :  { %3775 = vst [vmem:[#allocation5 + $0x3c] sm:$0xf] %v10879_v37  ;;  %v4287_v37 = vmul.f32 %v10979_v8, %v10979_v8  ;;  %5457 = vmatpush.bf16.msra.mxu0 %v7093_v58  ;;  %v7092_v27 = vld [vmem:[%s11419_s6 + $0x1b0] sm:$0xff] }
 0x45e   :  { %v4299_v38 = vadd.f32 %v4298_v21, %v4284_v45  ;;  %3822 = vst [vmem:[#allocation5 + $0x1c] sm:$0xf] %v3662_v54  ;;  %v3761_v54 = vpack.c.bf16 %v3745_v12, %v3745_v12  ;;  %v3762_v21 = vpack.c.bf16 %v3746_v14, %v3746_v14  ;;  %v6430_v12 = vld [vmem:[#allocation5 + $0x18c] sm:$0xf0]  ;;  %v7091_v14 = vld [vmem:[%s11419_s6 + $0x1a8] sm:$0xff] }
 0x45f   :  { %3823 = vst [vmem:[#allocation5 + $0x40] sm:$0xf] %v3807_v60  ;;  %v3701_v58 = vld [vmem:[#allocation3 + $0xb2] sm:$0xff] }
 0x460   :  { %v4300_v42 = vadd.f32 %v4299_v38, %v4285_v55  ;;  %3679 = vst [vmem:[#allocation5 + $0x58] sm:$0xf] %v3807_v60 }
 0x461   :  { %3680 = vst [vmem:[#allocation5 + $0x7c] sm:$0xf] %v3664_v20  ;;  %5458 = vmatpush.bf16.msra.mxu0 %v7092_v27  ;;  %v7020_v27 = vld [vmem:[#allocation5 + $0x1b4] sm:$0xf] }
 0x462   :  { %v4301_v9 = vadd.f32 %v4300_v42, %v4286_v19  ;;  %3727 = vst [vmem:[#allocation5 + $0x5c] sm:$0xf] %v11059_v57  ;;  %v3811_v19 = vpack.c.bf16 %v3795_v11, %v3795_v11  ;;  %v6436_v42 = vld [vmem:[#allocation5 + $0x170] sm:$0xf] }
 0x463   :  { %5191 = vmatmul.bf16.gmra.mxu2 %v6393_v2  ;;  %3728 = vst [vmem:[#allocation5 + $0x80] sm:$0xf] %v10898_v50  ;;  %v7085_v2 = vld [vmem:[%s11419_s6 + $0x178] sm:$0xff] }
 0x464   :  { %5240 = vmatmul.bf16.gmra.mxu3 %v6397_v0  ;;  %v4302_v45 = vadd.f32 %v4301_v9, %v4287_v37  ;;  %3776 = vst [vmem:[#allocation5 + $0x60] sm:$0xf] %v3760_v29  ;;  %v7073_v37 = vld [vmem:[%s11419_s6 + $0x118] sm:$0xff]  ;;  %v6429_v29 = vor.u32 %v7015_v61, %v6428_v18  ;;  %v3668_v9 = vpack.c.bf16 %v3652_v3, %v3652_v3 }
 0x465   :  { %3777 = vst [vmem:[#allocation5 + $0x84] sm:$0xf] %v3761_v54  ;;  %v7101_v0 = vld [vmem:[%s11419_s6 + $0x1f8] sm:$0xff]  ;;  %5408 = vmatpush.bf16.msra.mxu3 %v7085_v2  ;;  %v6433_v54 = vor.u32 %v7011_v5, %v6430_v12  ;;  %v7071_v5 = vld [vmem:[%s11419_s6 + $0x108] sm:$0xff]  ;;  %5459 = vmatpush.bf16.msra.mxu0 %v7091_v14  ;;  %v7098_v12 = vld [vmem:[%s11419_s6 + $0x1e0] sm:$0xff] }
 0x466   :  { %5289 = vmatmul.bf16.gmra.mxu0 %v6401_v7  ;;  %v4303_v60 = vadd.f32 %v4302_v45, %v4288_v47  ;;  %3824 = vst [vmem:[#allocation5 + $0x64] sm:$0xf] %v3664_v20  ;;  %v7074_v20 = vld [vmem:[%s11419_s6 + $0x120] sm:$0xff]  ;;  %5506 = vmatpush.bf16.msra.mxu1 %v7101_v0  ;;  %v7100_v47 = vld [vmem:[%s11419_s6 + $0x1f0] sm:$0xff]  ;;  %v6437_v45 = vor.u32 %v7016_v48, %v6436_v42  ;;  %v7081_v48 = vld [vmem:[%s11419_s6 + $0x158] sm:$0xff] }
 0x467   :  { %3825 = vst [vmem:[#allocation5 + $0x88] sm:$0xf] %v3809_v62  ;;  %5362 = vmatpush.bf16.msrb.mxu2 %v7074_v20  ;;  %v3700_v7 = vld [vmem:[#allocation3 + $0x82] sm:$0xff]  ;;  %v3797_v18 = vld [vmem:[#allocation3 + $0x91] sm:$0xff] }
 0x468   :  { %5338 = vmatmul.bf16.gmra.mxu1 %v6405_v41  ;;  %v4304_v55 = vrot.slane %v4303_v60, 4  ;;  %3681 = vst [vmem:[#allocation5 + $0xa0] sm:$0xf] %v3809_v62  ;;  %v6438_v62 = vld [vmem:[#allocation5 + $0x194] sm:$0xf0]  ;;  %v7072_v41 = vld [vmem:[%s11419_s6 + $0x110] sm:$0xff]  ;;  %v3813_v2 = vpack.c.bf16 %v3797_v18, %v3797_v18 }
 0x469   :  { %3682 = vst [vmem:[#allocation5 + $0xc4] sm:$0xf] %v3666_v34  ;;  %v6441_v11 = vor.u32 %v7012_v46, %v6438_v62  ;;  %v3654_v20 = vld [vmem:[#allocation3 + $0xc1] sm:$0xff]  ;;  %v6472_v62 = vld [vmem:[#allocation5 + $0x1b8] sm:$0xf] }
 0x46a   :  { %v4305_v50 = vadd.f32 %v4304_v55, %v4303_v60  ;;  %3729 = vst [vmem:[#allocation5 + $0xa4] sm:$0xf] %v11067_v28  ;;  %v11105_v60 = vpack.c.bf16 %v3700_v7, %v3700_v7  ;;  %v3749_v55 = vld [vmem:[#allocation3 + $0x90] sm:$0xff]  ;;  %5507 = vmatpush.bf16.msra.mxu1 %v7100_v47  ;;  %v3670_v42 = vpack.c.bf16 %v3654_v20, %v3654_v20  ;;  %v3750_v0 = vld [vmem:[#allocation3 + $0xc0] sm:$0xff]  ;;  %v7095_v20 = vld [vmem:[%s11419_s6 + $0x1c8] sm:$0xff] }
 0x46b   :  { %3730 = vst [vmem:[#allocation5 + $0xc8] sm:$0xf] %v10915_v10  ;;  %5363 = vmatpush.bf16.msrb.mxu2 %v7073_v37  ;;  %v7070_v37 = vld [vmem:[%s11419_s6 + $0x100] sm:$0xff]  ;;  %v3766_v47 = vpack.c.bf16 %v3750_v0, %v3750_v0  ;;  %v3799_v7 = vld [vmem:[#allocation3 + $0xd1] sm:$0xff] }
 0x46c   :  { %v4306_v38 = vrot.slane %v4305_v50, 2  ;;  %3778 = vst [vmem:[#allocation5 + $0xa8] sm:$0xf] %v3762_v21  ;;  %v3703_v18 = vld [vmem:[#allocation3 + $0xd2] sm:$0xff]  ;;  %v7086_v0 = vld [vmem:[%s11419_s6 + $0x180] sm:$0xff] }
 0x46d   :  { %3779 = vst [vmem:[#allocation5 + $0xcc] sm:$0xf] %v10909_v36  ;;  %v7084_v36 = vld [vmem:[%s11419_s6 + $0x170] sm:$0xff] }
 0x46e   :  { %v4307_v10 = vadd.f32 %v4306_v38, %v4305_v50  ;;  %3826 = vst [vmem:[#allocation5 + $0xac] sm:$0xf] %v3666_v34  ;;  %5409 = vmatpush.bf16.msra.mxu3 %v7084_v36  ;;  %v7083_v34 = vld [vmem:[%s11419_s6 + $0x168] sm:$0xff]  ;;  %v7082_v38 = vld [vmem:[%s11419_s6 + $0x160] sm:$0xff]  ;;  %v3717_v36 = vpack.c.bf16 %v3701_v58, %v3701_v58 }
 0x46f   :  { %3827 = vst [vmem:[#allocation5 + $0xd0] sm:$0xf] %v3811_v19  ;;  %v7099_v50 = vld [vmem:[%s11419_s6 + $0x1e8] sm:$0xff]  ;;  %5364 = vmatpush.bf16.msrb.mxu2 %v7072_v41  ;;  %v7080_v41 = vld [vmem:[%s11419_s6 + $0x150] sm:$0xff] }
 0x470   :  { %v4308_v17 = vrot.slane %v4307_v10, 1  ;;  %3683 = vst [vmem:[#allocation5 + $0xe8] sm:$0xf] %v3811_v19  ;;  %v3653_v19 = vld [vmem:[#allocation3 + $0xb1] sm:$0xff]  ;;  %5508 = vmatpush.bf16.msra.mxu1 %v7099_v50  ;;  %v6474_v50 = vld [vmem:[#allocation5 + $0x1dc] sm:$0xf0] }
 0x471   :  { %3684 = vst [vmem:[#allocation5 + $0x10c] sm:$0xf] %v3668_v9  ;;  %v3669_v3 = vpack.c.bf16 %v3653_v19, %v3653_v19  ;;  %v7079_v19 = vld [vmem:[%s11419_s6 + $0x148] sm:$0xff] }
 0x472   :  { %v4309_v51 = vadd.f32 %v4308_v17, %v4307_v10  ;;  %3731 = vst [vmem:[#allocation5 + $0xec] sm:$0xf] %v10918_v30  ;;  %5410 = vmatpush.bf16.msra.mxu3 %v7083_v34  ;;  %v7090_v30 = vld [vmem:[%s11419_s6 + $0x1a0] sm:$0xff]  ;;  %v6464_v10 = vld [vmem:[#allocation5 + $0x1b0] sm:$0xf]  ;;  %v7097_v17 = vld [vmem:[%s11419_s6 + $0x1d8] sm:$0xff] }
 0x473   :  { %5196 = vmatmul.bf16.gmra.mxu2 %v6429_v29  ;;  %3732 = vst [vmem:[#allocation5 + $0x110] sm:$0xf] %v11105_v60  ;;  %v7024_v29 = vld [vmem:[#allocation5 + $0x1d0] sm:$0xf0]  ;;  %5460 = vmatpush.bf16.msra.mxu0 %v7090_v30 }
 0x474   :  { %5245 = vmatmul.bf16.gmra.mxu3 %v6433_v54  ;;  %v4310_v21 = vmul.f32 %v4309_v51, %v10535_v13  ;;  %v3765_v13 = vpack.c.bf16 %v3749_v55, %v3749_v55  ;;  %3780 = vst [vmem:[#allocation5 + $0xf0] sm:$0xf] %v10923_v44  ;;  %5365 = vmatpush.bf16.msrb.mxu2 %v7071_v5  ;;  %v7089_v44 = vld [vmem:[%s11419_s6 + $0x198] sm:$0xff]  ;;  %v7088_v34 = vld [vmem:[%s11419_s6 + $0x190] sm:$0xff] }
 0x475   :  { %3828 = vst [vmem:[#allocation5 + $0xf4] sm:$0xf] %v3668_v9  ;;  %5509 = vmatpush.bf16.msra.mxu1 %v7098_v12  ;;  %v6466_v54 = vld [vmem:[#allocation5 + $0x1d4] sm:$0xf0]  ;;  %v6465_v51 = vor.u32 %v7024_v29, %v6464_v10  ;;  %v7021_v55 = vld [vmem:[#allocation5 + $0x1bc] sm:$0xf] }
 0x476   :  { %5294 = vmatmul.bf16.gmra.mxu0 %v6437_v45  ;;  %v11112_v61 = vadd.f32 1e-05, %v4310_v21  ;;  %3781 = vst [vmem:[#allocation5 + $0x114] sm:$0xf] %v3765_v13  ;;  %5411 = vmatpush.bf16.msra.mxu3 %v7082_v38  ;;  %v7025_v45 = vld [vmem:[#allocation5 + $0x1d8] sm:$0xf0]  ;;  %v6469_v14 = vor.u32 %v7020_v27, %v6466_v54  ;;  %v6477_v30 = vor.u32 %v7021_v55, %v6474_v50 }
 0x477   :  { %3829 = vst [vmem:[#allocation5 + $0x118] sm:$0xf] %v3813_v2  ;;  %5461 = vmatpush.bf16.msra.mxu0 %v7089_v44  ;;  %v7096_v21 = vld [vmem:[%s11419_s6 + $0x1d0] sm:$0xff]  ;;  %v6473_v13 = vor.u32 %v7025_v45, %v6472_v62  ;;  %v3752_v38 = vld [vmem:[#allocation3 + $0xe0] sm:$0xff]  ;;  %v6500_v54 = vld [vmem:[#allocation5 + $0x1f8] sm:$0xf] }
 0x478   :  { %5343 = vmatmul.bf16.gmra.mxu1 %v6441_v11  ;;  %7159 = vrsqrt.f32 %v11112_v61  ;;  %3685 = vst [vmem:[#allocation5 + $0x130] sm:$0xf] %v3669_v3  ;;  %5366 = vmatpush.bf16.msrb.mxu2 %v7070_v37  ;;  %v3815_v11 = vpack.c.bf16 %v3799_v7, %v3799_v7  ;;  %v3753_v12 = vld [vmem:[#allocation3 + $0xf0] sm:$0xff]  ;;  %v3800_v2 = vld [vmem:[#allocation3 + $0xe1] sm:$0xff]  ;;  %v7109_v3 = vld [vmem:[%s11419_s6 + $0x238] sm:$0xff]  ;;  %v3768_v10 = vpack.c.bf16 %v3752_v38, %v3752_v38  ;;  %vm4319_vm9 = vweird.f32 %v11112_v61 }
 0x479   :  { %3686 = vst [vmem:[#allocation5 + $0x154] sm:$0xf] %v3670_v42  ;;  %5510 = vmatpush.bf16.msra.mxu1 %v7097_v17  ;;  %v3801_v37 = vld [vmem:[#allocation3 + $0xf1] sm:$0xff]  ;;  %v3769_v29 = vpack.c.bf16 %v3753_v12, %v3753_v12  ;;  %v3816_v44 = vpack.c.bf16 %v3800_v2, %v3800_v2  ;;  %v7029_v62 = vld [vmem:[#allocation5 + $0x1fc] sm:$0xf]  ;;  %v3708_v38 = vld [vmem:[#allocation3 + $0x122] sm:$0xff] }
 0x47a   :  { %5412 = vmatpush.bf16.msra.mxu3 %v7081_v48  ;;  %3733 = vst [vmem:[#allocation5 + $0x134] sm:$0xf] %v3717_v36  ;;  %v7094_v48 = vld [vmem:[%s11419_s6 + $0x1c0] sm:$0xff]  ;;  %v3817_v36 = vpack.c.bf16 %v3801_v37, %v3801_v37  ;;  %v3705_v27 = vld [vmem:[#allocation3 + $0xf2] sm:$0xff]  ;;  %v6510_v50 = vld [vmem:[#allocation5 + $0x224] sm:$0xf0] }
 0x47b   :  { %3734 = vst [vmem:[#allocation5 + $0x158] sm:$0xf] %v10938_v1  ;;  %5462 = vmatpush.bf16.msra.mxu0 %v7088_v34  ;;  %v7087_v1 = vld [vmem:[%s11419_s6 + $0x188] sm:$0xff]  ;;  %v11185_v7 = vpack.c.bf16 %v3705_v27, %v3705_v27  ;;  %v7034_v34 = vld [vmem:[#allocation5 + $0x220] sm:$0xf0]  ;;  %v3757_v2 = vld [vmem:[#allocation3 + $0x130] sm:$0xff] }
 0x47c   :  { %3782 = vst [vmem:[#allocation5 + $0x138] sm:$0xf] %v3766_v47  ;;  %5555 = vmatpush.bf16.msra.mxu2 %v7109_v3  ;;  %v7033_v47 = vld [vmem:[#allocation5 + $0x218] sm:$0xf0]  ;;  %v7108_v3 = vld [vmem:[%s11419_s6 + $0x230] sm:$0xff]  ;;  %v3773_v37 = vpack.c.bf16 %v3757_v2, %v3757_v2 }
 0x47d   :  { %3783 = vst [vmem:[#allocation5 + $0x15c] sm:$0xf] %v10932_v56  ;;  %5511 = vmatpush.bf16.msra.mxu1 %v7096_v21  ;;  %v11166_v56 = vpack.c.bf16 %v3703_v18, %v3703_v18  ;;  %v7030_v21 = vld [vmem:[#allocation5 + $0x204] sm:$0xf]  ;;  %v3707_v18 = vld [vmem:[#allocation3 + $0x112] sm:$0xff] }
 0x47e   :  { %v11141_v46 = vpop.eup %7159  ;;  %5413 = vmatpush.bf16.msra.mxu3 %v7080_v41  ;;  %3830 = vst [vmem:[#allocation5 + $0x13c] sm:$0xf] %v3670_v42  ;;  %v7078_v42 = vld [vmem:[%s11419_s6 + $0x140] sm:$0xff]  ;;  %v11203_v12 = vpack.c.bf16 %v3707_v18, %v3707_v18  ;;  %v6968_v27 = vld [vmem:[#allocation5 + $0x14] sm:$0xf] }
 0x47f   :  { %v4314_v9 = vmul.f32 %v11141_v46, %v11112_v61  ;;  %3831 = vst [vmem:[#allocation5 + $0x160] sm:$0xf] %v3815_v11  ;;  %5463 = vmatpush.bf16.msra.mxu0 %v7087_v1  ;;  %vm4320_vm10 = vweird.f32 %v11141_v46  ;;  %v6501_v61 = vor.u32 %v7033_v47, %v6500_v54  ;;  %v6266_v54 = vld [vmem:[#allocation5 + $0x34] sm:$0xf0]  ;;  %v6973_v41 = vld [vmem:[#allocation5 + $0x38] sm:$0xf0] }
 0x480   :  { %3687 = vst [vmem:[#allocation5 + $0x178] sm:$0xf] %v3815_v11  ;;  %vm11188_vm11 = vmor %vm4319_vm9, %vm4320_vm10  ;;  %v3660_v11 = vld [vmem:[#allocation3 + $0x121] sm:$0xff]  ;;  %5556 = vmatpush.bf16.msra.mxu2 %v7108_v3  ;;  %v3853_v2 = vld [vmem:[#allocation3 + $0x132] sm:$0xff] }
 0x481   :  { %v4315_v5 = vmul.f32 %v11141_v46, %v4314_v9  ;;  %3688 = vst [vmem:[#allocation5 + $0x19c] sm:$0xf] %v10990_v63  ;;  %5512 = vmatpush.bf16.msra.mxu1 %v7095_v20  ;;  %v3754_v63 = vld [vmem:[#allocation3 + $0x100] sm:$0xff] }
 0x482   :  { %5414 = vmatpush.bf16.msra.mxu3 %v7079_v19  ;;  %3735 = vst [vmem:[#allocation5 + $0x17c] sm:$0xf] %v11166_v56  ;;  %v3770_v45 = vpack.c.bf16 %v3754_v63, %v3754_v63  ;;  %v3756_v20 = vld [vmem:[#allocation3 + $0x120] sm:$0xff]  ;;  %v3843_v63 = vld [vmem:[#allocation3 + $0x72] sm:$0xff] }
 0x483   :  { %5201 = vmatmul.bf16.gmra.mxu2 %v6465_v51  ;;  %v4316_v58 = vmul.f32 0.5, %v4315_v5  ;;  %3736 = vst [vmem:[#allocation5 + $0x1a0] sm:$0xf] %v10994_v26  ;;  %5464 = vmatpush.bf16.msra.mxu0 %v7086_v0  ;;  %v6502_v26 = vld [vmem:[#allocation5 + $0x21c] sm:$0xf0] }
 0x484   :  { %5250 = vmatmul.bf16.gmra.mxu3 %v6469_v14  ;;  %3784 = vst [vmem:[#allocation5 + $0x180] sm:$0xf] %v3768_v10  ;;  %v6508_v51 = vld [vmem:[#allocation5 + $0x200] sm:$0xf]  ;;  %v3659_v14 = vld [vmem:[#allocation3 + $0x111] sm:$0xff]  ;;  %v6505_v55 = vor.u32 %v7029_v62, %v6502_v26 }
 0x485   :  { %v4317_v17 = vsub.f32 1.5, %v4316_v58  ;;  %3785 = vst [vmem:[#allocation5 + $0x1a4] sm:$0xf] %v3769_v29  ;;  %5513 = vmatpush.bf16.msra.mxu1 %v7094_v48  ;;  %v4311_v5 = vld [vmem:[%s11422_s9] sm:$0x1]  ;;  %v6509_v19 = vor.u32 %v7034_v34, %v6508_v51  ;;  %v3675_v1 = vpack.c.bf16 %v3659_v14, %v3659_v14  ;;  %v3805_v10 = vld [vmem:[#allocation3 + $0x131] sm:$0xff]  ;;  %v6269_v14 = vor.u32 %v6968_v27, %v6266_v54 }
 0x486   :  { %5299 = vmatmul.bf16.gmra.mxu0 %v6473_v13  ;;  %5415 = vmatpush.bf16.msra.mxu3 %v7078_v42  ;;  %3832 = vst [vmem:[#allocation5 + $0x184] sm:$0xf] %v3816_v44  ;;  %v3838_v42 = vld [vmem:[#allocation3 + $0x22] sm:$0xff]  ;;  %v6264_v29 = vld [vmem:[#allocation5 + $0x10] sm:$0xf] }
 0x487   :  { %3833 = vst [vmem:[#allocation5 + $0x1a8] sm:$0xf] %v3817_v36  ;;  %v4318_v9 = vmul.f32 %v11141_v46, %v4317_v17  ;;  %v3840_v0 = vld [vmem:[#allocation3 + $0x42] sm:$0xff]  ;;  %v3854_v48 = vpack.c.bf16 %v3838_v42, %v3838_v42  ;;  %v6972_v44 = vld [vmem:[#allocation5 + $0x30] sm:$0xf0] }
 0x488   :  { %5348 = vmatmul.bf16.gmra.mxu1 %v6477_v30  ;;  %3689 = vst [vmem:[#allocation5 + $0x1c0] sm:$0xf] %v3817_v36  ;;  %v3676_v30 = vpack.c.bf16 %v3660_v11, %v3660_v11  ;;  %v3842_v36 = vld [vmem:[#allocation3 + $0x62] sm:$0xff]  ;;  %v3856_v17 = vpack.c.bf16 %v3840_v0, %v3840_v0  ;;  %v11220_v62 = vld [vmem:[%s11423_s10] ss:$0 sm:$0xff]  ;;  %v3845_v51 = vld [vmem:[#allocation3 + $0x92] sm:$0xff] }
 0x489   :  { %3690 = vst [vmem:[#allocation5 + $0x1e4] sm:$0xf] %v11014_v4  ;;  %v4322_v13 = vsel %vm11188_vm11, %v11141_v46, %v4318_v9  ;;  %v11206_v46 = vpack.c.bf16 %v3708_v38, %v3708_v38  ;;  %v6272_v26 = vld [vmem:[#allocation5 + $0x18] sm:$0xf]  ;;  %v3858_v9 = vpack.c.bf16 %v3842_v36, %v3842_v36  ;;  %v3846_v34 = vld [vmem:[#allocation3 + $0xc2] sm:$0xff] }
 0x48a   :  { %3737 = vst [vmem:[#allocation5 + $0x1c4] sm:$0xf] %v11185_v7  ;;  %v4323_v58 = vmul.f32 %v4322_v13, %v4311_v5  ;;  %v3848_v18 = vld [vmem:[#allocation3 + $0xe2] sm:$0xff]  ;;  %v6273_v5 = vor.u32 %v6973_v41, %v6272_v26  ;;  %v3862_v13 = vpack.c.bf16 %v3846_v34, %v3846_v34  ;;  %v6981_v0 = vld [vmem:[#allocation5 + $0x78] sm:$0xf0] }
 0x48b   :  { %3738 = vst [vmem:[#allocation5 + $0x1e8] sm:$0xf] %v11020_v6  ;;  %v6513_v6 = vor.u32 %v7030_v21, %v6510_v50  ;;  %v6274_v21 = vld [vmem:[#allocation5 + $0x3c] sm:$0xf0]  ;;  %v3861_v50 = vpack.c.bf16 %v3845_v51, %v3845_v51  ;;  %v3864_v38 = vpack.c.bf16 %v3848_v18, %v3848_v18  ;;  %v6310_v26 = vld [vmem:[#allocation5 + $0x84] sm:$0xf0] }
 0x48c   :  { %3786 = vst [vmem:[#allocation5 + $0x1c8] sm:$0xf] %v3770_v45  ;;  %v6265_v45 = vor.u32 %v6972_v44, %v6264_v29  ;;  %v6977_v29 = vld [vmem:[#allocation5 + $0x5c] sm:$0xf]  ;;  %v6308_v27 = vld [vmem:[#allocation5 + $0x60] sm:$0xf] }
 0x48d   :  { %3787 = vst [vmem:[#allocation5 + $0x1ec] sm:$0xf] %v11006_v59  ;;  %v3772_v59 = vpack.c.bf16 %v3756_v20, %v3756_v20  ;;  %v6990_v18 = vld [vmem:[#allocation5 + $0xc0] sm:$0xf0] }
 0x48e   :  { %3834 = vst [vmem:[#allocation5 + $0x1cc] sm:$0xf] %v11014_v4  ;;  %v11212_v4 = vperm.slane %v4323_v58, 0 }
 0x48f   :  { %3835 = vst [vmem:[#allocation5 + $0x1f0] sm:$0xf] %v11016_v24  ;;  %v3821_v24 = vpack.c.bf16 %v3805_v10, %v3805_v10  ;;  %v3869_v10 = vpack.c.bf16 %v3853_v2, %v3853_v2 }
 0x490   :  { %3691 = vst [vmem:[#allocation5 + $0x208] sm:$0xf] %v3675_v1  ;;  %v4327_v47 = vmul.f32 %v11212_v4, %v10947_v15  ;;  %v4328_v3 = vmul.f32 %v11212_v4, %v10951_v43  ;;  %v4329_v44 = vmul.f32 %v11212_v4, %v10955_v31 }
 0x491   :  { %3692 = vst [vmem:[#allocation5 + $0x22c] sm:$0xf] %v3676_v30 }
 0x492   :  { %3739 = vst [vmem:[#allocation5 + $0x20c] sm:$0xf] %v11203_v12  ;;  %v4347_v11 = vadd.f32 %v11220_v62, %v4327_v47  ;;  %v6978_v47 = vld [vmem:[#allocation5 + $0x64] sm:$0xf] }
 0x493   :  { %5206 = vmatmul.bf16.gmra.mxu2 %v6501_v61  ;;  %3740 = vst [vmem:[#allocation5 + $0x230] sm:$0xf] %v11206_v46  ;;  %v3859_v61 = vpack.c.bf16 %v3843_v63, %v3843_v63  ;;  %v6313_v51 = vor.u32 %v6978_v47, %v6310_v26  ;;  %v6374_v47 = vld [vmem:[#allocation5 + $0x10c] sm:$0xf0] }
 0x494   :  { %5255 = vmatmul.bf16.gmra.mxu3 %v6505_v55  ;;  %3788 = vst [vmem:[#allocation5 + $0x210] sm:$0xf] %v3772_v59  ;;  %v6969_v55 = vld [vmem:[#allocation5 + $0x1c] sm:$0xf] }
 0x495   :  { %3789 = vst [vmem:[#allocation5 + $0x234] sm:$0xf] %v3773_v37  ;;  %v4348_v37 = vadd.f32 %v11220_v62, %v4328_v3  ;;  %v6346_v3 = vld [vmem:[#allocation5 + $0xcc] sm:$0xf0] }
 0x496   :  { %5304 = vmatmul.bf16.gmra.mxu0 %v6509_v19  ;;  %3836 = vst [vmem:[#allocation5 + $0x214] sm:$0xf] %v3676_v30  ;;  %v6277_v19 = vor.u32 %v6969_v55, %v6274_v21 }
 0x497   :  { %3837 = vst [vmem:[#allocation5 + $0x238] sm:$0xf] %v3821_v24  ;;  %v6300_v24 = vld [vmem:[#allocation5 + $0x58] sm:$0xf] }
 0x498   :  { %5353 = vmatmul.bf16.gmra.mxu1 %v6513_v6  ;;  %3870 = vst [vmem:[#allocation5 + $0x20] sm:$0xf] %v3854_v48  ;;  %v6302_v48 = vld [vmem:[#allocation5 + $0x7c] sm:$0xf0]  ;;  %v6301_v36 = vor.u32 %v6981_v0, %v6300_v24  ;;  %v7105_v0 = vld [vmem:[%s11419_s6 + $0x218] sm:$0xff] }
 0x499   :  { %3871 = vst [vmem:[#allocation5 + $0x44] sm:$0xf] %v11059_v57  ;;  %v3850_v57 = vld [vmem:[#allocation3 + $0x102] sm:$0xff]  ;;  %v6305_v63 = vor.u32 %v6977_v29, %v6302_v48 }
 0x49a   :  { %3872 = vst [vmem:[#allocation5 + $0x68] sm:$0xf] %v3856_v17  ;;  %v3866_v6 = vpack.c.bf16 %v3850_v57, %v3850_v57  ;;  %v6982_v17 = vld [vmem:[#allocation5 + $0x80] sm:$0xf0] }
 0x49b   :  { %3873 = vst [vmem:[#allocation5 + $0x8c] sm:$0xf] %v11067_v28  ;;  %v7107_v28 = vld [vmem:[%s11419_s6 + $0x228] sm:$0xff]  ;;  %v6986_v57 = vld [vmem:[#allocation5 + $0xa4] sm:$0xf] }
 0x49c   :  { %3874 = vst [vmem:[#allocation5 + $0xb0] sm:$0xf] %v3858_v9  ;;  %5557 = vmatpush.bf16.msra.mxu2 %v7107_v28  ;;  %v6309_v9 = vor.u32 %v6982_v17, %v6308_v27  ;;  %v6999_v27 = vld [vmem:[#allocation5 + $0x108] sm:$0xf0] }
 0x49d   :  { %3875 = vst [vmem:[#allocation5 + $0xd4] sm:$0xf] %v3859_v61  ;;  %v7106_v61 = vld [vmem:[%s11419_s6 + $0x220] sm:$0xff] }
 0x49e   :  { %3876 = vst [vmem:[#allocation5 + $0xf8] sm:$0xf] %v11105_v60 }
 0x49f   :  { %3877 = vst [vmem:[#allocation5 + $0x11c] sm:$0xf] %v3861_v50  ;;  %v6336_v50 = vld [vmem:[#allocation5 + $0xa0] sm:$0xf] }
 0x4a0   :  { %3878 = vst [vmem:[#allocation5 + $0x140] sm:$0xf] %v3862_v13  ;;  %5558 = vmatpush.bf16.msra.mxu2 %v7106_v61 }
 0x4a1   :  { %3879 = vst [vmem:[#allocation5 + $0x164] sm:$0xf] %v11166_v56 }
 0x4a2   :  { %3880 = vst [vmem:[#allocation5 + $0x188] sm:$0xf] %v3864_v38 }
 0x4a3   :  { %v5270_v15 = vpop.f32.mrf.mxu0  ;;  %5367 = vmatmul.bf16.vlgmr.msrb.gmra.mxu2 %v6265_v45  ;;  %3881 = vst [vmem:[#allocation5 + $0x1ac] sm:$0xf] %v11185_v7 }
 0x4a4   :  { %5416 = vmatmul.bf16.vlgmr.msra.gmra.mxu3 %v6269_v14  ;;  %3882 = vst [vmem:[#allocation5 + $0x1d0] sm:$0xf] %v3866_v6  ;;  %v4330_v14 = vmul.f32 %v11212_v4, %v10984_v25  ;;  %v6991_v25 = vld [vmem:[#allocation5 + $0xc8] sm:$0xf0]  ;;  %5559 = vmatpush.bf16.msra.mxu2 %v7105_v0 }
 0x4a5   :  { %3883 = vst [vmem:[#allocation5 + $0x1f4] sm:$0xf] %v11203_v12  ;;  %v11264_v26 = vpop.f32.mrf.mxu1 }
 0x4a6   :  { %5465 = vmatmul.bf16.vlgmr.msra.gmra.mxu0 %v6273_v5  ;;  %v5172_v1 = vpop.f32.mrf.mxu2  ;;  %3884 = vst [vmem:[#allocation5 + $0x218] sm:$0xf] %v11206_v46  ;;  %v4349_v46 = vadd.f32 %v11220_v62, %v4329_v44  ;;  %v4350_v21 = vadd.f32 %v11220_v62, %v4330_v14  ;;  %v6382_v14 = vld [vmem:[#allocation5 + $0x114] sm:$0xf0] }
 0x4a7   :  { %v5173_v30 = vadd.f32 %v5172_v1, %v4347_v11  ;;  %v5221_v20 = vpop.f32.mrf.mxu3  ;;  %3885 = vst [vmem:[#allocation5 + $0x23c] sm:$0xf] %v3869_v10  ;;  %v4331_v1 = vmul.f32 %v11212_v4, %v10959_v39 }
 0x4a8   :  { %5514 = vmatmul.bf16.vlgmr.msra.gmra.mxu1 %v6277_v19  ;;  %v6338_v19 = vld [vmem:[#allocation5 + $0xc4] sm:$0xf0] }
 0x4a9   :  { %v5222_v58 = vadd.f32 %v5221_v20, %v5173_v30  ;;  %v6337_v30 = vor.u32 %v6990_v18, %v6336_v50  ;;  %v6344_v20 = vld [vmem:[#allocation5 + $0xa8] sm:$0xf]  ;;  %v6341_v28 = vor.u32 %v6986_v57, %v6338_v19  ;;  %v4334_v57 = vmul.f32 %v11212_v4, %v11010_v49 }
 0x4aa   :  { %v6345_v10 = vor.u32 %v6991_v25, %v6344_v20  ;;  %v6408_v25 = vld [vmem:[#allocation5 + $0x130] sm:$0xf]  ;;  %v4335_v49 = vmul.f32 %v11212_v4, %v10967_v16  ;;  %v7103_v16 = vld [vmem:[%s11419_s6 + $0x208] sm:$0xff] }
 0x4ab   :  { %v11232_v60 = vadd.f32 %v5270_v15, %v5222_v58  ;;  %v5272_v59 = vpop.f32.mrf.mxu0  ;;  %v6987_v58 = vld [vmem:[#allocation5 + $0xac] sm:$0xf] }
 0x4ad   :  { %v11276_v19 = vpop.f32.mrf.mxu1 }
 0x4ae   :  { %v5174_v42 = vpop.f32.mrf.mxu2 }
 0x4af   :  { %v5175_v43 = vadd.f32 %v5174_v42, %v4348_v37  ;;  %v5223_v56 = vpop.f32.mrf.mxu3  ;;  %v6349_v37 = vor.u32 %v6987_v58, %v6346_v3  ;;  %v7004_v3 = vld [vmem:[#allocation5 + $0x134] sm:$0xf] }
 0x4b1   :  { %v5224_v7 = vadd.f32 %v5223_v56, %v5175_v43  ;;  %v4332_v56 = vmul.f32 %v11212_v4, %v10998_v33  ;;  %v4333_v33 = vmul.f32 %v11212_v4, %v10963_v22  ;;  %v7104_v22 = vld [vmem:[%s11419_s6 + $0x210] sm:$0xff] }
 0x4b2   :  { %5560 = vmatpush.bf16.msra.mxu2 %v7104_v22  ;;  %v7018_v22 = vld [vmem:[#allocation5 + $0x1a0] sm:$0xf0] }
 0x4b3   :  { %v11240_v54 = vadd.f32 %v5272_v59, %v5224_v7  ;;  %v5275_v12 = vpop.f32.mrf.mxu0  ;;  %5372 = vmatmul.bf16.gmra.mxu2 %v6301_v36  ;;  %v4351_v59 = vadd.f32 %v11220_v62, %v4331_v1  ;;  %v4352_v44 = vadd.f32 %v11220_v62, %v4332_v56  ;;  %v6372_v36 = vld [vmem:[#allocation5 + $0xe8] sm:$0xf]  ;;  %v7005_v56 = vld [vmem:[#allocation5 + $0x13c] sm:$0xf] }
 0x4b4   :  { %5421 = vmatmul.bf16.gmra.mxu3 %v6305_v63 }
 0x4b6   :  { %5470 = vmatmul.bf16.gmra.mxu0 %v6309_v9  ;;  %v5177_v45 = vpop.f32.mrf.mxu2  ;;  %v6373_v9 = vor.u32 %v6999_v27, %v6372_v36  ;;  %v4355_v36 = vadd.f32 %v11220_v62, %v4335_v49  ;;  %5561 = vmatpush.bf16.msra.mxu2 %v7103_v16  ;;  %v6488_v16 = vld [vmem:[#allocation5 + $0x1c8] sm:$0xf] }
 0x4b7   :  { %v5178_v31 = vadd.f32 %v5177_v45, %v4349_v46  ;;  %v5226_v41 = vpop.f32.mrf.mxu3  ;;  %v7000_v45 = vld [vmem:[#allocation5 + $0x110] sm:$0xf0] }
 0x4b8   :  { %5519 = vmatmul.bf16.gmra.mxu1 %v6313_v51  ;;  %v6380_v51 = vld [vmem:[#allocation5 + $0xf0] sm:$0xf] }
 0x4b9   :  { %v5227_v34 = vadd.f32 %v5226_v41, %v5178_v31 }
 0x4bb   :  { %v11248_v55 = vadd.f32 %v5275_v12, %v5227_v34  ;;  %v5277_v15 = vpop.f32.mrf.mxu0  ;;  %v6995_v12 = vld [vmem:[#allocation5 + $0xec] sm:$0xf]  ;;  %v6996_v34 = vld [vmem:[#allocation5 + $0xf4] sm:$0xf] }
 0x4bc   :  { %v6377_v31 = vor.u32 %v6995_v12, %v6374_v47 }
 0x4be   :  { %v5179_v11 = vpop.f32.mrf.mxu2 }
 0x4bf   :  { %v5180_v5 = vadd.f32 %v5179_v11, %v4350_v21  ;;  %v5228_v13 = vpop.f32.mrf.mxu3  ;;  %v4353_v21 = vadd.f32 %v11220_v62, %v4333_v33  ;;  %v6385_v11 = vor.u32 %v6996_v34, %v6382_v14 }
 0x4c1   :  { %v5229_v38 = vadd.f32 %v5228_v13, %v5180_v5 }
 0x4c3   :  { %v11253_v6 = vadd.f32 %v5277_v15, %v5229_v38  ;;  %v5280_v2 = vpop.f32.mrf.mxu0  ;;  %5377 = vmatmul.bf16.gmra.mxu2 %v6337_v30  ;;  %v6381_v15 = vor.u32 %v7000_v45, %v6380_v51  ;;  %v4354_v30 = vadd.f32 %v11220_v62, %v4334_v57 }
 0x4c4   :  { %5426 = vmatmul.bf16.gmra.mxu3 %v6341_v28  ;;  %v7008_v28 = vld [vmem:[#allocation5 + $0x150] sm:$0xf0] }
 0x4c6   :  { %5475 = vmatmul.bf16.gmra.mxu0 %v6345_v10  ;;  %v5182_v42 = vpop.f32.mrf.mxu2 }
 0x4c7   :  { %v5183_v24 = vadd.f32 %v5182_v42, %v4351_v59  ;;  %v5231_v39 = vpop.f32.mrf.mxu3  ;;  %v6410_v59 = vld [vmem:[#allocation5 + $0x154] sm:$0xf0] }
 0x4c8   :  { %5524 = vmatmul.bf16.gmra.mxu1 %v6349_v37  ;;  %v6409_v37 = vor.u32 %v7008_v28, %v6408_v25  ;;  %v6416_v42 = vld [vmem:[#allocation5 + $0x138] sm:$0xf] }
 0x4c9   :  { %v5232_v43 = vadd.f32 %v5231_v39, %v5183_v24  ;;  %v7009_v24 = vld [vmem:[#allocation5 + $0x158] sm:$0xf0]  ;;  %v6413_v39 = vor.u32 %v7004_v3, %v6410_v59 }
 0x4cb   :  { %v11261_v29 = vadd.f32 %v5280_v2, %v5232_v43  ;;  %v5282_v48 = vpop.f32.mrf.mxu0 }
 0x4ce   :  { %v5184_v7 = vpop.f32.mrf.mxu2 }
 0x4cf   :  { %v5185_v17 = vadd.f32 %v5184_v7, %v4352_v44  ;;  %v5233_v63 = vpop.f32.mrf.mxu3  ;;  %v6417_v44 = vor.u32 %v7009_v24, %v6416_v42  ;;  %v11285_v7 = vpop.f32.mrf.mxu1  ;;  %v4338_v42 = vmul.f32 %v11212_v4, %v11036_v52  ;;  %v4339_v52 = vmul.f32 %v11212_v4, %v10975_v40 }
 0x4d1   :  { %v5234_v46 = vadd.f32 %v5233_v63, %v5185_v17 }
 0x4d3   :  { %v11268_v41 = vadd.f32 %v5282_v48, %v5234_v46  ;;  %v5285_v61 = vpop.f32.mrf.mxu0  ;;  %5382 = vmatmul.bf16.gmra.mxu2 %v6373_v9  ;;  %v6418_v48 = vld [vmem:[#allocation5 + $0x15c] sm:$0xf0]  ;;  %v4336_v46 = vmul.f32 %v11212_v4, %v11025_v23  ;;  %v4337_v23 = vmul.f32 %v11212_v4, %v10971_v35 }
 0x4d4   :  { %5431 = vmatmul.bf16.gmra.mxu3 %v6377_v31  ;;  %v6421_v27 = vor.u32 %v7005_v56, %v6418_v48  ;;  %v6444_v31 = vld [vmem:[#allocation5 + $0x178] sm:$0xf]  ;;  %v7102_v35 = vld [vmem:[%s11419_s6 + $0x200] sm:$0xff]  ;;  %s7311_s6 = smov [#allocation6]  }
 0x4d5   :  { %v4356_v45 = vadd.f32 %v11220_v62, %v4336_v46  ;;  %v4357_v28 = vadd.f32 %v11220_v62, %v4337_v23  ;;  %5562 = vmatpush.bf16.msra.mxu2 %v7102_v35  ;;  %v6480_v56 = vld [vmem:[#allocation5 + $0x1c0] sm:$0xf]  ;;  %v7026_v48 = vld [vmem:[#allocation5 + $0x1e0] sm:$0xf0]  ;;  %s5624_s19 = sshll.u32 %s7311_s6, 4  ;;  %s5625_s19 = int_to_ptr.vmem [resolvable:$true] %s5624_s19 }
 0x4d6   :  { %5480 = vmatmul.bf16.gmra.mxu0 %v6381_v15  ;;  %v5187_v50 = vpop.f32.mrf.mxu2 }
 0x4d7   :  { %v5188_v18 = vadd.f32 %v5187_v50, %v4353_v21  ;;  %v5236_v5 = vpop.f32.mrf.mxu3  ;;  %v11296_v34 = vpop.f32.mrf.mxu1  ;;  %v7013_v21 = vld [vmem:[#allocation5 + $0x17c] sm:$0xf] }
 0x4d8   :  { %5529 = vmatmul.bf16.gmra.mxu1 %v6385_v11  ;;  %v6446_v11 = vld [vmem:[#allocation5 + $0x19c] sm:$0xf0] }
 0x4d9   :  { %v5237_v13 = vadd.f32 %v5236_v5, %v5188_v18  ;;  %v6452_v5 = vld [vmem:[#allocation5 + $0x180] sm:$0xf] }
 0x4da   :  { %v6453_v25 = vor.u32 %v7018_v22, %v6452_v5  ;;  %v4340_v5 = vmul.f32 %v11212_v4, %v11045_v53  ;;  %v4341_v53 = vmul.f32 %v11212_v4, %v10979_v8  ;;  %v4342_v8 = vmul.f32 %v11212_v4, %v11055_v32 }
 0x4db   :  { %v11278_v1 = vadd.f32 %v5285_v61, %v5237_v13  ;;  %v5287_v38 = vpop.f32.mrf.mxu0  ;;  %v7017_v61 = vld [vmem:[#allocation5 + $0x198] sm:$0xf0]  ;;  %v6449_v13 = vor.u32 %v7013_v21, %v6446_v11  ;;  %v5322_v4 = vadd.f32 %v11276_v19, %v11240_v54  ;;  %v6992_v54 = vld [vmem:[#allocation5 + $0xd0] sm:$0xf0] }
 0x4dc   :  { %v6445_v18 = vor.u32 %v7017_v61, %v6444_v31  ;;  %v6490_v31 = vld [vmem:[#allocation5 + $0x1ec] sm:$0xf0] }
 0x4de   :  { %v5189_v20 = vpop.f32.mrf.mxu2 }
 0x4df   :  { %v5190_v2 = vadd.f32 %v5189_v20, %v4354_v30  ;;  %v5238_v58 = vpop.f32.mrf.mxu3  ;;  %v7014_v30 = vld [vmem:[#allocation5 + $0x184] sm:$0xf]  ;;  %v6454_v20 = vld [vmem:[#allocation5 + $0x1a4] sm:$0xf0] }
 0x4e1   :  { %v5239_v10 = vadd.f32 %v5238_v58, %v5190_v2  ;;  %v6457_v2 = vor.u32 %v7014_v30, %v6454_v20  ;;  %v6516_v20 = vld [vmem:[#allocation5 + $0x208] sm:$0xf] }
 0x4e3   :  { %v11283_v0 = vadd.f32 %v5287_v38, %v5239_v10  ;;  %v5290_v43 = vpop.f32.mrf.mxu0  ;;  %5387 = vmatmul.bf16.gmra.mxu2 %v6409_v37  ;;  %v11306_v10 = vpop.f32.mrf.mxu1 }
 0x4e4   :  { %5436 = vmatmul.bf16.gmra.mxu3 %v6413_v39  ;;  %v4358_v39 = vadd.f32 %v11220_v62, %v4338_v42  ;;  %v7036_v42 = vld [vmem:[#allocation5 + $0x230] sm:$0xf0] }
 0x4e6   :  { %5485 = vmatmul.bf16.gmra.mxu0 %v6417_v44  ;;  %v5192_v17 = vpop.f32.mrf.mxu2 }
 0x4e7   :  { %v5193_v63 = vadd.f32 %v5192_v17, %v4355_v36  ;;  %v5241_v12 = vpop.f32.mrf.mxu3  ;;  %v6482_v17 = vld [vmem:[#allocation5 + $0x1e4] sm:$0xf0] }
 0x4e8   :  { %5534 = vmatmul.bf16.gmra.mxu1 %v6421_v27  ;;  %v7022_v27 = vld [vmem:[#allocation5 + $0x1c4] sm:$0xf] }
 0x4e9   :  { %v5242_v47 = vadd.f32 %v5241_v12, %v5193_v63  ;;  %v6481_v12 = vor.u32 %v7026_v48, %v6480_v56  ;;  %v6485_v46 = vor.u32 %v7022_v27, %v6482_v17  ;;  %v6526_v56 = vld [vmem:[#allocation5 + $0x234] sm:$0xf0] }
 0x4eb   :  { %v11293_v9 = vadd.f32 %v5290_v43, %v5242_v47  ;;  %v5292_v51 = vpop.f32.mrf.mxu0  ;;  %v7027_v47 = vld [vmem:[#allocation5 + $0x1e8] sm:$0xf0] }
 0x4ee   :  { %v5194_v33 = vpop.f32.mrf.mxu2 }
 0x4ef   :  { %v5195_v14 = vadd.f32 %v5194_v33, %v4356_v45  ;;  %v5243_v15 = vpop.f32.mrf.mxu3  ;;  %v7023_v33 = vld [vmem:[#allocation5 + $0x1cc] sm:$0xf] }
 0x4f0   :  { %v6493_v21 = vor.u32 %v7023_v33, %v6490_v31  ;;  %v6280_v31 = vld [vmem:[#allocation5 + $0x20] sm:$0xf] }
 0x4f1   :  { %v5244_v50 = vadd.f32 %v5243_v15, %v5195_v14  ;;  %v6489_v14 = vor.u32 %v7027_v47, %v6488_v16  ;;  %v4359_v15 = vadd.f32 %v11220_v62, %v4339_v52 }
 0x4f3   :  { %v11300_v57 = vadd.f32 %v5292_v51, %v5244_v50  ;;  %v5295_v38 = vpop.f32.mrf.mxu0  ;;  %5392 = vmatmul.bf16.gmra.mxu2 %v6445_v18  ;;  %v11315_v51 = vpop.f32.mrf.mxu1 }
 0x4f4   :  { %5441 = vmatmul.bf16.gmra.mxu3 %v6449_v13  ;;  %v4360_v13 = vadd.f32 %v11220_v62, %v4340_v5 }
 0x4f6   :  { %5490 = vmatmul.bf16.gmra.mxu0 %v6453_v25  ;;  %v5197_v58 = vpop.f32.mrf.mxu2  ;;  %v7035_v25 = vld [vmem:[#allocation5 + $0x228] sm:$0xf0] }
 0x4f7   :  { %v5198_v3 = vadd.f32 %v5197_v58, %v4357_v28  ;;  %v5246_v59 = vpop.f32.mrf.mxu3  ;;  %v7031_v58 = vld [vmem:[#allocation5 + $0x20c] sm:$0xf]  ;;  %v6517_v35 = vor.u32 %v7035_v25, %v6516_v20  ;;  %v5325_v25 = vadd.f32 %v11285_v7, %v11248_v55 }
 0x4f8   :  { %5539 = vmatmul.bf16.gmra.mxu1 %v6457_v2 }
 0x4f9   :  { %v5247_v37 = vadd.f32 %v5246_v59, %v5198_v3  ;;  %v6518_v3 = vld [vmem:[#allocation5 + $0x22c] sm:$0xf0] }
 0x4fb   :  { %v11310_v24 = vadd.f32 %v5295_v38, %v5247_v37  ;;  %v5297_v49 = vpop.f32.mrf.mxu0  ;;  %v11324_v23 = vpop.f32.mrf.mxu1  ;;  %v6524_v37 = vld [vmem:[#allocation5 + $0x210] sm:$0xf] }
 0x4fc   :  { %v6525_v48 = vor.u32 %v7036_v42, %v6524_v37  ;;  %v5330_v37 = vadd.f32 %v11306_v10, %v11261_v29 }
 0x4fe   :  { %v5199_v43 = vpop.f32.mrf.mxu2 }
 0x4ff   :  { %v5200_v44 = vadd.f32 %v5199_v43, %v4358_v39  ;;  %v5248_v36 = vpop.f32.mrf.mxu3  ;;  %v7032_v43 = vld [vmem:[#allocation5 + $0x214] sm:$0xf] }
 0x501   :  { %v5249_v63 = vadd.f32 %v5248_v36, %v5200_v44  ;;  %v4361_v44 = vadd.f32 %v11220_v62, %v4341_v53  ;;  %v6529_v36 = vor.u32 %v7032_v43, %v6526_v56  ;;  %v5332_v53 = vadd.f32 %v11315_v51, %v11268_v41  ;;  %v7010_v41 = vld [vmem:[#allocation5 + $0x160] sm:$0xf0] }
 0x503   :  { %v11317_v45 = vadd.f32 %v5297_v49, %v5249_v63  ;;  %5397 = vmatmul.bf16.gmra.mxu2 %v6481_v12  ;;  %v5300_v61 = vpop.f32.mrf.mxu0  ;;  %v6521_v49 = vor.u32 %v7031_v58, %v6518_v3  ;;  %v5336_v12 = vpop.f32.mrf.mxu1  ;;  %v6352_v3 = vld [vmem:[#allocation5 + $0xb0] sm:$0xf] }
 0x504   :  { %5446 = vmatmul.bf16.gmra.mxu3 %v6485_v46  ;;  %v4362_v46 = vadd.f32 %v11220_v62, %v4342_v8  ;;  %v5337_v10 = vadd.f32 %v5336_v12, %v11283_v0 }
 0x506   :  { %5495 = vmatmul.bf16.gmra.mxu0 %v6489_v14  ;;  %v5202_v11 = vpop.f32.mrf.mxu2 }
 0x507   :  { %v5203_v50 = vadd.f32 %v5202_v11, %v4359_v15  ;;  %v5251_v18 = vpop.f32.mrf.mxu3 }
 0x508   :  { %5544 = vmatmul.bf16.gmra.mxu1 %v6493_v21 }
 0x509   :  { %v5252_v40 = vadd.f32 %v5251_v18, %v5203_v50 }
 0x50b   :  { %v11322_v22 = vadd.f32 %v5300_v61, %v5252_v40  ;;  %v5302_v38 = vpop.f32.mrf.mxu0  ;;  %v6974_v61 = vld [vmem:[#allocation5 + $0x40] sm:$0xf0]  ;;  %v5320_v40 = vadd.f32 %v11264_v26, %v11232_v60  ;;  %v5327_v60 = vadd.f32 %v11296_v34, %v11253_v6  ;;  %v6388_v6 = vld [vmem:[#allocation5 + $0xf8] sm:$0xf]  ;;  %v7001_v34 = vld [vmem:[#allocation5 + $0x118] sm:$0xf0] }
 0x50c   :  { %v6281_v11 = vor.u32 %v6974_v61, %v6280_v31  ;;  %v6389_v56 = vor.u32 %v7001_v34, %v6388_v6  ;;  %v6460_v31 = vld [vmem:[#allocation5 + $0x188] sm:$0xf]  ;;  %v7019_v61 = vld [vmem:[#allocation5 + $0x1a8] sm:$0xf0] }
 0x50d   :  { %v6461_v12 = vor.u32 %v7019_v61, %v6460_v31 }
 0x50e   :  { %v5204_v30 = vpop.f32.mrf.mxu2 }
 0x50f   :  { %v5205_v28 = vadd.f32 %v5204_v30, %v4360_v13  ;;  %v5253_v2 = vpop.f32.mrf.mxu3  ;;  %v6316_v13 = vld [vmem:[#allocation5 + $0x68] sm:$0xf] }
 0x511   :  { %v5254_v59 = vadd.f32 %v5253_v2, %v5205_v28  ;;  %v5339_v28 = vpop.f32.mrf.mxu1 }
 0x513   :  { %v11329_v39 = vadd.f32 %v5302_v38, %v5254_v59  ;;  %5402 = vmatmul.bf16.gmra.mxu2 %v6517_v35  ;;  %v5305_v16 = vpop.f32.mrf.mxu0  ;;  %v6983_v38 = vld [vmem:[#allocation5 + $0x88] sm:$0xf0]  ;;  %v6353_v35 = vor.u32 %v6992_v54, %v6352_v3  ;;  %v6532_v3 = vld [vmem:[#allocation5 + $0x218] sm:$0xf]  ;;  %v7037_v54 = vld [vmem:[#allocation5 + $0x238] sm:$0xf0] }
 0x514   :  { %5451 = vmatmul.bf16.gmra.mxu3 %v6521_v49  ;;  %v6317_v20 = vor.u32 %v6983_v38, %v6316_v13 }
 0x516   :  { %5500 = vmatmul.bf16.gmra.mxu0 %v6525_v48  ;;  %v5207_v27 = vpop.f32.mrf.mxu2 }
 0x517   :  { %v5208_v17 = vadd.f32 %v5207_v27, %v4361_v44  ;;  %v5256_v63 = vpop.f32.mrf.mxu3  ;;  %v5335_v44 = vadd.f32 %v11324_v23, %v11278_v1 }
 0x518   :  { %5549 = vmatmul.bf16.gmra.mxu1 %v6529_v36 }
 0x519   :  { %v5257_v47 = vadd.f32 %v5256_v63, %v5208_v17  ;;  %v5341_v59 = vpop.f32.mrf.mxu1  ;;  %v6424_v63 = vld [vmem:[#allocation5 + $0x140] sm:$0xf] }
 0x51a   :  { %v5342_v1 = vadd.f32 %v5341_v59, %v11300_v57  ;;  %v7028_v57 = vld [vmem:[#allocation5 + $0x1f0] sm:$0xf0] }
 0x51b   :  { %v11334_v52 = vadd.f32 %v5305_v16, %v5257_v47  ;;  %v5307_v50 = vpop.f32.mrf.mxu0  ;;  %v6425_v16 = vor.u32 %v7010_v41, %v6424_v63  ;;  %v5340_v47 = vadd.f32 %v5339_v28, %v11293_v9 }
 0x51e   :  { %v5209_v33 = vpop.f32.mrf.mxu2 }
 0x51f   :  { %v5210_v14 = vadd.f32 %v5209_v33, %v4362_v46  ;;  %v5258_v15 = vpop.f32.mrf.mxu3 }
 0x521   :  { %v5259_v21 = vadd.f32 %v5258_v15, %v5210_v14  ;;  %v5344_v7 = vpop.f32.mrf.mxu1 }
 0x522   :  { %v5345_v15 = vadd.f32 %v5344_v7, %v11310_v24 }
 0x523   :  { %v11337_v18 = vadd.f32 %v5307_v50, %v5259_v21  ;;  %5563 = vmatmul.bf16.vlgmr.msra.gmra.mxu2 %v6281_v11  ;;  %v5466_v38 = vpop.f32.mrf.mxu0 }
 0x526   :  { %v5368_v5 = vpop.f32.mrf.mxu2 }
 0x527   :  { %v11341_v32 = vadd.f32 %v5368_v5, %v5320_v40  ;;  %v5417_v40 = vpop.f32.mrf.mxu3 }
 0x529   :  { %v5346_v48 = vpop.f32.mrf.mxu1 }
 0x52a   :  { %v5347_v50 = vadd.f32 %v5346_v48, %v11317_v45 }
 0x52e   :  { %v5370_v62 = vpop.f32.mrf.mxu2 }
 0x52f   :  { %v11345_v30 = vadd.f32 %v5370_v62, %v5322_v4  ;;  %v6496_v4 = vld [vmem:[#allocation5 + $0x1d0] sm:$0xf] }
 0x530   :  { %v6497_v13 = vor.u32 %v7028_v57, %v6496_v4 }
 0x531   :  { %v5349_v27 = vpop.f32.mrf.mxu1 }
 0x533   :  { %5568 = vmatmul.bf16.gmra.mxu2 %v6317_v20  ;;  %v5350_v20 = vadd.f32 %v5349_v27, %v11322_v22 }
 0x536   :  { %v5373_v2 = vpop.f32.mrf.mxu2 }
 0x537   :  { %v11349_v58 = vadd.f32 %v5373_v2, %v5325_v25  ;;  %v5419_v2 = vpop.f32.mrf.mxu3 }
 0x539   :  { %v5351_v33 = vpop.f32.mrf.mxu1 }
 0x53e   :  { %v5375_v26 = vpop.f32.mrf.mxu2 }
 0x53f   :  { %v11353_v19 = vadd.f32 %v5375_v26, %v5327_v60  ;;  %v5468_v60 = vpop.f32.mrf.mxu0  ;;  %v5352_v26 = vadd.f32 %v5351_v33, %v11329_v39 }
 0x541   :  { %v5354_v14 = vpop.f32.mrf.mxu1 }
 0x542   :  { %v5355_v7 = vadd.f32 %v5354_v14, %v11334_v52 }
 0x543   :  { %5573 = vmatmul.bf16.gmra.mxu2 %v6353_v35 }
 0x546   :  { %v5378_v42 = vpop.f32.mrf.mxu2 }
 0x547   :  { %v11357_v55 = vadd.f32 %v5378_v42, %v5330_v37  ;;  %v6533_v37 = vor.u32 %v7037_v54, %v6532_v3  ;;  %v5422_v42 = vpop.f32.mrf.mxu3  ;;  %v5471_v22 = vpop.f32.mrf.mxu0 }
 0x548   :  { %v5423_v33 = vadd.f32 %v5422_v42, %v11349_v58 }
 0x549   :  { %v5356_v9 = vpop.f32.mrf.mxu1 }
 0x54a   :  { %v5357_v39 = vadd.f32 %v5356_v9, %v11337_v18  ;;  %v5472_v61 = vadd.f32 %v5471_v22, %v5423_v33 }
 0x54e   :  { %v5380_v49 = vpop.f32.mrf.mxu2 }
 0x54f   :  { %v11361_v43 = vadd.f32 %v5380_v49, %v5332_v53  ;;  %v5424_v34 = vpop.f32.mrf.mxu3 }
 0x550   :  { %v5425_v14 = vadd.f32 %v5424_v34, %v11353_v19 }
 0x551   :  { %v5515_v25 = vpop.f32.mrf.mxu1 }
 0x553   :  { %5578 = vmatmul.bf16.gmra.mxu2 %v6389_v56  ;;  %v5418_v56 = vadd.f32 %v5417_v40, %v11341_v32 }
 0x556   :  { %v5383_v36 = vpop.f32.mrf.mxu2 }
 0x557   :  { %v11365_v29 = vadd.f32 %v5383_v36, %v5335_v44  ;;  %v5473_v36 = vpop.f32.mrf.mxu0  ;;  %v5427_v52 = vpop.f32.mrf.mxu3 }
 0x559   :  { %v5517_v35 = vpop.f32.mrf.mxu1 }
 0x55e   :  { %v5385_v17 = vpop.f32.mrf.mxu2 }
 0x55f   :  { %v11368_v51 = vadd.f32 %v5385_v17, %v5337_v10  ;;  %v5467_v10 = vadd.f32 %v5466_v38, %v5418_v56  ;;  %v5420_v17 = vadd.f32 %v5419_v2, %v11345_v30  ;;  %v5429_v31 = vpop.f32.mrf.mxu3 }
 0x561   :  { %v5520_v6 = vpop.f32.mrf.mxu1  ;;  %v5516_v63 = vadd.f32 %v5515_v25, %v5467_v10 }
 0x562   :  { %v5521_v30 = vadd.f32 %v5520_v6, %v5472_v61 }
 0x563   :  { %5583 = vmatmul.bf16.gmra.mxu2 %v6425_v16 }
 0x566   :  { %v5388_v8 = vpop.f32.mrf.mxu2 }
 0x567   :  { %v11371_v46 = vadd.f32 %v5388_v8, %v5340_v47  ;;  %v5469_v47 = vadd.f32 %v5468_v60, %v5420_v17  ;;  %v5476_v8 = vpop.f32.mrf.mxu0  ;;  %v5432_v40 = vpop.f32.mrf.mxu3 }
 0x568   :  { %v5433_v54 = vadd.f32 %v5432_v40, %v11365_v29 }
 0x569   :  { %v5522_v27 = vpop.f32.mrf.mxu1  ;;  %v5518_v32 = vadd.f32 %v5517_v35, %v5469_v47 }
 0x56e   :  { %v5390_v23 = vpop.f32.mrf.mxu2 }
 0x56f   :  { %v11374_v0 = vadd.f32 %v5390_v23, %v5342_v1  ;;  %v5434_v25 = vpop.f32.mrf.mxu3 }
 0x571   :  { %v5525_v1 = vpop.f32.mrf.mxu1 }
 0x573   :  { %5588 = vmatmul.bf16.gmra.mxu2 %v6461_v12  ;;  %v5478_v12 = vpop.f32.mrf.mxu0 }
 0x576   :  { %v5393_v21 = vpop.f32.mrf.mxu2 }
 0x577   :  { %v11377_v11 = vadd.f32 %v5393_v21, %v5345_v15  ;;  %v5437_v35 = vpop.f32.mrf.mxu3 }
 0x578   :  { %v5438_v10 = vadd.f32 %v5437_v35, %v11371_v46 }
 0x579   :  { %v5527_v9 = vpop.f32.mrf.mxu1 }
 0x57b   :  { %v5481_v4 = vpop.f32.mrf.mxu0 }
 0x57e   :  { %v5395_v5 = vpop.f32.mrf.mxu2 }
 0x57f   :  { %v11380_v62 = vadd.f32 %v5395_v5, %v5347_v50  ;;  %v5474_v50 = vadd.f32 %v5473_v36, %v5425_v14  ;;  %v5428_v5 = vadd.f32 %v5427_v52, %v11357_v55 }
 0x581   :  { %v5523_v58 = vadd.f32 %v5522_v27, %v5474_v50  ;;  %v5477_v38 = vadd.f32 %v5476_v8, %v5428_v5 }
 0x583   :  { %5593 = vmatmul.bf16.gmra.mxu2 %v6497_v13  ;;  %v5526_v19 = vadd.f32 %v5525_v1, %v5477_v38 }
 0x586   :  { %v5398_v28 = vpop.f32.mrf.mxu2 }
 0x587   :  { %v11383_v24 = vadd.f32 %v5398_v28, %v5350_v20  ;;  %v5530_v20 = vpop.f32.mrf.mxu1  ;;  %v5430_v28 = vadd.f32 %v5429_v31, %v11361_v43 }
 0x58e   :  { %v5400_v45 = vpop.f32.mrf.mxu2 }
 0x58f   :  { %v11386_v59 = vadd.f32 %v5400_v45, %v5352_v26  ;;  %v5483_v26 = vpop.f32.mrf.mxu0  ;;  %v5479_v45 = vadd.f32 %v5478_v12, %v5430_v28  ;;  %v5532_v3 = vpop.f32.mrf.mxu1 }
 0x591   :  { %v5528_v55 = vadd.f32 %v5527_v9, %v5479_v45 }
 0x593   :  { %5598 = vmatmul.bf16.gmra.mxu2 %v6533_v37 }
 0x596   :  { %v5403_v53 = vpop.f32.mrf.mxu2 }
 0x597   :  { %v11389_v49 = vadd.f32 %v5403_v53, %v5355_v7  ;;  %v5482_v7 = vadd.f32 %v5481_v4, %v5433_v54  ;;  %v5486_v22 = vpop.f32.mrf.mxu0  ;;  %v5435_v53 = vadd.f32 %v5434_v25, %v11368_v51  ;;  %v5535_v43 = vpop.f32.mrf.mxu1 }
 0x598   :  { %v5487_v52 = vadd.f32 %v5486_v22, %v5438_v10 }
 0x599   :  { %v5531_v6 = vadd.f32 %v5530_v20, %v5482_v7 }
 0x59a   :  { %v5536_v51 = vadd.f32 %v5535_v43, %v5487_v52 }
 0x59e   :  { %v5405_v48 = vpop.f32.mrf.mxu2 }
 0x59f   :  { %v11393_v44 = vadd.f32 %v5405_v48, %v5357_v39  ;;  %v5439_v39 = vpop.f32.mrf.mxu3  ;;  %v5484_v48 = vadd.f32 %v5483_v26, %v5435_v53  ;;  %v5488_v36 = vpop.f32.mrf.mxu0 }
 0x5a1   :  { %v5533_v29 = vadd.f32 %v5532_v3, %v5484_v48 }
 0x5a6   :  { %v5564_v41 = vpop.f32.mrf.mxu2 }
 0x5a7   :  { %v5565_v16 = vadd.f32 %v5564_v41, %v5516_v63  ;;  %v5537_v63 = vpop.f32.mrf.mxu1  ;;  %v5442_v41 = vpop.f32.mrf.mxu3 }
 0x5a8   :  { %v5491_v47 = vpop.f32.mrf.mxu0 }
 0x5a9   :  { %5604 = vst [vmem:[#allocation6] sm:$0xff] %v5565_v16  ;;  %v5440_v16 = vadd.f32 %v5439_v39, %v11374_v0 }
 0x5ae   :  { %v5566_v18 = vpop.f32.mrf.mxu2 }
 0x5af   :  { %v5567_v23 = vadd.f32 %v5566_v18, %v5518_v32  ;;  %v5489_v32 = vadd.f32 %v5488_v36, %v5440_v16  ;;  %v5540_v1 = vpop.f32.mrf.mxu1  ;;  %v5444_v18 = vpop.f32.mrf.mxu3 }
 0x5b0   :  { %v5493_v12 = vpop.f32.mrf.mxu0 }
 0x5b1   :  { %5605 = vst [vmem:[#allocation6 + $0x8] sm:$0xff] %v5567_v23  ;;  %v5443_v23 = vadd.f32 %v5442_v41, %v11377_v11  ;;  %v5538_v46 = vadd.f32 %v5537_v63, %v5489_v32 }
 0x5b3   :  { %v5492_v14 = vadd.f32 %v5491_v47, %v5443_v23 }
 0x5b5   :  { %v5541_v0 = vadd.f32 %v5540_v1, %v5492_v14 }
 0x5b6   :  { %v5569_v15 = vpop.f32.mrf.mxu2 }
 0x5b7   :  { %v5570_v21 = vadd.f32 %v5569_v15, %v5521_v30  ;;  %v5542_v30 = vpop.f32.mrf.mxu1  ;;  %v5445_v15 = vadd.f32 %v5444_v18, %v11380_v62 }
 0x5b8   :  { %v5496_v5 = vpop.f32.mrf.mxu0 }
 0x5b9   :  { %5606 = vst [vmem:[#allocation6 + $0x10] sm:$0xff] %v5570_v21  ;;  %v5447_v21 = vpop.f32.mrf.mxu3  ;;  %v5494_v40 = vadd.f32 %v5493_v12, %v5445_v15 }
 0x5bb   :  { %v5543_v4 = vadd.f32 %v5542_v30, %v5494_v40 }
 0x5be   :  { %v5571_v57 = vpop.f32.mrf.mxu2 }
 0x5bf   :  { %v5572_v13 = vadd.f32 %v5571_v57, %v5523_v58  ;;  %v5448_v58 = vadd.f32 %v5447_v21, %v11383_v24  ;;  %v5545_v11 = vpop.f32.mrf.mxu1 }
 0x5c0   :  { %v5498_v25 = vpop.f32.mrf.mxu0 }
 0x5c1   :  { %5607 = vst [vmem:[#allocation6 + $0x18] sm:$0xff] %v5572_v13  ;;  %v5449_v38 = vpop.f32.mrf.mxu3  ;;  %v5497_v20 = vadd.f32 %v5496_v5, %v5448_v58 }
 0x5c2   :  { %v5450_v28 = vadd.f32 %v5449_v38, %v11386_v59 }
 0x5c3   :  { %v5546_v62 = vadd.f32 %v5545_v11, %v5497_v20 }
 0x5c4   :  { %v5499_v26 = vadd.f32 %v5498_v25, %v5450_v28 }
 0x5c6   :  { %v5574_v2 = vpop.f32.mrf.mxu2 }
 0x5c7   :  { %v5575_v60 = vadd.f32 %v5574_v2, %v5526_v19 }
 0x5c8   :  { %v5501_v54 = vpop.f32.mrf.mxu0 }
 0x5c9   :  { %5608 = vst [vmem:[#allocation6 + $0x20] sm:$0xff] %v5575_v60  ;;  %v5547_v60 = vpop.f32.mrf.mxu1  ;;  %v5452_v45 = vpop.f32.mrf.mxu3 }
 0x5ca   :  { %v5453_v3 = vadd.f32 %v5452_v45, %v11389_v49  ;;  %v5548_v24 = vadd.f32 %v5547_v60, %v5499_v26 }
 0x5ce   :  { %v5576_v37 = vpop.f32.mrf.mxu2 }
 0x5cf   :  { %v5577_v42 = vadd.f32 %v5576_v37, %v5528_v55  ;;  %v5502_v37 = vadd.f32 %v5501_v54, %v5453_v3 }
 0x5d0   :  { %v5503_v43 = vpop.f32.mrf.mxu0 }
 0x5d1   :  { %5609 = vst [vmem:[#allocation6 + $0x28] sm:$0xff] %v5577_v42  ;;  %v5550_v42 = vpop.f32.mrf.mxu1  ;;  %v5454_v7 = vpop.f32.mrf.mxu3 }
 0x5d2   :  { %v5455_v22 = vadd.f32 %v5454_v7, %v11393_v44  ;;  %v5551_v59 = vadd.f32 %v5550_v42, %v5502_v37 }
 0x5d6   :  { %v5579_v34 = vpop.f32.mrf.mxu2 }
 0x5d7   :  { %v5580_v56 = vadd.f32 %v5579_v34, %v5531_v6  ;;  %v5504_v34 = vadd.f32 %v5503_v43, %v5455_v22 }
 0x5d9   :  { %5610 = vst [vmem:[#allocation6 + $0x30] sm:$0xff] %v5580_v56  ;;  %v5552_v49 = vpop.f32.mrf.mxu1 }
 0x5da   :  { %v5553_v56 = vadd.f32 %v5552_v49, %v5504_v34 }
 0x5de   :  { %v5581_v27 = vpop.f32.mrf.mxu2 }
 0x5df   :  { %v5582_v17 = vadd.f32 %v5581_v27, %v5533_v29 }
 0x5e1   :  { %5611 = vst [vmem:[#allocation6 + $0x38] sm:$0xff] %v5582_v17 }
 0x5e6   :  { %v5584_v8 = vpop.f32.mrf.mxu2 }
 0x5e7   :  { %v5585_v33 = vadd.f32 %v5584_v8, %v5536_v51 }
 0x5e9   :  { %5612 = vst [vmem:[#allocation6 + $0x40] sm:$0xff] %v5585_v33 }
 0x5ee   :  { %v5586_v31 = vpop.f32.mrf.mxu2 }
 0x5ef   :  { %v5587_v61 = vadd.f32 %v5586_v31, %v5538_v46 }
 0x5f1   :  { %5613 = vst [vmem:[#allocation6 + $0x48] sm:$0xff] %v5587_v61 }
 0x5f6   :  { %v5589_v9 = vpop.f32.mrf.mxu2 }
 0x5f7   :  { %v5590_v50 = vadd.f32 %v5589_v9, %v5541_v0 }
 0x5f9   :  { %5614 = vst [vmem:[#allocation6 + $0x50] sm:$0xff] %v5590_v50 }
 0x5fe   :  { %v5591_v57 = vpop.f32.mrf.mxu2 }
 0x5ff   :  { %v5592_v13 = vadd.f32 %v5591_v57, %v5543_v4 }
 0x601   :  { %5615 = vst [vmem:[#allocation6 + $0x58] sm:$0xff] %v5592_v13 }
 0x606   :  { %v5594_v19 = vpop.f32.mrf.mxu2 }
 0x607   :  { %v5595_v2 = vadd.f32 %v5594_v19, %v5546_v62 }
 0x609   :  { %5616 = vst [vmem:[#allocation6 + $0x60] sm:$0xff] %v5595_v2 }
 0x60e   :  { %v5596_v55 = vpop.f32.mrf.mxu2 }
 0x60f   :  { %v5597_v35 = vadd.f32 %v5596_v55, %v5548_v24 }
 0x611   :  { %5617 = vst [vmem:[#allocation6 + $0x68] sm:$0xff] %v5597_v35 }
 0x616   :  { %v5599_v53 = vpop.f32.mrf.mxu2 }
 0x617   :  { %v5600_v6 = vadd.f32 %v5599_v53, %v5551_v59 }
 0x619   :  { %5618 = vst [vmem:[#allocation6 + $0x70] sm:$0xff] %v5600_v6 }
 0x61e   :  { %v5601_v39 = vpop.f32.mrf.mxu2 }
 0x61f   :  { %v5602_v48 = vadd.f32 %v5601_v39, %v5553_v56 }
 0x621   :  { %5619 = vst [vmem:[#allocation6 + $0x78] sm:$0xff] %v5602_v48 }
 0x622   :  { %5632 = dma.vmem_to_hbm [thread:$0]  %s5625_s19, 2048, %s5627_s21, [#allocation7], %s7312_s22, %s7312_s22, %s7313_s23  }
 0x623   :  { %7305 = dma.done.wait [#allocation7], 2048  }
 0x624   :  { %7306 = vsyncadd [#allocation7], 4294965248 }
 0x625   :  { %5637 = vsyncpa [#allocation7], 1 }

</bundles_post_ra>
